<compile_context>
chip_gen: v7x
topology: tpu7x:2x2x1
jax: 0.10.0
libtpu: 0.0.40
codegen_flags: <defaults>
</compile_context>

<pallas_src>
import functools

import numpy as np
import jax
import jax.numpy as jnp
from jax.experimental import pallas as pl
from jax.experimental.pallas import tpu as pltpu

# ----------------------------- configuration -----------------------------
NET_PARAMS = dict(
    norm=None,                  # -> Identity
    non_linearity="ReLU",
    affine=True,
    base=4,
    multiplier_chan=2.0,
    max_chan=8,
    num_features_encoding=16,
    upconv_chan=4,
    upconv_size=2,
    upscale_blocks=1,
    scale_tanh=1.0,
)
SIZE_INPUT = (2, 3, 16, 16)     # (B, C, H, W), square -> pad/crop are Identity


# -------------------- host-side operator construction --------------------
def _bilinear_matrix_np(in_size, out_size):
    """Row-interp matrix matching F.interpolate(mode='bilinear', align_corners=False)."""
    i = np.arange(out_size, dtype=np.float64)
    src = (i + 0.5) * (in_size / out_size) - 0.5
    src = np.clip(src, 0.0, in_size - 1)
    lo = np.floor(src).astype(np.int64)
    hi = np.minimum(lo + 1, in_size - 1)
    frac = src - lo
    L = np.zeros((out_size, in_size), np.float32)
    L[np.arange(out_size), lo] += (1.0 - frac).astype(np.float32)
    L[np.arange(out_size), hi] += frac.astype(np.float32)
    return L


def _conv_sel_np(H, W, stride):
    """sel[kh,kw,h,w,oh,ow] = 1 iff input (h,w) feeds output (oh,ow) through tap (kh,kw)."""
    Ho = (H + 2 - 3) // stride + 1
    Wo = (W + 2 - 3) // stride + 1
    sel = np.zeros((3, 3, H, W, Ho, Wo), np.float32)
    for kh in range(3):
        for kw in range(3):
            for oh in range(Ho):
                h = oh * stride + kh - 1
                if h < 0 or h >= H:
                    continue
                for ow in range(Wo):
                    w = ow * stride + kw - 1
                    if w < 0 or w >= W:
                        continue
                    sel[kh, kw, h, w, oh, ow] = 1.0
    return sel, Ho, Wo


def _conv_layer_op_np(w, b, H, W, stride):
    """3x3 conv (pad=1) as a dense (Cin*H*W, Cout*Ho*Wo) matmul on flat NCHW activations."""
    w = np.asarray(w, np.float32)
    b = np.asarray(b, np.float32)
    cin, cout = w.shape[2], w.shape[3]
    sel, Ho, Wo = _conv_sel_np(H, W, stride)
    op = np.einsum("abhwpq,abcd->chwdpq", sel, w, optimize=True)
    op = op.reshape(cin * H * W, cout * Ho * Wo)
    bias = np.repeat(b, Ho * Wo)                      # index = cout*Ho*Wo + oh*Wo + ow
    return op, bias, Ho, Wo


def _upsample_op_np(C, H, W):
    """Nearest x2 upsample as a dense (C*H*W, C*2H*2W) selection matrix."""
    U = np.zeros((C, H, W, C, 2 * H, 2 * W), np.float32)
    for c in range(C):
        for oh in range(2 * H):
            for ow in range(2 * W):
                U[c, oh // 2, ow // 2, c, oh, ow] = 1.0
    return U.reshape(C * H * W, C * 4 * H * W)


def _resize_op_np(C, Hin, Win, Hout, Wout):
    """Per-channel bilinear resize as a dense (C*Hin*Win, C*Hout*Wout) matrix."""
    Lh = _bilinear_matrix_np(Hin, Hout)
    Lw = _bilinear_matrix_np(Win, Wout)
    R4 = np.einsum("ph,qw->hwpq", Lh, Lw)
    out = np.zeros((C, Hin, Win, C, Hout, Wout), np.float32)
    for c in range(C):
        out[c, :, :, c, :, :] = R4
    return out.reshape(C * Hin * Win, C * Hout * Wout)


def build_fused_layers(params):
    """Lower every layer of the Encoder forward into one (K_l, N_l) matmul operator.

    Returns (ops, bias_pack, acts, enc_index):
      ops       : list of bf16 (K_l, N_l) operators (kernel inputs, VMEM-resident)
      bias_pack : f32 (num_layers, max_N) lane-aligned bias table (one kernel input)
      acts      : per-layer activation tag ('relu' | 'tanh' | 'none')
      enc_index : layer index whose output is the encoding (second kernel output)
    """
    ops, biases, acts = [], [], []

    def add(op, bias, act):
        ops.append(jnp.asarray(np.asarray(op, np.float32)).astype(jnp.bfloat16))
        biases.append(np.asarray(bias, np.float32).reshape(-1))
        acts.append(act)

    H = W = SIZE_INPUT[-2]

    # conv1: 3 -> base, stride 1, ReLU
    w, b = params["conv1"]
    op, bias, H, W = _conv_layer_op_np(w, b, H, W, 1)
    add(op, bias, "relu")

    # conv2: 6 blocks of [conv s1, conv s1, conv s2], all ReLU
    for (w, b, s) in params["conv2"]:
        op, bias, H, W = _conv_layer_op_np(w, b, H, W, s)
        add(op, bias, "relu")

    # conv_enc: View([-1]) -> Linear -> TanhMod   (spatial is already 1x1)
    add(np.asarray(params["enc_w"]), np.asarray(params["enc_b"]), "tanh")
    enc_index = len(ops) - 1

    # upconv1: Linear -> View([c,h,w]) -> ReLU -> ConvBlock
    add(np.asarray(params["up_lin_w"]), np.asarray(params["up_lin_b"]), "relu")
    uc, us = NET_PARAMS["upconv_chan"], NET_PARAMS["upconv_size"]
    H = W = us
    w, b = params["upconv1_conv"]
    op, bias, H, W = _conv_layer_op_np(w, b, H, W, 1)
    add(op, bias, "relu")

    # upconv2: [Upsample(x2, nearest) -> ConvBlock -> ConvBlock] * upscale_blocks
    for (wb1, wb2) in params["upconv2"]:
        cin = int(np.asarray(wb1[0]).shape[2])
        U = _upsample_op_np(cin, H, W)
        H, W = 2 * H, 2 * W
        op1, bias1, H, W = _conv_layer_op_np(wb1[0], wb1[1], H, W, 1)
        add(U @ op1, bias1, "relu")                   # upsample folded into the conv
        op2, bias2, H, W = _conv_layer_op_np(wb2[0], wb2[1], H, W, 1)
        add(op2, bias2, "relu")

    # upconv_rec: Identity norm -> Conv2d(chan, 3) (no nonlin) -> bilinear resize (folded)
    w, b = params["rec_conv"]
    opr, biasr, Hc, Wc = _conv_layer_op_np(w, b, H, W, 1)
    R = _resize_op_np(3, Hc, Wc, SIZE_INPUT[-2], SIZE_INPUT[-1])
    add(opr @ R, biasr @ R, "none")

    # pack all per-layer biases into one lane-aligned f32 table (row l = layer l)
    max_n = max(bv.shape[0] for bv in biases)
    max_n = ((max_n + 127) // 128) * 128
    bias_pack = np.zeros((len(biases), max_n), np.float32)
    for i, bv in enumerate(biases):
        bias_pack[i, : bv.shape[0]] = bv

    return ops, jnp.asarray(bias_pack), tuple(acts), enc_index


# -------------------------- fused Pallas kernel ---------------------------
def _fused_encoder_kernel(x_ref, bias_ref, *rest, ns, acts, enc_index, scale_tanh):
    """One batch row: chain of <num_layers> MXU matmuls, all operands resident in VMEM.

    bf16 operands (v6e/v7x-native MXU), f32 accumulation, f32 bias/ReLU/Tanh epilogue
    (v5e VPU/EUP have no bf16 path), cast back to bf16 only for the next matmul.
    """
    num_layers = len(ns)
    op_refs = rest[:num_layers]
    enc_ref = rest[num_layers]
    rec_ref = rest[num_layers + 1]

    h = x_ref[0].astype(jnp.bfloat16)                 # (1, K0) — this grid step's batch row
    out_f32 = None
    for li in range(num_layers):
        acc = jnp.dot(h, op_refs[li][...], preferred_element_type=jnp.float32)
        acc = acc + bias_ref[li:li + 1, :ns[li]]      # f32 epilogue
        act = acts[li]
        if act == "relu":
            acc = jnp.maximum(acc, 0.0)
        elif act == "tanh":
            acc = jnp.tanh(acc) * scale_tanh
        if li == enc_index:
            enc_ref[0] = acc.astype(enc_ref.dtype)
        h = acc.astype(jnp.bfloat16)
        out_f32 = acc
    rec_ref[0] = out_f32.astype(rec_ref.dtype)


def encoder_forward_fused(ops, bias_pack, acts, enc_index, x_nchw):
    """Single pallas_call for the whole Encoder forward.  Returns (encoding, reconstruction)."""
    B = x_nchw.shape[0]
    k0 = int(np.prod(x_nchw.shape[1:]))
    ns = tuple(int(op.shape[1]) for op in ops)
    n_enc, n_rec = ns[enc_index], ns[-1]
    num_layers = len(ops)

    # NCHW row-major flatten == the (c, h, w) ordering of the operators.
    x_flat = x_nchw.reshape(B, 1, k0).astype(jnp.float32)

    kernel = functools.partial(
        _fused_encoder_kernel,
        ns=ns, acts=tuple(acts), enc_index=enc_index,
        scale_tanh=float(NET_PARAMS["scale_tanh"]),
    )

    in_specs = [pl.BlockSpec((1, 1, k0), lambda b: (b, 0, 0)),          # per-batch row of x
                pl.BlockSpec(tuple(bias_pack.shape), lambda b: (0, 0))]  # bias table (resident)
    in_specs += [pl.BlockSpec(tuple(op.shape), lambda b: (0, 0))         # operators (resident)
                 for op in ops]
    out_specs = [pl.BlockSpec((1, 1, n_enc), lambda b: (b, 0, 0)),
                 pl.BlockSpec((1, 1, n_rec), lambda b: (b, 0, 0))]
    out_shape = (jax.ShapeDtypeStruct((B, 1, n_enc), jnp.float32),
                 jax.ShapeDtypeStruct((B, 1, n_rec), jnp.float32))

    enc, rec = pl.pallas_call(
        kernel,
        out_shape=out_shape,
        grid_spec=pltpu.PrefetchScalarGridSpec(
            num_scalar_prefetch=0,
            grid=(B,),
            in_specs=in_specs,
            out_specs=out_specs,
        ),
        compiler_params=pltpu.CompilerParams(
            dimension_semantics=("parallel",),        # batch rows -> both TCs on v7x
            vmem_limit_bytes=40 * 1024 * 1024,
        ),
    )(x_flat, bias_pack, *ops)

    enc = enc.reshape(B, n_enc)
    rec = rec.reshape(B, 3, SIZE_INPUT[-2], SIZE_INPUT[-1])   # flat layout is already NCHW
    return enc, rec


# ------------------------------ parameters ------------------------------
def init_params(key):
    keys = iter(jax.random.split(key, 64))

    def conv_init(k, cin, cout):
        k1, k2 = jax.random.split(k)
        std = (2.0 / (9 * cin)) ** 0.5
        return (jax.random.normal(k1, (3, 3, cin, cout), jnp.float32) * std,
                jax.random.normal(k2, (cout,), jnp.float32) * 0.05)

    def lin_init(k, fin, fout):
        k1, k2 = jax.random.split(k)
        std = (2.0 / fin) ** 0.5
        return (jax.random.normal(k1, (fin, fout), jnp.float32) * std,
                jax.random.normal(k2, (fout,), jnp.float32) * 0.05)

    p = {}
    base = NET_PARAMS["base"]
    p["conv1"] = conv_init(next(keys), 3, base)

    conv2 = []
    chan = base
    for _ in range(6):
        new_chan = min(NET_PARAMS["max_chan"], int(chan * NET_PARAMS["multiplier_chan"]))
        w, b = conv_init(next(keys), chan, chan); conv2.append((w, b, 1))
        w, b = conv_init(next(keys), chan, chan); conv2.append((w, b, 1))
        w, b = conv_init(next(keys), chan, new_chan); conv2.append((w, b, 2))
        chan = new_chan
    p["conv2"] = conv2

    pre_feat = chan                                   # spatial is 1x1 after conv2
    p["enc_w"], p["enc_b"] = lin_init(next(keys), pre_feat, NET_PARAMS["num_features_encoding"])

    uc, us = NET_PARAMS["upconv_chan"], NET_PARAMS["upconv_size"]
    p["up_lin_w"], p["up_lin_b"] = lin_init(next(keys), NET_PARAMS["num_features_encoding"],
                                            uc * us * us)
    p["upconv1_conv"] = conv_init(next(keys), uc, uc)

    upconv2 = []
    chan = uc
    new_chan = chan
    for i in range(NET_PARAMS["upscale_blocks"]):
        if i >= 3:
            new_chan = int(chan // NET_PARAMS["multiplier_chan"])
        block = (conv_init(next(keys), chan, new_chan),
                 conv_init(next(keys), new_chan, new_chan))
        upconv2.append(block)
        chan = new_chan
    p["upconv2"] = upconv2

    p["rec_conv"] = conv_init(next(keys), chan, 3)
    return p


# --------------------- independent pure-JAX reference ---------------------
def _conv_ref(x, w, b, stride):
    y = jax.lax.conv_general_dilated(
        x, w, window_strides=(stride, stride), padding=((1, 1), (1, 1)),
        dimension_numbers=("NCHW", "HWIO", "NCHW"),
        precision=jax.lax.Precision.HIGHEST)
    return y + b[None, :, None, None]


def reference_forward(params, x):
    relu = lambda t: jnp.maximum(t, 0.0)
    B = x.shape[0]
    h = relu(_conv_ref(x, *params["conv1"], 1))
    for (w, b, s) in params["conv2"]:
        h = relu(_conv_ref(h, w, b, s))
    flat = h.reshape(B, -1)
    enc = jnp.tanh(flat @ params["enc_w"] + params["enc_b"]) * NET_PARAMS["scale_tanh"]

    uc, us = NET_PARAMS["upconv_chan"], NET_PARAMS["upconv_size"]
    d = relu(enc @ params["up_lin_w"] + params["up_lin_b"]).reshape(B, uc, us, us)
    d = relu(_conv_ref(d, *params["upconv1_conv"], 1))
    for block in params["upconv2"]:
        d = jnp.repeat(jnp.repeat(d, 2, axis=2), 2, axis=3)
        for (w, b) in block:
            d = relu(_conv_ref(d, w, b, 1))
    d = _conv_ref(d, *params["rec_conv"], 1)
    Lh = jnp.asarray(_bilinear_matrix_np(d.shape[2], SIZE_INPUT[-2]))
    Lw = jnp.asarray(_bilinear_matrix_np(d.shape[3], SIZE_INPUT[-1]))
    d = jnp.einsum("ph,bchw,qw->bcpq", Lh, d, Lw, precision=jax.lax.Precision.HIGHEST)
    return enc, d


# --------------------------------- main ---------------------------------
if __name__ == "__main__":
    key = jax.random.PRNGKey(0)
    pkey, xkey = jax.random.split(key)
    params = init_params(pkey)
    x = jax.random.normal(xkey, SIZE_INPUT, jnp.float32)

    ops, bias_pack, acts, enc_index = build_fused_layers(params)

    fwd = jax.jit(lambda inp: encoder_forward_fused(ops, bias_pack, acts, enc_index, inp))
    enc, rec = fwd(x)
    enc = jax.block_until_ready(enc)
    rec = jax.block_until_ready(rec)

    assert enc.shape == (SIZE_INPUT[0], NET_PARAMS["num_features_encoding"]), enc.shape
    assert rec.shape == SIZE_INPUT, rec.shape
    assert bool(jnp.all(jnp.isfinite(enc))) and bool(jnp.all(jnp.isfinite(rec)))

    # numerical check against a straightforward lax-based reference (f32)
    enc_ref, rec_ref = jax.jit(lambda inp: reference_forward(params, inp))(x)

    def rel_err(a, b):
        return float(jnp.linalg.norm(a - b) / (jnp.linalg.norm(b) + 1e-6))

    assert rel_err(enc, enc_ref) < 5e-2, rel_err(enc, enc_ref)
    assert rel_err(rec, rec_ref) < 5e-2, rel_err(rec, rec_ref)

    print("KERNEL_OK")
</pallas_src>

<mosaic_0001>
module attributes {stable_mosaic.version = 11 : i64} {
  func.func @_fused_encoder_kernel(%arg0: i32, %arg1: memref<1x1x768xf32, #tpu.memory_space<vmem>>, %arg2: memref<25x1024xf32, #tpu.memory_space<vmem>>, %arg3: memref<768x1024xbf16, #tpu.memory_space<vmem>>, %arg4: memref<1024x1024xbf16, #tpu.memory_space<vmem>>, %arg5: memref<1024x1024xbf16, #tpu.memory_space<vmem>>, %arg6: memref<1024x512xbf16, #tpu.memory_space<vmem>>, %arg7: memref<512x512xbf16, #tpu.memory_space<vmem>>, %arg8: memref<512x512xbf16, #tpu.memory_space<vmem>>, %arg9: memref<512x128xbf16, #tpu.memory_space<vmem>>, %arg10: memref<128x128xbf16, #tpu.memory_space<vmem>>, %arg11: memref<128x128xbf16, #tpu.memory_space<vmem>>, %arg12: memref<128x32xbf16, #tpu.memory_space<vmem>>, %arg13: memref<32x32xbf16, #tpu.memory_space<vmem>>, %arg14: memref<32x32xbf16, #tpu.memory_space<vmem>>, %arg15: memref<32x8xbf16, #tpu.memory_space<vmem>>, %arg16: memref<8x8xbf16, #tpu.memory_space<vmem>>, %arg17: memref<8x8xbf16, #tpu.memory_space<vmem>>, %arg18: memref<8x8xbf16, #tpu.memory_space<vmem>>, %arg19: memref<8x8xbf16, #tpu.memory_space<vmem>>, %arg20: memref<8x8xbf16, #tpu.memory_space<vmem>>, %arg21: memref<8x8xbf16, #tpu.memory_space<vmem>>, %arg22: memref<8x16xbf16, #tpu.memory_space<vmem>>, %arg23: memref<16x16xbf16, #tpu.memory_space<vmem>>, %arg24: memref<16x16xbf16, #tpu.memory_space<vmem>>, %arg25: memref<16x64xbf16, #tpu.memory_space<vmem>>, %arg26: memref<64x64xbf16, #tpu.memory_space<vmem>>, %arg27: memref<64x768xbf16, #tpu.memory_space<vmem>>, %arg28: memref<1x1x16xf32, #tpu.memory_space<vmem>>, %arg29: memref<1x1x768xf32, #tpu.memory_space<vmem>>) attributes {dimension_semantics = [#tpu.dimension_semantics<parallel>], iteration_bounds = array<i64: 2>, scalar_prefetch = 0 : i64, scratch_operands = 0 : i64, tpu.core_type = #tpu.core_type<tc>, window_params = [{transform_indices = @transform_0, window_bounds = array<i64: 1, 1, 768>}, {pipeline_mode = #tpu.pipeline_mode<synchronous>, transform_indices = @transform_1, window_bounds = array<i64: 25, 1024>}, {pipeline_mode = #tpu.pipeline_mode<synchronous>, transform_indices = @transform_2, window_bounds = array<i64: 768, 1024>}, {pipeline_mode = #tpu.pipeline_mode<synchronous>, transform_indices = @transform_3, window_bounds = array<i64: 1024, 1024>}, {pipeline_mode = #tpu.pipeline_mode<synchronous>, transform_indices = @transform_4, window_bounds = array<i64: 1024, 1024>}, {pipeline_mode = #tpu.pipeline_mode<synchronous>, transform_indices = @transform_5, window_bounds = array<i64: 1024, 512>}, {pipeline_mode = #tpu.pipeline_mode<synchronous>, transform_indices = @transform_6, window_bounds = array<i64: 512, 512>}, {pipeline_mode = #tpu.pipeline_mode<synchronous>, transform_indices = @transform_7, window_bounds = array<i64: 512, 512>}, {pipeline_mode = #tpu.pipeline_mode<synchronous>, transform_indices = @transform_8, window_bounds = array<i64: 512, 128>}, {pipeline_mode = #tpu.pipeline_mode<synchronous>, transform_indices = @transform_9, window_bounds = array<i64: 128, 128>}, {pipeline_mode = #tpu.pipeline_mode<synchronous>, transform_indices = @transform_10, window_bounds = array<i64: 128, 128>}, {pipeline_mode = #tpu.pipeline_mode<synchronous>, transform_indices = @transform_11, window_bounds = array<i64: 128, 32>}, {pipeline_mode = #tpu.pipeline_mode<synchronous>, transform_indices = @transform_12, window_bounds = array<i64: 32, 32>}, {pipeline_mode = #tpu.pipeline_mode<synchronous>, transform_indices = @transform_13, window_bounds = array<i64: 32, 32>}, {pipeline_mode = #tpu.pipeline_mode<synchronous>, transform_indices = @transform_14, window_bounds = array<i64: 32, 8>}, {pipeline_mode = #tpu.pipeline_mode<synchronous>, transform_indices = @transform_15, window_bounds = array<i64: 8, 8>}, {pipeline_mode = #tpu.pipeline_mode<synchronous>, transform_indices = @transform_16, window_bounds = array<i64: 8, 8>}, {pipeline_mode = #tpu.pipeline_mode<synchronous>, transform_indices = @transform_17, window_bounds = array<i64: 8, 8>}, {pipeline_mode = #tpu.pipeline_mode<synchronous>, transform_indices = @transform_18, window_bounds = array<i64: 8, 8>}, {pipeline_mode = #tpu.pipeline_mode<synchronous>, transform_indices = @transform_19, window_bounds = array<i64: 8, 8>}, {pipeline_mode = #tpu.pipeline_mode<synchronous>, transform_indices = @transform_20, window_bounds = array<i64: 8, 8>}, {pipeline_mode = #tpu.pipeline_mode<synchronous>, transform_indices = @transform_21, window_bounds = array<i64: 8, 16>}, {pipeline_mode = #tpu.pipeline_mode<synchronous>, transform_indices = @transform_22, window_bounds = array<i64: 16, 16>}, {pipeline_mode = #tpu.pipeline_mode<synchronous>, transform_indices = @transform_23, window_bounds = array<i64: 16, 16>}, {pipeline_mode = #tpu.pipeline_mode<synchronous>, transform_indices = @transform_24, window_bounds = array<i64: 16, 64>}, {pipeline_mode = #tpu.pipeline_mode<synchronous>, transform_indices = @transform_25, window_bounds = array<i64: 64, 64>}, {pipeline_mode = #tpu.pipeline_mode<synchronous>, transform_indices = @transform_26, window_bounds = array<i64: 64, 768>}, {transform_indices = @transform_27, window_bounds = array<i64: 1, 1, 16>}, {transform_indices = @transform_28, window_bounds = array<i64: 1, 1, 768>}]} {
    %c0 = arith.constant 0 : index
    %c0_0 = arith.constant 0 : index
    %c0_1 = arith.constant 0 : index
    %0 = vector.load %arg1[%c0, %c0_0, %c0_1] : memref<1x1x768xf32, #tpu.memory_space<vmem>>, vector<1x1x768xf32>
    %1 = vector.shape_cast %0 : vector<1x1x768xf32> to vector<1x768xf32>
    %2 = arith.truncf %1 : vector<1x768xf32> to vector<1x768xbf16>
    %c0_2 = arith.constant 0 : index
    %c0_3 = arith.constant 0 : index
    %3 = vector.load %arg3[%c0_2, %c0_3] : memref<768x1024xbf16, #tpu.memory_space<vmem>>, vector<768x1024xbf16>
    %cst = arith.constant dense<0.000000e+00> : vector<1x1024xf32>
    %4 = tpu.matmul %2, %3, %cst {dimension_numbers = #tpu.dot_dimension_numbers<[1], [0], [0], [1], [0, 0, 1, 1], [], []>} : vector<1x768xbf16>, vector<768x1024xbf16>, vector<1x1024xf32> -> vector<1x1024xf32>
    %c0_4 = arith.constant 0 : index
    %c0_5 = arith.constant 0 : index
    %5 = vector.load %arg2[%c0_4, %c0_5] : memref<25x1024xf32, #tpu.memory_space<vmem>>, vector<1x1024xf32>
    %6 = arith.addf %4, %5 : vector<1x1024xf32>
    %cst_6 = arith.constant 0.000000e+00 : f32
    %7 = vector.broadcast %cst_6 : f32 to vector<1x1024xf32>
    %8 = arith.maximumf %6, %7 : vector<1x1024xf32>
    %9 = arith.truncf %8 : vector<1x1024xf32> to vector<1x1024xbf16>
    %c0_7 = arith.constant 0 : index
    %c0_8 = arith.constant 0 : index
    %10 = vector.load %arg4[%c0_7, %c0_8] : memref<1024x1024xbf16, #tpu.memory_space<vmem>>, vector<1024x1024xbf16>
    %cst_9 = arith.constant dense<0.000000e+00> : vector<1x1024xf32>
    %11 = tpu.matmul %9, %10, %cst_9 {dimension_numbers = #tpu.dot_dimension_numbers<[1], [0], [0], [1], [0, 0, 1, 1], [], []>} : vector<1x1024xbf16>, vector<1024x1024xbf16>, vector<1x1024xf32> -> vector<1x1024xf32>
    %c1 = arith.constant 1 : index
    %c0_10 = arith.constant 0 : index
    %12 = vector.load %arg2[%c1, %c0_10] : memref<25x1024xf32, #tpu.memory_space<vmem>>, vector<1x1024xf32>
    %13 = arith.addf %11, %12 : vector<1x1024xf32>
    %cst_11 = arith.constant 0.000000e+00 : f32
    %14 = vector.broadcast %cst_11 : f32 to vector<1x1024xf32>
    %15 = arith.maximumf %13, %14 : vector<1x1024xf32>
    %16 = arith.truncf %15 : vector<1x1024xf32> to vector<1x1024xbf16>
    %c0_12 = arith.constant 0 : index
    %c0_13 = arith.constant 0 : index
    %17 = vector.load %arg5[%c0_12, %c0_13] : memref<1024x1024xbf16, #tpu.memory_space<vmem>>, vector<1024x1024xbf16>
    %cst_14 = arith.constant dense<0.000000e+00> : vector<1x1024xf32>
    %18 = tpu.matmul %16, %17, %cst_14 {dimension_numbers = #tpu.dot_dimension_numbers<[1], [0], [0], [1], [0, 0, 1, 1], [], []>} : vector<1x1024xbf16>, vector<1024x1024xbf16>, vector<1x1024xf32> -> vector<1x1024xf32>
    %c2 = arith.constant 2 : index
    %c0_15 = arith.constant 0 : index
    %19 = vector.load %arg2[%c2, %c0_15] : memref<25x1024xf32, #tpu.memory_space<vmem>>, vector<1x1024xf32>
    %20 = arith.addf %18, %19 : vector<1x1024xf32>
    %cst_16 = arith.constant 0.000000e+00 : f32
    %21 = vector.broadcast %cst_16 : f32 to vector<1x1024xf32>
    %22 = arith.maximumf %20, %21 : vector<1x1024xf32>
    %23 = arith.truncf %22 : vector<1x1024xf32> to vector<1x1024xbf16>
    %c0_17 = arith.constant 0 : index
    %c0_18 = arith.constant 0 : index
    %24 = vector.load %arg6[%c0_17, %c0_18] : memref<1024x512xbf16, #tpu.memory_space<vmem>>, vector<1024x512xbf16>
    %cst_19 = arith.constant dense<0.000000e+00> : vector<1x512xf32>
    %25 = tpu.matmul %23, %24, %cst_19 {dimension_numbers = #tpu.dot_dimension_numbers<[1], [0], [0], [1], [0, 0, 1, 1], [], []>} : vector<1x1024xbf16>, vector<1024x512xbf16>, vector<1x512xf32> -> vector<1x512xf32>
    %c3 = arith.constant 3 : index
    %c0_20 = arith.constant 0 : index
    %26 = vector.load %arg2[%c3, %c0_20] : memref<25x1024xf32, #tpu.memory_space<vmem>>, vector<1x512xf32>
    %27 = arith.addf %25, %26 : vector<1x512xf32>
    %cst_21 = arith.constant 0.000000e+00 : f32
    %28 = vector.broadcast %cst_21 : f32 to vector<1x512xf32>
    %29 = arith.maximumf %27, %28 : vector<1x512xf32>
    %30 = arith.truncf %29 : vector<1x512xf32> to vector<1x512xbf16>
    %c0_22 = arith.constant 0 : index
    %c0_23 = arith.constant 0 : index
    %31 = vector.load %arg7[%c0_22, %c0_23] : memref<512x512xbf16, #tpu.memory_space<vmem>>, vector<512x512xbf16>
    %cst_24 = arith.constant dense<0.000000e+00> : vector<1x512xf32>
    %32 = tpu.matmul %30, %31, %cst_24 {dimension_numbers = #tpu.dot_dimension_numbers<[1], [0], [0], [1], [0, 0, 1, 1], [], []>} : vector<1x512xbf16>, vector<512x512xbf16>, vector<1x512xf32> -> vector<1x512xf32>
    %c4 = arith.constant 4 : index
    %c0_25 = arith.constant 0 : index
    %33 = vector.load %arg2[%c4, %c0_25] : memref<25x1024xf32, #tpu.memory_space<vmem>>, vector<1x512xf32>
    %34 = arith.addf %32, %33 : vector<1x512xf32>
    %cst_26 = arith.constant 0.000000e+00 : f32
    %35 = vector.broadcast %cst_26 : f32 to vector<1x512xf32>
    %36 = arith.maximumf %34, %35 : vector<1x512xf32>
    %37 = arith.truncf %36 : vector<1x512xf32> to vector<1x512xbf16>
    %c0_27 = arith.constant 0 : index
    %c0_28 = arith.constant 0 : index
    %38 = vector.load %arg8[%c0_27, %c0_28] : memref<512x512xbf16, #tpu.memory_space<vmem>>, vector<512x512xbf16>
    %cst_29 = arith.constant dense<0.000000e+00> : vector<1x512xf32>
    %39 = tpu.matmul %37, %38, %cst_29 {dimension_numbers = #tpu.dot_dimension_numbers<[1], [0], [0], [1], [0, 0, 1, 1], [], []>} : vector<1x512xbf16>, vector<512x512xbf16>, vector<1x512xf32> -> vector<1x512xf32>
    %c5 = arith.constant 5 : index
    %c0_30 = arith.constant 0 : index
    %40 = vector.load %arg2[%c5, %c0_30] : memref<25x1024xf32, #tpu.memory_space<vmem>>, vector<1x512xf32>
    %41 = arith.addf %39, %40 : vector<1x512xf32>
    %cst_31 = arith.constant 0.000000e+00 : f32
    %42 = vector.broadcast %cst_31 : f32 to vector<1x512xf32>
    %43 = arith.maximumf %41, %42 : vector<1x512xf32>
    %44 = arith.truncf %43 : vector<1x512xf32> to vector<1x512xbf16>
    %c0_32 = arith.constant 0 : index
    %c0_33 = arith.constant 0 : index
    %45 = vector.load %arg9[%c0_32, %c0_33] : memref<512x128xbf16, #tpu.memory_space<vmem>>, vector<512x128xbf16>
    %cst_34 = arith.constant dense<0.000000e+00> : vector<1x128xf32>
    %46 = tpu.matmul %44, %45, %cst_34 {dimension_numbers = #tpu.dot_dimension_numbers<[1], [0], [0], [1], [0, 0, 1, 1], [], []>} : vector<1x512xbf16>, vector<512x128xbf16>, vector<1x128xf32> -> vector<1x128xf32>
    %c6 = arith.constant 6 : index
    %c0_35 = arith.constant 0 : index
    %47 = vector.load %arg2[%c6, %c0_35] : memref<25x1024xf32, #tpu.memory_space<vmem>>, vector<1x128xf32>
    %48 = arith.addf %46, %47 : vector<1x128xf32>
    %cst_36 = arith.constant 0.000000e+00 : f32
    %49 = vector.broadcast %cst_36 : f32 to vector<1x128xf32>
    %50 = arith.maximumf %48, %49 : vector<1x128xf32>
    %51 = arith.truncf %50 : vector<1x128xf32> to vector<1x128xbf16>
    %c0_37 = arith.constant 0 : index
    %c0_38 = arith.constant 0 : index
    %52 = vector.load %arg10[%c0_37, %c0_38] : memref<128x128xbf16, #tpu.memory_space<vmem>>, vector<128x128xbf16>
    %cst_39 = arith.constant dense<0.000000e+00> : vector<1x128xf32>
    %53 = tpu.matmul %51, %52, %cst_39 {dimension_numbers = #tpu.dot_dimension_numbers<[1], [0], [0], [1], [0, 0, 1, 1], [], []>} : vector<1x128xbf16>, vector<128x128xbf16>, vector<1x128xf32> -> vector<1x128xf32>
    %c7 = arith.constant 7 : index
    %c0_40 = arith.constant 0 : index
    %54 = vector.load %arg2[%c7, %c0_40] : memref<25x1024xf32, #tpu.memory_space<vmem>>, vector<1x128xf32>
    %55 = arith.addf %53, %54 : vector<1x128xf32>
    %cst_41 = arith.constant 0.000000e+00 : f32
    %56 = vector.broadcast %cst_41 : f32 to vector<1x128xf32>
    %57 = arith.maximumf %55, %56 : vector<1x128xf32>
    %58 = arith.truncf %57 : vector<1x128xf32> to vector<1x128xbf16>
    %c0_42 = arith.constant 0 : index
    %c0_43 = arith.constant 0 : index
    %59 = vector.load %arg11[%c0_42, %c0_43] : memref<128x128xbf16, #tpu.memory_space<vmem>>, vector<128x128xbf16>
    %cst_44 = arith.constant dense<0.000000e+00> : vector<1x128xf32>
    %60 = tpu.matmul %58, %59, %cst_44 {dimension_numbers = #tpu.dot_dimension_numbers<[1], [0], [0], [1], [0, 0, 1, 1], [], []>} : vector<1x128xbf16>, vector<128x128xbf16>, vector<1x128xf32> -> vector<1x128xf32>
    %c8 = arith.constant 8 : index
    %c0_45 = arith.constant 0 : index
    %61 = vector.load %arg2[%c8, %c0_45] : memref<25x1024xf32, #tpu.memory_space<vmem>>, vector<1x128xf32>
    %62 = arith.addf %60, %61 : vector<1x128xf32>
    %cst_46 = arith.constant 0.000000e+00 : f32
    %63 = vector.broadcast %cst_46 : f32 to vector<1x128xf32>
    %64 = arith.maximumf %62, %63 : vector<1x128xf32>
    %65 = arith.truncf %64 : vector<1x128xf32> to vector<1x128xbf16>
    %c0_47 = arith.constant 0 : index
    %c0_48 = arith.constant 0 : index
    %66 = vector.load %arg12[%c0_47, %c0_48] : memref<128x32xbf16, #tpu.memory_space<vmem>>, vector<128x32xbf16>
    %cst_49 = arith.constant dense<0.000000e+00> : vector<1x32xf32>
    %67 = tpu.matmul %65, %66, %cst_49 {dimension_numbers = #tpu.dot_dimension_numbers<[1], [0], [0], [1], [0, 0, 1, 1], [], []>} : vector<1x128xbf16>, vector<128x32xbf16>, vector<1x32xf32> -> vector<1x32xf32>
    %c9 = arith.constant 9 : index
    %c0_50 = arith.constant 0 : index
    %68 = vector.load %arg2[%c9, %c0_50] : memref<25x1024xf32, #tpu.memory_space<vmem>>, vector<1x32xf32>
    %69 = arith.addf %67, %68 : vector<1x32xf32>
    %cst_51 = arith.constant 0.000000e+00 : f32
    %70 = vector.broadcast %cst_51 : f32 to vector<1x32xf32>
    %71 = arith.maximumf %69, %70 : vector<1x32xf32>
    %72 = arith.truncf %71 : vector<1x32xf32> to vector<1x32xbf16>
    %c0_52 = arith.constant 0 : index
    %c0_53 = arith.constant 0 : index
    %73 = vector.load %arg13[%c0_52, %c0_53] : memref<32x32xbf16, #tpu.memory_space<vmem>>, vector<32x32xbf16>
    %cst_54 = arith.constant dense<0.000000e+00> : vector<1x32xf32>
    %74 = tpu.matmul %72, %73, %cst_54 {dimension_numbers = #tpu.dot_dimension_numbers<[1], [0], [0], [1], [0, 0, 1, 1], [], []>} : vector<1x32xbf16>, vector<32x32xbf16>, vector<1x32xf32> -> vector<1x32xf32>
    %c10 = arith.constant 10 : index
    %c0_55 = arith.constant 0 : index
    %75 = vector.load %arg2[%c10, %c0_55] : memref<25x1024xf32, #tpu.memory_space<vmem>>, vector<1x32xf32>
    %76 = arith.addf %74, %75 : vector<1x32xf32>
    %cst_56 = arith.constant 0.000000e+00 : f32
    %77 = vector.broadcast %cst_56 : f32 to vector<1x32xf32>
    %78 = arith.maximumf %76, %77 : vector<1x32xf32>
    %79 = arith.truncf %78 : vector<1x32xf32> to vector<1x32xbf16>
    %c0_57 = arith.constant 0 : index
    %c0_58 = arith.constant 0 : index
    %80 = vector.load %arg14[%c0_57, %c0_58] : memref<32x32xbf16, #tpu.memory_space<vmem>>, vector<32x32xbf16>
    %cst_59 = arith.constant dense<0.000000e+00> : vector<1x32xf32>
    %81 = tpu.matmul %79, %80, %cst_59 {dimension_numbers = #tpu.dot_dimension_numbers<[1], [0], [0], [1], [0, 0, 1, 1], [], []>} : vector<1x32xbf16>, vector<32x32xbf16>, vector<1x32xf32> -> vector<1x32xf32>
    %c11 = arith.constant 11 : index
    %c0_60 = arith.constant 0 : index
    %82 = vector.load %arg2[%c11, %c0_60] : memref<25x1024xf32, #tpu.memory_space<vmem>>, vector<1x32xf32>
    %83 = arith.addf %81, %82 : vector<1x32xf32>
    %cst_61 = arith.constant 0.000000e+00 : f32
    %84 = vector.broadcast %cst_61 : f32 to vector<1x32xf32>
    %85 = arith.maximumf %83, %84 : vector<1x32xf32>
    %86 = arith.truncf %85 : vector<1x32xf32> to vector<1x32xbf16>
    %c0_62 = arith.constant 0 : index
    %c0_63 = arith.constant 0 : index
    %87 = vector.load %arg15[%c0_62, %c0_63] : memref<32x8xbf16, #tpu.memory_space<vmem>>, vector<32x8xbf16>
    %cst_64 = arith.constant dense<0.000000e+00> : vector<1x8xf32>
    %88 = tpu.matmul %86, %87, %cst_64 {dimension_numbers = #tpu.dot_dimension_numbers<[1], [0], [0], [1], [0, 0, 1, 1], [], []>} : vector<1x32xbf16>, vector<32x8xbf16>, vector<1x8xf32> -> vector<1x8xf32>
    %c12 = arith.constant 12 : index
    %c0_65 = arith.constant 0 : index
    %89 = vector.load %arg2[%c12, %c0_65] : memref<25x1024xf32, #tpu.memory_space<vmem>>, vector<1x8xf32>
    %90 = arith.addf %88, %89 : vector<1x8xf32>
    %cst_66 = arith.constant 0.000000e+00 : f32
    %91 = vector.broadcast %cst_66 : f32 to vector<1x8xf32>
    %92 = arith.maximumf %90, %91 : vector<1x8xf32>
    %93 = arith.truncf %92 : vector<1x8xf32> to vector<1x8xbf16>
    %c0_67 = arith.constant 0 : index
    %c0_68 = arith.constant 0 : index
    %94 = vector.load %arg16[%c0_67, %c0_68] : memref<8x8xbf16, #tpu.memory_space<vmem>>, vector<8x8xbf16>
    %cst_69 = arith.constant dense<0.000000e+00> : vector<1x8xf32>
    %95 = tpu.matmul %93, %94, %cst_69 {dimension_numbers = #tpu.dot_dimension_numbers<[1], [0], [0], [1], [0, 0, 1, 1], [], []>} : vector<1x8xbf16>, vector<8x8xbf16>, vector<1x8xf32> -> vector<1x8xf32>
    %c13 = arith.constant 13 : index
    %c0_70 = arith.constant 0 : index
    %96 = vector.load %arg2[%c13, %c0_70] : memref<25x1024xf32, #tpu.memory_space<vmem>>, vector<1x8xf32>
    %97 = arith.addf %95, %96 : vector<1x8xf32>
    %cst_71 = arith.constant 0.000000e+00 : f32
    %98 = vector.broadcast %cst_71 : f32 to vector<1x8xf32>
    %99 = arith.maximumf %97, %98 : vector<1x8xf32>
    %100 = arith.truncf %99 : vector<1x8xf32> to vector<1x8xbf16>
    %c0_72 = arith.constant 0 : index
    %c0_73 = arith.constant 0 : index
    %101 = vector.load %arg17[%c0_72, %c0_73] : memref<8x8xbf16, #tpu.memory_space<vmem>>, vector<8x8xbf16>
    %cst_74 = arith.constant dense<0.000000e+00> : vector<1x8xf32>
    %102 = tpu.matmul %100, %101, %cst_74 {dimension_numbers = #tpu.dot_dimension_numbers<[1], [0], [0], [1], [0, 0, 1, 1], [], []>} : vector<1x8xbf16>, vector<8x8xbf16>, vector<1x8xf32> -> vector<1x8xf32>
    %c14 = arith.constant 14 : index
    %c0_75 = arith.constant 0 : index
    %103 = vector.load %arg2[%c14, %c0_75] : memref<25x1024xf32, #tpu.memory_space<vmem>>, vector<1x8xf32>
    %104 = arith.addf %102, %103 : vector<1x8xf32>
    %cst_76 = arith.constant 0.000000e+00 : f32
    %105 = vector.broadcast %cst_76 : f32 to vector<1x8xf32>
    %106 = arith.maximumf %104, %105 : vector<1x8xf32>
    %107 = arith.truncf %106 : vector<1x8xf32> to vector<1x8xbf16>
    %c0_77 = arith.constant 0 : index
    %c0_78 = arith.constant 0 : index
    %108 = vector.load %arg18[%c0_77, %c0_78] : memref<8x8xbf16, #tpu.memory_space<vmem>>, vector<8x8xbf16>
    %cst_79 = arith.constant dense<0.000000e+00> : vector<1x8xf32>
    %109 = tpu.matmul %107, %108, %cst_79 {dimension_numbers = #tpu.dot_dimension_numbers<[1], [0], [0], [1], [0, 0, 1, 1], [], []>} : vector<1x8xbf16>, vector<8x8xbf16>, vector<1x8xf32> -> vector<1x8xf32>
    %c15 = arith.constant 15 : index
    %c0_80 = arith.constant 0 : index
    %110 = vector.load %arg2[%c15, %c0_80] : memref<25x1024xf32, #tpu.memory_space<vmem>>, vector<1x8xf32>
    %111 = arith.addf %109, %110 : vector<1x8xf32>
    %cst_81 = arith.constant 0.000000e+00 : f32
    %112 = vector.broadcast %cst_81 : f32 to vector<1x8xf32>
    %113 = arith.maximumf %111, %112 : vector<1x8xf32>
    %114 = arith.truncf %113 : vector<1x8xf32> to vector<1x8xbf16>
    %c0_82 = arith.constant 0 : index
    %c0_83 = arith.constant 0 : index
    %115 = vector.load %arg19[%c0_82, %c0_83] : memref<8x8xbf16, #tpu.memory_space<vmem>>, vector<8x8xbf16>
    %cst_84 = arith.constant dense<0.000000e+00> : vector<1x8xf32>
    %116 = tpu.matmul %114, %115, %cst_84 {dimension_numbers = #tpu.dot_dimension_numbers<[1], [0], [0], [1], [0, 0, 1, 1], [], []>} : vector<1x8xbf16>, vector<8x8xbf16>, vector<1x8xf32> -> vector<1x8xf32>
    %c16 = arith.constant 16 : index
    %c0_85 = arith.constant 0 : index
    %117 = vector.load %arg2[%c16, %c0_85] : memref<25x1024xf32, #tpu.memory_space<vmem>>, vector<1x8xf32>
    %118 = arith.addf %116, %117 : vector<1x8xf32>
    %cst_86 = arith.constant 0.000000e+00 : f32
    %119 = vector.broadcast %cst_86 : f32 to vector<1x8xf32>
    %120 = arith.maximumf %118, %119 : vector<1x8xf32>
    %121 = arith.truncf %120 : vector<1x8xf32> to vector<1x8xbf16>
    %c0_87 = arith.constant 0 : index
    %c0_88 = arith.constant 0 : index
    %122 = vector.load %arg20[%c0_87, %c0_88] : memref<8x8xbf16, #tpu.memory_space<vmem>>, vector<8x8xbf16>
    %cst_89 = arith.constant dense<0.000000e+00> : vector<1x8xf32>
    %123 = tpu.matmul %121, %122, %cst_89 {dimension_numbers = #tpu.dot_dimension_numbers<[1], [0], [0], [1], [0, 0, 1, 1], [], []>} : vector<1x8xbf16>, vector<8x8xbf16>, vector<1x8xf32> -> vector<1x8xf32>
    %c17 = arith.constant 17 : index
    %c0_90 = arith.constant 0 : index
    %124 = vector.load %arg2[%c17, %c0_90] : memref<25x1024xf32, #tpu.memory_space<vmem>>, vector<1x8xf32>
    %125 = arith.addf %123, %124 : vector<1x8xf32>
    %cst_91 = arith.constant 0.000000e+00 : f32
    %126 = vector.broadcast %cst_91 : f32 to vector<1x8xf32>
    %127 = arith.maximumf %125, %126 : vector<1x8xf32>
    %128 = arith.truncf %127 : vector<1x8xf32> to vector<1x8xbf16>
    %c0_92 = arith.constant 0 : index
    %c0_93 = arith.constant 0 : index
    %129 = vector.load %arg21[%c0_92, %c0_93] : memref<8x8xbf16, #tpu.memory_space<vmem>>, vector<8x8xbf16>
    %cst_94 = arith.constant dense<0.000000e+00> : vector<1x8xf32>
    %130 = tpu.matmul %128, %129, %cst_94 {dimension_numbers = #tpu.dot_dimension_numbers<[1], [0], [0], [1], [0, 0, 1, 1], [], []>} : vector<1x8xbf16>, vector<8x8xbf16>, vector<1x8xf32> -> vector<1x8xf32>
    %c18 = arith.constant 18 : index
    %c0_95 = arith.constant 0 : index
    %131 = vector.load %arg2[%c18, %c0_95] : memref<25x1024xf32, #tpu.memory_space<vmem>>, vector<1x8xf32>
    %132 = arith.addf %130, %131 : vector<1x8xf32>
    %cst_96 = arith.constant 0.000000e+00 : f32
    %133 = vector.broadcast %cst_96 : f32 to vector<1x8xf32>
    %134 = arith.maximumf %132, %133 : vector<1x8xf32>
    %135 = arith.truncf %134 : vector<1x8xf32> to vector<1x8xbf16>
    %c0_97 = arith.constant 0 : index
    %c0_98 = arith.constant 0 : index
    %136 = vector.load %arg22[%c0_97, %c0_98] : memref<8x16xbf16, #tpu.memory_space<vmem>>, vector<8x16xbf16>
    %cst_99 = arith.constant dense<0.000000e+00> : vector<1x16xf32>
    %137 = tpu.matmul %135, %136, %cst_99 {dimension_numbers = #tpu.dot_dimension_numbers<[1], [0], [0], [1], [0, 0, 1, 1], [], []>} : vector<1x8xbf16>, vector<8x16xbf16>, vector<1x16xf32> -> vector<1x16xf32>
    %c19 = arith.constant 19 : index
    %c0_100 = arith.constant 0 : index
    %138 = vector.load %arg2[%c19, %c0_100] : memref<25x1024xf32, #tpu.memory_space<vmem>>, vector<1x16xf32>
    %139 = arith.addf %137, %138 : vector<1x16xf32>
    %140 = math.tanh %139 : vector<1x16xf32>
    %cst_101 = arith.constant 1.000000e+00 : f32
    %141 = vector.broadcast %cst_101 : f32 to vector<1x16xf32>
    %142 = arith.mulf %140, %141 : vector<1x16xf32>
    %c0_102 = arith.constant 0 : index
    %c0_103 = arith.constant 0 : index
    %c0_104 = arith.constant 0 : index
    %143 = vector.load %arg28[%c0_102, %c0_103, %c0_104] : memref<1x1x16xf32, #tpu.memory_space<vmem>>, vector<1x1x16xf32>
    %144 = vector.shape_cast %143 : vector<1x1x16xf32> to vector<1x16xf32>
    %145 = vector.shape_cast %142 : vector<1x16xf32> to vector<1x1x16xf32>
    tpu.vector_store %arg28[%c0_102, %c0_103, %c0_104], %145 {strides = array<i32>} : memref<1x1x16xf32, #tpu.memory_space<vmem>>, vector<1x1x16xf32>,
    %146 = arith.truncf %142 : vector<1x16xf32> to vector<1x16xbf16>
    %c0_105 = arith.constant 0 : index
    %c0_106 = arith.constant 0 : index
    %147 = vector.load %arg23[%c0_105, %c0_106] : memref<16x16xbf16, #tpu.memory_space<vmem>>, vector<16x16xbf16>
    %cst_107 = arith.constant dense<0.000000e+00> : vector<1x16xf32>
    %148 = tpu.matmul %146, %147, %cst_107 {dimension_numbers = #tpu.dot_dimension_numbers<[1], [0], [0], [1], [0, 0, 1, 1], [], []>} : vector<1x16xbf16>, vector<16x16xbf16>, vector<1x16xf32> -> vector<1x16xf32>
    %c20 = arith.constant 20 : index
    %c0_108 = arith.constant 0 : index
    %149 = vector.load %arg2[%c20, %c0_108] : memref<25x1024xf32, #tpu.memory_space<vmem>>, vector<1x16xf32>
    %150 = arith.addf %148, %149 : vector<1x16xf32>
    %cst_109 = arith.constant 0.000000e+00 : f32
    %151 = vector.broadcast %cst_109 : f32 to vector<1x16xf32>
    %152 = arith.maximumf %150, %151 : vector<1x16xf32>
    %153 = arith.truncf %152 : vector<1x16xf32> to vector<1x16xbf16>
    %c0_110 = arith.constant 0 : index
    %c0_111 = arith.constant 0 : index
    %154 = vector.load %arg24[%c0_110, %c0_111] : memref<16x16xbf16, #tpu.memory_space<vmem>>, vector<16x16xbf16>
    %cst_112 = arith.constant dense<0.000000e+00> : vector<1x16xf32>
    %155 = tpu.matmul %153, %154, %cst_112 {dimension_numbers = #tpu.dot_dimension_numbers<[1], [0], [0], [1], [0, 0, 1, 1], [], []>} : vector<1x16xbf16>, vector<16x16xbf16>, vector<1x16xf32> -> vector<1x16xf32>
    %c21 = arith.constant 21 : index
    %c0_113 = arith.constant 0 : index
    %156 = vector.load %arg2[%c21, %c0_113] : memref<25x1024xf32, #tpu.memory_space<vmem>>, vector<1x16xf32>
    %157 = arith.addf %155, %156 : vector<1x16xf32>
    %cst_114 = arith.constant 0.000000e+00 : f32
    %158 = vector.broadcast %cst_114 : f32 to vector<1x16xf32>
    %159 = arith.maximumf %157, %158 : vector<1x16xf32>
    %160 = arith.truncf %159 : vector<1x16xf32> to vector<1x16xbf16>
    %c0_115 = arith.constant 0 : index
    %c0_116 = arith.constant 0 : index
    %161 = vector.load %arg25[%c0_115, %c0_116] : memref<16x64xbf16, #tpu.memory_space<vmem>>, vector<16x64xbf16>
    %cst_117 = arith.constant dense<0.000000e+00> : vector<1x64xf32>
    %162 = tpu.matmul %160, %161, %cst_117 {dimension_numbers = #tpu.dot_dimension_numbers<[1], [0], [0], [1], [0, 0, 1, 1], [], []>} : vector<1x16xbf16>, vector<16x64xbf16>, vector<1x64xf32> -> vector<1x64xf32>
    %c22 = arith.constant 22 : index
    %c0_118 = arith.constant 0 : index
    %163 = vector.load %arg2[%c22, %c0_118] : memref<25x1024xf32, #tpu.memory_space<vmem>>, vector<1x64xf32>
    %164 = arith.addf %162, %163 : vector<1x64xf32>
    %cst_119 = arith.constant 0.000000e+00 : f32
    %165 = vector.broadcast %cst_119 : f32 to vector<1x64xf32>
    %166 = arith.maximumf %164, %165 : vector<1x64xf32>
    %167 = arith.truncf %166 : vector<1x64xf32> to vector<1x64xbf16>
    %c0_120 = arith.constant 0 : index
    %c0_121 = arith.constant 0 : index
    %168 = vector.load %arg26[%c0_120, %c0_121] : memref<64x64xbf16, #tpu.memory_space<vmem>>, vector<64x64xbf16>
    %cst_122 = arith.constant dense<0.000000e+00> : vector<1x64xf32>
    %169 = tpu.matmul %167, %168, %cst_122 {dimension_numbers = #tpu.dot_dimension_numbers<[1], [0], [0], [1], [0, 0, 1, 1], [], []>} : vector<1x64xbf16>, vector<64x64xbf16>, vector<1x64xf32> -> vector<1x64xf32>
    %c23 = arith.constant 23 : index
    %c0_123 = arith.constant 0 : index
    %170 = vector.load %arg2[%c23, %c0_123] : memref<25x1024xf32, #tpu.memory_space<vmem>>, vector<1x64xf32>
    %171 = arith.addf %169, %170 : vector<1x64xf32>
    %cst_124 = arith.constant 0.000000e+00 : f32
    %172 = vector.broadcast %cst_124 : f32 to vector<1x64xf32>
    %173 = arith.maximumf %171, %172 : vector<1x64xf32>
    %174 = arith.truncf %173 : vector<1x64xf32> to vector<1x64xbf16>
    %c0_125 = arith.constant 0 : index
    %c0_126 = arith.constant 0 : index
    %175 = vector.load %arg27[%c0_125, %c0_126] : memref<64x768xbf16, #tpu.memory_space<vmem>>, vector<64x768xbf16>
    %cst_127 = arith.constant dense<0.000000e+00> : vector<1x768xf32>
    %176 = tpu.matmul %174, %175, %cst_127 {dimension_numbers = #tpu.dot_dimension_numbers<[1], [0], [0], [1], [0, 0, 1, 1], [], []>} : vector<1x64xbf16>, vector<64x768xbf16>, vector<1x768xf32> -> vector<1x768xf32>
    %c24 = arith.constant 24 : index
    %c0_128 = arith.constant 0 : index
    %177 = vector.load %arg2[%c24, %c0_128] : memref<25x1024xf32, #tpu.memory_space<vmem>>, vector<1x768xf32>
    %178 = arith.addf %176, %177 : vector<1x768xf32>
    %c0_129 = arith.constant 0 : index
    %c0_130 = arith.constant 0 : index
    %c0_131 = arith.constant 0 : index
    %179 = vector.load %arg29[%c0_129, %c0_130, %c0_131] : memref<1x1x768xf32, #tpu.memory_space<vmem>>, vector<1x1x768xf32>
    %180 = vector.shape_cast %179 : vector<1x1x768xf32> to vector<1x768xf32>
    %181 = vector.shape_cast %178 : vector<1x768xf32> to vector<1x1x768xf32>
    tpu.vector_store %arg29[%c0_129, %c0_130, %c0_131], %181 {strides = array<i32>} : memref<1x1x768xf32, #tpu.memory_space<vmem>>, vector<1x1x768xf32>,
    return
  }
  func.func @transform_0(%arg0: i32) -> (i32, i32, i32) {
    %c0_i32 = arith.constant 0 : i32
    %c0_i32_0 = arith.constant 0 : i32
    %c0_i32_1 = arith.constant 0 : i32
    return %arg0, %c0_i32, %c0_i32_0 : i32, i32, i32
  }
  func.func @transform_1(%arg0: i32) -> (i32, i32) {
    %c0_i32 = arith.constant 0 : i32
    %c0_i32_0 = arith.constant 0 : i32
    %c0_i32_1 = arith.constant 0 : i32
    return %c0_i32, %c0_i32_0 : i32, i32
  }
  func.func @transform_2(%arg0: i32) -> (i32, i32) {
    %c0_i32 = arith.constant 0 : i32
    %c0_i32_0 = arith.constant 0 : i32
    %c0_i32_1 = arith.constant 0 : i32
    return %c0_i32, %c0_i32_0 : i32, i32
  }
  func.func @transform_3(%arg0: i32) -> (i32, i32) {
    %c0_i32 = arith.constant 0 : i32
    %c0_i32_0 = arith.constant 0 : i32
    %c0_i32_1 = arith.constant 0 : i32
    return %c0_i32, %c0_i32_0 : i32, i32
  }
  func.func @transform_4(%arg0: i32) -> (i32, i32) {
    %c0_i32 = arith.constant 0 : i32
    %c0_i32_0 = arith.constant 0 : i32
    %c0_i32_1 = arith.constant 0 : i32
    return %c0_i32, %c0_i32_0 : i32, i32
  }
  func.func @transform_5(%arg0: i32) -> (i32, i32) {
    %c0_i32 = arith.constant 0 : i32
    %c0_i32_0 = arith.constant 0 : i32
    %c0_i32_1 = arith.constant 0 : i32
    return %c0_i32, %c0_i32_0 : i32, i32
  }
  func.func @transform_6(%arg0: i32) -> (i32, i32) {
    %c0_i32 = arith.constant 0 : i32
    %c0_i32_0 = arith.constant 0 : i32
    %c0_i32_1 = arith.constant 0 : i32
    return %c0_i32, %c0_i32_0 : i32, i32
  }
  func.func @transform_7(%arg0: i32) -> (i32, i32) {
    %c0_i32 = arith.constant 0 : i32
    %c0_i32_0 = arith.constant 0 : i32
    %c0_i32_1 = arith.constant 0 : i32
    return %c0_i32, %c0_i32_0 : i32, i32
  }
  func.func @transform_8(%arg0: i32) -> (i32, i32) {
    %c0_i32 = arith.constant 0 : i32
    %c0_i32_0 = arith.constant 0 : i32
    %c0_i32_1 = arith.constant 0 : i32
    return %c0_i32, %c0_i32_0 : i32, i32
  }
  func.func @transform_9(%arg0: i32) -> (i32, i32) {
    %c0_i32 = arith.constant 0 : i32
    %c0_i32_0 = arith.constant 0 : i32
    %c0_i32_1 = arith.constant 0 : i32
    return %c0_i32, %c0_i32_0 : i32, i32
  }
  func.func @transform_10(%arg0: i32) -> (i32, i32) {
    %c0_i32 = arith.constant 0 : i32
    %c0_i32_0 = arith.constant 0 : i32
    %c0_i32_1 = arith.constant 0 : i32
    return %c0_i32, %c0_i32_0 : i32, i32
  }
  func.func @transform_11(%arg0: i32) -> (i32, i32) {
    %c0_i32 = arith.constant 0 : i32
    %c0_i32_0 = arith.constant 0 : i32
    %c0_i32_1 = arith.constant 0 : i32
    return %c0_i32, %c0_i32_0 : i32, i32
  }
  func.func @transform_12(%arg0: i32) -> (i32, i32) {
    %c0_i32 = arith.constant 0 : i32
    %c0_i32_0 = arith.constant 0 : i32
    %c0_i32_1 = arith.constant 0 : i32
    return %c0_i32, %c0_i32_0 : i32, i32
  }
  func.func @transform_13(%arg0: i32) -> (i32, i32) {
    %c0_i32 = arith.constant 0 : i32
    %c0_i32_0 = arith.constant 0 : i32
    %c0_i32_1 = arith.constant 0 : i32
    return %c0_i32, %c0_i32_0 : i32, i32
  }
  func.func @transform_14(%arg0: i32) -> (i32, i32) {
    %c0_i32 = arith.constant 0 : i32
    %c0_i32_0 = arith.constant 0 : i32
    %c0_i32_1 = arith.constant 0 : i32
    return %c0_i32, %c0_i32_0 : i32, i32
  }
  func.func @transform_15(%arg0: i32) -> (i32, i32) {
    %c0_i32 = arith.constant 0 : i32
    %c0_i32_0 = arith.constant 0 : i32
    %c0_i32_1 = arith.constant 0 : i32
    return %c0_i32, %c0_i32_0 : i32, i32
  }
  func.func @transform_16(%arg0: i32) -> (i32, i32) {
    %c0_i32 = arith.constant 0 : i32
    %c0_i32_0 = arith.constant 0 : i32
    %c0_i32_1 = arith.constant 0 : i32
    return %c0_i32, %c0_i32_0 : i32, i32
  }
  func.func @transform_17(%arg0: i32) -> (i32, i32) {
    %c0_i32 = arith.constant 0 : i32
    %c0_i32_0 = arith.constant 0 : i32
    %c0_i32_1 = arith.constant 0 : i32
    return %c0_i32, %c0_i32_0 : i32, i32
  }
  func.func @transform_18(%arg0: i32) -> (i32, i32) {
    %c0_i32 = arith.constant 0 : i32
    %c0_i32_0 = arith.constant 0 : i32
    %c0_i32_1 = arith.constant 0 : i32
    return %c0_i32, %c0_i32_0 : i32, i32
  }
  func.func @transform_19(%arg0: i32) -> (i32, i32) {
    %c0_i32 = arith.constant 0 : i32
    %c0_i32_0 = arith.constant 0 : i32
    %c0_i32_1 = arith.constant 0 : i32
    return %c0_i32, %c0_i32_0 : i32, i32
  }
  func.func @transform_20(%arg0: i32) -> (i32, i32) {
    %c0_i32 = arith.constant 0 : i32
    %c0_i32_0 = arith.constant 0 : i32
    %c0_i32_1 = arith.constant 0 : i32
    return %c0_i32, %c0_i32_0 : i32, i32
  }
  func.func @transform_21(%arg0: i32) -> (i32, i32) {
    %c0_i32 = arith.constant 0 : i32
    %c0_i32_0 = arith.constant 0 : i32
    %c0_i32_1 = arith.constant 0 : i32
    return %c0_i32, %c0_i32_0 : i32, i32
  }
  func.func @transform_22(%arg0: i32) -> (i32, i32) {
    %c0_i32 = arith.constant 0 : i32
    %c0_i32_0 = arith.constant 0 : i32
    %c0_i32_1 = arith.constant 0 : i32
    return %c0_i32, %c0_i32_0 : i32, i32
  }
  func.func @transform_23(%arg0: i32) -> (i32, i32) {
    %c0_i32 = arith.constant 0 : i32
    %c0_i32_0 = arith.constant 0 : i32
    %c0_i32_1 = arith.constant 0 : i32
    return %c0_i32, %c0_i32_0 : i32, i32
  }
  func.func @transform_24(%arg0: i32) -> (i32, i32) {
    %c0_i32 = arith.constant 0 : i32
    %c0_i32_0 = arith.constant 0 : i32
    %c0_i32_1 = arith.constant 0 : i32
    return %c0_i32, %c0_i32_0 : i32, i32
  }
  func.func @transform_25(%arg0: i32) -> (i32, i32) {
    %c0_i32 = arith.constant 0 : i32
    %c0_i32_0 = arith.constant 0 : i32
    %c0_i32_1 = arith.constant 0 : i32
    return %c0_i32, %c0_i32_0 : i32, i32
  }
  func.func @transform_26(%arg0: i32) -> (i32, i32) {
    %c0_i32 = arith.constant 0 : i32
    %c0_i32_0 = arith.constant 0 : i32
    %c0_i32_1 = arith.constant 0 : i32
    return %c0_i32, %c0_i32_0 : i32, i32
  }
  func.func @transform_27(%arg0: i32) -> (i32, i32, i32) {
    %c0_i32 = arith.constant 0 : i32
    %c0_i32_0 = arith.constant 0 : i32
    %c0_i32_1 = arith.constant 0 : i32
    return %arg0, %c0_i32, %c0_i32_0 : i32, i32, i32
  }
  func.func @transform_28(%arg0: i32) -> (i32, i32, i32) {
    %c0_i32 = arith.constant 0 : i32
    %c0_i32_0 = arith.constant 0 : i32
    %c0_i32_1 = arith.constant 0 : i32
    return %arg0, %c0_i32, %c0_i32_0 : i32, i32, i32
  }
}

</mosaic_0001>

<bundles_post_ra>
// kernel: _lambda_.1
= control target key start
LH: loop header
LB: loop body
LE: loop exit
PB: predicated region body
PF: predicated region fallthrough
CT: control target
= control target key end

     0   :  { %s27360_s0 = inlined_call_operand.vmem [shape: f32[2,1,768], index: 0, kind: input, shape index: {}]   ;;  %s27361_s1 = inlined_call_operand.vmem [shape: f32[25,1024], index: 1, kind: input, shape index: {}]   ;;  %s27362_s2 = inlined_call_operand.vmem [shape: bf16[768,1024], index: 2, kind: input, shape index: {}]   ;;  %s27363_s3 = inlined_call_operand.vmem [shape: bf16[1024,1024], index: 3, kind: input, shape index: {}]   ;;  %s27364_s4 = inlined_call_operand.vmem [shape: bf16[1024,1024], index: 4, kind: input, shape index: {}]   ;;  %s27365_s5 = inlined_call_operand.vmem [shape: bf16[1024,512], index: 5, kind: input, shape index: {}]   ;;  %s27366_s6 = inlined_call_operand.vmem [shape: bf16[512,512], index: 6, kind: input, shape index: {}]   ;;  %s27367_s7 = inlined_call_operand.vmem [shape: bf16[512,512], index: 7, kind: input, shape index: {}]   ;;  %s27368_s8 = inlined_call_operand.vmem [shape: bf16[512,128], index: 8, kind: input, shape index: {}]   ;;  %s27369_s9 = inlined_call_operand.vmem [shape: bf16[128,128], index: 9, kind: input, shape index: {}]   ;;  %s27370_s10 = inlined_call_operand.vmem [shape: bf16[128,128], index: 10, kind: input, shape index: {}]   ;;  %s27371_s11 = inlined_call_operand.vmem [shape: bf16[128,32], index: 11, kind: input, shape index: {}]   ;;  %s27372_s12 = inlined_call_operand.vmem [shape: bf16[32,32], index: 12, kind: input, shape index: {}]   ;;  %s27373_s13 = inlined_call_operand.vmem [shape: bf16[32,32], index: 13, kind: input, shape index: {}]   ;;  %s27374_s14 = inlined_call_operand.vmem [shape: bf16[32,8], index: 14, kind: input, shape index: {}]   ;;  %s27375_s15 = inlined_call_operand.vmem [shape: bf16[8,8], index: 15, kind: input, shape index: {}]   ;;  %s27376_s16 = inlined_call_operand.vmem [shape: bf16[8,8], index: 16, kind: input, shape index: {}]   ;;  %s27377_s17 = inlined_call_operand.vmem [shape: bf16[8,8], index: 17, kind: input, shape index: {}]   ;;  %s27378_s18 = inlined_call_operand.vmem [shape: bf16[8,8], index: 18, kind: input, shape index: {}]   ;;  %s27379_s19 = inlined_call_operand.vmem [shape: bf16[8,8], index: 19, kind: input, shape index: {}]   ;;  %s27380_s20 = inlined_call_operand.vmem [shape: bf16[8,8], index: 20, kind: input, shape index: {}]   ;;  %s27381_s21 = inlined_call_operand.vmem [shape: bf16[8,16], index: 21, kind: input, shape index: {}]   ;;  %s27382_s22 = inlined_call_operand.vmem [shape: bf16[16,16], index: 22, kind: input, shape index: {}]   ;;  %s27383_s23 = inlined_call_operand.vmem [shape: bf16[16,16], index: 23, kind: input, shape index: {}]   ;;  %s27384_s24 = inlined_call_operand.vmem [shape: bf16[16,64], index: 24, kind: input, shape index: {}]   ;;  %s27385_s25 = inlined_call_operand.vmem [shape: bf16[64,64], index: 25, kind: input, shape index: {}]   ;;  %s27386_s26 = inlined_call_operand.vmem [shape: bf16[64,768], index: 26, kind: input, shape index: {}]   ;;  %s27387_s27 = inlined_call_operand.hbm [shape: f32[2,1,16], index: 27, kind: output, shape index: {0}]   ;;  %s27388_s28 = inlined_call_operand.vmem [shape: f32[2,1,768], index: 28, kind: output, shape index: {1}]  }
   0x1   :  { %27420 = sst [smem:[#allocation12_spill]] %s27360_s0 }
   0x2   :  { %27421 = sst [smem:[#allocation13_spill]] %s27361_s1 }
   0x3   :  { %27422 = sst [smem:[#allocation14_spill]] %s27362_s2 }
   0x4   :  { %27423 = sst [smem:[#allocation15_spill]] %s27363_s3 }
   0x5   :  { %27424 = sst [smem:[#allocation16_spill]] %s27364_s4 }
   0x6   :  { %27425 = sst [smem:[#allocation17_spill]] %s27365_s5 }
   0x7   :  { %27426 = sst [smem:[#allocation18_spill]] %s27366_s6 }
   0x8   :  { %27427 = sst [smem:[#allocation19_spill]] %s27367_s7 }
   0x9   :  { %27428 = sst [smem:[#allocation20_spill]] %s27368_s8 }
   0xa   :  { %27429 = sst [smem:[#allocation21_spill]] %s27369_s9 }
   0xb   :  { %27430 = sst [smem:[#allocation22_spill]] %s27370_s10 }
   0xc   :  { %27431 = sst [smem:[#allocation23_spill]] %s27371_s11 }
   0xd   :  { %27432 = sst [smem:[#allocation24_spill]] %s27372_s12 }
   0xe   :  { %27433 = sst [smem:[#allocation25_spill]] %s27373_s13 }
   0xf   :  { %27434 = sst [smem:[#allocation26_spill]] %s27374_s14 }
  0x10   :  { %27435 = sst [smem:[#allocation27_spill]] %s27387_s27 }
  0x11   :  { %27436 = sst [smem:[#allocation28_spill]] %s27388_s28 }
  0x12   :  { %34 = vsyncpa [#allocation3], 0 }
  0x13   :  { %36 = vsyncpa [#allocation3 + $0x1], 0  ;;  %s20689_s8 = smov 0   ;;  %s20691_s5 = smov 0  }
  0x14   :  { %s20693_s9 = smov 0   ;;  %s20695_s30 = smov 0  }
  0x15 LB: > { %27437 = sst [smem:[#allocation5_spill]] %s20525_s8  ;;  %s20710_s3 = sadd.s32 4294967295, %s20537_s30   ;;  %s20537_s30 = sphi %s20695_s30, %s27472_s30   ;;  %s20533_s9 = sphi %s20693_s9, %s27474_s9   ;;  %s20529_s5 = sphi %s20691_s5, %s27476_s5   ;;  %s20525_s8 = sphi %s20689_s8, %s27475_s8  }
  0x16   : > { %27438 = sst [smem:[#allocation6_spill]] %s20533_s9  ;;  %s17044_s6 = sadd.s32 4294967294, %s20537_s30  }
  0x17   : > { %27439 = sst [smem:[#allocation7_spill]] %s20537_s30  ;;  %s20714_s10 = sadd.s32 1, %s20537_s30  }
  0x18   : > { %27440 = sst [smem:[#allocation8_spill]] %s20714_s10  ;;  %s621_s0 = sadd.s32 1, %s20533_s9 }
  0x19   : > { %s618_s11 = ssub.s32 %s20537_s30, %s20714_s10  ;;  %p631_p0 = scmp.ne.s32.totalorder %s20533_s9, %s20529_s5 }
  0x1a   : > { %p619_p1 = scmp.eq.s32.totalorder %s618_s11, 0  ;;  %p632_p2 = scmp.eq.s32.totalorder %s20710_s3, 1 }
  0x1b   : > { %p637_p3 = scmp.ne.s32.totalorder %s20529_s5, %s20525_s8  ;;  %p638_p4 = scmp.eq.s32.totalorder %s17044_s6, 1 }
  0x1c   : > { %s20725_s29 = scalar_select %p619_p1, %s20533_s9, %s621_s0  }
  0x1d   : > { %p20727_p5 = por %p632_p2, %p631_p0  ;;  %p20731_p6 = por %p638_p4, %p637_p3 }
  0x1e   : > { %27441 = sst [smem:[#allocation9_spill]] %s20725_s29  ;;  %p17047_p7 = scmp.ge.s32.totalorder %s20537_s30, 1 }
  0x1f   : > { %s27443_s7 = scalar_select %p20731_p6, 1, 0 }
  0x20   : > { %p767_p8 = scmp.lt.s32.totalorder %s20537_s30, 3 }
  0x21   : > { %27444 = sst [smem:[#allocation10_spill]] %s27443_s7 }
  0x22   : > { %p768_p9 = pnand %p17047_p7, %p767_p8 }
  0x24   : > { %771 = sbr.rel (%p768_p9) target bundleno = 6767 (0x1a6f), region = 128 }
  0x2b   : > { %s27445_s4 = sld [smem:[#allocation14_spill]]  ;;  %p843_p10 = scmp.lt.s32.totalorder %s20710_s3, 1  ;;  %v854_v32 = vlaneseq  ;;  %vm20540_vm0 = vmmov 0   ;;  %vm15822_vm1 = vcmask 261120   ;;  %vm15998_vm2 = vcmask 1043456  }
  0x2c   : > { %s27447_s7 = sld [smem:[#allocation12_spill]]  ;;  %s27448_s6 = sld [smem:[#allocation15_spill]]  ;;  %vm15994_vm3 = vcmask 64512   ;;  %vm16343_vm4 = vcmask 122880   ;;  %vm16355_vm5 = vcmask 130048   ;;  %vm16542_vm6 = vcmask 523264  }
  0x2d   : > { %s20793_s9 = scalar_select %p843_p10, %s20710_s3, 1  ;;  %v20809_v41 = vshrl.u32 %v854_v32, 7 }
  0x2e   : > { %s27450_s11 = sld [smem:[#allocation16_spill]]  ;;  %s27451_s28 = sld [smem:[#allocation17_spill]] }
  0x2f   : > { %27446 = sst [smem:[#allocation11_spill]] %s20793_s9  ;;  %s27407_s0 = smul.u32 6, %s20793_s9  ;;  %v20831_v50 = vsub.s32 1, %v20809_v41 }
  0x30   : > { %s27452_s27 = sld [smem:[#allocation18_spill]]  ;;  %s27456_s30 = sld [smem:[#allocation22_spill]] }
  0x31   : > { %v890_v0 = vld [vmem:[%s27445_s4] sm:$0xff]  ;;  %v891_v2 = vld [vmem:[%s27445_s4 + $0x8] sm:$0xff]  ;;  %s27458_s8 = sld [smem:[#allocation23_spill]]  ;;  %s27462_s13 = sld [smem:[#allocation25_spill]] }
  0x32   : > { %v894_v1 = vld [vmem:[%s27445_s4 + $0x20] sm:$0xff]  ;;  %v895_v4 = vld [vmem:[%s27445_s4 + $0x28] sm:$0xff]  ;;  %s20828_s12 = scalar_lea.vmem %s27447_s7, %s27407_s0  ;;  %s27453_s7 = sld [smem:[#allocation19_spill]] }
  0x33   : > { %v17049_v3 = vcombine.high %v890_v0, %v894_v1  ;;  %v17048_v5 = vcombine.low %v890_v0, %v894_v1  ;;  %v898_v6 = vld [vmem:[%s27445_s4 + $0x40] sm:$0xff]  ;;  %v17051_v8 = vcombine.high %v891_v2, %v895_v4  ;;  %v17050_v9 = vcombine.low %v891_v2, %v895_v4  ;;  %v899_v11 = vld [vmem:[%s27445_s4 + $0x48] sm:$0xff]  ;;  %s27455_s0 = sld [smem:[#allocation21_spill]]  ;;  %s27463_s14 = sld [smem:[#allocation26_spill]] }
  0x34   : > { %v902_v7 = vld [vmem:[%s27445_s4 + $0x60] sm:$0xff]  ;;  %v903_v12 = vld [vmem:[%s27445_s4 + $0x68] sm:$0xff]  ;;  %s27416_s29 = sand.u32 1, %s20529_s5   ;;  %s20542_s1 = smov [#allocation2]  }
  0x35   : > { %v17057_v10 = vcombine.high %v898_v6, %v902_v7  ;;  %v906_v13 = vld [vmem:[%s27445_s4 + $0x80] sm:$0xff]  ;;  %3238 = vmatprep.subr.bf16.mxu0 %v17049_v3  ;;  %v17059_v14 = vcombine.high %v899_v11, %v903_v12  ;;  %v907_v16 = vld [vmem:[%s27445_s4 + $0x88] sm:$0xff]  ;;  %3361 = vmatprep.subr.bf16.mxu1 %v17051_v8  ;;  %v17056_v18 = vcombine.low %v898_v6, %v902_v7  ;;  %s20479_s9 = sshll.u32 %s20542_s1, 4  ;;  %s20480_s9 = int_to_ptr.vmem [resolvable:$false] %s20479_s9 }
  0x36   : > { %v910_v15 = vld [vmem:[%s27445_s4 + $0xa0] sm:$0xff]  ;;  %v911_v17 = vld [vmem:[%s27445_s4 + $0xa8] sm:$0xff]  ;;  %3239 = vmatpush1.bf16.msra.mxu0 %v17048_v5  ;;  %3362 = vmatpush1.bf16.msra.mxu1 %v17050_v9  ;;  %v17058_v19 = vcombine.low %v899_v11, %v903_v12  ;;  %s27457_s10 = smov %s27456_s30 }
  0x37   : > { %3240 = vmatprep.subr.bf16.mxu0 %v17057_v10  ;;  %v17065_v20 = vcombine.high %v906_v13, %v910_v15  ;;  %3363 = vmatprep.subr.bf16.mxu1 %v17059_v14  ;;  %v17067_v21 = vcombine.high %v907_v16, %v911_v17  ;;  %v914_v22 = vld [vmem:[%s27445_s4 + $0xc0] sm:$0xff]  ;;  %v915_v24 = vld [vmem:[%s27445_s4 + $0xc8] sm:$0xff]  ;;  %v17064_v26 = vcombine.low %v906_v13, %v910_v15 }
  0x38   : > { %v918_v23 = vld [vmem:[%s27445_s4 + $0xe0] sm:$0xff]  ;;  %v919_v25 = vld [vmem:[%s27445_s4 + $0xe8] sm:$0xff]  ;;  %v17066_v27 = vcombine.low %v907_v16, %v911_v17 }
  0x39   : > { %v17073_v28 = vcombine.high %v914_v22, %v918_v23  ;;  %v17075_v29 = vcombine.high %v915_v24, %v919_v25  ;;  %v922_v30 = vld [vmem:[%s27445_s4 + $0x100] sm:$0xff]  ;;  %v923_v33 = vld [vmem:[%s27445_s4 + $0x108] sm:$0xff]  ;;  %v17072_v35 = vcombine.low %v914_v22, %v918_v23  ;;  %v17074_v36 = vcombine.low %v915_v24, %v919_v25 }
  0x3a   : > { %3241 = vmatpush1.bf16.msra.mxu0 %v17056_v18  ;;  %3364 = vmatpush1.bf16.msra.mxu1 %v17058_v19  ;;  %v926_v31 = vld [vmem:[%s27445_s4 + $0x120] sm:$0xff]  ;;  %v927_v34 = vld [vmem:[%s27445_s4 + $0x128] sm:$0xff] }
  0x3b   : > { %3242 = vmatprep.subr.bf16.mxu0 %v17065_v20  ;;  %3365 = vmatprep.subr.bf16.mxu1 %v17067_v21  ;;  %v17081_v37 = vcombine.high %v922_v30, %v926_v31  ;;  %v17083_v38 = vcombine.high %v923_v33, %v927_v34  ;;  %v930_v39 = vld [vmem:[%s27445_s4 + $0x140] sm:$0xff]  ;;  %v931_v42 = vld [vmem:[%s27445_s4 + $0x148] sm:$0xff]  ;;  %v17080_v44 = vcombine.low %v922_v30, %v926_v31 }
  0x3c   : > { %v934_v40 = vld [vmem:[%s27445_s4 + $0x160] sm:$0xff]  ;;  %v935_v43 = vld [vmem:[%s27445_s4 + $0x168] sm:$0xff]  ;;  %v17082_v45 = vcombine.low %v923_v33, %v927_v34 }
  0x3d   : > { %v17089_v46 = vcombine.high %v930_v39, %v934_v40  ;;  %v17091_v47 = vcombine.high %v931_v42, %v935_v43  ;;  %v938_v48 = vld [vmem:[%s27445_s4 + $0x180] sm:$0xff]  ;;  %v939_v51 = vld [vmem:[%s27445_s4 + $0x188] sm:$0xff]  ;;  %v17088_v53 = vcombine.low %v930_v39, %v934_v40  ;;  %v17090_v54 = vcombine.low %v931_v42, %v935_v43 }
  0x3e   : > { %3243 = vmatpush1.bf16.msra.mxu0 %v17064_v26  ;;  %3366 = vmatpush1.bf16.msra.mxu1 %v17066_v27  ;;  %v942_v49 = vld [vmem:[%s27445_s4 + $0x1a0] sm:$0xff]  ;;  %v943_v52 = vld [vmem:[%s27445_s4 + $0x1a8] sm:$0xff] }
  0x3f   : > { %3244 = vmatprep.subr.bf16.mxu0 %v17073_v28  ;;  %3367 = vmatprep.subr.bf16.mxu1 %v17075_v29  ;;  %v17097_v55 = vcombine.high %v938_v48, %v942_v49  ;;  %v20840_v56 = vld [vmem:[%s20828_s12] sm:$0x3f]  ;;  %v17099_v57 = vcombine.high %v939_v51, %v943_v52  ;;  %v947_v61 = vld [vmem:[%s27445_s4 + $0x1c8] sm:$0xff]  ;;  %v17096_v63 = vcombine.low %v938_v48, %v942_v49 }
  0x40   : > { %v946_v58 = vld [vmem:[%s27445_s4 + $0x1c0] sm:$0xff]  ;;  %v861_v60 = vrot.slane %v20840_v56, %v20831_v50  ;;  %v951_v62 = vld [vmem:[%s27445_s4 + $0x1e8] sm:$0xff]  ;;  %v17098_v1 = vcombine.low %v939_v51, %v943_v52 }
  0x41   : > { %v950_v59 = vld [vmem:[%s27445_s4 + $0x1e0] sm:$0xff]  ;;  %v17107_v3 = vcombine.high %v947_v61, %v951_v62  ;;  %v955_v6 = vld [vmem:[%s27445_s4 + $0x208] sm:$0xff]  ;;  %v17106_v9 = vcombine.low %v947_v61, %v951_v62 }
  0x42   : > { %3245 = vmatpush1.bf16.msra.mxu0 %v17072_v35  ;;  %3368 = vmatpush1.bf16.msra.mxu1 %v17074_v36  ;;  %v20856_v0 = vpack.c.bf16 %v861_v60, %v861_v60  ;;  %v17105_v2 = vcombine.high %v946_v58, %v950_v59  ;;  %v954_v4 = vld [vmem:[%s27445_s4 + $0x200] sm:$0xff]  ;;  %v959_v7 = vld [vmem:[%s27445_s4 + $0x228] sm:$0xff]  ;;  %v17104_v8 = vcombine.low %v946_v58, %v950_v59 }
  0x43   : > { %3246 = vmatprep.subr.bf16.mxu0 %v17081_v37  ;;  %3369 = vmatprep.subr.bf16.mxu1 %v17083_v38  ;;  %v958_v5 = vld [vmem:[%s27445_s4 + $0x220] sm:$0xff]  ;;  %v17115_v11 = vcombine.high %v955_v6, %v959_v7  ;;  %v963_v14 = vld [vmem:[%s27445_s4 + $0x248] sm:$0xff]  ;;  %v17114_v17 = vcombine.low %v955_v6, %v959_v7 }
  0x44   : > { %3270 = vmatprep.mubr.bf16.mxu0 %v20856_v0  ;;  %3393 = vmatprep.mubr.bf16.mxu1 %v20856_v0  ;;  %v17113_v10 = vcombine.high %v954_v4, %v958_v5  ;;  %v962_v12 = vld [vmem:[%s27445_s4 + $0x240] sm:$0xff]  ;;  %v967_v15 = vld [vmem:[%s27445_s4 + $0x268] sm:$0xff]  ;;  %v17112_v16 = vcombine.low %v954_v4, %v958_v5  ;;  %v20957_v5 = vsub.s32 0, %v20809_v41 }
  0x45   : > { %v966_v13 = vld [vmem:[%s27445_s4 + $0x260] sm:$0xff]  ;;  %v17123_v19 = vcombine.high %v963_v14, %v967_v15  ;;  %v971_v22 = vld [vmem:[%s27445_s4 + $0x288] sm:$0xff]  ;;  %v17122_v25 = vcombine.low %v963_v14, %v967_v15 }
  0x46   : > { %3247 = vmatpush1.bf16.msra.mxu0 %v17080_v44  ;;  %3370 = vmatpush1.bf16.msra.mxu1 %v17082_v45  ;;  %v17121_v18 = vcombine.high %v962_v12, %v966_v13  ;;  %v970_v20 = vld [vmem:[%s27445_s4 + $0x280] sm:$0xff]  ;;  %v975_v23 = vld [vmem:[%s27445_s4 + $0x2a8] sm:$0xff]  ;;  %v17120_v24 = vcombine.low %v962_v12, %v966_v13  ;;  %v20966_v12 = vsub.s32 3, %v20809_v41  ;;  %v857_v15 = vrot.slane %v20840_v56, %v20957_v5 }
  0x47   : > { %3248 = vmatprep.subr.bf16.mxu0 %v17089_v46  ;;  %3371 = vmatprep.subr.bf16.mxu1 %v17091_v47  ;;  %v974_v21 = vld [vmem:[%s27445_s4 + $0x2a0] sm:$0xff]  ;;  %v17131_v27 = vcombine.high %v971_v22, %v975_v23  ;;  %v979_v30 = vld [vmem:[%s27445_s4 + $0x2c8] sm:$0xff]  ;;  %v17130_v34 = vcombine.low %v971_v22, %v975_v23 }
  0x48   : > { %v17129_v26 = vcombine.high %v970_v20, %v974_v21  ;;  %v978_v28 = vld [vmem:[%s27445_s4 + $0x2c0] sm:$0xff]  ;;  %v983_v31 = vld [vmem:[%s27445_s4 + $0x2e8] sm:$0xff]  ;;  %v17128_v33 = vcombine.low %v970_v20, %v974_v21  ;;  %v869_v22 = vrot.slane %v20840_v56, %v20966_v12  ;;  %v20984_v23 = vpack.c.bf16 %v857_v15, %v857_v15 }
  0x49   : > { %v982_v29 = vld [vmem:[%s27445_s4 + $0x2e0] sm:$0xff]  ;;  %v17139_v36 = vcombine.high %v979_v30, %v983_v31  ;;  %v987_v39 = vld [vmem:[%s27445_s4 + $0x308] sm:$0xff]  ;;  %v17138_v43 = vcombine.low %v979_v30, %v983_v31 }
  0x4a   : > { %3249 = vmatpush1.bf16.msra.mxu0 %v17088_v53  ;;  %3372 = vmatpush1.bf16.msra.mxu1 %v17090_v54  ;;  %v17137_v35 = vcombine.high %v978_v28, %v982_v29  ;;  %v986_v37 = vld [vmem:[%s27445_s4 + $0x300] sm:$0xff]  ;;  %v991_v40 = vld [vmem:[%s27445_s4 + $0x328] sm:$0xff]  ;;  %v17136_v42 = vcombine.low %v978_v28, %v982_v29 }
  0x4b   : > { %3250 = vmatprep.subr.bf16.mxu0 %v17097_v55  ;;  %3373 = vmatprep.subr.bf16.mxu1 %v17099_v57  ;;  %v990_v38 = vld [vmem:[%s27445_s4 + $0x320] sm:$0xff]  ;;  %v17147_v45 = vcombine.high %v987_v39, %v991_v40  ;;  %v995_v48 = vld [vmem:[%s27445_s4 + $0x348] sm:$0xff]  ;;  %v17146_v52 = vcombine.low %v987_v39, %v991_v40 }
  0x4c   : > { %v17145_v44 = vcombine.high %v986_v37, %v990_v38  ;;  %v994_v46 = vld [vmem:[%s27445_s4 + $0x340] sm:$0xff]  ;;  %v999_v49 = vld [vmem:[%s27445_s4 + $0x368] sm:$0xff]  ;;  %v17144_v51 = vcombine.low %v986_v37, %v990_v38 }
  0x4d   : > { %v998_v47 = vld [vmem:[%s27445_s4 + $0x360] sm:$0xff]  ;;  %v17155_v54 = vcombine.high %v995_v48, %v999_v49  ;;  %v1003_v58 = vld [vmem:[%s27445_s4 + $0x388] sm:$0xff]  ;;  %v17154_v61 = vcombine.low %v995_v48, %v999_v49 }
  0x4e   : > { %3251 = vmatpush1.bf16.msra.mxu0 %v17096_v63  ;;  %3374 = vmatpush1.bf16.msra.mxu1 %v17098_v1  ;;  %v17153_v53 = vcombine.high %v994_v46, %v998_v47  ;;  %v1002_v55 = vld [vmem:[%s27445_s4 + $0x380] sm:$0xff]  ;;  %v1007_v59 = vld [vmem:[%s27445_s4 + $0x3a8] sm:$0xff]  ;;  %v17152_v60 = vcombine.low %v994_v46, %v998_v47 }
  0x4f   : > { %3252 = vmatprep.subr.bf16.mxu0 %v17105_v2  ;;  %3375 = vmatprep.subr.bf16.mxu1 %v17107_v3  ;;  %v1006_v57 = vld [vmem:[%s27445_s4 + $0x3a0] sm:$0xff]  ;;  %v17163_v63 = vcombine.high %v1003_v58, %v1007_v59  ;;  %v1011_v3 = vld [vmem:[%s27445_s4 + $0x3c8] sm:$0xff]  ;;  %v17162_v7 = vcombine.low %v1003_v58, %v1007_v59 }
  0x50   : > { %v17161_v62 = vcombine.high %v1002_v55, %v1006_v57  ;;  %v1010_v1 = vld [vmem:[%s27445_s4 + $0x3c0] sm:$0xff]  ;;  %v1015_v4 = vld [vmem:[%s27445_s4 + $0x3e8] sm:$0xff]  ;;  %v17160_v6 = vcombine.low %v1002_v55, %v1006_v57 }
  0x51   : > { %v1014_v2 = vld [vmem:[%s27445_s4 + $0x3e0] sm:$0xff]  ;;  %v1019_v13 = vld [vmem:[%s27445_s4 + $0x408] sm:$0xff] }
  0x52   : > { %3253 = vmatpush1.bf16.msra.mxu0 %v17104_v8  ;;  %3376 = vmatpush1.bf16.msra.mxu1 %v17106_v9  ;;  %v17169_v8 = vcombine.high %v1010_v1, %v1014_v2  ;;  %v17171_v9 = vcombine.high %v1011_v3, %v1015_v4  ;;  %v1023_v14 = vld [vmem:[%s27445_s4 + $0x428] sm:$0xff]  ;;  %v1026_v20 = vld [vmem:[%s27445_s4 + $0x440] sm:$0xff] }
  0x53   : > { %3254 = vmatprep.subr.bf16.mxu0 %v17113_v10  ;;  %3377 = vmatprep.subr.bf16.mxu1 %v17115_v11  ;;  %v1018_v10 = vld [vmem:[%s27445_s4 + $0x400] sm:$0xff]  ;;  %v1035_v31 = vld [vmem:[%s27445_s4 + $0x488] sm:$0xff] }
  0x54   : > { %v1022_v11 = vld [vmem:[%s27445_s4 + $0x420] sm:$0xff]  ;;  %v1075_v15 = vld [vmem:[%s27445_s4 + $0x5c8] sm:$0xff] }
  0x55   : > { %v1030_v21 = vld [vmem:[%s27445_s4 + $0x460] sm:$0xff] }
  0x56   : > { %3255 = vmatpush1.bf16.msra.mxu0 %v17112_v16  ;;  %3378 = vmatpush1.bf16.msra.mxu1 %v17114_v17  ;;  %v17168_v16 = vcombine.low %v1010_v1, %v1014_v2  ;;  %v17170_v17 = vcombine.low %v1011_v3, %v1015_v4  ;;  %v17185_v28 = vcombine.high %v1026_v20, %v1030_v21  ;;  %v1034_v29 = vld [vmem:[%s27445_s4 + $0x480] sm:$0xff] }
  0x57   : > { %3256 = vmatprep.subr.bf16.mxu0 %v17121_v18  ;;  %3379 = vmatprep.subr.bf16.mxu1 %v17123_v19  ;;  %v17177_v18 = vcombine.high %v1018_v10, %v1022_v11  ;;  %v17179_v19 = vcombine.high %v1019_v13, %v1023_v14  ;;  %v1038_v30 = vld [vmem:[%s27445_s4 + $0x4a0] sm:$0xff] }
  0x58   : > { %v17193_v38 = vcombine.high %v1034_v29, %v1038_v30  ;;  %v1042_v39 = vld [vmem:[%s27445_s4 + $0x4c0] sm:$0xff] }
  0x59   : > { %v1046_v40 = vld [vmem:[%s27445_s4 + $0x4e0] sm:$0xff] }
  0x5a   : > { %3257 = vmatpush1.bf16.msra.mxu0 %v17120_v24  ;;  %3380 = vmatpush1.bf16.msra.mxu1 %v17122_v25  ;;  %v1027_v24 = vld [vmem:[%s27445_s4 + $0x448] sm:$0xff]  ;;  %v17201_v47 = vcombine.high %v1042_v39, %v1046_v40  ;;  %v1050_v48 = vld [vmem:[%s27445_s4 + $0x500] sm:$0xff] }
  0x5b   : > { %3258 = vmatprep.subr.bf16.mxu0 %v17129_v26  ;;  %3381 = vmatprep.subr.bf16.mxu1 %v17131_v27  ;;  %v1031_v25 = vld [vmem:[%s27445_s4 + $0x468] sm:$0xff]  ;;  %v17176_v26 = vcombine.low %v1018_v10, %v1022_v11  ;;  %v17178_v27 = vcombine.low %v1019_v13, %v1023_v14  ;;  %v1054_v49 = vld [vmem:[%s27445_s4 + $0x520] sm:$0xff] }
  0x5c   : > { %v17186_v37 = vcombine.low %v1027_v24, %v1031_v25  ;;  %v17209_v57 = vcombine.high %v1050_v48, %v1054_v49  ;;  %v1058_v58 = vld [vmem:[%s27445_s4 + $0x540] sm:$0xff] }
  0x5d   : > { %v1062_v59 = vld [vmem:[%s27445_s4 + $0x560] sm:$0xff] }
  0x5e   : > { %3259 = vmatpush1.bf16.msra.mxu0 %v17128_v33  ;;  %3382 = vmatpush1.bf16.msra.mxu1 %v17130_v34  ;;  %v17187_v33 = vcombine.high %v1027_v24, %v1031_v25  ;;  %v1039_v34 = vld [vmem:[%s27445_s4 + $0x4a8] sm:$0xff]  ;;  %v17217_v2 = vcombine.high %v1058_v58, %v1062_v59  ;;  %v1066_v3 = vld [vmem:[%s27445_s4 + $0x580] sm:$0xff] }
  0x5f   : > { %3260 = vmatprep.subr.bf16.mxu0 %v17137_v35  ;;  %3383 = vmatprep.subr.bf16.mxu1 %v17139_v36  ;;  %v21004_v35 = vpack.c.bf16 %v869_v22, %v869_v22  ;;  %v17184_v36 = vcombine.low %v1026_v20, %v1030_v21  ;;  %v17194_v46 = vcombine.low %v1035_v31, %v1039_v34  ;;  %v1070_v4 = vld [vmem:[%s27445_s4 + $0x5a0] sm:$0xff]  ;;  %v1083_v24 = vld [vmem:[%s27445_s4 + $0x608] sm:$0xff] }
  0x60   : > { %v17225_v11 = vcombine.high %v1066_v3, %v1070_v4  ;;  %v1074_v13 = vld [vmem:[%s27445_s4 + $0x5c0] sm:$0xff] }
  0x61   : > { %v1078_v14 = vld [vmem:[%s27445_s4 + $0x5e0] sm:$0xff] }
  0x62   : > { %3261 = vmatpush1.bf16.msra.mxu0 %v17136_v42  ;;  %3384 = vmatpush1.bf16.msra.mxu1 %v17138_v43  ;;  %v1043_v42 = vld [vmem:[%s27445_s4 + $0x4c8] sm:$0xff]  ;;  %v17195_v43 = vcombine.high %v1035_v31, %v1039_v34  ;;  %v17233_v20 = vcombine.high %v1074_v13, %v1078_v14  ;;  %v1082_v21 = vld [vmem:[%s27445_s4 + $0x600] sm:$0xff] }
  0x63   : > { %3262 = vmatprep.subr.bf16.mxu0 %v17145_v44  ;;  %3385 = vmatprep.subr.bf16.mxu1 %v17147_v45  ;;  %v1047_v44 = vld [vmem:[%s27445_s4 + $0x4e8] sm:$0xff]  ;;  %v17192_v45 = vcombine.low %v1034_v29, %v1038_v30  ;;  %v1086_v22 = vld [vmem:[%s27445_s4 + $0x620] sm:$0xff] }
  0x64   : > { %v17202_v55 = vcombine.low %v1043_v42, %v1047_v44  ;;  %v17241_v29 = vcombine.high %v1082_v21, %v1086_v22  ;;  %v1090_v30 = vld [vmem:[%s27445_s4 + $0x640] sm:$0xff] }
  0x65   : > { %v1094_v31 = vld [vmem:[%s27445_s4 + $0x660] sm:$0xff] }
  0x66   : > { %3263 = vmatpush1.bf16.msra.mxu0 %v17144_v51  ;;  %3386 = vmatpush1.bf16.msra.mxu1 %v17146_v52  ;;  %v1051_v51 = vld [vmem:[%s27445_s4 + $0x508] sm:$0xff]  ;;  %v17203_v52 = vcombine.high %v1043_v42, %v1047_v44  ;;  %v1102_v42 = vld [vmem:[%s27445_s4 + $0x6a0] sm:$0xff] }
  0x67   : > { %3264 = vmatprep.subr.bf16.mxu0 %v17153_v53  ;;  %3387 = vmatprep.subr.bf16.mxu1 %v17155_v54  ;;  %v1055_v53 = vld [vmem:[%s27445_s4 + $0x528] sm:$0xff]  ;;  %v17200_v54 = vcombine.low %v1042_v39, %v1046_v40  ;;  %v17249_v39 = vcombine.high %v1090_v30, %v1094_v31  ;;  %v1098_v40 = vld [vmem:[%s27445_s4 + $0x680] sm:$0xff] }
  0x68   : > { %v17210_v1 = vcombine.low %v1051_v51, %v1055_v53 }
  0x6a   : > { %3265 = vmatpush1.bf16.msra.mxu0 %v17152_v60  ;;  %3388 = vmatpush1.bf16.msra.mxu1 %v17154_v61  ;;  %v1059_v60 = vld [vmem:[%s27445_s4 + $0x548] sm:$0xff]  ;;  %v17211_v61 = vcombine.high %v1051_v51, %v1055_v53  ;;  %v1110_v51 = vld [vmem:[%s27445_s4 + $0x6e0] sm:$0xff] }
  0x6b   : > { %3266 = vmatprep.subr.bf16.mxu0 %v17161_v62  ;;  %3389 = vmatprep.subr.bf16.mxu1 %v17163_v63  ;;  %v1063_v62 = vld [vmem:[%s27445_s4 + $0x568] sm:$0xff]  ;;  %v17208_v63 = vcombine.low %v1050_v48, %v1054_v49  ;;  %v17257_v48 = vcombine.high %v1098_v40, %v1102_v42  ;;  %v1106_v49 = vld [vmem:[%s27445_s4 + $0x6c0] sm:$0xff] }
  0x6c   : > { %v17218_v10 = vcombine.low %v1059_v60, %v1063_v62 }
  0x6e   : > { %3267 = vmatpush1.bf16.msra.mxu0 %v17160_v6  ;;  %3390 = vmatpush1.bf16.msra.mxu1 %v17162_v7  ;;  %v1067_v6 = vld [vmem:[%s27445_s4 + $0x588] sm:$0xff]  ;;  %v17219_v7 = vcombine.high %v1059_v60, %v1063_v62  ;;  %v1118_v60 = vld [vmem:[%s27445_s4 + $0x720] sm:$0xff] }
  0x6f   : > { %3268 = vmatprep.subr.bf16.mxu0 %v17169_v8  ;;  %3391 = vmatprep.subr.bf16.mxu1 %v17171_v9  ;;  %v1071_v8 = vld [vmem:[%s27445_s4 + $0x5a8] sm:$0xff]  ;;  %v17216_v9 = vcombine.low %v1058_v58, %v1062_v59  ;;  %v17265_v58 = vcombine.high %v1106_v49, %v1110_v51  ;;  %v1114_v59 = vld [vmem:[%s27445_s4 + $0x700] sm:$0xff] }
  0x72   : > { %3269 = vmatpush1.bf16.msra.mxu0 %v17168_v16  ;;  %3392 = vmatpush1.bf16.msra.mxu1 %v17170_v17  ;;  %v17227_v16 = vcombine.high %v1067_v6, %v1071_v8  ;;  %v1079_v17 = vld [vmem:[%s27445_s4 + $0x5e8] sm:$0xff] }
  0x73   : > { %3279 = vmatprep.subr.bf16.mxu0 %v17177_v18  ;;  %3402 = vmatprep.subr.bf16.mxu1 %v17179_v19  ;;  %v17224_v18 = vcombine.low %v1066_v3, %v1070_v4  ;;  %v17226_v19 = vcombine.low %v1067_v6, %v1071_v8  ;;  %v17235_v25 = vcombine.high %v1075_v15, %v1079_v17  ;;  %v1122_v4 = vld [vmem:[%s27445_s4 + $0x740] sm:$0xff] }
  0x74   : > { %v17273_v3 = vcombine.high %v1114_v59, %v1118_v60  ;;  %v1126_v6 = vld [vmem:[%s27445_s4 + $0x760] sm:$0xff] }
  0x75   : > { %3271 = vmatmul.mubr.bf16.vlgmr.msra.gmra.mrb[0].mxu0 %v20984_v23  ;;  %3394 = vmatmul.mubr.bf16.vlgmr.msra.gmra.mrb[0].mxu1 %v20984_v23 }
  0x76   : > { %3280 = vmatpush1.bf16.msra.mxu0 %v17176_v26  ;;  %3403 = vmatpush1.bf16.msra.mxu1 %v17178_v27  ;;  %v1087_v26 = vld [vmem:[%s27445_s4 + $0x628] sm:$0xff]  ;;  %v17232_v27 = vcombine.low %v1074_v13, %v1078_v14  ;;  %v17281_v13 = vcombine.high %v1122_v4, %v1126_v6  ;;  %v1130_v14 = vld [vmem:[%s27445_s4 + $0x780] sm:$0xff] }
  0x77   : > { %3281 = vmatprep.subr.bf16.mxu0 %v17185_v28  ;;  %3404 = vmatprep.subr.bf16.mxu1 %v17187_v33  ;;  %v17234_v28 = vcombine.low %v1075_v15, %v1079_v17  ;;  %v1091_v33 = vld [vmem:[%s27445_s4 + $0x648] sm:$0xff]  ;;  %v17243_v34 = vcombine.high %v1083_v24, %v1087_v26  ;;  %v1134_v15 = vld [vmem:[%s27445_s4 + $0x7a0] sm:$0xff] }
  0x78   : > { %3311 = vmatprep.mubr.bf16.mxu0 %v21004_v35  ;;  %3434 = vmatprep.mubr.bf16.mxu1 %v21004_v35 }
  0x7a   : > { %3282 = vmatpush1.bf16.msra.mxu0 %v17184_v36  ;;  %3405 = vmatpush1.bf16.msra.mxu1 %v17186_v37  ;;  %v1095_v36 = vld [vmem:[%s27445_s4 + $0x668] sm:$0xff]  ;;  %v17240_v37 = vcombine.low %v1082_v21, %v1086_v22  ;;  %v17289_v21 = vcombine.high %v1130_v14, %v1134_v15  ;;  %v1138_v22 = vld [vmem:[%s27445_s4 + $0x7c0] sm:$0xff] }
  0x7b   : > { %3283 = vmatprep.subr.bf16.mxu0 %v17193_v38  ;;  %3406 = vmatprep.subr.bf16.mxu1 %v17195_v43  ;;  %v17242_v38 = vcombine.low %v1083_v24, %v1087_v26  ;;  %v1099_v43 = vld [vmem:[%s27445_s4 + $0x688] sm:$0xff]  ;;  %v17251_v44 = vcombine.high %v1091_v33, %v1095_v36  ;;  %v1142_v24 = vld [vmem:[%s27445_s4 + $0x7e0] sm:$0xff] }
  0x7e   : > { %3284 = vmatpush1.bf16.msra.mxu0 %v17192_v45  ;;  %3407 = vmatpush1.bf16.msra.mxu1 %v17194_v46  ;;  %v1103_v45 = vld [vmem:[%s27445_s4 + $0x6a8] sm:$0xff]  ;;  %v17248_v46 = vcombine.low %v1090_v30, %v1094_v31  ;;  %v17297_v31 = vcombine.high %v1138_v22, %v1142_v24 }
  0x7f   : > { %3285 = vmatprep.subr.bf16.mxu0 %v17201_v47  ;;  %3408 = vmatprep.subr.bf16.mxu1 %v17203_v52  ;;  %v17250_v47 = vcombine.low %v1091_v33, %v1095_v36  ;;  %v1107_v52 = vld [vmem:[%s27445_s4 + $0x6c8] sm:$0xff]  ;;  %v17259_v53 = vcombine.high %v1099_v43, %v1103_v45  ;;  %v1146_v33 = vld [vmem:[%s27445_s4 + $0x800] sm:$0xff] }
  0x80   : > { %v1147_v36 = vld [vmem:[%s27445_s4 + $0x808] sm:$0xff] }
  0x82   : > { %3286 = vmatpush1.bf16.msra.mxu0 %v17200_v54  ;;  %3409 = vmatpush1.bf16.msra.mxu1 %v17202_v55  ;;  %v1111_v54 = vld [vmem:[%s27445_s4 + $0x6e8] sm:$0xff]  ;;  %v17256_v55 = vcombine.low %v1098_v40, %v1102_v42  ;;  %v17296_v42 = vcombine.low %v1138_v22, %v1142_v24 }
  0x83   : > { %3287 = vmatprep.subr.bf16.mxu0 %v17209_v57  ;;  %3410 = vmatprep.subr.bf16.mxu1 %v17211_v61  ;;  %v17258_v57 = vcombine.low %v1099_v43, %v1103_v45  ;;  %v1115_v61 = vld [vmem:[%s27445_s4 + $0x708] sm:$0xff]  ;;  %v17267_v62 = vcombine.high %v1107_v52, %v1111_v54  ;;  %v1154_v45 = vld [vmem:[%s27445_s4 + $0x840] sm:$0xff] }
  0x84   : > { %v1187_v22 = vld [vmem:[%s27445_s4 + $0x948] sm:$0xff] }
  0x86   : > { %3288 = vmatpush1.bf16.msra.mxu0 %v17208_v63  ;;  %3411 = vmatpush1.bf16.msra.mxu1 %v17210_v1  ;;  %v1119_v63 = vld [vmem:[%s27445_s4 + $0x728] sm:$0xff]  ;;  %v17264_v1 = vcombine.low %v1106_v49, %v1110_v51 }
  0x87   : > { %3289 = vmatprep.subr.bf16.mxu0 %v17217_v2  ;;  %3412 = vmatprep.subr.bf16.mxu1 %v17219_v7  ;;  %v17266_v2 = vcombine.low %v1107_v52, %v1111_v54  ;;  %v1123_v7 = vld [vmem:[%s27445_s4 + $0x748] sm:$0xff]  ;;  %v17275_v8 = vcombine.high %v1115_v61, %v1119_v63 }
  0x88   : > { %v1159_v49 = vld [vmem:[%s27445_s4 + $0x868] sm:$0xff] }
  0x8a   : > { %3290 = vmatpush1.bf16.msra.mxu0 %v17216_v9  ;;  %3413 = vmatpush1.bf16.msra.mxu1 %v17218_v10  ;;  %v1127_v9 = vld [vmem:[%s27445_s4 + $0x768] sm:$0xff]  ;;  %v17272_v10 = vcombine.low %v1114_v59, %v1118_v60 }
  0x8b   : > { %3291 = vmatprep.subr.bf16.mxu0 %v17225_v11  ;;  %3414 = vmatprep.subr.bf16.mxu1 %v17227_v16  ;;  %v17274_v11 = vcombine.low %v1115_v61, %v1119_v63  ;;  %v1131_v16 = vld [vmem:[%s27445_s4 + $0x788] sm:$0xff]  ;;  %v17283_v17 = vcombine.high %v1123_v7, %v1127_v9 }
  0x8c   : > { %v1167_v60 = vld [vmem:[%s27445_s4 + $0x8a8] sm:$0xff] }
  0x8e   : > { %3292 = vmatpush1.bf16.msra.mxu0 %v17224_v18  ;;  %3415 = vmatpush1.bf16.msra.mxu1 %v17226_v19  ;;  %v1135_v18 = vld [vmem:[%s27445_s4 + $0x7a8] sm:$0xff]  ;;  %v17280_v19 = vcombine.low %v1122_v4, %v1126_v6 }
  0x8f   : > { %3293 = vmatprep.subr.bf16.mxu0 %v17233_v20  ;;  %3416 = vmatprep.subr.bf16.mxu1 %v17235_v25  ;;  %v17282_v20 = vcombine.low %v1123_v7, %v1127_v9  ;;  %v1139_v25 = vld [vmem:[%s27445_s4 + $0x7c8] sm:$0xff]  ;;  %v17291_v26 = vcombine.high %v1131_v16, %v1135_v18  ;;  %v17290_v30 = vcombine.low %v1131_v16, %v1135_v18 }
  0x90   : > { %v1171_v4 = vld [vmem:[%s27445_s4 + $0x8c8] sm:$0xff] }
  0x91   : > { %v1175_v7 = vld [vmem:[%s27445_s4 + $0x8e8] sm:$0xff] }
  0x92   : > { %3294 = vmatpush1.bf16.msra.mxu0 %v17232_v27  ;;  %3417 = vmatpush1.bf16.msra.mxu1 %v17234_v28  ;;  %v1143_v27 = vld [vmem:[%s27445_s4 + $0x7e8] sm:$0xff]  ;;  %v21167_v28 = vsub.s32 2, %v20809_v41  ;;  %v17330_v18 = vcombine.low %v1171_v4, %v1175_v7 }
  0x93   : > { %3295 = vmatprep.subr.bf16.mxu0 %v17241_v29  ;;  %3418 = vmatprep.subr.bf16.mxu1 %v17243_v34  ;;  %v17288_v29 = vcombine.low %v1130_v14, %v1134_v15  ;;  %v1150_v34 = vld [vmem:[%s27445_s4 + $0x820] sm:$0xff]  ;;  %v17298_v43 = vcombine.low %v1139_v25, %v1143_v27  ;;  %v1179_v14 = vld [vmem:[%s27445_s4 + $0x908] sm:$0xff]  ;;  %v17331_v15 = vcombine.high %v1171_v4, %v1175_v7 }
  0x94   : > { %v865_v40 = vrot.slane %v20840_v56, %v21167_v28  ;;  %v1183_v16 = vld [vmem:[%s27445_s4 + $0x928] sm:$0xff]  ;;  %v1226_v7 = vld [vmem:[%s27445_s4 + $0xa80] sm:$0xff] }
  0x95   : > { %v17339_v24 = vcombine.high %v1179_v14, %v1183_v16 }
  0x96   : > { %3296 = vmatpush1.bf16.msra.mxu0 %v17240_v37  ;;  %3419 = vmatpush1.bf16.msra.mxu1 %v17242_v38  ;;  %v17299_v37 = vcombine.high %v1139_v25, %v1143_v27  ;;  %v1151_v38 = vld [vmem:[%s27445_s4 + $0x828] sm:$0xff]  ;;  %v21200_v52 = vpack.c.bf16 %v865_v40, %v865_v40  ;;  %v17338_v27 = vcombine.low %v1179_v14, %v1183_v16  ;;  %v1234_v16 = vld [vmem:[%s27445_s4 + $0xac0] sm:$0xff] }
  0x97   : > { %3297 = vmatprep.subr.bf16.mxu0 %v17249_v39  ;;  %3420 = vmatprep.subr.bf16.mxu1 %v17251_v44  ;;  %v21182_v39 = vsub.s32 5, %v20809_v41  ;;  %v17305_v44 = vcombine.high %v1146_v33, %v1150_v34  ;;  %v17306_v54 = vcombine.low %v1147_v36, %v1151_v38  ;;  %v1191_v25 = vld [vmem:[%s27445_s4 + $0x968] sm:$0xff] }
  0x99   : > { %v877_v51 = vrot.slane %v20840_v56, %v21182_v39  ;;  %v1163_v56 = vld [vmem:[%s27445_s4 + $0x888] sm:$0xff] }
  0x9a   : > { %3298 = vmatpush1.bf16.msra.mxu0 %v17248_v46  ;;  %3421 = vmatpush1.bf16.msra.mxu1 %v17250_v47  ;;  %v1158_v46 = vld [vmem:[%s27445_s4 + $0x860] sm:$0xff]  ;;  %v1155_v47 = vld [vmem:[%s27445_s4 + $0x848] sm:$0xff]  ;;  %v17323_v6 = vcombine.high %v1163_v56, %v1167_v60  ;;  %v17322_v9 = vcombine.low %v1163_v56, %v1167_v60 }
  0x9b   : > { %3299 = vmatprep.subr.bf16.mxu0 %v17257_v48  ;;  %3422 = vmatprep.subr.bf16.mxu1 %v17259_v53  ;;  %v17307_v48 = vcombine.high %v1147_v36, %v1151_v38  ;;  %v17304_v53 = vcombine.low %v1146_v33, %v1150_v34  ;;  %v17315_v59 = vcombine.high %v1155_v47, %v1159_v49  ;;  %v1195_v33 = vld [vmem:[%s27445_s4 + $0x988] sm:$0xff]  ;;  %v1218_v60 = vld [vmem:[%s27445_s4 + $0xa40] sm:$0xff] }
  0x9c   : > { %v21214_v61 = vpack.c.bf16 %v877_v51, %v877_v51  ;;  %v17314_v63 = vcombine.low %v1155_v47, %v1159_v49  ;;  %v17347_v34 = vcombine.high %v1187_v22, %v1191_v25  ;;  %v1199_v36 = vld [vmem:[%s27445_s4 + $0x9a8] sm:$0xff]  ;;  %v17346_v38 = vcombine.low %v1187_v22, %v1191_v25  ;;  %v1210_v51 = vld [vmem:[%s27445_s4 + $0xa00] sm:$0xff] }
  0x9d   : > { %v1242_v25 = vld [vmem:[%s27445_s4 + $0xb00] sm:$0xff] }
  0x9e   : > { %3300 = vmatpush1.bf16.msra.mxu0 %v17256_v55  ;;  %3423 = vmatpush1.bf16.msra.mxu1 %v17258_v57  ;;  %v17313_v55 = vcombine.high %v1154_v45, %v1158_v46  ;;  %v1162_v57 = vld [vmem:[%s27445_s4 + $0x880] sm:$0xff] }
  0x9f   : > { %3301 = vmatprep.subr.bf16.mxu0 %v17265_v58  ;;  %3424 = vmatprep.subr.bf16.mxu1 %v17267_v62  ;;  %v1166_v58 = vld [vmem:[%s27445_s4 + $0x8a0] sm:$0xff]  ;;  %v17312_v62 = vcombine.low %v1154_v45, %v1158_v46  ;;  %v17355_v45 = vcombine.high %v1195_v33, %v1199_v36  ;;  %v1207_v46 = vld [vmem:[%s27445_s4 + $0x9e8] sm:$0xff] }
  0xa2   : > { %3302 = vmatpush1.bf16.msra.mxu0 %v17264_v1  ;;  %3425 = vmatpush1.bf16.msra.mxu1 %v17266_v2  ;;  %v17321_v1 = vcombine.high %v1162_v57, %v1166_v58  ;;  %v1170_v2 = vld [vmem:[%s27445_s4 + $0x8c0] sm:$0xff] }
  0xa3   : > { %3303 = vmatprep.subr.bf16.mxu0 %v17273_v3  ;;  %3426 = vmatprep.subr.bf16.mxu1 %v17275_v8  ;;  %v1174_v3 = vld [vmem:[%s27445_s4 + $0x8e0] sm:$0xff]  ;;  %v17320_v8 = vcombine.low %v1162_v57, %v1166_v58  ;;  %v1215_v57 = vld [vmem:[%s27445_s4 + $0xa28] sm:$0xff] }
  0xa6   : > { %3304 = vmatpush1.bf16.msra.mxu0 %v17272_v10  ;;  %3427 = vmatpush1.bf16.msra.mxu1 %v17274_v11  ;;  %v17329_v10 = vcombine.high %v1170_v2, %v1174_v3  ;;  %v1178_v11 = vld [vmem:[%s27445_s4 + $0x900] sm:$0xff] }
  0xa7   : > { %3305 = vmatprep.subr.bf16.mxu0 %v17281_v13  ;;  %3428 = vmatprep.subr.bf16.mxu1 %v17283_v17  ;;  %v1182_v13 = vld [vmem:[%s27445_s4 + $0x920] sm:$0xff]  ;;  %v17328_v17 = vcombine.low %v1170_v2, %v1174_v3  ;;  %v1223_v2 = vld [vmem:[%s27445_s4 + $0xa68] sm:$0xff] }
  0xaa   : > { %3306 = vmatpush1.bf16.msra.mxu0 %v17280_v19  ;;  %3429 = vmatpush1.bf16.msra.mxu1 %v17282_v20  ;;  %v17337_v19 = vcombine.high %v1178_v11, %v1182_v13  ;;  %v1186_v20 = vld [vmem:[%s27445_s4 + $0x940] sm:$0xff] }
  0xab   : > { %3307 = vmatprep.subr.bf16.mxu0 %v17289_v21  ;;  %3430 = vmatprep.subr.bf16.mxu1 %v17291_v26  ;;  %v1190_v21 = vld [vmem:[%s27445_s4 + $0x960] sm:$0xff]  ;;  %v17336_v26 = vcombine.low %v1178_v11, %v1182_v13  ;;  %v1231_v11 = vld [vmem:[%s27445_s4 + $0xaa8] sm:$0xff] }
  0xae   : > { %3308 = vmatpush1.bf16.msra.mxu0 %v17288_v29  ;;  %3431 = vmatpush1.bf16.msra.mxu1 %v17290_v30  ;;  %v17345_v29 = vcombine.high %v1186_v20, %v1190_v21  ;;  %v1194_v30 = vld [vmem:[%s27445_s4 + $0x980] sm:$0xff] }
  0xaf   : > { %3309 = vmatprep.subr.bf16.mxu0 %v17297_v31  ;;  %3432 = vmatprep.subr.bf16.mxu1 %v17299_v37  ;;  %v1198_v31 = vld [vmem:[%s27445_s4 + $0x9a0] sm:$0xff]  ;;  %v17344_v37 = vcombine.low %v1186_v20, %v1190_v21  ;;  %v1239_v20 = vld [vmem:[%s27445_s4 + $0xae8] sm:$0xff] }
  0xb0   : > { %v17353_v40 = vcombine.high %v1194_v30, %v1198_v31  ;;  %v17352_v47 = vcombine.low %v1194_v30, %v1198_v31  ;;  %v1247_v30 = vld [vmem:[%s27445_s4 + $0xb28] sm:$0xff] }
  0xb2   : > { %3310 = vmatpush1.bf16.msra.mxu0 %v17296_v42  ;;  %3433 = vmatpush1.bf16.msra.mxu1 %v17298_v43  ;;  %v1202_v42 = vld [vmem:[%s27445_s4 + $0x9c0] sm:$0xff] }
  0xb3   : > { %3320 = vmatprep.subr.bf16.mxu0 %v17305_v44  ;;  %3443 = vmatprep.subr.bf16.mxu1 %v17307_v48  ;;  %v1206_v43 = vld [vmem:[%s27445_s4 + $0x9e0] sm:$0xff]  ;;  %v1203_v44 = vld [vmem:[%s27445_s4 + $0x9c8] sm:$0xff]  ;;  %v17354_v48 = vcombine.low %v1195_v33, %v1199_v36 }
  0xb4   : > { %v17361_v49 = vcombine.high %v1202_v42, %v1206_v43  ;;  %v17360_v58 = vcombine.low %v1202_v42, %v1206_v43  ;;  %v17362_v56 = vcombine.low %v1203_v44, %v1207_v46  ;;  %v1250_v36 = vld [vmem:[%s27445_s4 + $0xb40] sm:$0xff]  ;;  %v1255_v42 = vld [vmem:[%s27445_s4 + $0xb68] sm:$0xff] }
  0xb5   : > { %3312 = vmatmul.mubr.bf16.vlgmr.msra.gmra.mrb[0].mxu0 %v21200_v52  ;;  %3435 = vmatmul.mubr.bf16.vlgmr.msra.gmra.mrb[0].mxu1 %v21200_v52 }
  0xb6   : > { %3321 = vmatpush1.bf16.msra.mxu0 %v17304_v53  ;;  %3444 = vmatpush1.bf16.msra.mxu1 %v17306_v54  ;;  %v1214_v53 = vld [vmem:[%s27445_s4 + $0xa20] sm:$0xff]  ;;  %v1211_v54 = vld [vmem:[%s27445_s4 + $0xa08] sm:$0xff] }
  0xb7   : > { %3322 = vmatprep.subr.bf16.mxu0 %v17313_v55  ;;  %3445 = vmatprep.subr.bf16.mxu1 %v17315_v59  ;;  %v17363_v55 = vcombine.high %v1203_v44, %v1207_v46  ;;  %v17369_v59 = vcombine.high %v1210_v51, %v1214_v53  ;;  %v17368_v3 = vcombine.low %v1210_v51, %v1214_v53  ;;  %v1258_v46 = vld [vmem:[%s27445_s4 + $0xb80] sm:$0xff]  ;;  %v1263_v51 = vld [vmem:[%s27445_s4 + $0xba8] sm:$0xff] }
  0xb8   : > { %3352 = vmatprep.mubr.bf16.mxu0 %v21214_v61  ;;  %3475 = vmatprep.mubr.bf16.mxu1 %v21214_v61  ;;  %v17370_v4 = vcombine.low %v1211_v54, %v1215_v57 }
  0xba   : > { %3323 = vmatpush1.bf16.msra.mxu0 %v17312_v62  ;;  %3446 = vmatpush1.bf16.msra.mxu1 %v17314_v63  ;;  %v1222_v62 = vld [vmem:[%s27445_s4 + $0xa60] sm:$0xff]  ;;  %v1219_v63 = vld [vmem:[%s27445_s4 + $0xa48] sm:$0xff] }
  0xbb   : > { %3324 = vmatprep.subr.bf16.mxu0 %v17321_v1  ;;  %3447 = vmatprep.subr.bf16.mxu1 %v17323_v6  ;;  %v17371_v1 = vcombine.high %v1211_v54, %v1215_v57  ;;  %v17377_v6 = vcombine.high %v1218_v60, %v1222_v62  ;;  %v17376_v13 = vcombine.low %v1218_v60, %v1222_v62  ;;  %v1266_v57 = vld [vmem:[%s27445_s4 + $0xbc0] sm:$0xff]  ;;  %v1271_v60 = vld [vmem:[%s27445_s4 + $0xbe8] sm:$0xff]  ;;  %v21377_v62 = vsub.s32 4, %v20809_v41 }
  0xbc   : > { %v17378_v14 = vcombine.low %v1219_v63, %v1223_v2 }
  0xbe   : > { %3325 = vmatpush1.bf16.msra.mxu0 %v17320_v8  ;;  %3448 = vmatpush1.bf16.msra.mxu1 %v17322_v9  ;;  %v1230_v8 = vld [vmem:[%s27445_s4 + $0xaa0] sm:$0xff]  ;;  %v1227_v9 = vld [vmem:[%s27445_s4 + $0xa88] sm:$0xff] }
  0xbf   : > { %3326 = vmatprep.subr.bf16.mxu0 %v17329_v10  ;;  %3449 = vmatprep.subr.bf16.mxu1 %v17331_v15  ;;  %v17379_v10 = vcombine.high %v1219_v63, %v1223_v2  ;;  %v17385_v15 = vcombine.high %v1226_v7, %v1230_v8  ;;  %v17384_v21 = vcombine.low %v1226_v7, %v1230_v8  ;;  %v897_v8 = vld [vmem:[%s27445_s4 + $0x38] sm:$0xff] }
  0xc0   : > { %v17386_v22 = vcombine.low %v1227_v9, %v1231_v11 }
  0xc2   : > { %3327 = vmatpush1.bf16.msra.mxu0 %v17328_v17  ;;  %3450 = vmatpush1.bf16.msra.mxu1 %v17330_v18  ;;  %v1238_v17 = vld [vmem:[%s27445_s4 + $0xae0] sm:$0xff]  ;;  %v1235_v18 = vld [vmem:[%s27445_s4 + $0xac8] sm:$0xff] }
  0xc3   : > { %3328 = vmatprep.subr.bf16.mxu0 %v17337_v19  ;;  %3451 = vmatprep.subr.bf16.mxu1 %v17339_v24  ;;  %v17387_v19 = vcombine.high %v1227_v9, %v1231_v11  ;;  %v17393_v24 = vcombine.high %v1234_v16, %v1238_v17  ;;  %v17392_v31 = vcombine.low %v1234_v16, %v1238_v17  ;;  %v20474_v9 = vld [vmem:[%s20828_s12] sm:$0x3f]  ;;  %v904_v16 = vld [vmem:[%s27445_s4 + $0x70] sm:$0xff]  ;;  %v901_v17 = vld [vmem:[%s27445_s4 + $0x58] sm:$0xff]  ;;  %s27464_s12 = sld [smem:[#allocation27_spill]] }
  0xc4   : > { %v17394_v33 = vcombine.low %v1235_v18, %v1239_v20 }
  0xc6   : > { %3329 = vmatpush1.bf16.msra.mxu0 %v17336_v26  ;;  %3452 = vmatpush1.bf16.msra.mxu1 %v17338_v27  ;;  %v1246_v26 = vld [vmem:[%s27445_s4 + $0xb20] sm:$0xff]  ;;  %v1243_v27 = vld [vmem:[%s27445_s4 + $0xb08] sm:$0xff] }
  0xc7   : > { %3330 = vmatprep.subr.bf16.mxu0 %v17345_v29  ;;  %3453 = vmatprep.subr.bf16.mxu1 %v17347_v34  ;;  %v17395_v29 = vcombine.high %v1235_v18, %v1239_v20  ;;  %v17401_v34 = vcombine.high %v1242_v25, %v1246_v26  ;;  %v17400_v43 = vcombine.low %v1242_v25, %v1246_v26  ;;  %v908_v25 = vld [vmem:[%s27445_s4 + $0x90] sm:$0xff] }
  0xc8   : > { %v17402_v44 = vcombine.low %v1243_v27, %v1247_v30  ;;  %v912_v26 = vld [vmem:[%s27445_s4 + $0xb0] sm:$0xff] }
  0xca   : > { %3331 = vmatpush1.bf16.msra.mxu0 %v17344_v37  ;;  %3454 = vmatpush1.bf16.msra.mxu1 %v17346_v38  ;;  %v1254_v37 = vld [vmem:[%s27445_s4 + $0xb60] sm:$0xff]  ;;  %v1251_v38 = vld [vmem:[%s27445_s4 + $0xb48] sm:$0xff] }
  0xcb   : > { %3332 = vmatprep.subr.bf16.mxu0 %v17353_v40  ;;  %3455 = vmatprep.subr.bf16.mxu1 %v17355_v45  ;;  %v17403_v40 = vcombine.high %v1243_v27, %v1247_v30  ;;  %v17409_v45 = vcombine.high %v1250_v36, %v1254_v37  ;;  %v17408_v53 = vcombine.low %v1250_v36, %v1254_v37  ;;  %v909_v27 = vld [vmem:[%s27445_s4 + $0x98] sm:$0xff]  ;;  %v916_v36 = vld [vmem:[%s27445_s4 + $0xd0] sm:$0xff] }
  0xcc   : > { %v17410_v54 = vcombine.low %v1251_v38, %v1255_v42  ;;  %v913_v30 = vld [vmem:[%s27445_s4 + $0xb8] sm:$0xff]  ;;  %v920_v37 = vld [vmem:[%s27445_s4 + $0xf0] sm:$0xff] }
  0xce   : > { %3333 = vmatpush1.bf16.msra.mxu0 %v17352_v47  ;;  %3456 = vmatpush1.bf16.msra.mxu1 %v17354_v48  ;;  %v1262_v47 = vld [vmem:[%s27445_s4 + $0xba0] sm:$0xff]  ;;  %v1259_v48 = vld [vmem:[%s27445_s4 + $0xb88] sm:$0xff] }
  0xcf   : > { %3334 = vmatprep.subr.bf16.mxu0 %v17361_v49  ;;  %3457 = vmatprep.subr.bf16.mxu1 %v17363_v55  ;;  %v17411_v49 = vcombine.high %v1251_v38, %v1255_v42  ;;  %v17417_v55 = vcombine.high %v1258_v46, %v1262_v47  ;;  %v17416_v63 = vcombine.low %v1258_v46, %v1262_v47  ;;  %v917_v38 = vld [vmem:[%s27445_s4 + $0xd8] sm:$0xff]  ;;  %v924_v46 = vld [vmem:[%s27445_s4 + $0x110] sm:$0xff] }
  0xd0   : > { %v921_v42 = vld [vmem:[%s27445_s4 + $0xf8] sm:$0xff]  ;;  %v928_v47 = vld [vmem:[%s27445_s4 + $0x130] sm:$0xff] }
  0xd2   : > { %3335 = vmatpush1.bf16.msra.mxu0 %v17360_v58  ;;  %3458 = vmatpush1.bf16.msra.mxu1 %v17362_v56  ;;  %v1270_v58 = vld [vmem:[%s27445_s4 + $0xbe0] sm:$0xff]  ;;  %v1267_v56 = vld [vmem:[%s27445_s4 + $0xbc8] sm:$0xff] }
  0xd3   : > { %3336 = vmatprep.subr.bf16.mxu0 %v17369_v59  ;;  %3459 = vmatprep.subr.bf16.mxu1 %v17371_v1  ;;  %v17419_v59 = vcombine.high %v1259_v48, %v1263_v51  ;;  %v17418_v1 = vcombine.low %v1259_v48, %v1263_v51  ;;  %v17425_v2 = vcombine.high %v1266_v57, %v1270_v58  ;;  %v925_v48 = vld [vmem:[%s27445_s4 + $0x118] sm:$0xff] }
  0xd4   : > { %v17427_v7 = vcombine.high %v1267_v56, %v1271_v60  ;;  %v17424_v11 = vcombine.low %v1266_v57, %v1270_v58  ;;  %v17076_v51 = vcombine.low %v916_v36, %v920_v37  ;;  %v936_v57 = vld [vmem:[%s27445_s4 + $0x170] sm:$0xff]  ;;  %v933_v58 = vld [vmem:[%s27445_s4 + $0x158] sm:$0xff] }
  0xd6   : > { %3337 = vmatpush1.bf16.msra.mxu0 %v17368_v3  ;;  %3460 = vmatpush1.bf16.msra.mxu1 %v17370_v4  ;;  %v892_v3 = vld [vmem:[%s27445_s4 + $0x10] sm:$0xff] }
  0xd7   : > { %3338 = vmatprep.subr.bf16.mxu0 %v17377_v6  ;;  %3461 = vmatprep.subr.bf16.mxu1 %v17379_v10  ;;  %v896_v4 = vld [vmem:[%s27445_s4 + $0x30] sm:$0xff]  ;;  %v893_v6 = vld [vmem:[%s27445_s4 + $0x18] sm:$0xff]  ;;  %v873_v10 = vrot.slane %v20474_v9, %v21377_v62 }
  0xd8   : > { %v17055_v18 = vcombine.high %v893_v6, %v897_v8 }
  0xd9   : > { %v21405_v20 = vpack.c.bf16 %v873_v10, %v873_v10 }
  0xda   : > { %3339 = vmatpush1.bf16.msra.mxu0 %v17376_v13  ;;  %3462 = vmatpush1.bf16.msra.mxu1 %v17378_v14  ;;  %v17426_v13 = vcombine.low %v1267_v56, %v1271_v60  ;;  %v17053_v14 = vcombine.high %v892_v3, %v896_v4  ;;  %v17084_v60 = vcombine.low %v924_v46, %v928_v47 }
  0xdb   : > { %3340 = vmatprep.subr.bf16.mxu0 %v17385_v15  ;;  %3463 = vmatprep.subr.bf16.mxu1 %v17387_v19  ;;  %v900_v15 = vld [vmem:[%s27445_s4 + $0x50] sm:$0xff]  ;;  %v905_v19 = vld [vmem:[%s27445_s4 + $0x78] sm:$0xff] }
  0xde   : > { %3341 = vmatpush1.bf16.msra.mxu0 %v17384_v21  ;;  %3464 = vmatpush1.bf16.msra.mxu1 %v17386_v22  ;;  %v17052_v21 = vcombine.low %v892_v3, %v896_v4  ;;  %v17054_v22 = vcombine.low %v893_v6, %v897_v8  ;;  %v944_v3 = vld [vmem:[%s27445_s4 + $0x1b0] sm:$0xff]  ;;  %v941_v4 = vld [vmem:[%s27445_s4 + $0x198] sm:$0xff] }
  0xdf   : > { %3342 = vmatprep.subr.bf16.mxu0 %v17393_v24  ;;  %3465 = vmatprep.subr.bf16.mxu1 %v17395_v29  ;;  %v17061_v24 = vcombine.high %v900_v15, %v904_v16  ;;  %v17063_v29 = vcombine.high %v901_v17, %v905_v19 }
  0xe2   : > { %3343 = vmatpush1.bf16.msra.mxu0 %v17392_v31  ;;  %3466 = vmatpush1.bf16.msra.mxu1 %v17394_v33  ;;  %v17060_v31 = vcombine.low %v900_v15, %v904_v16  ;;  %v17062_v33 = vcombine.low %v901_v17, %v905_v19  ;;  %v953_v16 = vld [vmem:[%s27445_s4 + $0x1f8] sm:$0xff] }
  0xe3   : > { %3344 = vmatprep.subr.bf16.mxu0 %v17401_v34  ;;  %3467 = vmatprep.subr.bf16.mxu1 %v17403_v40  ;;  %v17069_v34 = vcombine.high %v908_v25, %v912_v26  ;;  %v17071_v40 = vcombine.high %v909_v27, %v913_v30 }
  0xe6   : > { %3345 = vmatpush1.bf16.msra.mxu0 %v17400_v43  ;;  %3468 = vmatpush1.bf16.msra.mxu1 %v17402_v44  ;;  %v17068_v43 = vcombine.low %v908_v25, %v912_v26  ;;  %v17070_v44 = vcombine.low %v909_v27, %v913_v30  ;;  %v961_v26 = vld [vmem:[%s27445_s4 + $0x238] sm:$0xff] }
  0xe7   : > { %3346 = vmatprep.subr.bf16.mxu0 %v17409_v45  ;;  %3469 = vmatprep.subr.bf16.mxu1 %v17411_v49  ;;  %v17077_v45 = vcombine.high %v916_v36, %v920_v37  ;;  %v929_v49 = vld [vmem:[%s27445_s4 + $0x138] sm:$0xff] }
  0xe8   : > { %v17087_v56 = vcombine.high %v925_v48, %v929_v49  ;;  %v969_v37 = vld [vmem:[%s27445_s4 + $0x278] sm:$0xff] }
  0xea   : > { %3347 = vmatpush1.bf16.msra.mxu0 %v17408_v53  ;;  %3470 = vmatpush1.bf16.msra.mxu1 %v17410_v54  ;;  %v17078_v53 = vcombine.low %v917_v38, %v921_v42  ;;  %v17085_v54 = vcombine.high %v924_v46, %v928_v47  ;;  %v977_v47 = vld [vmem:[%s27445_s4 + $0x2b8] sm:$0xff] }
  0xeb   : > { %3348 = vmatprep.subr.bf16.mxu0 %v17417_v55  ;;  %3471 = vmatprep.subr.bf16.mxu1 %v17419_v59  ;;  %v932_v55 = vld [vmem:[%s27445_s4 + $0x150] sm:$0xff]  ;;  %v937_v59 = vld [vmem:[%s27445_s4 + $0x178] sm:$0xff] }
  0xec   : > { %v17095_v6 = vcombine.high %v933_v58, %v937_v59  ;;  %v17092_v8 = vcombine.low %v932_v55, %v936_v57  ;;  %v17094_v9 = vcombine.low %v933_v58, %v937_v59 }
  0xee   : > { %3349 = vmatpush1.bf16.msra.mxu0 %v17416_v63  ;;  %3472 = vmatpush1.bf16.msra.mxu1 %v17418_v1  ;;  %v17086_v63 = vcombine.low %v925_v48, %v929_v49  ;;  %v17093_v1 = vcombine.high %v932_v55, %v936_v57  ;;  %v985_v57 = vld [vmem:[%s27445_s4 + $0x2f8] sm:$0xff] }
  0xef   : > { %3350 = vmatprep.subr.bf16.mxu0 %v17425_v2  ;;  %3473 = vmatprep.subr.bf16.mxu1 %v17427_v7  ;;  %v940_v2 = vld [vmem:[%s27445_s4 + $0x190] sm:$0xff]  ;;  %v945_v7 = vld [vmem:[%s27445_s4 + $0x1b8] sm:$0xff] }
  0xf0   : > { %v17101_v10 = vcombine.high %v940_v2, %v944_v3  ;;  %v17103_v15 = vcombine.high %v941_v4, %v945_v7  ;;  %v17100_v17 = vcombine.low %v940_v2, %v944_v3  ;;  %v993_v3 = vld [vmem:[%s27445_s4 + $0x338] sm:$0xff] }
  0xf2   : > { %3351 = vmatpush1.bf16.msra.mxu0 %v17424_v11  ;;  %3474 = vmatpush1.bf16.msra.mxu1 %v17426_v13  ;;  %v948_v11 = vld [vmem:[%s27445_s4 + $0x1d0] sm:$0xff] }
  0xf3   : > { %3484 = vmatprep.subr.bf16.mxu0 %v17053_v14  ;;  %3607 = vmatprep.subr.bf16.mxu1 %v17055_v18  ;;  %v952_v13 = vld [vmem:[%s27445_s4 + $0x1f0] sm:$0xff]  ;;  %v949_v14 = vld [vmem:[%s27445_s4 + $0x1d8] sm:$0xff]  ;;  %v17102_v18 = vcombine.low %v941_v4, %v945_v7 }
  0xf4   : > { %v17109_v19 = vcombine.high %v948_v11, %v952_v13  ;;  %v17111_v25 = vcombine.high %v949_v14, %v953_v16  ;;  %v17108_v27 = vcombine.low %v948_v11, %v952_v13  ;;  %v1001_v13 = vld [vmem:[%s27445_s4 + $0x378] sm:$0xff] }
  0xf5   : > { %3353 = vmatmul.mubr.bf16.vlgmr.msra.gmra.mrb[0].mxu0 %v21405_v20  ;;  %3476 = vmatmul.mubr.bf16.vlgmr.msra.gmra.mrb[0].mxu1 %v21405_v20 }
  0xf6   : > { %3485 = vmatpush1.bf16.msra.mxu0 %v17052_v21  ;;  %3608 = vmatpush1.bf16.msra.mxu1 %v17054_v22  ;;  %v956_v21 = vld [vmem:[%s27445_s4 + $0x210] sm:$0xff] }
  0xf7   : > { %3486 = vmatprep.subr.bf16.mxu0 %v17061_v24  ;;  %3609 = vmatprep.subr.bf16.mxu1 %v17063_v29  ;;  %v960_v22 = vld [vmem:[%s27445_s4 + $0x230] sm:$0xff]  ;;  %v957_v24 = vld [vmem:[%s27445_s4 + $0x218] sm:$0xff]  ;;  %v17110_v29 = vcombine.low %v949_v14, %v953_v16 }
  0xf8   : > { %3516 = vmatprep.mubr.bf16.mxu0 %v20856_v0  ;;  %3639 = vmatprep.mubr.bf16.mxu1 %v20856_v0  ;;  %v17079_v0 = vcombine.high %v917_v38, %v921_v42  ;;  %v17117_v30 = vcombine.high %v956_v21, %v960_v22  ;;  %v17119_v36 = vcombine.high %v957_v24, %v961_v26 }
  0xf9   : > { %v17116_v38 = vcombine.low %v956_v21, %v960_v22  ;;  %v1009_v22 = vld [vmem:[%s27445_s4 + $0x3b8] sm:$0xff] }
  0xfa   : > { %3487 = vmatpush1.bf16.msra.mxu0 %v17060_v31  ;;  %3610 = vmatpush1.bf16.msra.mxu1 %v17062_v33  ;;  %v964_v31 = vld [vmem:[%s27445_s4 + $0x250] sm:$0xff] }
  0xfb   : > { %3488 = vmatprep.subr.bf16.mxu0 %v17069_v34  ;;  %3611 = vmatprep.subr.bf16.mxu1 %v17071_v40  ;;  %v968_v33 = vld [vmem:[%s27445_s4 + $0x270] sm:$0xff]  ;;  %v965_v34 = vld [vmem:[%s27445_s4 + $0x258] sm:$0xff]  ;;  %v17118_v40 = vcombine.low %v957_v24, %v961_v26 }
  0xfc   : > { %v17125_v42 = vcombine.high %v964_v31, %v968_v33  ;;  %v17127_v46 = vcombine.high %v965_v34, %v969_v37  ;;  %v17124_v48 = vcombine.low %v964_v31, %v968_v33  ;;  %v1017_v33 = vld [vmem:[%s27445_s4 + $0x3f8] sm:$0xff] }
  0xfe   : > { %3489 = vmatpush1.bf16.msra.mxu0 %v17068_v43  ;;  %3612 = vmatpush1.bf16.msra.mxu1 %v17070_v44  ;;  %v972_v43 = vld [vmem:[%s27445_s4 + $0x290] sm:$0xff] }
  0xff   : > { %3490 = vmatprep.subr.bf16.mxu0 %v17077_v45  ;;  %3613 = vmatprep.subr.bf16.mxu1 %v17079_v0  ;;  %v976_v44 = vld [vmem:[%s27445_s4 + $0x2b0] sm:$0xff]  ;;  %v973_v45 = vld [vmem:[%s27445_s4 + $0x298] sm:$0xff]  ;;  %v17126_v0 = vcombine.low %v965_v34, %v969_v37 }
 0x100   : > { %v17133_v49 = vcombine.high %v972_v43, %v976_v44  ;;  %v17135_v55 = vcombine.high %v973_v45, %v977_v47  ;;  %v17132_v58 = vcombine.low %v972_v43, %v976_v44  ;;  %v1025_v44 = vld [vmem:[%s27445_s4 + $0x438] sm:$0xff] }
 0x102   : > { %3491 = vmatpush1.bf16.msra.mxu0 %v17076_v51  ;;  %3614 = vmatpush1.bf16.msra.mxu1 %v17078_v53  ;;  %v980_v51 = vld [vmem:[%s27445_s4 + $0x2d0] sm:$0xff] }
 0x103   : > { %3492 = vmatprep.subr.bf16.mxu0 %v17085_v54  ;;  %3615 = vmatprep.subr.bf16.mxu1 %v17087_v56  ;;  %v984_v53 = vld [vmem:[%s27445_s4 + $0x2f0] sm:$0xff]  ;;  %v981_v54 = vld [vmem:[%s27445_s4 + $0x2d8] sm:$0xff]  ;;  %v17134_v56 = vcombine.low %v973_v45, %v977_v47 }
 0x104   : > { %v17141_v59 = vcombine.high %v980_v51, %v984_v53  ;;  %v17143_v2 = vcombine.high %v981_v54, %v985_v57  ;;  %v17140_v4 = vcombine.low %v980_v51, %v984_v53  ;;  %v1033_v53 = vld [vmem:[%s27445_s4 + $0x478] sm:$0xff] }
 0x106   : > { %3493 = vmatpush1.bf16.msra.mxu0 %v17084_v60  ;;  %3616 = vmatpush1.bf16.msra.mxu1 %v17086_v63  ;;  %v988_v60 = vld [vmem:[%s27445_s4 + $0x310] sm:$0xff] }
 0x107   : > { %3494 = vmatprep.subr.bf16.mxu0 %v17093_v1  ;;  %3617 = vmatprep.subr.bf16.mxu1 %v17095_v6  ;;  %v992_v63 = vld [vmem:[%s27445_s4 + $0x330] sm:$0xff]  ;;  %v989_v1 = vld [vmem:[%s27445_s4 + $0x318] sm:$0xff]  ;;  %v17142_v6 = vcombine.low %v981_v54, %v985_v57 }
 0x108   : > { %v17149_v7 = vcombine.high %v988_v60, %v992_v63  ;;  %v17151_v11 = vcombine.high %v989_v1, %v993_v3  ;;  %v17148_v14 = vcombine.low %v988_v60, %v992_v63  ;;  %v1041_v63 = vld [vmem:[%s27445_s4 + $0x4b8] sm:$0xff] }
 0x10a   : > { %3495 = vmatpush1.bf16.msra.mxu0 %v17092_v8  ;;  %3618 = vmatpush1.bf16.msra.mxu1 %v17094_v9  ;;  %v996_v8 = vld [vmem:[%s27445_s4 + $0x350] sm:$0xff] }
 0x10b   : > { %3496 = vmatprep.subr.bf16.mxu0 %v17101_v10  ;;  %3619 = vmatprep.subr.bf16.mxu1 %v17103_v15  ;;  %v1000_v9 = vld [vmem:[%s27445_s4 + $0x370] sm:$0xff]  ;;  %v997_v10 = vld [vmem:[%s27445_s4 + $0x358] sm:$0xff]  ;;  %v17150_v15 = vcombine.low %v989_v1, %v993_v3 }
 0x10c   : > { %v17157_v16 = vcombine.high %v996_v8, %v1000_v9  ;;  %v17159_v21 = vcombine.high %v997_v10, %v1001_v13  ;;  %v17156_v24 = vcombine.low %v996_v8, %v1000_v9 }
 0x10e   : > { %3497 = vmatpush1.bf16.msra.mxu0 %v17100_v17  ;;  %3620 = vmatpush1.bf16.msra.mxu1 %v17102_v18  ;;  %v1004_v17 = vld [vmem:[%s27445_s4 + $0x390] sm:$0xff] }
 0x10f   : > { %3498 = vmatprep.subr.bf16.mxu0 %v17109_v19  ;;  %3621 = vmatprep.subr.bf16.mxu1 %v17111_v25  ;;  %v1008_v18 = vld [vmem:[%s27445_s4 + $0x3b0] sm:$0xff]  ;;  %v1005_v19 = vld [vmem:[%s27445_s4 + $0x398] sm:$0xff]  ;;  %v17158_v25 = vcombine.low %v997_v10, %v1001_v13 }
 0x110   : > { %v17165_v26 = vcombine.high %v1004_v17, %v1008_v18  ;;  %v17167_v31 = vcombine.high %v1005_v19, %v1009_v22  ;;  %v17164_v34 = vcombine.low %v1004_v17, %v1008_v18  ;;  %v1052_v13 = vld [vmem:[%s27445_s4 + $0x510] sm:$0xff] }
 0x112   : > { %3499 = vmatpush1.bf16.msra.mxu0 %v17108_v27  ;;  %3622 = vmatpush1.bf16.msra.mxu1 %v17110_v29  ;;  %v1012_v27 = vld [vmem:[%s27445_s4 + $0x3d0] sm:$0xff] }
 0x113   : > { %3500 = vmatprep.subr.bf16.mxu0 %v17117_v30  ;;  %3623 = vmatprep.subr.bf16.mxu1 %v17119_v36  ;;  %v1016_v29 = vld [vmem:[%s27445_s4 + $0x3f0] sm:$0xff]  ;;  %v1013_v30 = vld [vmem:[%s27445_s4 + $0x3d8] sm:$0xff]  ;;  %v17166_v36 = vcombine.low %v1005_v19, %v1009_v22 }
 0x114   : > { %v17173_v37 = vcombine.high %v1012_v27, %v1016_v29  ;;  %v17175_v43 = vcombine.high %v1013_v30, %v1017_v33  ;;  %v17172_v45 = vcombine.low %v1012_v27, %v1016_v29  ;;  %v1064_v22 = vld [vmem:[%s27445_s4 + $0x570] sm:$0xff] }
 0x116   : > { %3501 = vmatpush1.bf16.msra.mxu0 %v17116_v38  ;;  %3624 = vmatpush1.bf16.msra.mxu1 %v17118_v40  ;;  %v1020_v38 = vld [vmem:[%s27445_s4 + $0x410] sm:$0xff] }
 0x117   : > { %3502 = vmatprep.subr.bf16.mxu0 %v17125_v42  ;;  %3625 = vmatprep.subr.bf16.mxu1 %v17127_v46  ;;  %v1024_v40 = vld [vmem:[%s27445_s4 + $0x430] sm:$0xff]  ;;  %v1021_v42 = vld [vmem:[%s27445_s4 + $0x418] sm:$0xff]  ;;  %v17174_v46 = vcombine.low %v1013_v30, %v1017_v33 }
 0x118   : > { %v17181_v47 = vcombine.high %v1020_v38, %v1024_v40  ;;  %v17183_v51 = vcombine.high %v1021_v42, %v1025_v44  ;;  %v17180_v54 = vcombine.low %v1020_v38, %v1024_v40 }
 0x11a   : > { %3503 = vmatpush1.bf16.msra.mxu0 %v17124_v48  ;;  %3626 = vmatpush1.bf16.msra.mxu1 %v17126_v0  ;;  %v1028_v48 = vld [vmem:[%s27445_s4 + $0x450] sm:$0xff] }
 0x11b   : > { %3504 = vmatprep.subr.bf16.mxu0 %v17133_v49  ;;  %3627 = vmatprep.subr.bf16.mxu1 %v17135_v55  ;;  %v1032_v0 = vld [vmem:[%s27445_s4 + $0x470] sm:$0xff]  ;;  %v1029_v49 = vld [vmem:[%s27445_s4 + $0x458] sm:$0xff]  ;;  %v17182_v55 = vcombine.low %v1021_v42, %v1025_v44 }
 0x11c   : > { %v17189_v57 = vcombine.high %v1028_v48, %v1032_v0  ;;  %v17191_v60 = vcombine.high %v1029_v49, %v1033_v53  ;;  %v17188_v1 = vcombine.low %v1028_v48, %v1032_v0  ;;  %v1080_v44 = vld [vmem:[%s27445_s4 + $0x5f0] sm:$0xff] }
 0x11e   : > { %3505 = vmatpush1.bf16.msra.mxu0 %v17132_v58  ;;  %3628 = vmatpush1.bf16.msra.mxu1 %v17134_v56  ;;  %v1036_v58 = vld [vmem:[%s27445_s4 + $0x490] sm:$0xff] }
 0x11f   : > { %3506 = vmatprep.subr.bf16.mxu0 %v17141_v59  ;;  %3629 = vmatprep.subr.bf16.mxu1 %v17143_v2  ;;  %v1040_v56 = vld [vmem:[%s27445_s4 + $0x4b0] sm:$0xff]  ;;  %v1037_v59 = vld [vmem:[%s27445_s4 + $0x498] sm:$0xff]  ;;  %v17190_v2 = vcombine.low %v1029_v49, %v1033_v53 }
 0x120   : > { %v17197_v3 = vcombine.high %v1036_v58, %v1040_v56  ;;  %v17199_v8 = vcombine.high %v1037_v59, %v1041_v63  ;;  %v17196_v9 = vcombine.low %v1036_v58, %v1040_v56  ;;  %v17198_v10 = vcombine.low %v1037_v59, %v1041_v63  ;;  %v1088_v53 = vld [vmem:[%s27445_s4 + $0x630] sm:$0xff] }
 0x121   : > { %v1096_v63 = vld [vmem:[%s27445_s4 + $0x670] sm:$0xff] }
 0x122   : > { %3507 = vmatpush1.bf16.msra.mxu0 %v17140_v4  ;;  %3630 = vmatpush1.bf16.msra.mxu1 %v17142_v6  ;;  %v1044_v4 = vld [vmem:[%s27445_s4 + $0x4d0] sm:$0xff] }
 0x123   : > { %3508 = vmatprep.subr.bf16.mxu0 %v17149_v7  ;;  %3631 = vmatprep.subr.bf16.mxu1 %v17151_v11  ;;  %v1048_v6 = vld [vmem:[%s27445_s4 + $0x4f0] sm:$0xff]  ;;  %v1045_v7 = vld [vmem:[%s27445_s4 + $0x4d8] sm:$0xff] }
 0x124   : > { %v17205_v11 = vcombine.high %v1044_v4, %v1048_v6  ;;  %v17204_v17 = vcombine.low %v1044_v4, %v1048_v6 }
 0x126   : > { %3509 = vmatpush1.bf16.msra.mxu0 %v17148_v14  ;;  %3632 = vmatpush1.bf16.msra.mxu1 %v17150_v15  ;;  %v1056_v14 = vld [vmem:[%s27445_s4 + $0x530] sm:$0xff]  ;;  %v1053_v15 = vld [vmem:[%s27445_s4 + $0x518] sm:$0xff] }
 0x127   : > { %3510 = vmatprep.subr.bf16.mxu0 %v17157_v16  ;;  %3633 = vmatprep.subr.bf16.mxu1 %v17159_v21  ;;  %v1057_v16 = vld [vmem:[%s27445_s4 + $0x538] sm:$0xff]  ;;  %v17213_v19 = vcombine.high %v1052_v13, %v1056_v14  ;;  %v1060_v21 = vld [vmem:[%s27445_s4 + $0x550] sm:$0xff]  ;;  %v17212_v27 = vcombine.low %v1052_v13, %v1056_v14 }
 0x128   : > { %v17214_v29 = vcombine.low %v1053_v15, %v1057_v16  ;;  %v17221_v30 = vcombine.high %v1060_v21, %v1064_v22  ;;  %v17220_v38 = vcombine.low %v1060_v21, %v1064_v22 }
 0x12a   : > { %3511 = vmatpush1.bf16.msra.mxu0 %v17156_v24  ;;  %3634 = vmatpush1.bf16.msra.mxu1 %v17158_v25  ;;  %v1061_v24 = vld [vmem:[%s27445_s4 + $0x558] sm:$0xff]  ;;  %v17215_v25 = vcombine.high %v1053_v15, %v1057_v16  ;;  %v1112_v16 = vld [vmem:[%s27445_s4 + $0x6f0] sm:$0xff] }
 0x12b   : > { %3512 = vmatprep.subr.bf16.mxu0 %v17165_v26  ;;  %3635 = vmatprep.subr.bf16.mxu1 %v17167_v31  ;;  %v1065_v26 = vld [vmem:[%s27445_s4 + $0x578] sm:$0xff]  ;;  %v1068_v31 = vld [vmem:[%s27445_s4 + $0x590] sm:$0xff] }
 0x12c   : > { %v17223_v33 = vcombine.high %v1061_v24, %v1065_v26  ;;  %v17222_v40 = vcombine.low %v1061_v24, %v1065_v26  ;;  %v1120_v26 = vld [vmem:[%s27445_s4 + $0x730] sm:$0xff] }
 0x12e   : > { %3513 = vmatpush1.bf16.msra.mxu0 %v17164_v34  ;;  %3636 = vmatpush1.bf16.msra.mxu1 %v17166_v36  ;;  %v1072_v34 = vld [vmem:[%s27445_s4 + $0x5b0] sm:$0xff]  ;;  %v1069_v36 = vld [vmem:[%s27445_s4 + $0x598] sm:$0xff] }
 0x12f   : > { %3514 = vmatprep.subr.bf16.mxu0 %v17173_v37  ;;  %3637 = vmatprep.subr.bf16.mxu1 %v17175_v43  ;;  %v1073_v37 = vld [vmem:[%s27445_s4 + $0x5b8] sm:$0xff]  ;;  %v17229_v42 = vcombine.high %v1068_v31, %v1072_v34  ;;  %v1076_v43 = vld [vmem:[%s27445_s4 + $0x5d0] sm:$0xff]  ;;  %v17228_v48 = vcombine.low %v1068_v31, %v1072_v34 }
 0x130   : > { %v17230_v0 = vcombine.low %v1069_v36, %v1073_v37  ;;  %v17237_v49 = vcombine.high %v1076_v43, %v1080_v44  ;;  %v17236_v58 = vcombine.low %v1076_v43, %v1080_v44 }
 0x132   : > { %3515 = vmatpush1.bf16.msra.mxu0 %v17172_v45  ;;  %3638 = vmatpush1.bf16.msra.mxu1 %v17174_v46  ;;  %v1077_v45 = vld [vmem:[%s27445_s4 + $0x5d8] sm:$0xff]  ;;  %v17231_v46 = vcombine.high %v1069_v36, %v1073_v37  ;;  %v1124_v36 = vld [vmem:[%s27445_s4 + $0x750] sm:$0xff] }
 0x133   : > { %3525 = vmatprep.subr.bf16.mxu0 %v17181_v47  ;;  %3648 = vmatprep.subr.bf16.mxu1 %v17183_v51  ;;  %v1081_v47 = vld [vmem:[%s27445_s4 + $0x5f8] sm:$0xff]  ;;  %v1084_v51 = vld [vmem:[%s27445_s4 + $0x610] sm:$0xff] }
 0x134   : > { %v17238_v56 = vcombine.low %v1077_v45, %v1081_v47  ;;  %v17245_v59 = vcombine.high %v1084_v51, %v1088_v53  ;;  %v17244_v4 = vcombine.low %v1084_v51, %v1088_v53  ;;  %v1128_v37 = vld [vmem:[%s27445_s4 + $0x770] sm:$0xff] }
 0x135   : > { %3517 = vmatmul.mubr.bf16.vlgmr.msra.gmra.mrb[4].mxu0 %v20984_v23  ;;  %3640 = vmatmul.mubr.bf16.vlgmr.msra.gmra.mrb[4].mxu1 %v20984_v23  ;;  %v1049_v23 = vld [vmem:[%s27445_s4 + $0x4f8] sm:$0xff]  ;;  %v17284_v51 = vcombine.low %v1124_v36, %v1128_v37 }
 0x136   : > { %3526 = vmatpush1.bf16.msra.mxu0 %v17180_v54  ;;  %3649 = vmatpush1.bf16.msra.mxu1 %v17182_v55  ;;  %v17206_v18 = vcombine.low %v1045_v7, %v1049_v23  ;;  %v1085_v54 = vld [vmem:[%s27445_s4 + $0x618] sm:$0xff]  ;;  %v17239_v55 = vcombine.high %v1077_v45, %v1081_v47  ;;  %v17285_v45 = vcombine.high %v1124_v36, %v1128_v37  ;;  %v1136_v47 = vld [vmem:[%s27445_s4 + $0x7b0] sm:$0xff] }
 0x137   : > { %3527 = vmatprep.subr.bf16.mxu0 %v17189_v57  ;;  %3650 = vmatprep.subr.bf16.mxu1 %v17191_v60  ;;  %v1089_v57 = vld [vmem:[%s27445_s4 + $0x638] sm:$0xff]  ;;  %v1092_v60 = vld [vmem:[%s27445_s4 + $0x650] sm:$0xff] }
 0x138   : > { %3557 = vmatprep.mubr.bf16.mxu0 %v21004_v35  ;;  %3680 = vmatprep.mubr.bf16.mxu1 %v21004_v35  ;;  %v17207_v35 = vcombine.high %v1045_v7, %v1049_v23  ;;  %v17246_v6 = vcombine.low %v1085_v54, %v1089_v57  ;;  %v17253_v7 = vcombine.high %v1092_v60, %v1096_v63  ;;  %v1104_v23 = vld [vmem:[%s27445_s4 + $0x6b0] sm:$0xff] }
 0x139   : > { %v17252_v13 = vcombine.low %v1092_v60, %v1096_v63 }
 0x13a   : > { %3528 = vmatpush1.bf16.msra.mxu0 %v17188_v1  ;;  %3651 = vmatpush1.bf16.msra.mxu1 %v17190_v2  ;;  %v1093_v1 = vld [vmem:[%s27445_s4 + $0x658] sm:$0xff]  ;;  %v17247_v2 = vcombine.high %v1085_v54, %v1089_v57  ;;  %v1144_v57 = vld [vmem:[%s27445_s4 + $0x7f0] sm:$0xff] }
 0x13b   : > { %3529 = vmatprep.subr.bf16.mxu0 %v17197_v3  ;;  %3652 = vmatprep.subr.bf16.mxu1 %v17199_v8  ;;  %v1097_v3 = vld [vmem:[%s27445_s4 + $0x678] sm:$0xff]  ;;  %v1100_v8 = vld [vmem:[%s27445_s4 + $0x690] sm:$0xff] }
 0x13c   : > { %v17254_v14 = vcombine.low %v1093_v1, %v1097_v3  ;;  %v17261_v15 = vcombine.high %v1100_v8, %v1104_v23  ;;  %v17260_v21 = vcombine.low %v1100_v8, %v1104_v23 }
 0x13e   : > { %3530 = vmatpush1.bf16.msra.mxu0 %v17196_v9  ;;  %3653 = vmatpush1.bf16.msra.mxu1 %v17198_v10  ;;  %v1101_v9 = vld [vmem:[%s27445_s4 + $0x698] sm:$0xff]  ;;  %v17255_v10 = vcombine.high %v1093_v1, %v1097_v3  ;;  %v1152_v3 = vld [vmem:[%s27445_s4 + $0x830] sm:$0xff] }
 0x13f   : > { %3531 = vmatprep.subr.bf16.mxu0 %v17205_v11  ;;  %3654 = vmatprep.subr.bf16.mxu1 %v17207_v35  ;;  %v1105_v11 = vld [vmem:[%s27445_s4 + $0x6b8] sm:$0xff]  ;;  %v1108_v35 = vld [vmem:[%s27445_s4 + $0x6d0] sm:$0xff] }
 0x140   : > { %v17262_v22 = vcombine.low %v1101_v9, %v1105_v11  ;;  %v17269_v24 = vcombine.high %v1108_v35, %v1112_v16  ;;  %v17268_v31 = vcombine.low %v1108_v35, %v1112_v16 }
 0x142   : > { %3532 = vmatpush1.bf16.msra.mxu0 %v17204_v17  ;;  %3655 = vmatpush1.bf16.msra.mxu1 %v17206_v18  ;;  %v1109_v17 = vld [vmem:[%s27445_s4 + $0x6d8] sm:$0xff]  ;;  %v17263_v18 = vcombine.high %v1101_v9, %v1105_v11  ;;  %v1160_v11 = vld [vmem:[%s27445_s4 + $0x870] sm:$0xff] }
 0x143   : > { %3533 = vmatprep.subr.bf16.mxu0 %v17213_v19  ;;  %3656 = vmatprep.subr.bf16.mxu1 %v17215_v25  ;;  %v1113_v19 = vld [vmem:[%s27445_s4 + $0x6f8] sm:$0xff]  ;;  %v1116_v25 = vld [vmem:[%s27445_s4 + $0x710] sm:$0xff] }
 0x144   : > { %v17277_v34 = vcombine.high %v1116_v25, %v1120_v26  ;;  %v17276_v43 = vcombine.low %v1116_v25, %v1120_v26 }
 0x146   : > { %3534 = vmatpush1.bf16.msra.mxu0 %v17212_v27  ;;  %3657 = vmatpush1.bf16.msra.mxu1 %v17214_v29  ;;  %v1117_v27 = vld [vmem:[%s27445_s4 + $0x718] sm:$0xff]  ;;  %v17271_v29 = vcombine.high %v1109_v17, %v1113_v19 }
 0x147   : > { %3535 = vmatprep.subr.bf16.mxu0 %v17221_v30  ;;  %3658 = vmatprep.subr.bf16.mxu1 %v17223_v33  ;;  %v1121_v30 = vld [vmem:[%s27445_s4 + $0x738] sm:$0xff]  ;;  %v17270_v33 = vcombine.low %v1109_v17, %v1113_v19  ;;  %v1168_v19 = vld [vmem:[%s27445_s4 + $0x8b0] sm:$0xff] }
 0x148   : > { %v17278_v44 = vcombine.low %v1117_v27, %v1121_v30 }
 0x14a   : > { %3536 = vmatpush1.bf16.msra.mxu0 %v17220_v38  ;;  %3659 = vmatpush1.bf16.msra.mxu1 %v17222_v40  ;;  %v1125_v38 = vld [vmem:[%s27445_s4 + $0x758] sm:$0xff]  ;;  %v17279_v40 = vcombine.high %v1117_v27, %v1121_v30  ;;  %v1172_v30 = vld [vmem:[%s27445_s4 + $0x8d0] sm:$0xff] }
 0x14b   : > { %3537 = vmatprep.subr.bf16.mxu0 %v17229_v42  ;;  %3660 = vmatprep.subr.bf16.mxu1 %v17231_v46  ;;  %v1129_v42 = vld [vmem:[%s27445_s4 + $0x778] sm:$0xff]  ;;  %v1132_v46 = vld [vmem:[%s27445_s4 + $0x790] sm:$0xff] }
 0x14c   : > { %v17286_v53 = vcombine.low %v1125_v38, %v1129_v42  ;;  %v17293_v54 = vcombine.high %v1132_v46, %v1136_v47  ;;  %v17292_v60 = vcombine.low %v1132_v46, %v1136_v47  ;;  %v1188_v47 = vld [vmem:[%s27445_s4 + $0x950] sm:$0xff] }
 0x14e   : > { %3538 = vmatpush1.bf16.msra.mxu0 %v17228_v48  ;;  %3661 = vmatpush1.bf16.msra.mxu1 %v17230_v0  ;;  %v1133_v48 = vld [vmem:[%s27445_s4 + $0x798] sm:$0xff]  ;;  %v17287_v0 = vcombine.high %v1125_v38, %v1129_v42  ;;  %v1180_v38 = vld [vmem:[%s27445_s4 + $0x910] sm:$0xff] }
 0x14f   : > { %3539 = vmatprep.subr.bf16.mxu0 %v17237_v49  ;;  %3662 = vmatprep.subr.bf16.mxu1 %v17239_v55  ;;  %v1137_v49 = vld [vmem:[%s27445_s4 + $0x7b8] sm:$0xff]  ;;  %v1140_v55 = vld [vmem:[%s27445_s4 + $0x7d0] sm:$0xff] }
 0x150   : > { %v17294_v63 = vcombine.low %v1133_v48, %v1137_v49  ;;  %v17301_v1 = vcombine.high %v1140_v55, %v1144_v57  ;;  %v17300_v8 = vcombine.low %v1140_v55, %v1144_v57  ;;  %v1181_v42 = vld [vmem:[%s27445_s4 + $0x918] sm:$0xff]  ;;  %v1196_v57 = vld [vmem:[%s27445_s4 + $0x990] sm:$0xff] }
 0x152   : > { %3540 = vmatpush1.bf16.msra.mxu0 %v17236_v58  ;;  %3663 = vmatpush1.bf16.msra.mxu1 %v17238_v56  ;;  %v1141_v58 = vld [vmem:[%s27445_s4 + $0x7d8] sm:$0xff]  ;;  %v17295_v56 = vcombine.high %v1133_v48, %v1137_v49  ;;  %v1192_v48 = vld [vmem:[%s27445_s4 + $0x970] sm:$0xff] }
 0x153   : > { %3541 = vmatprep.subr.bf16.mxu0 %v17245_v59  ;;  %3664 = vmatprep.subr.bf16.mxu1 %v17247_v2  ;;  %v1145_v59 = vld [vmem:[%s27445_s4 + $0x7f8] sm:$0xff]  ;;  %v1148_v2 = vld [vmem:[%s27445_s4 + $0x810] sm:$0xff]  ;;  %v17349_v55 = vcombine.high %v1188_v47, %v1192_v48 }
 0x154   : > { %v17302_v23 = vcombine.low %v1141_v58, %v1145_v59  ;;  %v17309_v9 = vcombine.high %v1148_v2, %v1152_v3  ;;  %v17308_v35 = vcombine.low %v1148_v2, %v1152_v3  ;;  %v1204_v3 = vld [vmem:[%s27445_s4 + $0x9d0] sm:$0xff] }
 0x156   : > { %3542 = vmatpush1.bf16.msra.mxu0 %v17244_v4  ;;  %3665 = vmatpush1.bf16.msra.mxu1 %v17246_v6  ;;  %v1149_v4 = vld [vmem:[%s27445_s4 + $0x818] sm:$0xff]  ;;  %v17303_v6 = vcombine.high %v1141_v58, %v1145_v59  ;;  %v1200_v58 = vld [vmem:[%s27445_s4 + $0x9b0] sm:$0xff] }
 0x157   : > { %3543 = vmatprep.subr.bf16.mxu0 %v17253_v7  ;;  %3666 = vmatprep.subr.bf16.mxu1 %v17255_v10  ;;  %v1153_v7 = vld [vmem:[%s27445_s4 + $0x838] sm:$0xff]  ;;  %v1156_v10 = vld [vmem:[%s27445_s4 + $0x850] sm:$0xff]  ;;  %v17357_v2 = vcombine.high %v1196_v57, %v1200_v58 }
 0x158   : > { %v17310_v16 = vcombine.low %v1149_v4, %v1153_v7  ;;  %v17317_v17 = vcombine.high %v1156_v10, %v1160_v11  ;;  %v17316_v25 = vcombine.low %v1156_v10, %v1160_v11  ;;  %v1212_v11 = vld [vmem:[%s27445_s4 + $0xa10] sm:$0xff] }
 0x15a   : > { %3544 = vmatpush1.bf16.msra.mxu0 %v17252_v13  ;;  %3667 = vmatpush1.bf16.msra.mxu1 %v17254_v14  ;;  %v1157_v13 = vld [vmem:[%s27445_s4 + $0x858] sm:$0xff]  ;;  %v17311_v14 = vcombine.high %v1149_v4, %v1153_v7  ;;  %v1208_v4 = vld [vmem:[%s27445_s4 + $0x9f0] sm:$0xff] }
 0x15b   : > { %3545 = vmatprep.subr.bf16.mxu0 %v17261_v15  ;;  %3668 = vmatprep.subr.bf16.mxu1 %v17263_v18  ;;  %v1161_v15 = vld [vmem:[%s27445_s4 + $0x878] sm:$0xff]  ;;  %v1164_v18 = vld [vmem:[%s27445_s4 + $0x890] sm:$0xff]  ;;  %v17365_v10 = vcombine.high %v1204_v3, %v1208_v4 }
 0x15c   : > { %v17318_v26 = vcombine.low %v1157_v13, %v1161_v15  ;;  %v17325_v27 = vcombine.high %v1164_v18, %v1168_v19 }
 0x15e   : > { %3546 = vmatpush1.bf16.msra.mxu0 %v17260_v21  ;;  %3669 = vmatpush1.bf16.msra.mxu1 %v17262_v22  ;;  %v1165_v21 = vld [vmem:[%s27445_s4 + $0x898] sm:$0xff]  ;;  %v17319_v22 = vcombine.high %v1157_v13, %v1161_v15  ;;  %v1216_v13 = vld [vmem:[%s27445_s4 + $0xa30] sm:$0xff] }
 0x15f   : > { %3547 = vmatprep.subr.bf16.mxu0 %v17269_v24  ;;  %3670 = vmatprep.subr.bf16.mxu1 %v17271_v29  ;;  %v1169_v24 = vld [vmem:[%s27445_s4 + $0x8b8] sm:$0xff] }
 0x160   : > { %v17327_v29 = vcombine.high %v1165_v21, %v1169_v24  ;;  %v17326_v36 = vcombine.low %v1165_v21, %v1169_v24  ;;  %v1224_v21 = vld [vmem:[%s27445_s4 + $0xa70] sm:$0xff] }
 0x162   : > { %3548 = vmatpush1.bf16.msra.mxu0 %v17268_v31  ;;  %3671 = vmatpush1.bf16.msra.mxu1 %v17270_v33  ;;  %v1176_v31 = vld [vmem:[%s27445_s4 + $0x8f0] sm:$0xff]  ;;  %v1173_v33 = vld [vmem:[%s27445_s4 + $0x8d8] sm:$0xff] }
 0x163   : > { %3549 = vmatprep.subr.bf16.mxu0 %v17277_v34  ;;  %3672 = vmatprep.subr.bf16.mxu1 %v17279_v40  ;;  %v17324_v34 = vcombine.low %v1164_v18, %v1168_v19  ;;  %v17333_v37 = vcombine.high %v1172_v30, %v1176_v31  ;;  %v1184_v40 = vld [vmem:[%s27445_s4 + $0x930] sm:$0xff]  ;;  %v17373_v18 = vcombine.high %v1212_v11, %v1216_v13 }
 0x164   : > { %v17341_v46 = vcombine.high %v1180_v38, %v1184_v40  ;;  %v1220_v19 = vld [vmem:[%s27445_s4 + $0xa50] sm:$0xff] }
 0x166   : > { %3550 = vmatpush1.bf16.msra.mxu0 %v17276_v43  ;;  %3673 = vmatpush1.bf16.msra.mxu1 %v17278_v44  ;;  %v1185_v43 = vld [vmem:[%s27445_s4 + $0x938] sm:$0xff]  ;;  %v17332_v44 = vcombine.low %v1172_v30, %v1176_v31  ;;  %v1228_v30 = vld [vmem:[%s27445_s4 + $0xa90] sm:$0xff] }
 0x167   : > { %3551 = vmatprep.subr.bf16.mxu0 %v17285_v45  ;;  %3674 = vmatprep.subr.bf16.mxu1 %v17287_v0  ;;  %v1189_v0 = vld [vmem:[%s27445_s4 + $0x958] sm:$0xff]  ;;  %v17343_v49 = vcombine.high %v1181_v42, %v1185_v43  ;;  %v1232_v31 = vld [vmem:[%s27445_s4 + $0xab0] sm:$0xff] }
 0x16a   : > { %3552 = vmatpush1.bf16.msra.mxu0 %v17284_v51  ;;  %3675 = vmatpush1.bf16.msra.mxu1 %v17286_v53  ;;  %v1193_v51 = vld [vmem:[%s27445_s4 + $0x978] sm:$0xff]  ;;  %v17340_v53 = vcombine.low %v1180_v38, %v1184_v40  ;;  %v17389_v38 = vcombine.high %v1228_v30, %v1232_v31  ;;  %v1236_v40 = vld [vmem:[%s27445_s4 + $0xad0] sm:$0xff] }
 0x16b   : > { %3553 = vmatprep.subr.bf16.mxu0 %v17293_v54  ;;  %3676 = vmatprep.subr.bf16.mxu1 %v17295_v56  ;;  %v17342_v54 = vcombine.low %v1181_v42, %v1185_v43  ;;  %v1197_v56 = vld [vmem:[%s27445_s4 + $0x998] sm:$0xff]  ;;  %v17351_v59 = vcombine.high %v1189_v0, %v1193_v51  ;;  %v1240_v42 = vld [vmem:[%s27445_s4 + $0xaf0] sm:$0xff] }
 0x16e   : > { %3554 = vmatpush1.bf16.msra.mxu0 %v17292_v60  ;;  %3677 = vmatpush1.bf16.msra.mxu1 %v17294_v63  ;;  %v1201_v60 = vld [vmem:[%s27445_s4 + $0x9b8] sm:$0xff]  ;;  %v17348_v63 = vcombine.low %v1188_v47, %v1192_v48  ;;  %v17397_v47 = vcombine.high %v1236_v40, %v1240_v42  ;;  %v1244_v48 = vld [vmem:[%s27445_s4 + $0xb10] sm:$0xff] }
 0x16f   : > { %3555 = vmatprep.subr.bf16.mxu0 %v17301_v1  ;;  %3678 = vmatprep.subr.bf16.mxu1 %v17303_v6  ;;  %v17350_v1 = vcombine.low %v1189_v0, %v1193_v51  ;;  %v1205_v6 = vld [vmem:[%s27445_s4 + $0x9d8] sm:$0xff]  ;;  %v17359_v7 = vcombine.high %v1197_v56, %v1201_v60  ;;  %v1248_v0 = vld [vmem:[%s27445_s4 + $0xb30] sm:$0xff] }
 0x172   : > { %3556 = vmatpush1.bf16.msra.mxu0 %v17300_v8  ;;  %3679 = vmatpush1.bf16.msra.mxu1 %v17302_v23  ;;  %v1209_v8 = vld [vmem:[%s27445_s4 + $0x9f8] sm:$0xff]  ;;  %v17356_v23 = vcombine.low %v1196_v57, %v1200_v58  ;;  %v17405_v57 = vcombine.high %v1244_v48, %v1248_v0  ;;  %v1252_v58 = vld [vmem:[%s27445_s4 + $0xb50] sm:$0xff] }
 0x173   : > { %3566 = vmatprep.subr.bf16.mxu0 %v17309_v9  ;;  %3689 = vmatprep.subr.bf16.mxu1 %v17311_v14  ;;  %v17358_v9 = vcombine.low %v1197_v56, %v1201_v60  ;;  %v1213_v14 = vld [vmem:[%s27445_s4 + $0xa18] sm:$0xff]  ;;  %v17367_v15 = vcombine.high %v1205_v6, %v1209_v8  ;;  %v1256_v56 = vld [vmem:[%s27445_s4 + $0xb70] sm:$0xff] }
 0x175   : > { %3558 = vmatmul.mubr.bf16.vlgmr.msra.gmra.mrb[4].mxu0 %v21200_v52  ;;  %3681 = vmatmul.mubr.bf16.vlgmr.msra.gmra.mrb[4].mxu1 %v21200_v52  ;;  %v1177_v52 = vld [vmem:[%s27445_s4 + $0x8f8] sm:$0xff] }
 0x176   : > { %3567 = vmatpush1.bf16.msra.mxu0 %v17308_v35  ;;  %3690 = vmatpush1.bf16.msra.mxu1 %v17310_v16  ;;  %v17334_v45 = vcombine.low %v1173_v33, %v1177_v52  ;;  %v1217_v35 = vld [vmem:[%s27445_s4 + $0xa38] sm:$0xff]  ;;  %v17364_v16 = vcombine.low %v1204_v3, %v1208_v4  ;;  %v17413_v3 = vcombine.high %v1252_v58, %v1256_v56  ;;  %v1260_v4 = vld [vmem:[%s27445_s4 + $0xb90] sm:$0xff] }
 0x177   : > { %3568 = vmatprep.subr.bf16.mxu0 %v17317_v17  ;;  %3691 = vmatprep.subr.bf16.mxu1 %v17319_v22  ;;  %v17366_v17 = vcombine.low %v1205_v6, %v1209_v8  ;;  %v1221_v22 = vld [vmem:[%s27445_s4 + $0xa58] sm:$0xff]  ;;  %v17375_v24 = vcombine.high %v1213_v14, %v1217_v35  ;;  %v1264_v6 = vld [vmem:[%s27445_s4 + $0xbb0] sm:$0xff] }
 0x178   : > { %3598 = vmatprep.mubr.bf16.mxu0 %v21214_v61  ;;  %3721 = vmatprep.mubr.bf16.mxu1 %v21214_v61  ;;  %v17335_v61 = vcombine.high %v1173_v33, %v1177_v52  ;;  %v1229_v33 = vld [vmem:[%s27445_s4 + $0xa98] sm:$0xff] }
 0x17a   : > { %3569 = vmatpush1.bf16.msra.mxu0 %v17316_v25  ;;  %3692 = vmatpush1.bf16.msra.mxu1 %v17318_v26  ;;  %v1225_v25 = vld [vmem:[%s27445_s4 + $0xa78] sm:$0xff]  ;;  %v17372_v26 = vcombine.low %v1212_v11, %v1216_v13  ;;  %v17421_v11 = vcombine.high %v1260_v4, %v1264_v6  ;;  %v1268_v13 = vld [vmem:[%s27445_s4 + $0xbd0] sm:$0xff] }
 0x17b   : > { %3570 = vmatprep.subr.bf16.mxu0 %v17325_v27  ;;  %3693 = vmatprep.subr.bf16.mxu1 %v17327_v29  ;;  %v17374_v27 = vcombine.low %v1213_v14, %v1217_v35  ;;  %v17381_v29 = vcombine.high %v1220_v19, %v1224_v21  ;;  %v17383_v52 = vcombine.high %v1221_v22, %v1225_v25  ;;  %v1272_v14 = vld [vmem:[%s27445_s4 + $0xbf0] sm:$0xff] }
 0x17e   : > { %3571 = vmatpush1.bf16.msra.mxu0 %v17324_v34  ;;  %3694 = vmatpush1.bf16.msra.mxu1 %v17326_v36  ;;  %v1233_v34 = vld [vmem:[%s27445_s4 + $0xab8] sm:$0xff]  ;;  %v17380_v36 = vcombine.low %v1220_v19, %v1224_v21  ;;  %v17429_v19 = vcombine.high %v1268_v13, %v1272_v14  ;;  %v3746_v21 = vld [vmem:[%s27448_s6] sm:$0xff] }
 0x17f   : > { %3572 = vmatprep.subr.bf16.mxu0 %v17333_v37  ;;  %3695 = vmatprep.subr.bf16.mxu1 %v17335_v61  ;;  %v17382_v37 = vcombine.low %v1221_v22, %v1225_v25  ;;  %v1237_v61 = vld [vmem:[%s27445_s4 + $0xad8] sm:$0xff]  ;;  %v17391_v43 = vcombine.high %v1229_v33, %v1233_v34  ;;  %v3750_v22 = vld [vmem:[%s27448_s6 + $0x20] sm:$0xff] }
 0x182   : > { %3573 = vmatpush1.bf16.msra.mxu0 %v17332_v44  ;;  %3696 = vmatpush1.bf16.msra.mxu1 %v17334_v45  ;;  %v1241_v44 = vld [vmem:[%s27445_s4 + $0xaf8] sm:$0xff]  ;;  %v17388_v45 = vcombine.low %v1228_v30, %v1232_v31  ;;  %v17435_v30 = vcombine.high %v3746_v21, %v3750_v22  ;;  %v3754_v31 = vld [vmem:[%s27448_s6 + $0x40] sm:$0xff] }
 0x183   : > { %3574 = vmatprep.subr.bf16.mxu0 %v17341_v46  ;;  %3697 = vmatprep.subr.bf16.mxu1 %v17343_v49  ;;  %v17390_v46 = vcombine.low %v1229_v33, %v1233_v34  ;;  %v1245_v49 = vld [vmem:[%s27445_s4 + $0xb18] sm:$0xff]  ;;  %v17399_v51 = vcombine.high %v1237_v61, %v1241_v44  ;;  %v3758_v33 = vld [vmem:[%s27448_s6 + $0x60] sm:$0xff] }
 0x186   : > { %3575 = vmatpush1.bf16.msra.mxu0 %v17340_v53  ;;  %3698 = vmatpush1.bf16.msra.mxu1 %v17342_v54  ;;  %v1249_v53 = vld [vmem:[%s27445_s4 + $0xb38] sm:$0xff]  ;;  %v17396_v54 = vcombine.low %v1236_v40, %v1240_v42  ;;  %v3766_v40 = vld [vmem:[%s27448_s6 + $0xa0] sm:$0xff] }
 0x187   : > { %3576 = vmatprep.subr.bf16.mxu0 %v17349_v55  ;;  %3699 = vmatprep.subr.bf16.mxu1 %v17351_v59  ;;  %v17398_v55 = vcombine.low %v1237_v61, %v1241_v44  ;;  %v1253_v59 = vld [vmem:[%s27445_s4 + $0xb58] sm:$0xff]  ;;  %v17407_v60 = vcombine.high %v1245_v49, %v1249_v53  ;;  %v17443_v61 = vcombine.high %v3754_v31, %v3758_v33  ;;  %v3767_v44 = vld [vmem:[%s27448_s6 + $0xa8] sm:$0xff] }
 0x18a   : > { %3577 = vmatpush1.bf16.msra.mxu0 %v17348_v63  ;;  %3700 = vmatpush1.bf16.msra.mxu1 %v17350_v1  ;;  %v1257_v63 = vld [vmem:[%s27445_s4 + $0xb78] sm:$0xff]  ;;  %v17404_v1 = vcombine.low %v1244_v48, %v1248_v0  ;;  %v3770_v0 = vld [vmem:[%s27448_s6 + $0xc0] sm:$0xff] }
 0x18b   : > { %3578 = vmatprep.subr.bf16.mxu0 %v17357_v2  ;;  %3701 = vmatprep.subr.bf16.mxu1 %v17359_v7  ;;  %v17406_v2 = vcombine.low %v1245_v49, %v1249_v53  ;;  %v1261_v7 = vld [vmem:[%s27445_s4 + $0xb98] sm:$0xff]  ;;  %v17415_v8 = vcombine.high %v1253_v59, %v1257_v63  ;;  %v3774_v49 = vld [vmem:[%s27448_s6 + $0xe0] sm:$0xff]  ;;  %v3775_v53 = vld [vmem:[%s27448_s6 + $0xe8] sm:$0xff] }
 0x18e   : > { %3579 = vmatpush1.bf16.msra.mxu0 %v17356_v23  ;;  %3702 = vmatpush1.bf16.msra.mxu1 %v17358_v9  ;;  %v1265_v23 = vld [vmem:[%s27445_s4 + $0xbb8] sm:$0xff]  ;;  %v17412_v9 = vcombine.low %v1252_v58, %v1256_v56  ;;  %v3778_v58 = vld [vmem:[%s27448_s6 + $0x100] sm:$0xff] }
 0x18f   : > { %3580 = vmatprep.subr.bf16.mxu0 %v17365_v10  ;;  %3703 = vmatprep.subr.bf16.mxu1 %v17367_v15  ;;  %v17414_v10 = vcombine.low %v1253_v59, %v1257_v63  ;;  %v1269_v15 = vld [vmem:[%s27445_s4 + $0xbd8] sm:$0xff]  ;;  %v17423_v35 = vcombine.high %v1261_v7, %v1265_v23  ;;  %v3782_v56 = vld [vmem:[%s27448_s6 + $0x120] sm:$0xff]  ;;  %v3779_v59 = vld [vmem:[%s27448_s6 + $0x108] sm:$0xff] }
 0x190   : > { %v3783_v63 = vld [vmem:[%s27448_s6 + $0x128] sm:$0xff] }
 0x192   : > { %3581 = vmatpush1.bf16.msra.mxu0 %v17364_v16  ;;  %3704 = vmatpush1.bf16.msra.mxu1 %v17366_v17  ;;  %v1273_v16 = vld [vmem:[%s27445_s4 + $0xbf8] sm:$0xff]  ;;  %v17420_v17 = vcombine.low %v1260_v4, %v1264_v6  ;;  %s27449_s4 = sld [smem:[#allocation13_spill]]  ;;  %v17467_v6 = vcombine.high %v3778_v58, %v3782_v56 }
 0x193   : > { %3582 = vmatprep.subr.bf16.mxu0 %v17373_v18  ;;  %3705 = vmatprep.subr.bf16.mxu1 %v17375_v24  ;;  %v17422_v18 = vcombine.low %v1261_v7, %v1265_v23  ;;  %v3747_v24 = vld [vmem:[%s27448_s6 + $0x8] sm:$0xff]  ;;  %v17431_v25 = vcombine.high %v1269_v15, %v1273_v16  ;;  %v3786_v7 = vld [vmem:[%s27448_s6 + $0x140] sm:$0xff] }
 0x194   : > { %v3787_v23 = vld [vmem:[%s27448_s6 + $0x148] sm:$0xff] }
 0x196   : > { %3583 = vmatpush1.bf16.msra.mxu0 %v17372_v26  ;;  %3706 = vmatpush1.bf16.msra.mxu1 %v17374_v27  ;;  %v3751_v26 = vld [vmem:[%s27448_s6 + $0x28] sm:$0xff]  ;;  %v17428_v27 = vcombine.low %v1268_v13, %v1272_v14  ;;  %v17468_v14 = vcombine.low %v3779_v59, %v3783_v63 }
 0x197   : > { %3584 = vmatprep.subr.bf16.mxu0 %v17381_v29  ;;  %3707 = vmatprep.subr.bf16.mxu1 %v17383_v52  ;;  %v17430_v29 = vcombine.low %v1269_v15, %v1273_v16  ;;  %v3755_v52 = vld [vmem:[%s27448_s6 + $0x48] sm:$0xff]  ;;  %v17437_v34 = vcombine.high %v3747_v24, %v3751_v26  ;;  %v17436_v42 = vcombine.low %v3747_v24, %v3751_v26 }
 0x19a   : > { %3585 = vmatpush1.bf16.msra.mxu0 %v17380_v36  ;;  %3708 = vmatpush1.bf16.msra.mxu1 %v17382_v37  ;;  %v3759_v36 = vld [vmem:[%s27448_s6 + $0x68] sm:$0xff]  ;;  %v17434_v37 = vcombine.low %v3746_v21, %v3750_v22 }
 0x19b   : > { %3586 = vmatprep.subr.bf16.mxu0 %v17389_v38  ;;  %3709 = vmatprep.subr.bf16.mxu1 %v17391_v43  ;;  %v3762_v38 = vld [vmem:[%s27448_s6 + $0x80] sm:$0xff]  ;;  %v3763_v43 = vld [vmem:[%s27448_s6 + $0x88] sm:$0xff] }
 0x19c   : > { %v17451_v48 = vcombine.high %v3762_v38, %v3766_v40 }
 0x19e   : > { %3587 = vmatpush1.bf16.msra.mxu0 %v17388_v45  ;;  %3710 = vmatpush1.bf16.msra.mxu1 %v17390_v46  ;;  %v17445_v45 = vcombine.high %v3755_v52, %v3759_v36  ;;  %v17442_v46 = vcombine.low %v3754_v31, %v3758_v33 }
 0x19f   : > { %3588 = vmatprep.subr.bf16.mxu0 %v17397_v47  ;;  %3711 = vmatprep.subr.bf16.mxu1 %v17399_v51  ;;  %v17444_v47 = vcombine.low %v3755_v52, %v3759_v36  ;;  %v17453_v51 = vcombine.high %v3763_v43, %v3767_v44 }
 0x1a2   : > { %3589 = vmatpush1.bf16.msra.mxu0 %v17396_v54  ;;  %3712 = vmatpush1.bf16.msra.mxu1 %v17398_v55  ;;  %v17450_v54 = vcombine.low %v3762_v38, %v3766_v40  ;;  %v17452_v55 = vcombine.low %v3763_v43, %v3767_v44  ;;  %v3803_v38 = vld [vmem:[%s27448_s6 + $0x1c8] sm:$0xff] }
 0x1a3   : > { %3590 = vmatprep.subr.bf16.mxu0 %v17405_v57  ;;  %3713 = vmatprep.subr.bf16.mxu1 %v17407_v60  ;;  %v17459_v57 = vcombine.high %v3770_v0, %v3774_v49  ;;  %v3807_v40 = vld [vmem:[%s27448_s6 + $0x1e8] sm:$0xff] }
 0x1a6   : > { %3591 = vmatpush1.bf16.msra.mxu0 %v17404_v1  ;;  %3714 = vmatpush1.bf16.msra.mxu1 %v17406_v2  ;;  %v1274_v1 = vld [vmem:[%s27449_s4] ss:$8 sm:$0xf] }
 0x1a7   : > { %3592 = vmatprep.subr.bf16.mxu0 %v17413_v3  ;;  %3715 = vmatprep.subr.bf16.mxu1 %v17415_v8  ;;  %v1275_v2 = vld [vmem:[%s27449_s4] ss:$8 sm:$0xf0]  ;;  %v17458_v3 = vcombine.low %v3770_v0, %v3774_v49  ;;  %v17493_v0 = vcombine.high %v3803_v38, %v3807_v40 }
 0x1a8   : > { %v3790_v8 = vld [vmem:[%s27448_s6 + $0x160] sm:$0xff]  ;;  %v22051_v13 = vor.u32 %v1275_v2, %v1274_v1  ;;  %v3811_v49 = vld [vmem:[%s27448_s6 + $0x208] sm:$0xff] }
 0x1a9   : > { %v17475_v15 = vcombine.high %v3786_v7, %v3790_v8  ;;  %v17474_v22 = vcombine.low %v3786_v7, %v3790_v8  ;;  %v3827_v7 = vld [vmem:[%s27448_s6 + $0x288] sm:$0xff] }
 0x1aa   : > { %3593 = vmatpush1.bf16.msra.mxu0 %v17412_v9  ;;  %3716 = vmatpush1.bf16.msra.mxu1 %v17414_v10  ;;  %v17469_v9 = vcombine.high %v3779_v59, %v3783_v63  ;;  %v3791_v10 = vld [vmem:[%s27448_s6 + $0x168] sm:$0xff]  ;;  %v3205_v21 = vrot.slane %v22051_v13, %v20831_v50 }
 0x1ab   : > { %3594 = vmatprep.subr.bf16.mxu0 %v17421_v11  ;;  %3717 = vmatprep.subr.bf16.mxu1 %v17423_v35  ;;  %v17466_v11 = vcombine.low %v3778_v58, %v3782_v56  ;;  %v3794_v35 = vld [vmem:[%s27448_s6 + $0x180] sm:$0xff]  ;;  %v17477_v16 = vcombine.high %v3787_v23, %v3791_v10  ;;  %v17476_v24 = vcombine.low %v3787_v23, %v3791_v10  ;;  %v3819_v59 = vld [vmem:[%s27448_s6 + $0x248] sm:$0xff] }
 0x1ac   : > { %v3818_v58 = vld [vmem:[%s27448_s6 + $0x240] sm:$0xff]  ;;  %v3831_v8 = vld [vmem:[%s27448_s6 + $0x2a8] sm:$0xff] }
 0x1ad   : > { %v3822_v56 = vld [vmem:[%s27448_s6 + $0x260] sm:$0xff] }
 0x1ae   : > { %3595 = vmatpush1.bf16.msra.mxu0 %v17420_v17  ;;  %3718 = vmatpush1.bf16.msra.mxu1 %v17422_v18  ;;  %v3798_v17 = vld [vmem:[%s27448_s6 + $0x1a0] sm:$0xff]  ;;  %v3795_v18 = vld [vmem:[%s27448_s6 + $0x188] sm:$0xff]  ;;  %v17507_v2 = vcombine.high %v3818_v58, %v3822_v56  ;;  %v17506_v23 = vcombine.low %v3818_v58, %v3822_v56  ;;  %v3213_v58 = vrot.slane %v22051_v13, %v20966_v12 }
 0x1af   : > { %3596 = vmatprep.subr.bf16.mxu0 %v17429_v19  ;;  %3719 = vmatprep.subr.bf16.mxu1 %v17431_v25  ;;  %v3799_v19 = vld [vmem:[%s27448_s6 + $0x1a8] sm:$0xff]  ;;  %v17483_v25 = vcombine.high %v3794_v35, %v3798_v17 }
 0x1b0   : > { %v17484_v43 = vcombine.low %v3795_v18, %v3799_v19  ;;  %v3867_v56 = vld [vmem:[%s27448_s6 + $0x3c8] sm:$0xff] }
 0x1b2   : > { %3597 = vmatpush1.bf16.msra.mxu0 %v17428_v27  ;;  %3720 = vmatpush1.bf16.msra.mxu1 %v17430_v29  ;;  %v17485_v27 = vcombine.high %v3795_v18, %v3799_v19  ;;  %v3802_v29 = vld [vmem:[%s27448_s6 + $0x1c0] sm:$0xff]  ;;  %v17516_v18 = vcombine.low %v3827_v7, %v3831_v8 }
 0x1b3   : > { %6863 = vmatprep.subr.bf16.mxu0 %v17435_v30  ;;  %7027 = vmatprep.subr.bf16.mxu1 %v17437_v34  ;;  %v3806_v30 = vld [vmem:[%s27448_s6 + $0x1e0] sm:$0xff] }
 0x1b4   : > { %v17491_v44 = vcombine.high %v3802_v29, %v3806_v30 }
 0x1b5   : > { %3599 = vmatmul.mubr.bf16.vlgmr.msra.gmra.mrb[4].mxu0 %v21405_v20  ;;  %3722 = vmatmul.mubr.bf16.vlgmr.msra.gmra.mrb[4].mxu1 %v21405_v20  ;;  %v3771_v20 = vld [vmem:[%s27448_s6 + $0xc8] sm:$0xff] }
 0x1b6   : > { %6864 = vmatpush1.bf16.msra.mxu0 %v17434_v37  ;;  %7028 = vmatpush1.bf16.msra.mxu1 %v17436_v42  ;;  %v17461_v60 = vcombine.high %v3771_v20, %v3775_v53  ;;  %v17460_v4 = vcombine.low %v3771_v20, %v3775_v53  ;;  %v17482_v37 = vcombine.low %v3794_v35, %v3798_v17  ;;  %v3835_v35 = vld [vmem:[%s27448_s6 + $0x2c8] sm:$0xff] }
 0x1b7   : > { %6865 = vmatprep.subr.bf16.mxu0 %v17443_v61  ;;  %7029 = vmatprep.subr.bf16.mxu1 %v17445_v45  ;;  %v17490_v53 = vcombine.low %v3802_v29, %v3806_v30 }
 0x1ba   : > { %6866 = vmatpush1.bf16.msra.mxu0 %v17442_v46  ;;  %7030 = vmatpush1.bf16.msra.mxu1 %v17444_v47  ;;  %v3810_v47 = vld [vmem:[%s27448_s6 + $0x200] sm:$0xff] }
 0x1bb   : > { %6867 = vmatprep.subr.bf16.mxu0 %v17451_v48  ;;  %7031 = vmatprep.subr.bf16.mxu1 %v17453_v51  ;;  %v3814_v48 = vld [vmem:[%s27448_s6 + $0x220] sm:$0xff]  ;;  %v3815_v51 = vld [vmem:[%s27448_s6 + $0x228] sm:$0xff] }
 0x1bc   : > { %v17498_v63 = vcombine.low %v3810_v47, %v3814_v48  ;;  %v17500_v1 = vcombine.low %v3811_v49, %v3815_v51 }
 0x1be   : > { %6868 = vmatpush1.bf16.msra.mxu0 %v17450_v54  ;;  %7032 = vmatpush1.bf16.msra.mxu1 %v17452_v55  ;;  %v17492_v54 = vcombine.low %v3803_v38, %v3807_v40  ;;  %v17499_v55 = vcombine.high %v3810_v47, %v3814_v48  ;;  %v3851_v38 = vld [vmem:[%s27448_s6 + $0x348] sm:$0xff] }
 0x1bf   : > { %6869 = vmatprep.subr.bf16.mxu0 %v17459_v57  ;;  %7033 = vmatprep.subr.bf16.mxu1 %v17461_v60  ;;  %v17501_v57 = vcombine.high %v3811_v49, %v3815_v51  ;;  %v3823_v60 = vld [vmem:[%s27448_s6 + $0x268] sm:$0xff]  ;;  %v3201_v49 = vrot.slane %v22051_v13, %v20957_v5 }
 0x1c0   : > { %v3855_v40 = vld [vmem:[%s27448_s6 + $0x368] sm:$0xff] }
 0x1c1   : > { %v3859_v47 = vld [vmem:[%s27448_s6 + $0x388] sm:$0xff]  ;;  %v17540_v51 = vcombine.low %v3851_v38, %v3855_v40 }
 0x1c2   : > { %6870 = vmatpush1.bf16.msra.mxu0 %v17458_v3  ;;  %7034 = vmatpush1.bf16.msra.mxu1 %v17460_v4  ;;  %v17509_v3 = vcombine.high %v3819_v59, %v3823_v60  ;;  %v3826_v4 = vld [vmem:[%s27448_s6 + $0x280] sm:$0xff]  ;;  %v3863_v48 = vld [vmem:[%s27448_s6 + $0x3a8] sm:$0xff] }
 0x1c3   : > { %6871 = vmatprep.subr.bf16.mxu0 %v17467_v6  ;;  %7035 = vmatprep.subr.bf16.mxu1 %v17469_v9  ;;  %v3830_v6 = vld [vmem:[%s27448_s6 + $0x2a0] sm:$0xff]  ;;  %v17508_v9 = vcombine.low %v3819_v59, %v3823_v60  ;;  %v3871_v59 = vld [vmem:[%s27448_s6 + $0x3e8] sm:$0xff] }
 0x1c4   : > { %v17515_v10 = vcombine.high %v3826_v4, %v3830_v6  ;;  %v17514_v17 = vcombine.low %v3826_v4, %v3830_v6  ;;  %v3874_v4 = vld [vmem:[%s27448_s6 + $0x400] sm:$0xff] }
 0x1c5   : > { %v3878_v6 = vld [vmem:[%s27448_s6 + $0x420] sm:$0xff] }
 0x1c6   : > { %6872 = vmatpush1.bf16.msra.mxu0 %v17466_v11  ;;  %7036 = vmatpush1.bf16.msra.mxu1 %v17468_v14  ;;  %v17517_v11 = vcombine.high %v3827_v7, %v3831_v8  ;;  %v3834_v14 = vld [vmem:[%s27448_s6 + $0x2c0] sm:$0xff]  ;;  %v3879_v8 = vld [vmem:[%s27448_s6 + $0x428] sm:$0xff] }
 0x1c7   : > { %6873 = vmatprep.subr.bf16.mxu0 %v17475_v15  ;;  %7037 = vmatprep.subr.bf16.mxu1 %v17477_v16  ;;  %v3838_v15 = vld [vmem:[%s27448_s6 + $0x2e0] sm:$0xff]  ;;  %v3839_v16 = vld [vmem:[%s27448_s6 + $0x2e8] sm:$0xff] }
 0x1c8   : > { %v22067_v26 = vpop.f32.mrb[0].mxu0  ;;  %v22075_v31 = vpop.f32.mrb[0].mxu1  ;;  %v17523_v19 = vcombine.high %v3834_v14, %v3838_v15  ;;  %v17522_v29 = vcombine.low %v3834_v14, %v3838_v15  ;;  %v17524_v30 = vcombine.low %v3835_v35, %v3839_v16 }
 0x1c9   : > { %v3356_v33 = vpop.f32.mrb[1].mxu0  ;;  %v22077_v34 = vpop.f32.mrb[1].mxu1 }
 0x1ca   : > { %v19352_v52 = vadd.f32 %v3356_v33, %v3205_v21  ;;  %v3358_v36 = vpop.f32.mrb[2].mxu0  ;;  %6874 = vmatpush1.bf16.msra.mxu0 %v17474_v22  ;;  %v3481_v42 = vpop.f32.mrb[2].mxu1  ;;  %7038 = vmatpush1.bf16.msra.mxu1 %v17476_v24  ;;  %v17525_v21 = vcombine.high %v3835_v35, %v3839_v16  ;;  %v3842_v22 = vld [vmem:[%s27448_s6 + $0x300] sm:$0xff]  ;;  %v19354_v7 = vadd.f32 %v22077_v34, %v3213_v58 }
 0x1cb   : > { %v3359_v61 = vpop.f32.mrb[3].mxu0  ;;  %6875 = vmatprep.subr.bf16.mxu0 %v17483_v25  ;;  %v3482_v46 = vpop.f32.mrb[3].mxu1  ;;  %7039 = vmatprep.subr.bf16.mxu1 %v17485_v27  ;;  %v3846_v24 = vld [vmem:[%s27448_s6 + $0x320] sm:$0xff]  ;;  %v3843_v25 = vld [vmem:[%s27448_s6 + $0x308] sm:$0xff]  ;;  %v17562_v16 = vcombine.low %v3874_v4, %v3878_v6 }
 0x1cc   : > { %v3731_v45 = vmax.f32 %v19352_v52, 0.0  ;;  %v3847_v27 = vld [vmem:[%s27448_s6 + $0x328] sm:$0xff]  ;;  %v17531_v33 = vcombine.high %v3842_v22, %v3846_v24  ;;  %v3850_v36 = vld [vmem:[%s27448_s6 + $0x340] sm:$0xff]  ;;  %v17530_v42 = vcombine.low %v3842_v22, %v3846_v24  ;;  %v3733_v15 = vmax.f32 %v19354_v7, 0.0 }
 0x1cd   : > { %v17533_v52 = vcombine.high %v3843_v25, %v3847_v27  ;;  %v17532_v61 = vcombine.low %v3843_v25, %v3847_v27  ;;  %v3862_v46 = vld [vmem:[%s27448_s6 + $0x3a0] sm:$0xff]  ;;  %v3923_v7 = vld [vmem:[%s27448_s6 + $0x588] sm:$0xff] }
 0x1ce   : > { %v22097_v20 = vpack.c.bf16 %v3731_v45, %v3731_v45  ;;  %6876 = vmatpush1.bf16.msra.mxu0 %v17482_v37  ;;  %7040 = vmatpush1.bf16.msra.mxu1 %v17484_v43  ;;  %v3854_v37 = vld [vmem:[%s27448_s6 + $0x360] sm:$0xff]  ;;  %v22223_v27 = vpack.c.bf16 %v3733_v15, %v3733_v15  ;;  %v3931_v15 = vld [vmem:[%s27448_s6 + $0x5c8] sm:$0xff] }
 0x1cf   : > { %6877 = vmatprep.subr.bf16.mxu0 %v17491_v44  ;;  %7041 = vmatprep.subr.bf16.mxu1 %v17493_v0  ;;  %v17539_v43 = vcombine.high %v3850_v36, %v3854_v37  ;;  %v17541_v44 = vcombine.high %v3851_v38, %v3855_v40  ;;  %v3858_v45 = vld [vmem:[%s27448_s6 + $0x380] sm:$0xff]  ;;  %v17538_v0 = vcombine.low %v3850_v36, %v3854_v37 }
 0x1d0   : > { %6895 = vmatprep.mubr.bf16.mxu0 %v22097_v20  ;;  %7059 = vmatprep.mubr.bf16.mxu1 %v22097_v20  ;;  %v17546_v60 = vcombine.low %v3858_v45, %v3862_v46  ;;  %v3882_v34 = vld [vmem:[%s27448_s6 + $0x440] sm:$0xff] }
 0x1d1   : > { %v3886_v35 = vld [vmem:[%s27448_s6 + $0x460] sm:$0xff] }
 0x1d2   : > { %6878 = vmatpush1.bf16.msra.mxu0 %v17490_v53  ;;  %7042 = vmatpush1.bf16.msra.mxu1 %v17492_v54  ;;  %v17547_v53 = vcombine.high %v3858_v45, %v3862_v46  ;;  %v17549_v54 = vcombine.high %v3859_v47, %v3863_v48  ;;  %v17571_v22 = vcombine.high %v3882_v34, %v3886_v35  ;;  %v3890_v24 = vld [vmem:[%s27448_s6 + $0x480] sm:$0xff] }
 0x1d3   : > { %6879 = vmatprep.subr.bf16.mxu0 %v17499_v55  ;;  %7043 = vmatprep.subr.bf16.mxu1 %v17501_v57  ;;  %v3866_v55 = vld [vmem:[%s27448_s6 + $0x3c0] sm:$0xff] }
 0x1d4   : > { %v3870_v57 = vld [vmem:[%s27448_s6 + $0x3e0] sm:$0xff] }
 0x1d5   : > { %v3894_v25 = vld [vmem:[%s27448_s6 + $0x4a0] sm:$0xff] }
 0x1d6   : > { %6880 = vmatpush1.bf16.msra.mxu0 %v17498_v63  ;;  %7044 = vmatpush1.bf16.msra.mxu1 %v17500_v1  ;;  %v19351_v63 = vadd.f32 %v22067_v26, %v3201_v49  ;;  %v17548_v1 = vcombine.low %v3859_v47, %v3863_v48  ;;  %v3875_v26 = vld [vmem:[%s27448_s6 + $0x408] sm:$0xff]  ;;  %v17579_v37 = vcombine.high %v3890_v24, %v3894_v25  ;;  %v3898_v40 = vld [vmem:[%s27448_s6 + $0x4c0] sm:$0xff] }
 0x1d7   : > { %6881 = vmatprep.subr.bf16.mxu0 %v17507_v2  ;;  %7045 = vmatprep.subr.bf16.mxu1 %v17509_v3  ;;  %v17555_v2 = vcombine.high %v3866_v55, %v3870_v57  ;;  %v17557_v3 = vcombine.high %v3867_v56, %v3871_v59  ;;  %v17565_v14 = vcombine.high %v3875_v26, %v3879_v8  ;;  %v3906_v48 = vld [vmem:[%s27448_s6 + $0x500] sm:$0xff]  ;;  %v3907_v49 = vld [vmem:[%s27448_s6 + $0x508] sm:$0xff] }
 0x1d8   : > { %v3914_v58 = vld [vmem:[%s27448_s6 + $0x540] sm:$0xff] }
 0x1da   : > { %6882 = vmatpush1.bf16.msra.mxu0 %v17506_v23  ;;  %7046 = vmatpush1.bf16.msra.mxu1 %v17508_v9  ;;  %v17554_v23 = vcombine.low %v3866_v55, %v3870_v57  ;;  %v3730_v9 = vmax.f32 %v19351_v63, 0.0 }
 0x1db   : > { %6883 = vmatprep.subr.bf16.mxu0 %v17515_v10  ;;  %7047 = vmatprep.subr.bf16.mxu1 %v17517_v11  ;;  %v17556_v10 = vcombine.low %v3867_v56, %v3871_v59  ;;  %v17563_v11 = vcombine.high %v3874_v4, %v3878_v6  ;;  %v3918_v56 = vld [vmem:[%s27448_s6 + $0x560] sm:$0xff]  ;;  %v3915_v59 = vld [vmem:[%s27448_s6 + $0x548] sm:$0xff] }
 0x1dc   : > { %v3922_v4 = vld [vmem:[%s27448_s6 + $0x580] sm:$0xff] }
 0x1dd   : > { %v3926_v6 = vld [vmem:[%s27448_s6 + $0x5a0] sm:$0xff] }
 0x1de   : > { %6884 = vmatpush1.bf16.msra.mxu0 %v17514_v17  ;;  %7048 = vmatpush1.bf16.msra.mxu1 %v17516_v18  ;;  %v3883_v17 = vld [vmem:[%s27448_s6 + $0x448] sm:$0xff] }
 0x1df   : > { %6885 = vmatprep.subr.bf16.mxu0 %v17523_v19  ;;  %7049 = vmatprep.subr.bf16.mxu1 %v17525_v21  ;;  %v3887_v18 = vld [vmem:[%s27448_s6 + $0x468] sm:$0xff]  ;;  %v22215_v19 = vpack.c.bf16 %v3730_v9, %v3730_v9  ;;  %v17564_v21 = vcombine.low %v3875_v26, %v3879_v8  ;;  %v17602_v8 = vcombine.low %v3914_v58, %v3918_v56 }
 0x1e0   : > { %v17572_v36 = vcombine.low %v3883_v17, %v3887_v18  ;;  %v3927_v26 = vld [vmem:[%s27448_s6 + $0x5a8] sm:$0xff]  ;;  %v17611_v9 = vcombine.high %v3922_v4, %v3926_v6 }
 0x1e2   : > { %6886 = vmatpush1.bf16.msra.mxu0 %v17522_v29  ;;  %7050 = vmatpush1.bf16.msra.mxu1 %v17524_v30  ;;  %v17573_v29 = vcombine.high %v3883_v17, %v3887_v18  ;;  %v3891_v30 = vld [vmem:[%s27448_s6 + $0x488] sm:$0xff] }
 0x1e3   : > { %6887 = vmatprep.subr.bf16.mxu0 %v17531_v33  ;;  %7051 = vmatprep.subr.bf16.mxu1 %v17533_v52  ;;  %v3895_v33 = vld [vmem:[%s27448_s6 + $0x4a8] sm:$0xff]  ;;  %v17570_v52 = vcombine.low %v3882_v34, %v3886_v35  ;;  %v17610_v35 = vcombine.low %v3922_v4, %v3926_v6 }
 0x1e4   : > { %v17581_v38 = vcombine.high %v3891_v30, %v3895_v33  ;;  %v17580_v45 = vcombine.low %v3891_v30, %v3895_v33  ;;  %v3935_v34 = vld [vmem:[%s27448_s6 + $0x5e8] sm:$0xff] }
 0x1e5   : > { %v17621_v18 = vcombine.high %v3931_v15, %v3935_v34  ;;  %v17620_v30 = vcombine.low %v3931_v15, %v3935_v34  ;;  %v3975_v4 = vld [vmem:[%s27448_s6 + $0x728] sm:$0xff] }
 0x1e6   : > { %6888 = vmatpush1.bf16.msra.mxu0 %v17530_v42  ;;  %7052 = vmatpush1.bf16.msra.mxu1 %v17532_v61  ;;  %v3902_v42 = vld [vmem:[%s27448_s6 + $0x4e0] sm:$0xff]  ;;  %v3899_v61 = vld [vmem:[%s27448_s6 + $0x4c8] sm:$0xff] }
 0x1e7   : > { %6889 = vmatprep.subr.bf16.mxu0 %v17539_v43  ;;  %7053 = vmatprep.subr.bf16.mxu1 %v17541_v44  ;;  %v3903_v43 = vld [vmem:[%s27448_s6 + $0x4e8] sm:$0xff]  ;;  %v17578_v44 = vcombine.low %v3890_v24, %v3894_v25  ;;  %v17587_v46 = vcombine.high %v3898_v40, %v3902_v42 }
 0x1e8   : > { %v17589_v47 = vcombine.high %v3899_v61, %v3903_v43  ;;  %v3939_v24 = vld [vmem:[%s27448_s6 + $0x608] sm:$0xff] }
 0x1e9   : > { %v3943_v25 = vld [vmem:[%s27448_s6 + $0x628] sm:$0xff] }
 0x1ea   : > { %6890 = vmatpush1.bf16.msra.mxu0 %v17538_v0  ;;  %7054 = vmatpush1.bf16.msra.mxu1 %v17540_v51  ;;  %v3910_v0 = vld [vmem:[%s27448_s6 + $0x520] sm:$0xff]  ;;  %v3911_v51 = vld [vmem:[%s27448_s6 + $0x528] sm:$0xff] }
 0x1eb   : > { %6891 = vmatprep.subr.bf16.mxu0 %v17547_v53  ;;  %7055 = vmatprep.subr.bf16.mxu1 %v17549_v54  ;;  %v17586_v53 = vcombine.low %v3898_v40, %v3902_v42  ;;  %v17588_v54 = vcombine.low %v3899_v61, %v3903_v43  ;;  %v17595_v55 = vcombine.high %v3906_v48, %v3910_v0  ;;  %v3951_v40 = vld [vmem:[%s27448_s6 + $0x668] sm:$0xff] }
 0x1ec   : > { %v17597_v57 = vcombine.high %v3907_v49, %v3911_v51  ;;  %v17594_v63 = vcombine.low %v3906_v48, %v3910_v0  ;;  %v17628_v61 = vcombine.low %v3939_v24, %v3943_v25  ;;  %v3959_v48 = vld [vmem:[%s27448_s6 + $0x6a8] sm:$0xff] }
 0x1ee   : > { %6892 = vmatpush1.bf16.msra.mxu0 %v17546_v60  ;;  %7056 = vmatpush1.bf16.msra.mxu1 %v17548_v1  ;;  %v3919_v60 = vld [vmem:[%s27448_s6 + $0x568] sm:$0xff]  ;;  %v17596_v1 = vcombine.low %v3907_v49, %v3911_v51 }
 0x1ef   : > { %6893 = vmatprep.subr.bf16.mxu0 %v17555_v2  ;;  %7057 = vmatprep.subr.bf16.mxu1 %v17557_v3  ;;  %v17603_v2 = vcombine.high %v3914_v58, %v3918_v56  ;;  %v17605_v3 = vcombine.high %v3915_v59, %v3919_v60  ;;  %v3967_v58 = vld [vmem:[%s27448_s6 + $0x6e8] sm:$0xff] }
 0x1f2   : > { %6894 = vmatpush1.bf16.msra.mxu0 %v17554_v23  ;;  %7058 = vmatpush1.bf16.msra.mxu1 %v17556_v10  ;;  %v17604_v23 = vcombine.low %v3915_v59, %v3919_v60  ;;  %v17613_v10 = vcombine.high %v3923_v7, %v3927_v26 }
 0x1f3   : > { %6904 = vmatprep.subr.bf16.mxu0 %v17563_v11  ;;  %7068 = vmatprep.subr.bf16.mxu1 %v17565_v14  ;;  %v3930_v11 = vld [vmem:[%s27448_s6 + $0x5c0] sm:$0xff] }
 0x1f4   : > { %v3934_v14 = vld [vmem:[%s27448_s6 + $0x5e0] sm:$0xff] }
 0x1f5   : > { %6896 = vmatmul.mubr.bf16.vlgmr.msra.gmra.mrb[8].mxu0 %v22215_v19  ;;  %7060 = vmatmul.mubr.bf16.vlgmr.msra.gmra.mrb[8].mxu1 %v22215_v19  ;;  %v17619_v17 = vcombine.high %v3930_v11, %v3934_v14 }
 0x1f6   : > { %6905 = vmatpush1.bf16.msra.mxu0 %v17562_v16  ;;  %6936 = vmatprep.mubr.bf16.mxu0 %v22223_v27  ;;  %v17612_v16 = vcombine.low %v3923_v7, %v3927_v26 }
 0x1f7   : > { %7069 = vmatpush1.bf16.msra.mxu1 %v17564_v21  ;;  %7100 = vmatprep.mubr.bf16.mxu1 %v22223_v27  ;;  %v3938_v21 = vld [vmem:[%s27448_s6 + $0x600] sm:$0xff] }
 0x1f8   : > { %6906 = vmatprep.subr.bf16.mxu0 %v17571_v22  ;;  %7070 = vmatprep.subr.bf16.mxu1 %v17573_v29  ;;  %v3942_v22 = vld [vmem:[%s27448_s6 + $0x620] sm:$0xff]  ;;  %v17618_v29 = vcombine.low %v3930_v11, %v3934_v14  ;;  %v3983_v11 = vld [vmem:[%s27448_s6 + $0x768] sm:$0xff] }
 0x1f9   : > { %v17627_v33 = vcombine.high %v3938_v21, %v3942_v22  ;;  %v17626_v42 = vcombine.low %v3938_v21, %v3942_v22  ;;  %v3991_v21 = vld [vmem:[%s27448_s6 + $0x7a8] sm:$0xff] }
 0x1fa   : > { %6907 = vmatpush1.bf16.msra.mxu0 %v17570_v52  ;;  %v17629_v52 = vcombine.high %v3939_v24, %v3943_v25  ;;  %v3209_v24 = vrot.slane %v22051_v13, %v21167_v28 }
 0x1fb   : > { %7071 = vmatpush1.bf16.msra.mxu1 %v17572_v36  ;;  %6908 = vmatprep.subr.bf16.mxu0 %v17579_v37  ;;  %v3946_v36 = vld [vmem:[%s27448_s6 + $0x640] sm:$0xff] }
 0x1fc   : > { %7072 = vmatprep.subr.bf16.mxu1 %v17581_v38  ;;  %v3950_v37 = vld [vmem:[%s27448_s6 + $0x660] sm:$0xff]  ;;  %v3947_v38 = vld [vmem:[%s27448_s6 + $0x648] sm:$0xff] }
 0x1fd   : > { %v17635_v43 = vcombine.high %v3946_v36, %v3950_v37  ;;  %v17634_v0 = vcombine.low %v3946_v36, %v3950_v37  ;;  %v17636_v49 = vcombine.low %v3947_v38, %v3951_v40  ;;  %v3995_v36 = vld [vmem:[%s27448_s6 + $0x7c8] sm:$0xff] }
 0x1fe   : > { %6909 = vmatpush1.bf16.msra.mxu0 %v17578_v44  ;;  %v17637_v44 = vcombine.high %v3947_v38, %v3951_v40  ;;  %v3999_v37 = vld [vmem:[%s27448_s6 + $0x7e8] sm:$0xff]  ;;  %v19353_v40 = vadd.f32 %v22075_v31, %v3209_v24 }
 0x1ff   : > { %7073 = vmatpush1.bf16.msra.mxu1 %v17580_v45  ;;  %6910 = vmatprep.subr.bf16.mxu0 %v17587_v46  ;;  %v3954_v45 = vld [vmem:[%s27448_s6 + $0x680] sm:$0xff]  ;;  %v4007_v31 = vld [vmem:[%s27448_s6 + $0x828] sm:$0xff] }
 0x200   : > { %7074 = vmatprep.subr.bf16.mxu1 %v17589_v47  ;;  %v3958_v46 = vld [vmem:[%s27448_s6 + $0x6a0] sm:$0xff]  ;;  %v3955_v47 = vld [vmem:[%s27448_s6 + $0x688] sm:$0xff] }
 0x201   : > { %v17643_v51 = vcombine.high %v3954_v45, %v3958_v46  ;;  %v17642_v56 = vcombine.low %v3954_v45, %v3958_v46  ;;  %v17644_v59 = vcombine.low %v3955_v47, %v3959_v48  ;;  %v4006_v45 = vld [vmem:[%s27448_s6 + $0x820] sm:$0xff]  ;;  %v4003_v46 = vld [vmem:[%s27448_s6 + $0x808] sm:$0xff] }
 0x202   : > { %6911 = vmatpush1.bf16.msra.mxu0 %v17586_v53  ;;  %v17645_v53 = vcombine.high %v3955_v47, %v3959_v48  ;;  %v3732_v48 = vmax.f32 %v19353_v40, 0.0 }
 0x203   : > { %7075 = vmatpush1.bf16.msra.mxu1 %v17588_v54  ;;  %6912 = vmatprep.subr.bf16.mxu0 %v17595_v55  ;;  %v3962_v54 = vld [vmem:[%s27448_s6 + $0x6c0] sm:$0xff] }
 0x204   : > { %7076 = vmatprep.subr.bf16.mxu1 %v17597_v57  ;;  %v3966_v55 = vld [vmem:[%s27448_s6 + $0x6e0] sm:$0xff]  ;;  %v3963_v57 = vld [vmem:[%s27448_s6 + $0x6c8] sm:$0xff] }
 0x205   : > { %v17651_v60 = vcombine.high %v3962_v54, %v3966_v55  ;;  %v17650_v6 = vcombine.low %v3962_v54, %v3966_v55  ;;  %v17652_v7 = vcombine.low %v3963_v57, %v3967_v58  ;;  %v4014_v54 = vld [vmem:[%s27448_s6 + $0x860] sm:$0xff]  ;;  %v4011_v55 = vld [vmem:[%s27448_s6 + $0x848] sm:$0xff] }
 0x206   : > { %6913 = vmatpush1.bf16.msra.mxu0 %v17594_v63  ;;  %v17653_v63 = vcombine.high %v3963_v57, %v3967_v58  ;;  %v4015_v57 = vld [vmem:[%s27448_s6 + $0x868] sm:$0xff] }
 0x207   : > { %7077 = vmatpush1.bf16.msra.mxu1 %v17596_v1  ;;  %6914 = vmatprep.subr.bf16.mxu0 %v17603_v2  ;;  %v3970_v1 = vld [vmem:[%s27448_s6 + $0x700] sm:$0xff] }
 0x208   : > { %7078 = vmatprep.subr.bf16.mxu1 %v17605_v3  ;;  %v3974_v2 = vld [vmem:[%s27448_s6 + $0x720] sm:$0xff]  ;;  %v3971_v3 = vld [vmem:[%s27448_s6 + $0x708] sm:$0xff] }
 0x209   : > { %v17659_v26 = vcombine.high %v3970_v1, %v3974_v2  ;;  %v17658_v14 = vcombine.low %v3970_v1, %v3974_v2  ;;  %v17660_v15 = vcombine.low %v3971_v3, %v3975_v4  ;;  %v4018_v1 = vld [vmem:[%s27448_s6 + $0x880] sm:$0xff] }
 0x20a   : > { %6915 = vmatpush1.bf16.msra.mxu0 %v17602_v8  ;;  %v17661_v8 = vcombine.high %v3971_v3, %v3975_v4  ;;  %v4022_v2 = vld [vmem:[%s27448_s6 + $0x8a0] sm:$0xff]  ;;  %v4019_v3 = vld [vmem:[%s27448_s6 + $0x888] sm:$0xff] }
 0x20b   : > { %7079 = vmatpush1.bf16.msra.mxu1 %v17604_v23  ;;  %6916 = vmatprep.subr.bf16.mxu0 %v17611_v9  ;;  %v3978_v23 = vld [vmem:[%s27448_s6 + $0x740] sm:$0xff]  ;;  %v4023_v4 = vld [vmem:[%s27448_s6 + $0x8a8] sm:$0xff] }
 0x20c   : > { %7080 = vmatprep.subr.bf16.mxu1 %v17613_v10  ;;  %v3982_v9 = vld [vmem:[%s27448_s6 + $0x760] sm:$0xff]  ;;  %v3979_v10 = vld [vmem:[%s27448_s6 + $0x748] sm:$0xff] }
 0x20d   : > { %v17667_v34 = vcombine.high %v3978_v23, %v3982_v9  ;;  %v17666_v22 = vcombine.low %v3978_v23, %v3982_v9  ;;  %v17668_v25 = vcombine.low %v3979_v10, %v3983_v11  ;;  %v4026_v23 = vld [vmem:[%s27448_s6 + $0x8c0] sm:$0xff] }
 0x20e   : > { %6917 = vmatpush1.bf16.msra.mxu0 %v17610_v35  ;;  %v17669_v35 = vcombine.high %v3979_v10, %v3983_v11  ;;  %v4030_v9 = vld [vmem:[%s27448_s6 + $0x8e0] sm:$0xff]  ;;  %v4027_v10 = vld [vmem:[%s27448_s6 + $0x8c8] sm:$0xff] }
 0x20f   : > { %7081 = vmatpush1.bf16.msra.mxu1 %v17612_v16  ;;  %6918 = vmatprep.subr.bf16.mxu0 %v17619_v17  ;;  %v3986_v16 = vld [vmem:[%s27448_s6 + $0x780] sm:$0xff]  ;;  %v4031_v11 = vld [vmem:[%s27448_s6 + $0x8e8] sm:$0xff] }
 0x210   : > { %7082 = vmatprep.subr.bf16.mxu1 %v17621_v18  ;;  %v3990_v17 = vld [vmem:[%s27448_s6 + $0x7a0] sm:$0xff]  ;;  %v3987_v18 = vld [vmem:[%s27448_s6 + $0x788] sm:$0xff]  ;;  %v17716_v24 = vcombine.low %v4027_v10, %v4031_v11 }
 0x211   : > { %v17674_v38 = vcombine.low %v3986_v16, %v3990_v17 }
 0x212   : > { %6919 = vmatpush1.bf16.msra.mxu0 %v17618_v29  ;;  %v17675_v29 = vcombine.high %v3986_v16, %v3990_v17  ;;  %v4034_v16 = vld [vmem:[%s27448_s6 + $0x900] sm:$0xff] }
 0x213   : > { %7083 = vmatpush1.bf16.msra.mxu1 %v17620_v30  ;;  %6920 = vmatprep.subr.bf16.mxu0 %v17627_v33  ;;  %v17677_v30 = vcombine.high %v3987_v18, %v3991_v21  ;;  %v3994_v33 = vld [vmem:[%s27448_s6 + $0x7c0] sm:$0xff] }
 0x214   : > { %7084 = vmatprep.subr.bf16.mxu1 %v17629_v52  ;;  %v3998_v52 = vld [vmem:[%s27448_s6 + $0x7e0] sm:$0xff] }
 0x215   : > { %v17682_v47 = vcombine.low %v3994_v33, %v3998_v52  ;;  %v4038_v17 = vld [vmem:[%s27448_s6 + $0x920] sm:$0xff] }
 0x216   : > { %6921 = vmatpush1.bf16.msra.mxu0 %v17626_v42  ;;  %v17676_v42 = vcombine.low %v3987_v18, %v3991_v21  ;;  %v4035_v18 = vld [vmem:[%s27448_s6 + $0x908] sm:$0xff] }
 0x217   : > { %7085 = vmatpush1.bf16.msra.mxu1 %v17628_v61  ;;  %6922 = vmatprep.subr.bf16.mxu0 %v17635_v43  ;;  %v17683_v61 = vcombine.high %v3994_v33, %v3998_v52  ;;  %v17685_v43 = vcombine.high %v3995_v36, %v3999_v37  ;;  %v4039_v21 = vld [vmem:[%s27448_s6 + $0x928] sm:$0xff]  ;;  %v4046_v33 = vld [vmem:[%s27448_s6 + $0x960] sm:$0xff] }
 0x218   : > { %7086 = vmatprep.subr.bf16.mxu1 %v17637_v44  ;;  %v4002_v44 = vld [vmem:[%s27448_s6 + $0x800] sm:$0xff]  ;;  %v4043_v52 = vld [vmem:[%s27448_s6 + $0x948] sm:$0xff] }
 0x219   : > { %v17690_v58 = vcombine.low %v4002_v44, %v4006_v45 }
 0x21a   : > { %6923 = vmatpush1.bf16.msra.mxu0 %v17634_v0  ;;  %v17684_v0 = vcombine.low %v3995_v36, %v3999_v37  ;;  %v4047_v36 = vld [vmem:[%s27448_s6 + $0x968] sm:$0xff]  ;;  %v17722_v37 = vcombine.low %v4034_v16, %v4038_v17 }
 0x21b   : > { %7087 = vmatpush1.bf16.msra.mxu1 %v17636_v49  ;;  %6924 = vmatprep.subr.bf16.mxu0 %v17643_v51  ;;  %v17691_v49 = vcombine.high %v4002_v44, %v4006_v45  ;;  %v17693_v51 = vcombine.high %v4003_v46, %v4007_v31  ;;  %v4051_v44 = vld [vmem:[%s27448_s6 + $0x988] sm:$0xff] }
 0x21c   : > { %7088 = vmatprep.subr.bf16.mxu1 %v17645_v53  ;;  %v4010_v53 = vld [vmem:[%s27448_s6 + $0x840] sm:$0xff]  ;;  %v4055_v45 = vld [vmem:[%s27448_s6 + $0x9a8] sm:$0xff] }
 0x21e   : > { %6925 = vmatpush1.bf16.msra.mxu0 %v17642_v56  ;;  %v22418_v56 = vpack.c.bf16 %v3732_v48, %v3732_v48  ;;  %v17741_v48 = vcombine.high %v4051_v44, %v4055_v45 }
 0x21f   : > { %7089 = vmatpush1.bf16.msra.mxu1 %v17644_v59  ;;  %6926 = vmatprep.subr.bf16.mxu0 %v17651_v60  ;;  %v17692_v59 = vcombine.low %v4003_v46, %v4007_v31  ;;  %v17699_v60 = vcombine.high %v4010_v53, %v4014_v54  ;;  %v17732_v31 = vcombine.low %v4043_v52, %v4047_v36 }
 0x220   : > { %7090 = vmatprep.subr.bf16.mxu1 %v17653_v63  ;;  %v17701_v63 = vcombine.high %v4011_v55, %v4015_v57 }
 0x222   : > { %6927 = vmatpush1.bf16.msra.mxu0 %v17650_v6  ;;  %v17698_v6 = vcombine.low %v4010_v53, %v4014_v54  ;;  %v4063_v53 = vld [vmem:[%s27448_s6 + $0x9e8] sm:$0xff] }
 0x223   : > { %7091 = vmatpush1.bf16.msra.mxu1 %v17652_v7  ;;  %6928 = vmatprep.subr.bf16.mxu0 %v17659_v26  ;;  %v17700_v7 = vcombine.low %v4011_v55, %v4015_v57  ;;  %v17707_v26 = vcombine.high %v4018_v1, %v4022_v2  ;;  %v17740_v55 = vcombine.low %v4051_v44, %v4055_v45 }
 0x224   : > { %7092 = vmatprep.subr.bf16.mxu1 %v17661_v8  ;;  %v17709_v8 = vcombine.high %v4019_v3, %v4023_v4 }
 0x226   : > { %6929 = vmatpush1.bf16.msra.mxu0 %v17658_v14  ;;  %v17706_v14 = vcombine.low %v4018_v1, %v4022_v2  ;;  %v4071_v1 = vld [vmem:[%s27448_s6 + $0xa28] sm:$0xff] }
 0x227   : > { %7093 = vmatpush1.bf16.msra.mxu1 %v17660_v15  ;;  %6930 = vmatprep.subr.bf16.mxu0 %v17667_v34  ;;  %v17708_v15 = vcombine.low %v4019_v3, %v4023_v4  ;;  %v17715_v34 = vcombine.high %v4026_v23, %v4030_v9 }
 0x228   : > { %7094 = vmatprep.subr.bf16.mxu1 %v17669_v35  ;;  %v17717_v35 = vcombine.high %v4027_v10, %v4031_v11 }
 0x22a   : > { %6931 = vmatpush1.bf16.msra.mxu0 %v17666_v22  ;;  %v17714_v22 = vcombine.low %v4026_v23, %v4030_v9  ;;  %v4079_v23 = vld [vmem:[%s27448_s6 + $0xa68] sm:$0xff] }
 0x22b   : > { %7095 = vmatpush1.bf16.msra.mxu1 %v17668_v25  ;;  %6932 = vmatprep.subr.bf16.mxu0 %v17675_v29  ;;  %v17723_v25 = vcombine.high %v4034_v16, %v4038_v17  ;;  %v17725_v29 = vcombine.high %v4035_v18, %v4039_v21  ;;  %v4087_v16 = vld [vmem:[%s27448_s6 + $0xaa8] sm:$0xff] }
 0x22c   : > { %7096 = vmatprep.subr.bf16.mxu1 %v17677_v30  ;;  %v4042_v30 = vld [vmem:[%s27448_s6 + $0x940] sm:$0xff] }
 0x22d   : > { %v17731_v40 = vcombine.high %v4042_v30, %v4046_v33  ;;  %v17730_v46 = vcombine.low %v4042_v30, %v4046_v33  ;;  %v4095_v30 = vld [vmem:[%s27448_s6 + $0xae8] sm:$0xff] }
 0x22e   : > { %6933 = vmatpush1.bf16.msra.mxu0 %v17674_v38  ;;  %v17724_v38 = vcombine.low %v4035_v18, %v4039_v21 }
 0x22f   : > { %7097 = vmatpush1.bf16.msra.mxu1 %v17676_v42  ;;  %6934 = vmatprep.subr.bf16.mxu0 %v17683_v61  ;;  %v17733_v42 = vcombine.high %v4043_v52, %v4047_v36  ;;  %v4050_v61 = vld [vmem:[%s27448_s6 + $0x980] sm:$0xff] }
 0x230   : > { %7098 = vmatprep.subr.bf16.mxu1 %v17685_v43  ;;  %v4054_v43 = vld [vmem:[%s27448_s6 + $0x9a0] sm:$0xff] }
 0x231   : > { %v17738_v54 = vcombine.low %v4050_v61, %v4054_v43 }
 0x232   : > { %6935 = vmatpush1.bf16.msra.mxu0 %v17682_v47  ;;  %v17739_v47 = vcombine.high %v4050_v61, %v4054_v43  ;;  %v4103_v61 = vld [vmem:[%s27448_s6 + $0xb28] sm:$0xff] }
 0x233   : > { %7099 = vmatpush1.bf16.msra.mxu1 %v17684_v0  ;;  %6945 = vmatprep.subr.bf16.mxu0 %v17691_v49  ;;  %v4058_v0 = vld [vmem:[%s27448_s6 + $0x9c0] sm:$0xff] }
 0x234   : > { %7109 = vmatprep.subr.bf16.mxu1 %v17693_v51  ;;  %v4062_v49 = vld [vmem:[%s27448_s6 + $0x9e0] sm:$0xff]  ;;  %v4059_v51 = vld [vmem:[%s27448_s6 + $0x9c8] sm:$0xff] }
 0x235   : > { %6937 = vmatmul.mubr.bf16.vlgmr.msra.gmra.mrb[8].mxu0 %v22418_v56  ;;  %v17747_v57 = vcombine.high %v4058_v0, %v4062_v49  ;;  %v17746_v2 = vcombine.low %v4058_v0, %v4062_v49  ;;  %v17748_v3 = vcombine.low %v4059_v51, %v4063_v53  ;;  %v4111_v0 = vld [vmem:[%s27448_s6 + $0xb68] sm:$0xff] }
 0x236   : > { %7101 = vmatmul.mubr.bf16.vlgmr.msra.gmra.mrb[8].mxu1 %v22418_v56  ;;  %6946 = vmatpush1.bf16.msra.mxu0 %v17690_v58  ;;  %v17749_v58 = vcombine.high %v4059_v51, %v4063_v53 }
 0x237   : > { %7110 = vmatpush1.bf16.msra.mxu1 %v17692_v59  ;;  %6947 = vmatprep.subr.bf16.mxu0 %v17699_v60  ;;  %v4066_v59 = vld [vmem:[%s27448_s6 + $0xa00] sm:$0xff] }
 0x238   : > { %7111 = vmatprep.subr.bf16.mxu1 %v17701_v63  ;;  %v4070_v60 = vld [vmem:[%s27448_s6 + $0xa20] sm:$0xff]  ;;  %v4067_v63 = vld [vmem:[%s27448_s6 + $0xa08] sm:$0xff] }
 0x239   : > { %v17755_v4 = vcombine.high %v4066_v59, %v4070_v60  ;;  %v17754_v9 = vcombine.low %v4066_v59, %v4070_v60  ;;  %v17756_v10 = vcombine.low %v4067_v63, %v4071_v1  ;;  %v4119_v59 = vld [vmem:[%s27448_s6 + $0xba8] sm:$0xff] }
 0x23a   : > { %6948 = vmatpush1.bf16.msra.mxu0 %v17698_v6  ;;  %v17757_v6 = vcombine.high %v4067_v63, %v4071_v1 }
 0x23b   : > { %7112 = vmatpush1.bf16.msra.mxu1 %v17700_v7  ;;  %6949 = vmatprep.subr.bf16.mxu0 %v17707_v26  ;;  %v4074_v7 = vld [vmem:[%s27448_s6 + $0xa40] sm:$0xff] }
 0x23c   : > { %7113 = vmatprep.subr.bf16.mxu1 %v17709_v8  ;;  %v4078_v26 = vld [vmem:[%s27448_s6 + $0xa60] sm:$0xff]  ;;  %v4075_v8 = vld [vmem:[%s27448_s6 + $0xa48] sm:$0xff] }
 0x23d   : > { %v17763_v11 = vcombine.high %v4074_v7, %v4078_v26  ;;  %v17762_v17 = vcombine.low %v4074_v7, %v4078_v26  ;;  %v17764_v18 = vcombine.low %v4075_v8, %v4079_v23  ;;  %v4127_v7 = vld [vmem:[%s27448_s6 + $0xbe8] sm:$0xff] }
 0x23e   : > { %6950 = vmatpush1.bf16.msra.mxu0 %v17706_v14  ;;  %v17765_v14 = vcombine.high %v4075_v8, %v4079_v23 }
 0x23f   : > { %7114 = vmatpush1.bf16.msra.mxu1 %v17708_v15  ;;  %6951 = vmatprep.subr.bf16.mxu0 %v17715_v34  ;;  %v4082_v15 = vld [vmem:[%s27448_s6 + $0xa80] sm:$0xff] }
 0x240   : > { %7115 = vmatprep.subr.bf16.mxu1 %v17717_v35  ;;  %v4086_v34 = vld [vmem:[%s27448_s6 + $0xaa0] sm:$0xff]  ;;  %v4083_v35 = vld [vmem:[%s27448_s6 + $0xa88] sm:$0xff] }
 0x241   : > { %v17771_v21 = vcombine.high %v4082_v15, %v4086_v34  ;;  %v17770_v33 = vcombine.low %v4082_v15, %v4086_v34  ;;  %v17772_v52 = vcombine.low %v4083_v35, %v4087_v16  ;;  %v4135_v15 = vld [vmem:[%s27448_s6 + $0xc28] sm:$0xff] }
 0x242   : > { %6952 = vmatpush1.bf16.msra.mxu0 %v17714_v22  ;;  %v17773_v22 = vcombine.high %v4083_v35, %v4087_v16 }
 0x243   : > { %7116 = vmatpush1.bf16.msra.mxu1 %v17716_v24  ;;  %6953 = vmatprep.subr.bf16.mxu0 %v17723_v25  ;;  %v4090_v24 = vld [vmem:[%s27448_s6 + $0xac0] sm:$0xff] }
 0x244   : > { %7117 = vmatprep.subr.bf16.mxu1 %v17725_v29  ;;  %v4094_v25 = vld [vmem:[%s27448_s6 + $0xae0] sm:$0xff]  ;;  %v4091_v29 = vld [vmem:[%s27448_s6 + $0xac8] sm:$0xff] }
 0x245   : > { %v17779_v36 = vcombine.high %v4090_v24, %v4094_v25  ;;  %v17778_v43 = vcombine.low %v4090_v24, %v4094_v25  ;;  %v17780_v44 = vcombine.low %v4091_v29, %v4095_v30 }
 0x246   : > { %6954 = vmatpush1.bf16.msra.mxu0 %v17722_v37  ;;  %v17781_v37 = vcombine.high %v4091_v29, %v4095_v30 }
 0x247   : > { %7118 = vmatpush1.bf16.msra.mxu1 %v17724_v38  ;;  %6955 = vmatprep.subr.bf16.mxu0 %v17731_v40  ;;  %v4098_v38 = vld [vmem:[%s27448_s6 + $0xb00] sm:$0xff] }
 0x248   : > { %7119 = vmatprep.subr.bf16.mxu1 %v17733_v42  ;;  %v4102_v40 = vld [vmem:[%s27448_s6 + $0xb20] sm:$0xff]  ;;  %v4099_v42 = vld [vmem:[%s27448_s6 + $0xb08] sm:$0xff] }
 0x249   : > { %v17787_v45 = vcombine.high %v4098_v38, %v4102_v40  ;;  %v17786_v49 = vcombine.low %v4098_v38, %v4102_v40  ;;  %v17788_v51 = vcombine.low %v4099_v42, %v4103_v61 }
 0x24a   : > { %6956 = vmatpush1.bf16.msra.mxu0 %v17730_v46  ;;  %v17789_v46 = vcombine.high %v4099_v42, %v4103_v61 }
 0x24b   : > { %7120 = vmatpush1.bf16.msra.mxu1 %v17732_v31  ;;  %6957 = vmatprep.subr.bf16.mxu0 %v17739_v47  ;;  %v4106_v31 = vld [vmem:[%s27448_s6 + $0xb40] sm:$0xff] }
 0x24c   : > { %7121 = vmatprep.subr.bf16.mxu1 %v17741_v48  ;;  %v4110_v47 = vld [vmem:[%s27448_s6 + $0xb60] sm:$0xff]  ;;  %v4107_v48 = vld [vmem:[%s27448_s6 + $0xb48] sm:$0xff] }
 0x24d   : > { %v17795_v53 = vcombine.high %v4106_v31, %v4110_v47  ;;  %v17794_v60 = vcombine.low %v4106_v31, %v4110_v47  ;;  %v17796_v63 = vcombine.low %v4107_v48, %v4111_v0  ;;  %v4142_v31 = vld [vmem:[%s27448_s6 + $0xc60] sm:$0xff]  ;;  %v4139_v47 = vld [vmem:[%s27448_s6 + $0xc48] sm:$0xff] }
 0x24e   : > { %6958 = vmatpush1.bf16.msra.mxu0 %v17738_v54  ;;  %v17797_v54 = vcombine.high %v4107_v48, %v4111_v0  ;;  %v4143_v48 = vld [vmem:[%s27448_s6 + $0xc68] sm:$0xff] }
 0x24f   : > { %7122 = vmatpush1.bf16.msra.mxu1 %v17740_v55  ;;  %6959 = vmatprep.subr.bf16.mxu0 %v17747_v57  ;;  %v4114_v55 = vld [vmem:[%s27448_s6 + $0xb80] sm:$0xff] }
 0x250   : > { %7123 = vmatprep.subr.bf16.mxu1 %v17749_v58  ;;  %v4118_v57 = vld [vmem:[%s27448_s6 + $0xba0] sm:$0xff]  ;;  %v4115_v58 = vld [vmem:[%s27448_s6 + $0xb88] sm:$0xff] }
 0x251   : > { %v17803_v1 = vcombine.high %v4114_v55, %v4118_v57  ;;  %v17802_v26 = vcombine.low %v4114_v55, %v4118_v57  ;;  %v17804_v8 = vcombine.low %v4115_v58, %v4119_v59  ;;  %v17829_v57 = vcombine.high %v4139_v47, %v4143_v48 }
 0x252   : > { %6960 = vmatpush1.bf16.msra.mxu0 %v17746_v2  ;;  %v17805_v2 = vcombine.high %v4115_v58, %v4119_v59  ;;  %v4150_v58 = vld [vmem:[%s27448_s6 + $0xca0] sm:$0xff]  ;;  %v4147_v59 = vld [vmem:[%s27448_s6 + $0xc88] sm:$0xff] }
 0x253   : > { %7124 = vmatpush1.bf16.msra.mxu1 %v17748_v3  ;;  %6961 = vmatprep.subr.bf16.mxu0 %v17755_v4  ;;  %v4122_v3 = vld [vmem:[%s27448_s6 + $0xbc0] sm:$0xff] }
 0x254   : > { %7125 = vmatprep.subr.bf16.mxu1 %v17757_v6  ;;  %v4126_v4 = vld [vmem:[%s27448_s6 + $0xbe0] sm:$0xff]  ;;  %v4123_v6 = vld [vmem:[%s27448_s6 + $0xbc8] sm:$0xff] }
 0x255   : > { %v17811_v23 = vcombine.high %v4122_v3, %v4126_v4  ;;  %v17810_v34 = vcombine.low %v4122_v3, %v4126_v4  ;;  %v17812_v35 = vcombine.low %v4123_v6, %v4127_v7 }
 0x256   : > { %6962 = vmatpush1.bf16.msra.mxu0 %v17754_v9  ;;  %v17813_v9 = vcombine.high %v4123_v6, %v4127_v7  ;;  %v4154_v6 = vld [vmem:[%s27448_s6 + $0xcc0] sm:$0xff] }
 0x257   : > { %7126 = vmatpush1.bf16.msra.mxu1 %v17756_v10  ;;  %6963 = vmatprep.subr.bf16.mxu0 %v17763_v11  ;;  %v4130_v10 = vld [vmem:[%s27448_s6 + $0xc00] sm:$0xff] }
 0x258   : > { %7127 = vmatprep.subr.bf16.mxu1 %v17765_v14  ;;  %v4134_v11 = vld [vmem:[%s27448_s6 + $0xc20] sm:$0xff]  ;;  %v4131_v14 = vld [vmem:[%s27448_s6 + $0xc08] sm:$0xff] }
 0x259   : > { %v17819_v16 = vcombine.high %v4130_v10, %v4134_v11  ;;  %v4158_v7 = vld [vmem:[%s27448_s6 + $0xce0] sm:$0xff] }
 0x25a   : > { %6964 = vmatpush1.bf16.msra.mxu0 %v17762_v17  ;;  %v17821_v17 = vcombine.high %v4131_v14, %v4135_v15 }
 0x25b   : > { %7128 = vmatpush1.bf16.msra.mxu1 %v17764_v18  ;;  %6965 = vmatprep.subr.bf16.mxu0 %v17771_v21  ;;  %v22603_v18 = vsub.s32 7, %v20809_v41  ;;  %v3217_v21 = vrot.slane %v22051_v13, %v21377_v62 }
 0x25c   : > { %7129 = vmatprep.subr.bf16.mxu1 %v17773_v22  ;;  %v3221_v22 = vrot.slane %v22051_v13, %v21182_v39 }
 0x25d   : > { %v3229_v24 = vrot.slane %v22051_v13, %v22603_v18 }
 0x25e   : > { %6966 = vmatpush1.bf16.msra.mxu0 %v17770_v33 }
 0x25f   : > { %7130 = vmatpush1.bf16.msra.mxu1 %v17772_v52  ;;  %6967 = vmatprep.subr.bf16.mxu0 %v17779_v36 }
 0x260   : > { %7131 = vmatprep.subr.bf16.mxu1 %v17781_v37 }
 0x262   : > { %6968 = vmatpush1.bf16.msra.mxu0 %v17778_v43 }
 0x263   : > { %7132 = vmatpush1.bf16.msra.mxu1 %v17780_v44  ;;  %6969 = vmatprep.subr.bf16.mxu0 %v17787_v45  ;;  %v4138_v45 = vld [vmem:[%s27448_s6 + $0xc40] sm:$0xff] }
 0x264   : > { %7133 = vmatprep.subr.bf16.mxu1 %v17789_v46  ;;  %v17827_v55 = vcombine.high %v4138_v45, %v4142_v31 }
 0x266   : > { %6970 = vmatpush1.bf16.msra.mxu0 %v17786_v49  ;;  %v17818_v49 = vcombine.low %v4130_v10, %v4134_v11  ;;  %v17843_v10 = vcombine.high %v4154_v6, %v4158_v7 }
 0x267   : > { %7134 = vmatpush1.bf16.msra.mxu1 %v17788_v51  ;;  %6971 = vmatprep.subr.bf16.mxu0 %v17795_v53  ;;  %v17820_v51 = vcombine.low %v4131_v14, %v4135_v15  ;;  %v4162_v14 = vld [vmem:[%s27448_s6 + $0xd00] sm:$0xff] }
 0x268   : > { %7135 = vmatprep.subr.bf16.mxu1 %v17797_v54  ;;  %v4146_v54 = vld [vmem:[%s27448_s6 + $0xc80] sm:$0xff] }
 0x269   : > { %v17835_v3 = vcombine.high %v4146_v54, %v4150_v58  ;;  %v4166_v15 = vld [vmem:[%s27448_s6 + $0xd20] sm:$0xff] }
 0x26a   : > { %6972 = vmatpush1.bf16.msra.mxu0 %v17794_v60  ;;  %v4151_v60 = vld [vmem:[%s27448_s6 + $0xca8] sm:$0xff] }
 0x26b   : > { %7136 = vmatpush1.bf16.msra.mxu1 %v17796_v63  ;;  %6973 = vmatprep.subr.bf16.mxu0 %v17803_v1  ;;  %v17826_v1 = vcombine.low %v4138_v45, %v4142_v31  ;;  %v17837_v4 = vcombine.high %v4147_v59, %v4151_v60 }
 0x26c   : > { %7137 = vmatprep.subr.bf16.mxu1 %v17805_v2  ;;  %v17828_v2 = vcombine.low %v4139_v47, %v4143_v48  ;;  %v4186_v47 = vld [vmem:[%s27448_s6 + $0xdc0] sm:$0xff] }
 0x26d   : > { %v4190_v48 = vld [vmem:[%s27448_s6 + $0xde0] sm:$0xff] }
 0x26e   : > { %6974 = vmatpush1.bf16.msra.mxu0 %v17802_v26  ;;  %v4155_v26 = vld [vmem:[%s27448_s6 + $0xcc8] sm:$0xff] }
 0x26f   : > { %7138 = vmatpush1.bf16.msra.mxu1 %v17804_v8  ;;  %6975 = vmatprep.subr.bf16.mxu0 %v17811_v23  ;;  %v4159_v8 = vld [vmem:[%s27448_s6 + $0xce8] sm:$0xff]  ;;  %v17834_v23 = vcombine.low %v4146_v54, %v4150_v58 }
 0x270   : > { %7139 = vmatprep.subr.bf16.mxu1 %v17813_v9  ;;  %v17836_v9 = vcombine.low %v4147_v59, %v4151_v60  ;;  %v17845_v11 = vcombine.high %v4155_v26, %v4159_v8  ;;  %v4194_v59 = vld [vmem:[%s27448_s6 + $0xe00] sm:$0xff] }
 0x271   : > { %v4198_v60 = vld [vmem:[%s27448_s6 + $0xe20] sm:$0xff] }
 0x272   : > { %6976 = vmatpush1.bf16.msra.mxu0 %v17810_v34  ;;  %v4163_v34 = vld [vmem:[%s27448_s6 + $0xd08] sm:$0xff] }
 0x273   : > { %7140 = vmatpush1.bf16.msra.mxu1 %v17812_v35  ;;  %6986 = vmatprep.subr.bf16.mxu0 %v17819_v16  ;;  %v4167_v35 = vld [vmem:[%s27448_s6 + $0xd28] sm:$0xff]  ;;  %v17842_v16 = vcombine.low %v4154_v6, %v4158_v7  ;;  %v17883_v6 = vcombine.high %v4194_v59, %v4198_v60 }
 0x274   : > { %7150 = vmatprep.subr.bf16.mxu1 %v17821_v17  ;;  %v17844_v17 = vcombine.low %v4155_v26, %v4159_v8  ;;  %v4202_v26 = vld [vmem:[%s27448_s6 + $0xe40] sm:$0xff] }
 0x275   : > { %v4206_v8 = vld [vmem:[%s27448_s6 + $0xe60] sm:$0xff] }
 0x288   : > { %v3600_v25 = vpop.f32.mrb[4].mxu0  ;;  %v22611_v30 = vpop.f32.mrb[4].mxu1 }
 0x289   : > { %v19355_v29 = vadd.f32 %v3600_v25, %v3217_v21  ;;  %v3602_v33 = vpop.f32.mrb[5].mxu0  ;;  %v3725_v36 = vpop.f32.mrb[5].mxu1  ;;  %v17851_v21 = vcombine.high %v4162_v14, %v4166_v15  ;;  %v4174_v25 = vld [vmem:[%s27448_s6 + $0xd60] sm:$0xff] }
 0x28a   : > { %v19356_v52 = vadd.f32 %v3602_v33, %v3221_v22  ;;  %v3604_v37 = vpop.f32.mrb[6].mxu0  ;;  %v19358_v40 = vadd.f32 %v3725_v36, %v3229_v24  ;;  %v3727_v42 = vpop.f32.mrb[6].mxu1  ;;  %v17853_v22 = vcombine.high %v4163_v34, %v4167_v35  ;;  %v4170_v24 = vld [vmem:[%s27448_s6 + $0xd40] sm:$0xff]  ;;  %v4175_v33 = vld [vmem:[%s27448_s6 + $0xd68] sm:$0xff]  ;;  %v17852_v36 = vcombine.low %v4163_v34, %v4167_v35 }
 0x28b   : > { %v3734_v38 = vmax.f32 %v19355_v29, 0.0  ;;  %v3605_v61 = vpop.f32.mrb[7].mxu0  ;;  %v3728_v44 = vpop.f32.mrb[7].mxu1  ;;  %v4171_v29 = vld [vmem:[%s27448_s6 + $0xd48] sm:$0xff]  ;;  %v17859_v37 = vcombine.high %v4170_v24, %v4174_v25  ;;  %v4182_v42 = vld [vmem:[%s27448_s6 + $0xda0] sm:$0xff] }
 0x28c   : > { %v3735_v43 = vmax.f32 %v19356_v52, 0.0  ;;  %v3737_v46 = vmax.f32 %v19358_v40, 0.0  ;;  %v17850_v52 = vcombine.low %v4162_v14, %v4166_v15  ;;  %v4178_v40 = vld [vmem:[%s27448_s6 + $0xd80] sm:$0xff]  ;;  %v4179_v61 = vld [vmem:[%s27448_s6 + $0xd88] sm:$0xff]  ;;  %v17858_v44 = vcombine.low %v4170_v24, %v4174_v25 }
 0x28d   : > { %v22627_v53 = vpack.c.bf16 %v3734_v38, %v3734_v38  ;;  %v17861_v38 = vcombine.high %v4171_v29, %v4175_v33  ;;  %v17860_v45 = vcombine.low %v4171_v29, %v4175_v33  ;;  %v17866_v54 = vcombine.low %v4178_v40, %v4182_v42  ;;  %v4210_v34 = vld [vmem:[%s27448_s6 + $0xe80] sm:$0xff] }
 0x28e   : > { %v22625_v0 = vpack.c.bf16 %v3735_v43, %v3735_v43  ;;  %v22643_v63 = vpack.c.bf16 %v3737_v46, %v3737_v46  ;;  %v4183_v43 = vld [vmem:[%s27448_s6 + $0xda8] sm:$0xff]  ;;  %v17867_v46 = vcombine.high %v4178_v40, %v4182_v42  ;;  %v17891_v14 = vcombine.high %v4202_v26, %v4206_v8  ;;  %v4214_v35 = vld [vmem:[%s27448_s6 + $0xea0] sm:$0xff] }
 0x28f   : > { %v17869_v31 = vcombine.high %v4179_v61, %v4183_v43  ;;  %v17899_v24 = vcombine.high %v4210_v34, %v4214_v35  ;;  %v4218_v29 = vld [vmem:[%s27448_s6 + $0xec0] sm:$0xff] }
 0x290   : > { %6977 = vmatprep.mubr.bf16.mxu0 %v22625_v0  ;;  %7141 = vmatprep.mubr.bf16.mxu1 %v22625_v0  ;;  %v4222_v33 = vld [vmem:[%s27448_s6 + $0xee0] sm:$0xff] }
 0x291   : > { %6978 = vmatmul.mubr.bf16.vlgmr.msra.gmra.mrb[8].mxu0 %v22627_v53  ;;  %7142 = vmatmul.mubr.bf16.vlgmr.msra.gmra.mrb[8].mxu1 %v22627_v53  ;;  %v17907_v40 = vcombine.high %v4218_v29, %v4222_v33 }
 0x292   : > { %6987 = vmatpush1.bf16.msra.mxu0 %v17818_v49  ;;  %7151 = vmatpush1.bf16.msra.mxu1 %v17820_v51  ;;  %v4187_v49 = vld [vmem:[%s27448_s6 + $0xdc8] sm:$0xff] }
 0x293   : > { %7018 = vmatprep.mubr.bf16.mxu0 %v22643_v63  ;;  %7182 = vmatprep.mubr.bf16.mxu1 %v22643_v63  ;;  %v4191_v51 = vld [vmem:[%s27448_s6 + $0xde8] sm:$0xff] }
 0x294   : > { %6988 = vmatprep.subr.bf16.mxu0 %v17827_v55  ;;  %7152 = vmatprep.subr.bf16.mxu1 %v17829_v57  ;;  %v17868_v55 = vcombine.low %v4179_v61, %v4183_v43  ;;  %v17875_v57 = vcombine.high %v4186_v47, %v4190_v48  ;;  %v17877_v58 = vcombine.high %v4187_v49, %v4191_v51  ;;  %v4226_v61 = vld [vmem:[%s27448_s6 + $0xf00] sm:$0xff] }
 0x295   : > { %v4230_v43 = vld [vmem:[%s27448_s6 + $0xf20] sm:$0xff] }
 0x296   : > { %6989 = vmatpush1.bf16.msra.mxu0 %v17826_v1  ;;  %7153 = vmatpush1.bf16.msra.mxu1 %v17828_v2  ;;  %v4195_v1 = vld [vmem:[%s27448_s6 + $0xe08] sm:$0xff] }
 0x297   : > { %6990 = vmatprep.subr.bf16.mxu0 %v17835_v3  ;;  %7154 = vmatprep.subr.bf16.mxu1 %v17837_v4  ;;  %v4199_v2 = vld [vmem:[%s27448_s6 + $0xe28] sm:$0xff]  ;;  %v17874_v3 = vcombine.low %v4186_v47, %v4190_v48  ;;  %v17876_v4 = vcombine.low %v4187_v49, %v4191_v51  ;;  %v17915_v47 = vcombine.high %v4226_v61, %v4230_v43  ;;  %v4234_v49 = vld [vmem:[%s27448_s6 + $0xf40] sm:$0xff] }
 0x298   : > { %v17885_v7 = vcombine.high %v4195_v1, %v4199_v2  ;;  %v4238_v51 = vld [vmem:[%s27448_s6 + $0xf60] sm:$0xff] }
 0x29a   : > { %6991 = vmatpush1.bf16.msra.mxu0 %v17834_v23  ;;  %7155 = vmatpush1.bf16.msra.mxu1 %v17836_v9  ;;  %v4203_v23 = vld [vmem:[%s27448_s6 + $0xe48] sm:$0xff] }
 0x29b   : > { %6992 = vmatprep.subr.bf16.mxu0 %v17843_v10  ;;  %7156 = vmatprep.subr.bf16.mxu1 %v17845_v11  ;;  %v4207_v9 = vld [vmem:[%s27448_s6 + $0xe68] sm:$0xff]  ;;  %v17882_v10 = vcombine.low %v4194_v59, %v4198_v60  ;;  %v17884_v11 = vcombine.low %v4195_v1, %v4199_v2  ;;  %v22782_v59 = vsub.s32 6, %v20809_v41  ;;  %v17923_v60 = vcombine.high %v4234_v49, %v4238_v51  ;;  %v4242_v2 = vld [vmem:[%s27448_s6 + $0xf80] sm:$0xff] }
 0x29c   : > { %v17893_v15 = vcombine.high %v4203_v23, %v4207_v9 }
 0x29e   : > { %6993 = vmatpush1.bf16.msra.mxu0 %v17842_v16  ;;  %7157 = vmatpush1.bf16.msra.mxu1 %v17844_v17  ;;  %v4211_v16 = vld [vmem:[%s27448_s6 + $0xe88] sm:$0xff] }
 0x29f   : > { %6994 = vmatprep.subr.bf16.mxu0 %v17851_v21  ;;  %7158 = vmatprep.subr.bf16.mxu1 %v17853_v22  ;;  %v4215_v17 = vld [vmem:[%s27448_s6 + $0xea8] sm:$0xff]  ;;  %v17890_v21 = vcombine.low %v4202_v26, %v4206_v8  ;;  %v17892_v22 = vcombine.low %v4203_v23, %v4207_v9  ;;  %v3225_v8 = vrot.slane %v22051_v13, %v22782_v59 }
 0x2a0   : > { %v17901_v25 = vcombine.high %v4211_v16, %v4215_v17  ;;  %v4255_v13 = vld [vmem:[%s27448_s6 + $0xfe8] sm:$0xff] }
 0x2a2   : > { %6995 = vmatpush1.bf16.msra.mxu0 %v17850_v52  ;;  %7159 = vmatpush1.bf16.msra.mxu1 %v17852_v36  ;;  %v4219_v52 = vld [vmem:[%s27448_s6 + $0xec8] sm:$0xff] }
 0x2a3   : > { %6996 = vmatprep.subr.bf16.mxu0 %v17859_v37  ;;  %7160 = vmatprep.subr.bf16.mxu1 %v17861_v38  ;;  %v4223_v36 = vld [vmem:[%s27448_s6 + $0xee8] sm:$0xff]  ;;  %v17898_v37 = vcombine.low %v4210_v34, %v4214_v35  ;;  %v17900_v38 = vcombine.low %v4211_v16, %v4215_v17  ;;  %v19357_v35 = vadd.f32 %v22611_v30, %v3225_v8  ;;  %v3753_v30 = vld [vmem:[%s27448_s6 + $0x38] sm:$0xff] }
 0x2a4   : > { %v17909_v42 = vcombine.high %v4219_v52, %v4223_v36  ;;  %v3781_v8 = vld [vmem:[%s27448_s6 + $0x118] sm:$0xff] }
 0x2a6   : > { %6997 = vmatpush1.bf16.msra.mxu0 %v17858_v44  ;;  %7161 = vmatpush1.bf16.msra.mxu1 %v17860_v45  ;;  %v4227_v44 = vld [vmem:[%s27448_s6 + $0xf08] sm:$0xff] }
 0x2a7   : > { %6998 = vmatprep.subr.bf16.mxu0 %v17867_v46  ;;  %7162 = vmatprep.subr.bf16.mxu1 %v17869_v31  ;;  %v4231_v45 = vld [vmem:[%s27448_s6 + $0xf28] sm:$0xff]  ;;  %v17906_v46 = vcombine.low %v4218_v29, %v4222_v33  ;;  %v17908_v31 = vcombine.low %v4219_v52, %v4223_v36  ;;  %v3736_v33 = vmax.f32 %v19357_v35, 0.0  ;;  %v3793_v35 = vld [vmem:[%s27448_s6 + $0x178] sm:$0xff] }
 0x2a8   : > { %v17917_v48 = vcombine.high %v4227_v44, %v4231_v45 }
 0x2aa   : > { %6999 = vmatpush1.bf16.msra.mxu0 %v17866_v54  ;;  %7163 = vmatpush1.bf16.msra.mxu1 %v17868_v55  ;;  %v4235_v54 = vld [vmem:[%s27448_s6 + $0xf48] sm:$0xff] }
 0x2ab   : > { %7000 = vmatprep.subr.bf16.mxu0 %v17875_v57  ;;  %7164 = vmatprep.subr.bf16.mxu1 %v17877_v58  ;;  %v4239_v55 = vld [vmem:[%s27448_s6 + $0xf68] sm:$0xff]  ;;  %v17914_v57 = vcombine.low %v4226_v61, %v4230_v43  ;;  %v17916_v58 = vcombine.low %v4227_v44, %v4231_v45  ;;  %v22835_v43 = vpack.c.bf16 %v3736_v33, %v3736_v33 }
 0x2ac   : > { %v17925_v1 = vcombine.high %v4235_v54, %v4239_v55  ;;  %v17924_v26 = vcombine.low %v4235_v54, %v4239_v55 }
 0x2ae   : > { %7001 = vmatpush1.bf16.msra.mxu0 %v17874_v3  ;;  %7165 = vmatpush1.bf16.msra.mxu1 %v17876_v4  ;;  %v4246_v3 = vld [vmem:[%s27448_s6 + $0xfa0] sm:$0xff]  ;;  %v4243_v4 = vld [vmem:[%s27448_s6 + $0xf88] sm:$0xff] }
 0x2af   : > { %7002 = vmatprep.subr.bf16.mxu0 %v17883_v6  ;;  %7166 = vmatprep.subr.bf16.mxu1 %v17885_v7  ;;  %v4247_v6 = vld [vmem:[%s27448_s6 + $0xfa8] sm:$0xff]  ;;  %v17922_v7 = vcombine.low %v4234_v49, %v4238_v51  ;;  %v17931_v23 = vcombine.high %v4242_v2, %v4246_v3  ;;  %v3769_v49 = vld [vmem:[%s27448_s6 + $0xb8] sm:$0xff] }
 0x2b0   : > { %v17933_v9 = vcombine.high %v4243_v4, %v4247_v6  ;;  %v17932_v34 = vcombine.low %v4243_v4, %v4247_v6 }
 0x2b2   : > { %7003 = vmatpush1.bf16.msra.mxu0 %v17882_v10  ;;  %7167 = vmatpush1.bf16.msra.mxu1 %v17884_v11  ;;  %v4250_v10 = vld [vmem:[%s27448_s6 + $0xfc0] sm:$0xff] }
 0x2b3   : > { %7004 = vmatprep.subr.bf16.mxu0 %v17891_v14  ;;  %7168 = vmatprep.subr.bf16.mxu1 %v17893_v15  ;;  %v4254_v11 = vld [vmem:[%s27448_s6 + $0xfe0] sm:$0xff]  ;;  %v4251_v14 = vld [vmem:[%s27448_s6 + $0xfc8] sm:$0xff]  ;;  %v17930_v15 = vcombine.low %v4242_v2, %v4246_v3 }
 0x2b4   : > { %v17939_v16 = vcombine.high %v4250_v10, %v4254_v11  ;;  %v17941_v17 = vcombine.high %v4251_v14, %v4255_v13  ;;  %v17940_v29 = vcombine.low %v4251_v14, %v4255_v13  ;;  %v3788_v13 = vld [vmem:[%s27448_s6 + $0x150] sm:$0xff] }
 0x2b6   : > { %7005 = vmatpush1.bf16.msra.mxu0 %v17890_v21  ;;  %7169 = vmatpush1.bf16.msra.mxu1 %v17892_v22  ;;  %v3748_v21 = vld [vmem:[%s27448_s6 + $0x10] sm:$0xff] }
 0x2b7   : > { %7006 = vmatprep.subr.bf16.mxu0 %v17899_v24  ;;  %7170 = vmatprep.subr.bf16.mxu1 %v17901_v25  ;;  %v3752_v22 = vld [vmem:[%s27448_s6 + $0x30] sm:$0xff]  ;;  %v3749_v24 = vld [vmem:[%s27448_s6 + $0x18] sm:$0xff]  ;;  %v17938_v25 = vcombine.low %v4250_v10, %v4254_v11 }
 0x2b8   : > { %v17439_v52 = vcombine.high %v3748_v21, %v3752_v22  ;;  %v17441_v36 = vcombine.high %v3749_v24, %v3753_v30  ;;  %v17438_v61 = vcombine.low %v3748_v21, %v3752_v22  ;;  %v17440_v44 = vcombine.low %v3749_v24, %v3753_v30  ;;  %v3796_v24 = vld [vmem:[%s27448_s6 + $0x190] sm:$0xff] }
 0x2b9   : > { %v3800_v30 = vld [vmem:[%s27448_s6 + $0x1b0] sm:$0xff] }
 0x2ba   : > { %7007 = vmatpush1.bf16.msra.mxu0 %v17898_v37  ;;  %7171 = vmatpush1.bf16.msra.mxu1 %v17900_v38  ;;  %v3756_v37 = vld [vmem:[%s27448_s6 + $0x50] sm:$0xff] }
 0x2bb   : > { %7008 = vmatprep.subr.bf16.mxu0 %v17907_v40  ;;  %7172 = vmatprep.subr.bf16.mxu1 %v17909_v42  ;;  %v3760_v38 = vld [vmem:[%s27448_s6 + $0x70] sm:$0xff]  ;;  %v3757_v40 = vld [vmem:[%s27448_s6 + $0x58] sm:$0xff] }
 0x2bc   : > { %v3761_v42 = vld [vmem:[%s27448_s6 + $0x78] sm:$0xff]  ;;  %v17447_v45 = vcombine.high %v3756_v37, %v3760_v38  ;;  %v17446_v51 = vcombine.low %v3756_v37, %v3760_v38  ;;  %v3804_v38 = vld [vmem:[%s27448_s6 + $0x1d0] sm:$0xff] }
 0x2bd   : > { %v17448_v54 = vcombine.low %v3757_v40, %v3761_v42 }
 0x2be   : > { %7009 = vmatpush1.bf16.msra.mxu0 %v17906_v46  ;;  %7173 = vmatpush1.bf16.msra.mxu1 %v17908_v31  ;;  %v17449_v46 = vcombine.high %v3757_v40, %v3761_v42  ;;  %v3764_v31 = vld [vmem:[%s27448_s6 + $0x90] sm:$0xff]  ;;  %v3805_v42 = vld [vmem:[%s27448_s6 + $0x1d8] sm:$0xff] }
 0x2bf   : > { %7010 = vmatprep.subr.bf16.mxu0 %v17915_v47  ;;  %7174 = vmatprep.subr.bf16.mxu1 %v17917_v48  ;;  %v3768_v47 = vld [vmem:[%s27448_s6 + $0xb0] sm:$0xff]  ;;  %v3765_v48 = vld [vmem:[%s27448_s6 + $0x98] sm:$0xff] }
 0x2c0   : > { %v17455_v55 = vcombine.high %v3764_v31, %v3768_v47  ;;  %v17454_v2 = vcombine.low %v3764_v31, %v3768_v47  ;;  %v17456_v3 = vcombine.low %v3765_v48, %v3769_v49  ;;  %v3808_v40 = vld [vmem:[%s27448_s6 + $0x1f0] sm:$0xff] }
 0x2c1   : > { %v3812_v47 = vld [vmem:[%s27448_s6 + $0x210] sm:$0xff] }
 0x2c2   : > { %7011 = vmatpush1.bf16.msra.mxu0 %v17914_v57  ;;  %7175 = vmatpush1.bf16.msra.mxu1 %v17916_v58  ;;  %v17457_v57 = vcombine.high %v3765_v48, %v3769_v49  ;;  %v3772_v58 = vld [vmem:[%s27448_s6 + $0xd0] sm:$0xff]  ;;  %v3813_v49 = vld [vmem:[%s27448_s6 + $0x218] sm:$0xff] }
 0x2c3   : > { %7012 = vmatprep.subr.bf16.mxu0 %v17923_v60  ;;  %7176 = vmatprep.subr.bf16.mxu1 %v17925_v1  ;;  %v3776_v60 = vld [vmem:[%s27448_s6 + $0xf0] sm:$0xff]  ;;  %v3773_v1 = vld [vmem:[%s27448_s6 + $0xd8] sm:$0xff] }
 0x2c4   : > { %v17463_v4 = vcombine.high %v3772_v58, %v3776_v60  ;;  %v3816_v48 = vld [vmem:[%s27448_s6 + $0x230] sm:$0xff] }
 0x2c6   : > { %7013 = vmatpush1.bf16.msra.mxu0 %v17922_v7  ;;  %7177 = vmatpush1.bf16.msra.mxu1 %v17924_v26  ;;  %v3780_v7 = vld [vmem:[%s27448_s6 + $0x110] sm:$0xff] }
 0x2c7   : > { %7014 = vmatprep.subr.bf16.mxu0 %v17931_v23  ;;  %7178 = vmatprep.subr.bf16.mxu1 %v17933_v9  ;;  %v3784_v26 = vld [vmem:[%s27448_s6 + $0x130] sm:$0xff]  ;;  %v3785_v23 = vld [vmem:[%s27448_s6 + $0x138] sm:$0xff]  ;;  %v17462_v9 = vcombine.low %v3772_v58, %v3776_v60 }
 0x2c8   : > { %v17471_v11 = vcombine.high %v3780_v7, %v3784_v26  ;;  %v17473_v14 = vcombine.high %v3781_v8, %v3785_v23  ;;  %v3820_v60 = vld [vmem:[%s27448_s6 + $0x250] sm:$0xff] }
 0x2ca   : > { %7015 = vmatpush1.bf16.msra.mxu0 %v17930_v15  ;;  %7179 = vmatpush1.bf16.msra.mxu1 %v17932_v34  ;;  %v3792_v15 = vld [vmem:[%s27448_s6 + $0x170] sm:$0xff]  ;;  %v3789_v34 = vld [vmem:[%s27448_s6 + $0x158] sm:$0xff] }
 0x2cb   : > { %7016 = vmatprep.subr.bf16.mxu0 %v17939_v16  ;;  %7180 = vmatprep.subr.bf16.mxu1 %v17941_v17  ;;  %v17470_v16 = vcombine.low %v3780_v7, %v3784_v26  ;;  %v17472_v17 = vcombine.low %v3781_v8, %v3785_v23  ;;  %v17479_v21 = vcombine.high %v3788_v13, %v3792_v15  ;;  %v3828_v26 = vld [vmem:[%s27448_s6 + $0x290] sm:$0xff]  ;;  %v3829_v23 = vld [vmem:[%s27448_s6 + $0x298] sm:$0xff] }
 0x2cc   : > { %v17481_v22 = vcombine.high %v3789_v34, %v3793_v35  ;;  %v17478_v33 = vcombine.low %v3788_v13, %v3792_v15  ;;  %v3832_v8 = vld [vmem:[%s27448_s6 + $0x2b0] sm:$0xff] }
 0x2cd   : > { %v3836_v15 = vld [vmem:[%s27448_s6 + $0x2d0] sm:$0xff] }
 0x2ce   : > { %7017 = vmatpush1.bf16.msra.mxu0 %v17938_v25  ;;  %7181 = vmatpush1.bf16.msra.mxu1 %v17940_v29  ;;  %v3797_v25 = vld [vmem:[%s27448_s6 + $0x198] sm:$0xff] }
 0x2cf   : > { %7191 = vmatprep.subr.bf16.mxu0 %v17439_v52  ;;  %7355 = vmatprep.subr.bf16.mxu1 %v17441_v36  ;;  %v3801_v29 = vld [vmem:[%s27448_s6 + $0x1b8] sm:$0xff]  ;;  %v17480_v52 = vcombine.low %v3789_v34, %v3793_v35  ;;  %v17487_v36 = vcombine.high %v3796_v24, %v3800_v30  ;;  %v3840_v34 = vld [vmem:[%s27448_s6 + $0x2f0] sm:$0xff] }
 0x2d0   : > { %v17489_v37 = vcombine.high %v3797_v25, %v3801_v29  ;;  %v3837_v35 = vld [vmem:[%s27448_s6 + $0x2d8] sm:$0xff] }
 0x2d1   : > { %7019 = vmatmul.mubr.bf16.vlgmr.msra.gmra.mrb[8].mxu0 %v22835_v43  ;;  %7183 = vmatmul.mubr.bf16.vlgmr.msra.gmra.mrb[8].mxu1 %v22835_v43 }
 0x2d2   : > { %7192 = vmatpush1.bf16.msra.mxu0 %v17438_v61  ;;  %7223 = vmatprep.mubr.bf16.mxu0 %v22097_v20  ;;  %v3809_v61 = vld [vmem:[%s27448_s6 + $0x1f8] sm:$0xff] }
 0x2d3   : > { %7356 = vmatpush1.bf16.msra.mxu1 %v17440_v44  ;;  %7387 = vmatprep.mubr.bf16.mxu1 %v22097_v20  ;;  %v3777_v20 = vld [vmem:[%s27448_s6 + $0xf8] sm:$0xff]  ;;  %v17486_v44 = vcombine.low %v3796_v24, %v3800_v30  ;;  %v17497_v31 = vcombine.high %v3805_v42, %v3809_v61  ;;  %v3844_v30 = vld [vmem:[%s27448_s6 + $0x310] sm:$0xff] }
 0x2d4   : > { %7193 = vmatprep.subr.bf16.mxu0 %v17447_v45  ;;  %7357 = vmatprep.subr.bf16.mxu1 %v17449_v46  ;;  %v17465_v6 = vcombine.high %v3773_v1, %v3777_v20  ;;  %v17464_v10 = vcombine.low %v3773_v1, %v3777_v20  ;;  %v17488_v45 = vcombine.low %v3797_v25, %v3801_v29  ;;  %v3824_v1 = vld [vmem:[%s27448_s6 + $0x270] sm:$0xff]  ;;  %v3821_v20 = vld [vmem:[%s27448_s6 + $0x258] sm:$0xff] }
 0x2d5   : > { %v17495_v46 = vcombine.high %v3804_v38, %v3808_v40  ;;  %v3848_v25 = vld [vmem:[%s27448_s6 + $0x330] sm:$0xff]  ;;  %v3845_v29 = vld [vmem:[%s27448_s6 + $0x318] sm:$0xff] }
 0x2d6   : > { %7194 = vmatpush1.bf16.msra.mxu0 %v17446_v51  ;;  %v3817_v51 = vld [vmem:[%s27448_s6 + $0x238] sm:$0xff] }
 0x2d7   : > { %7358 = vmatpush1.bf16.msra.mxu1 %v17448_v54  ;;  %7195 = vmatprep.subr.bf16.mxu0 %v17455_v55  ;;  %v17494_v54 = vcombine.low %v3804_v38, %v3808_v40  ;;  %v17496_v55 = vcombine.low %v3805_v42, %v3809_v61  ;;  %v17505_v58 = vcombine.high %v3813_v49, %v3817_v51  ;;  %v3852_v40 = vld [vmem:[%s27448_s6 + $0x350] sm:$0xff]  ;;  %v3853_v61 = vld [vmem:[%s27448_s6 + $0x358] sm:$0xff] }
 0x2d8   : > { %7359 = vmatprep.subr.bf16.mxu1 %v17457_v57  ;;  %v17503_v57 = vcombine.high %v3812_v47, %v3816_v48  ;;  %v3856_v42 = vld [vmem:[%s27448_s6 + $0x370] sm:$0xff] }
 0x2da   : > { %7196 = vmatpush1.bf16.msra.mxu0 %v17454_v2  ;;  %v3825_v2 = vld [vmem:[%s27448_s6 + $0x278] sm:$0xff] }
 0x2db   : > { %7360 = vmatpush1.bf16.msra.mxu1 %v17456_v3  ;;  %7197 = vmatprep.subr.bf16.mxu0 %v17463_v4  ;;  %v17502_v3 = vcombine.low %v3812_v47, %v3816_v48  ;;  %v17504_v4 = vcombine.low %v3813_v49, %v3817_v51  ;;  %v17513_v7 = vcombine.high %v3821_v20, %v3825_v2  ;;  %v3860_v48 = vld [vmem:[%s27448_s6 + $0x390] sm:$0xff]  ;;  %v3861_v51 = vld [vmem:[%s27448_s6 + $0x398] sm:$0xff] }
 0x2dc   : > { %7361 = vmatprep.subr.bf16.mxu1 %v17465_v6  ;;  %v17511_v6 = vcombine.high %v3820_v60, %v3824_v1  ;;  %v3864_v49 = vld [vmem:[%s27448_s6 + $0x3b0] sm:$0xff] }
 0x2de   : > { %7198 = vmatpush1.bf16.msra.mxu0 %v17462_v9  ;;  %v3833_v9 = vld [vmem:[%s27448_s6 + $0x2b8] sm:$0xff] }
 0x2df   : > { %7362 = vmatpush1.bf16.msra.mxu1 %v17464_v10  ;;  %7199 = vmatprep.subr.bf16.mxu0 %v17471_v11  ;;  %v17510_v10 = vcombine.low %v3820_v60, %v3824_v1  ;;  %v17512_v11 = vcombine.low %v3821_v20, %v3825_v2  ;;  %v17521_v13 = vcombine.high %v3829_v23, %v3833_v9  ;;  %v3868_v1 = vld [vmem:[%s27448_s6 + $0x3d0] sm:$0xff]  ;;  %v3869_v2 = vld [vmem:[%s27448_s6 + $0x3d8] sm:$0xff] }
 0x2e0   : > { %7363 = vmatprep.subr.bf16.mxu1 %v17473_v14  ;;  %v17519_v14 = vcombine.high %v3828_v26, %v3832_v8  ;;  %v3872_v20 = vld [vmem:[%s27448_s6 + $0x3f0] sm:$0xff] }
 0x2e2   : > { %7200 = vmatpush1.bf16.msra.mxu0 %v17470_v16  ;;  %v3841_v16 = vld [vmem:[%s27448_s6 + $0x2f8] sm:$0xff] }
 0x2e3   : > { %7364 = vmatpush1.bf16.msra.mxu1 %v17472_v17  ;;  %7201 = vmatprep.subr.bf16.mxu0 %v17479_v21  ;;  %v17518_v17 = vcombine.low %v3828_v26, %v3832_v8  ;;  %v17520_v21 = vcombine.low %v3829_v23, %v3833_v9  ;;  %v17529_v24 = vcombine.high %v3837_v35, %v3841_v16  ;;  %v3876_v8 = vld [vmem:[%s27448_s6 + $0x410] sm:$0xff]  ;;  %v3877_v9 = vld [vmem:[%s27448_s6 + $0x418] sm:$0xff] }
 0x2e4   : > { %7365 = vmatprep.subr.bf16.mxu1 %v17481_v22  ;;  %v17527_v22 = vcombine.high %v3836_v15, %v3840_v34  ;;  %v3880_v23 = vld [vmem:[%s27448_s6 + $0x430] sm:$0xff] }
 0x2e6   : > { %7202 = vmatpush1.bf16.msra.mxu0 %v17478_v33  ;;  %v3849_v33 = vld [vmem:[%s27448_s6 + $0x338] sm:$0xff] }
 0x2e7   : > { %7366 = vmatpush1.bf16.msra.mxu1 %v17480_v52  ;;  %7203 = vmatprep.subr.bf16.mxu0 %v17487_v36  ;;  %v17526_v52 = vcombine.low %v3836_v15, %v3840_v34  ;;  %v17528_v36 = vcombine.low %v3837_v35, %v3841_v16  ;;  %v17537_v38 = vcombine.high %v3845_v29, %v3849_v33  ;;  %v3884_v34 = vld [vmem:[%s27448_s6 + $0x450] sm:$0xff] }
 0x2e8   : > { %7367 = vmatprep.subr.bf16.mxu1 %v17489_v37  ;;  %v17535_v37 = vcombine.high %v3844_v30, %v3848_v25  ;;  %v3888_v35 = vld [vmem:[%s27448_s6 + $0x470] sm:$0xff]  ;;  %v17566_v16 = vcombine.low %v3876_v8, %v3880_v23 }
 0x2ea   : > { %7204 = vmatpush1.bf16.msra.mxu0 %v17486_v44  ;;  %v3857_v44 = vld [vmem:[%s27448_s6 + $0x378] sm:$0xff] }
 0x2eb   : > { %7368 = vmatpush1.bf16.msra.mxu1 %v17488_v45  ;;  %7205 = vmatprep.subr.bf16.mxu0 %v17495_v46  ;;  %v17534_v45 = vcombine.low %v3844_v30, %v3848_v25  ;;  %v17536_v46 = vcombine.low %v3845_v29, %v3849_v33  ;;  %v17545_v47 = vcombine.high %v3853_v61, %v3857_v44  ;;  %v3892_v30 = vld [vmem:[%s27448_s6 + $0x490] sm:$0xff]  ;;  %v3893_v33 = vld [vmem:[%s27448_s6 + $0x498] sm:$0xff] }
 0x2ec   : > { %7369 = vmatprep.subr.bf16.mxu1 %v17497_v31  ;;  %v17543_v31 = vcombine.high %v3852_v40, %v3856_v42  ;;  %v3896_v25 = vld [vmem:[%s27448_s6 + $0x4b0] sm:$0xff] }
 0x2ee   : > { %7206 = vmatpush1.bf16.msra.mxu0 %v17494_v54  ;;  %v3865_v54 = vld [vmem:[%s27448_s6 + $0x3b8] sm:$0xff] }
 0x2ef   : > { %7370 = vmatpush1.bf16.msra.mxu1 %v17496_v55  ;;  %7207 = vmatprep.subr.bf16.mxu0 %v17503_v57  ;;  %v17542_v55 = vcombine.low %v3852_v40, %v3856_v42  ;;  %v17544_v57 = vcombine.low %v3853_v61, %v3857_v44  ;;  %v17553_v60 = vcombine.high %v3861_v51, %v3865_v54  ;;  %v3900_v42 = vld [vmem:[%s27448_s6 + $0x4d0] sm:$0xff]  ;;  %v3905_v44 = vld [vmem:[%s27448_s6 + $0x4f8] sm:$0xff] }
 0x2f0   : > { %7371 = vmatprep.subr.bf16.mxu1 %v17505_v58  ;;  %v17551_v58 = vcombine.high %v3860_v48, %v3864_v49  ;;  %v3904_v61 = vld [vmem:[%s27448_s6 + $0x4f0] sm:$0xff] }
 0x2f2   : > { %7208 = vmatpush1.bf16.msra.mxu0 %v17502_v3  ;;  %v3873_v3 = vld [vmem:[%s27448_s6 + $0x3f8] sm:$0xff] }
 0x2f3   : > { %7372 = vmatpush1.bf16.msra.mxu1 %v17504_v4  ;;  %7209 = vmatprep.subr.bf16.mxu0 %v17511_v6  ;;  %v17550_v4 = vcombine.low %v3860_v48, %v3864_v49  ;;  %v17552_v6 = vcombine.low %v3861_v51, %v3865_v54  ;;  %v17561_v26 = vcombine.high %v3869_v2, %v3873_v3  ;;  %v3912_v48 = vld [vmem:[%s27448_s6 + $0x530] sm:$0xff]  ;;  %v3909_v49 = vld [vmem:[%s27448_s6 + $0x518] sm:$0xff] }
 0x2f4   : > { %7373 = vmatprep.subr.bf16.mxu1 %v17513_v7  ;;  %v17559_v7 = vcombine.high %v3868_v1, %v3872_v20  ;;  %v3913_v51 = vld [vmem:[%s27448_s6 + $0x538] sm:$0xff]  ;;  %v17590_v54 = vcombine.low %v3900_v42, %v3904_v61 }
 0x2f6   : > { %7210 = vmatpush1.bf16.msra.mxu0 %v17510_v10  ;;  %v3881_v10 = vld [vmem:[%s27448_s6 + $0x438] sm:$0xff] }
 0x2f7   : > { %7374 = vmatpush1.bf16.msra.mxu1 %v17512_v11  ;;  %7211 = vmatprep.subr.bf16.mxu0 %v17519_v14  ;;  %v17558_v11 = vcombine.low %v3868_v1, %v3872_v20  ;;  %v17560_v14 = vcombine.low %v3869_v2, %v3873_v3  ;;  %v17569_v15 = vcombine.high %v3877_v9, %v3881_v10  ;;  %v3920_v1 = vld [vmem:[%s27448_s6 + $0x570] sm:$0xff]  ;;  %v3917_v20 = vld [vmem:[%s27448_s6 + $0x558] sm:$0xff] }
 0x2f8   : > { %7375 = vmatprep.subr.bf16.mxu1 %v17521_v13  ;;  %v17567_v13 = vcombine.high %v3876_v8, %v3880_v23  ;;  %v3921_v2 = vld [vmem:[%s27448_s6 + $0x578] sm:$0xff]  ;;  %v3928_v8 = vld [vmem:[%s27448_s6 + $0x5b0] sm:$0xff] }
 0x2f9   : > { %v3925_v23 = vld [vmem:[%s27448_s6 + $0x598] sm:$0xff] }
 0x2fa   : > { %7212 = vmatpush1.bf16.msra.mxu0 %v17518_v17  ;;  %v3885_v17 = vld [vmem:[%s27448_s6 + $0x458] sm:$0xff] }
 0x2fb   : > { %7376 = vmatpush1.bf16.msra.mxu1 %v17520_v21  ;;  %7213 = vmatprep.subr.bf16.mxu0 %v17527_v22  ;;  %v3889_v21 = vld [vmem:[%s27448_s6 + $0x478] sm:$0xff]  ;;  %v17568_v22 = vcombine.low %v3877_v9, %v3881_v10 }
 0x2fc   : > { %7377 = vmatprep.subr.bf16.mxu1 %v17529_v24  ;;  %v17575_v24 = vcombine.high %v3884_v34, %v3888_v35  ;;  %v17577_v29 = vcombine.high %v3885_v17, %v3889_v21  ;;  %v3929_v9 = vld [vmem:[%s27448_s6 + $0x5b8] sm:$0xff] }
 0x2fe   : > { %7214 = vmatpush1.bf16.msra.mxu0 %v17526_v52  ;;  %v3897_v52 = vld [vmem:[%s27448_s6 + $0x4b8] sm:$0xff] }
 0x2ff   : > { %7378 = vmatpush1.bf16.msra.mxu1 %v17528_v36  ;;  %7215 = vmatprep.subr.bf16.mxu0 %v17535_v37  ;;  %v17574_v36 = vcombine.low %v3884_v34, %v3888_v35  ;;  %v17576_v37 = vcombine.low %v3885_v17, %v3889_v21  ;;  %v17585_v40 = vcombine.high %v3893_v33, %v3897_v52  ;;  %v3936_v34 = vld [vmem:[%s27448_s6 + $0x5f0] sm:$0xff]  ;;  %v3933_v35 = vld [vmem:[%s27448_s6 + $0x5d8] sm:$0xff] }
 0x300   : > { %7379 = vmatprep.subr.bf16.mxu1 %v17537_v38  ;;  %v17583_v38 = vcombine.high %v3892_v30, %v3896_v25  ;;  %v17616_v21 = vcombine.low %v3925_v23, %v3929_v9 }
 0x302   : > { %7216 = vmatpush1.bf16.msra.mxu0 %v17534_v45  ;;  %v17584_v45 = vcombine.low %v3893_v33, %v3897_v52  ;;  %v3945_v33 = vld [vmem:[%s27448_s6 + $0x638] sm:$0xff] }
 0x303   : > { %7380 = vmatpush1.bf16.msra.mxu1 %v17536_v46  ;;  %7217 = vmatprep.subr.bf16.mxu0 %v17543_v31  ;;  %v17591_v46 = vcombine.high %v3900_v42, %v3904_v61  ;;  %v3952_v42 = vld [vmem:[%s27448_s6 + $0x670] sm:$0xff]  ;;  %v3949_v61 = vld [vmem:[%s27448_s6 + $0x658] sm:$0xff] }
 0x304   : > { %7381 = vmatprep.subr.bf16.mxu1 %v17545_v47  ;;  %v3908_v47 = vld [vmem:[%s27448_s6 + $0x510] sm:$0xff] }
 0x305   : > { %v17598_v3 = vcombine.low %v3908_v47, %v3912_v48 }
 0x306   : > { %7218 = vmatpush1.bf16.msra.mxu0 %v17542_v55 }
 0x307   : > { %7382 = vmatpush1.bf16.msra.mxu1 %v17544_v57  ;;  %7219 = vmatprep.subr.bf16.mxu0 %v17551_v58  ;;  %v17599_v57 = vcombine.high %v3908_v47, %v3912_v48  ;;  %v17601_v58 = vcombine.high %v3909_v49, %v3913_v51  ;;  %v3960_v47 = vld [vmem:[%s27448_s6 + $0x6b0] sm:$0xff]  ;;  %v3957_v48 = vld [vmem:[%s27448_s6 + $0x698] sm:$0xff] }
 0x308   : > { %7383 = vmatprep.subr.bf16.mxu1 %v17553_v60  ;;  %v3916_v60 = vld [vmem:[%s27448_s6 + $0x550] sm:$0xff] }
 0x309   : > { %v17606_v10 = vcombine.low %v3916_v60, %v3920_v1 }
 0x30a   : > { %7220 = vmatpush1.bf16.msra.mxu0 %v17550_v4  ;;  %v17600_v4 = vcombine.low %v3909_v49, %v3913_v51  ;;  %v3961_v49 = vld [vmem:[%s27448_s6 + $0x6b8] sm:$0xff] }
 0x30b   : > { %7384 = vmatpush1.bf16.msra.mxu1 %v17552_v6  ;;  %7221 = vmatprep.subr.bf16.mxu0 %v17559_v7  ;;  %v17607_v6 = vcombine.high %v3916_v60, %v3920_v1  ;;  %v17609_v7 = vcombine.high %v3917_v20, %v3921_v2  ;;  %v3968_v60 = vld [vmem:[%s27448_s6 + $0x6f0] sm:$0xff]  ;;  %v3965_v1 = vld [vmem:[%s27448_s6 + $0x6d8] sm:$0xff] }
 0x30c   : > { %7385 = vmatprep.subr.bf16.mxu1 %v17561_v26  ;;  %v3924_v26 = vld [vmem:[%s27448_s6 + $0x590] sm:$0xff] }
 0x30d   : > { %v17614_v17 = vcombine.low %v3924_v26, %v3928_v8 }
 0x30e   : > { %7222 = vmatpush1.bf16.msra.mxu0 %v17558_v11  ;;  %v17608_v11 = vcombine.low %v3917_v20, %v3921_v2  ;;  %v3969_v20 = vld [vmem:[%s27448_s6 + $0x6f8] sm:$0xff] }
 0x30f   : > { %7386 = vmatpush1.bf16.msra.mxu1 %v17560_v14  ;;  %7232 = vmatprep.subr.bf16.mxu0 %v17567_v13  ;;  %v17615_v14 = vcombine.high %v3924_v26, %v3928_v8  ;;  %v17617_v13 = vcombine.high %v3925_v23, %v3929_v9  ;;  %v3976_v26 = vld [vmem:[%s27448_s6 + $0x730] sm:$0xff]  ;;  %v3973_v8 = vld [vmem:[%s27448_s6 + $0x718] sm:$0xff] }
 0x310   : > { %7396 = vmatprep.subr.bf16.mxu1 %v17569_v15  ;;  %v3932_v15 = vld [vmem:[%s27448_s6 + $0x5d0] sm:$0xff]  ;;  %v3977_v23 = vld [vmem:[%s27448_s6 + $0x738] sm:$0xff] }
 0x311   : > { %7224 = vmatmul.mubr.bf16.vlgmr.msra.gmra.mrb[12].mxu0 %v22215_v19  ;;  %v17622_v52 = vcombine.low %v3932_v15, %v3936_v34 }
 0x312   : > { %7388 = vmatmul.mubr.bf16.vlgmr.msra.gmra.mrb[12].mxu1 %v22215_v19  ;;  %7233 = vmatpush1.bf16.msra.mxu0 %v17566_v16  ;;  %v3901_v19 = vld [vmem:[%s27448_s6 + $0x4d8] sm:$0xff] }
 0x313   : > { %7264 = vmatprep.mubr.bf16.mxu0 %v22223_v27  ;;  %7397 = vmatpush1.bf16.msra.mxu1 %v17568_v22  ;;  %v17593_v31 = vcombine.high %v3901_v19, %v3905_v44  ;;  %v17592_v55 = vcombine.low %v3901_v19, %v3905_v44  ;;  %v3937_v16 = vld [vmem:[%s27448_s6 + $0x5f8] sm:$0xff]  ;;  %v17623_v22 = vcombine.high %v3932_v15, %v3936_v34  ;;  %v3984_v15 = vld [vmem:[%s27448_s6 + $0x770] sm:$0xff] }
 0x314   : > { %7428 = vmatprep.mubr.bf16.mxu1 %v22223_v27  ;;  %7234 = vmatprep.subr.bf16.mxu0 %v17575_v24  ;;  %v17582_v27 = vcombine.low %v3892_v30, %v3896_v25  ;;  %v17625_v24 = vcombine.high %v3933_v35, %v3937_v16  ;;  %v3940_v30 = vld [vmem:[%s27448_s6 + $0x610] sm:$0xff]  ;;  %v3953_v19 = vld [vmem:[%s27448_s6 + $0x678] sm:$0xff] }
 0x315   : > { %7398 = vmatprep.subr.bf16.mxu1 %v17577_v29  ;;  %v3944_v25 = vld [vmem:[%s27448_s6 + $0x630] sm:$0xff]  ;;  %v3941_v29 = vld [vmem:[%s27448_s6 + $0x618] sm:$0xff] }
 0x316   : > { %7235 = vmatpush1.bf16.msra.mxu0 %v17574_v36  ;;  %v17624_v36 = vcombine.low %v3933_v35, %v3937_v16  ;;  %v17630_v44 = vcombine.low %v3940_v30, %v3944_v25  ;;  %v3981_v34 = vld [vmem:[%s27448_s6 + $0x758] sm:$0xff] }
 0x317   : > { %7399 = vmatpush1.bf16.msra.mxu1 %v17576_v37  ;;  %7236 = vmatprep.subr.bf16.mxu0 %v17583_v38  ;;  %v17631_v37 = vcombine.high %v3940_v30, %v3944_v25  ;;  %v17633_v38 = vcombine.high %v3941_v29, %v3945_v33  ;;  %v3985_v35 = vld [vmem:[%s27448_s6 + $0x778] sm:$0xff]  ;;  %v3992_v30 = vld [vmem:[%s27448_s6 + $0x7b0] sm:$0xff] }
 0x318   : > { %7400 = vmatprep.subr.bf16.mxu1 %v17585_v40  ;;  %v3948_v40 = vld [vmem:[%s27448_s6 + $0x650] sm:$0xff]  ;;  %v3989_v25 = vld [vmem:[%s27448_s6 + $0x798] sm:$0xff] }
 0x319   : > { %v17638_v51 = vcombine.low %v3948_v40, %v3952_v42 }
 0x31a   : > { %7237 = vmatpush1.bf16.msra.mxu0 %v17582_v27  ;;  %v17632_v27 = vcombine.low %v3941_v29, %v3945_v33  ;;  %v3993_v29 = vld [vmem:[%s27448_s6 + $0x7b8] sm:$0xff] }
 0x31b   : > { %7401 = vmatpush1.bf16.msra.mxu1 %v17584_v45  ;;  %7238 = vmatprep.subr.bf16.mxu0 %v17591_v46  ;;  %v17639_v45 = vcombine.high %v3948_v40, %v3952_v42  ;;  %v17641_v46 = vcombine.high %v3949_v61, %v3953_v19  ;;  %v4000_v40 = vld [vmem:[%s27448_s6 + $0x7f0] sm:$0xff]  ;;  %v3997_v42 = vld [vmem:[%s27448_s6 + $0x7d8] sm:$0xff] }
 0x31c   : > { %7402 = vmatprep.subr.bf16.mxu1 %v17593_v31  ;;  %v3956_v31 = vld [vmem:[%s27448_s6 + $0x690] sm:$0xff] }
 0x31d   : > { %v17646_v2 = vcombine.low %v3956_v31, %v3960_v47 }
 0x31e   : > { %7239 = vmatpush1.bf16.msra.mxu0 %v17590_v54  ;;  %v17640_v54 = vcombine.low %v3949_v61, %v3953_v19  ;;  %v4001_v61 = vld [vmem:[%s27448_s6 + $0x7f8] sm:$0xff] }
 0x31f   : > { %7403 = vmatpush1.bf16.msra.mxu1 %v17592_v55  ;;  %7240 = vmatprep.subr.bf16.mxu0 %v17599_v57  ;;  %v17647_v55 = vcombine.high %v3956_v31, %v3960_v47  ;;  %v17649_v57 = vcombine.high %v3957_v48, %v3961_v49  ;;  %v4008_v31 = vld [vmem:[%s27448_s6 + $0x830] sm:$0xff]  ;;  %v4005_v47 = vld [vmem:[%s27448_s6 + $0x818] sm:$0xff] }
 0x320   : > { %7404 = vmatprep.subr.bf16.mxu1 %v17601_v58  ;;  %v3964_v58 = vld [vmem:[%s27448_s6 + $0x6d0] sm:$0xff] }
 0x321   : > { %v17654_v9 = vcombine.low %v3964_v58, %v3968_v60 }
 0x322   : > { %7241 = vmatpush1.bf16.msra.mxu0 %v17598_v3  ;;  %v17648_v3 = vcombine.low %v3957_v48, %v3961_v49  ;;  %v4009_v48 = vld [vmem:[%s27448_s6 + $0x838] sm:$0xff] }
 0x323   : > { %7405 = vmatpush1.bf16.msra.mxu1 %v17600_v4  ;;  %7242 = vmatprep.subr.bf16.mxu0 %v17607_v6  ;;  %v17655_v4 = vcombine.high %v3964_v58, %v3968_v60  ;;  %v17657_v6 = vcombine.high %v3965_v1, %v3969_v20  ;;  %v4016_v58 = vld [vmem:[%s27448_s6 + $0x870] sm:$0xff] }
 0x324   : > { %7406 = vmatprep.subr.bf16.mxu1 %v17609_v7  ;;  %v3972_v7 = vld [vmem:[%s27448_s6 + $0x710] sm:$0xff] }
 0x325   : > { %v17662_v16 = vcombine.low %v3972_v7, %v3976_v26 }
 0x326   : > { %7243 = vmatpush1.bf16.msra.mxu0 %v17606_v10  ;;  %v17656_v10 = vcombine.low %v3965_v1, %v3969_v20  ;;  %v4013_v1 = vld [vmem:[%s27448_s6 + $0x858] sm:$0xff] }
 0x327   : > { %7407 = vmatpush1.bf16.msra.mxu1 %v17608_v11  ;;  %7244 = vmatprep.subr.bf16.mxu0 %v17615_v14  ;;  %v17663_v11 = vcombine.high %v3972_v7, %v3976_v26  ;;  %v17665_v14 = vcombine.high %v3973_v8, %v3977_v23  ;;  %v4017_v20 = vld [vmem:[%s27448_s6 + $0x878] sm:$0xff] }
 0x328   : > { %7408 = vmatprep.subr.bf16.mxu1 %v17617_v13  ;;  %v3980_v13 = vld [vmem:[%s27448_s6 + $0x750] sm:$0xff]  ;;  %v17705_v7 = vcombine.high %v4013_v1, %v4017_v20  ;;  %v4021_v26 = vld [vmem:[%s27448_s6 + $0x898] sm:$0xff] }
 0x329   : > { %v17670_v33 = vcombine.low %v3980_v13, %v3984_v15 }
 0x32a   : > { %7245 = vmatpush1.bf16.msra.mxu0 %v17614_v17  ;;  %v17664_v17 = vcombine.low %v3973_v8, %v3977_v23  ;;  %v4025_v8 = vld [vmem:[%s27448_s6 + $0x8b8] sm:$0xff] }
 0x32b   : > { %7409 = vmatpush1.bf16.msra.mxu1 %v17616_v21  ;;  %7246 = vmatprep.subr.bf16.mxu0 %v17623_v22  ;;  %v17671_v21 = vcombine.high %v3980_v13, %v3984_v15  ;;  %v17673_v22 = vcombine.high %v3981_v34, %v3985_v35  ;;  %v4032_v13 = vld [vmem:[%s27448_s6 + $0x8f0] sm:$0xff]  ;;  %v4033_v15 = vld [vmem:[%s27448_s6 + $0x8f8] sm:$0xff] }
 0x32c   : > { %7410 = vmatprep.subr.bf16.mxu1 %v17625_v24  ;;  %v3988_v24 = vld [vmem:[%s27448_s6 + $0x790] sm:$0xff] }
 0x32d   : > { %v17678_v19 = vcombine.low %v3988_v24, %v3992_v30 }
 0x32e   : > { %7247 = vmatpush1.bf16.msra.mxu0 %v17622_v52  ;;  %v17672_v52 = vcombine.low %v3981_v34, %v3985_v35  ;;  %v17712_v34 = vcombine.low %v4021_v26, %v4025_v8 }
 0x32f   : > { %7411 = vmatpush1.bf16.msra.mxu1 %v17624_v36  ;;  %7248 = vmatprep.subr.bf16.mxu0 %v17631_v37  ;;  %v17679_v36 = vcombine.high %v3988_v24, %v3992_v30  ;;  %v17681_v37 = vcombine.high %v3989_v25, %v3993_v29  ;;  %v4041_v24 = vld [vmem:[%s27448_s6 + $0x938] sm:$0xff] }
 0x330   : > { %7412 = vmatprep.subr.bf16.mxu1 %v17633_v38  ;;  %v3996_v38 = vld [vmem:[%s27448_s6 + $0x7d0] sm:$0xff] }
 0x331   : > { %v17686_v49 = vcombine.low %v3996_v38, %v4000_v40 }
 0x332   : > { %7249 = vmatpush1.bf16.msra.mxu0 %v17630_v44  ;;  %v17680_v44 = vcombine.low %v3989_v25, %v3993_v29 }
 0x333   : > { %7413 = vmatpush1.bf16.msra.mxu1 %v17632_v27  ;;  %7250 = vmatprep.subr.bf16.mxu0 %v17639_v45  ;;  %v17687_v27 = vcombine.high %v3996_v38, %v4000_v40  ;;  %v17689_v45 = vcombine.high %v3997_v42, %v4001_v61  ;;  %v4049_v38 = vld [vmem:[%s27448_s6 + $0x978] sm:$0xff] }
 0x334   : > { %7414 = vmatprep.subr.bf16.mxu1 %v17641_v46  ;;  %v4004_v46 = vld [vmem:[%s27448_s6 + $0x810] sm:$0xff] }
 0x335   : > { %v17694_v60 = vcombine.low %v4004_v46, %v4008_v31 }
 0x336   : > { %7251 = vmatpush1.bf16.msra.mxu0 %v17638_v51  ;;  %v17688_v51 = vcombine.low %v3997_v42, %v4001_v61 }
 0x337   : > { %7415 = vmatpush1.bf16.msra.mxu1 %v17640_v54  ;;  %7252 = vmatprep.subr.bf16.mxu0 %v17647_v55  ;;  %v17695_v54 = vcombine.high %v4004_v46, %v4008_v31  ;;  %v17697_v55 = vcombine.high %v4005_v47, %v4009_v48  ;;  %v4057_v46 = vld [vmem:[%s27448_s6 + $0x9b8] sm:$0xff] }
 0x338   : > { %7416 = vmatprep.subr.bf16.mxu1 %v17649_v57  ;;  %v4012_v57 = vld [vmem:[%s27448_s6 + $0x850] sm:$0xff] }
 0x339   : > { %v17702_v23 = vcombine.low %v4012_v57, %v4016_v58 }
 0x33a   : > { %7253 = vmatpush1.bf16.msra.mxu0 %v17646_v2  ;;  %v17696_v2 = vcombine.low %v4005_v47, %v4009_v48 }
 0x33b   : > { %7417 = vmatpush1.bf16.msra.mxu1 %v17648_v3  ;;  %7254 = vmatprep.subr.bf16.mxu0 %v17655_v4  ;;  %v17703_v3 = vcombine.high %v4012_v57, %v4016_v58  ;;  %v4020_v4 = vld [vmem:[%s27448_s6 + $0x890] sm:$0xff]  ;;  %v4065_v57 = vld [vmem:[%s27448_s6 + $0x9f8] sm:$0xff] }
 0x33c   : > { %7418 = vmatprep.subr.bf16.mxu1 %v17657_v6  ;;  %v4024_v6 = vld [vmem:[%s27448_s6 + $0x8b0] sm:$0xff] }
 0x33e   : > { %7255 = vmatpush1.bf16.msra.mxu0 %v17654_v9  ;;  %v17704_v9 = vcombine.low %v4013_v1, %v4017_v20 }
 0x33f   : > { %7419 = vmatpush1.bf16.msra.mxu1 %v17656_v10  ;;  %7256 = vmatprep.subr.bf16.mxu0 %v17663_v11  ;;  %v17711_v10 = vcombine.high %v4020_v4, %v4024_v6  ;;  %v17713_v11 = vcombine.high %v4021_v26, %v4025_v8 }
 0x340   : > { %7420 = vmatprep.subr.bf16.mxu1 %v17665_v14  ;;  %v4028_v14 = vld [vmem:[%s27448_s6 + $0x8d0] sm:$0xff] }
 0x341   : > { %v17719_v35 = vcombine.high %v4028_v14, %v4032_v13  ;;  %v17718_v30 = vcombine.low %v4028_v14, %v4032_v13  ;;  %v4081_v14 = vld [vmem:[%s27448_s6 + $0xa78] sm:$0xff] }
 0x342   : > { %7257 = vmatpush1.bf16.msra.mxu0 %v17662_v16 }
 0x343   : > { %7421 = vmatpush1.bf16.msra.mxu1 %v17664_v17  ;;  %7258 = vmatprep.subr.bf16.mxu0 %v17671_v21  ;;  %v4036_v17 = vld [vmem:[%s27448_s6 + $0x910] sm:$0xff] }
 0x344   : > { %7422 = vmatprep.subr.bf16.mxu1 %v17673_v22  ;;  %v4040_v21 = vld [vmem:[%s27448_s6 + $0x930] sm:$0xff]  ;;  %v4037_v22 = vld [vmem:[%s27448_s6 + $0x918] sm:$0xff] }
 0x345   : > { %v17727_v29 = vcombine.high %v4036_v17, %v4040_v21  ;;  %v17726_v40 = vcombine.low %v4036_v17, %v4040_v21  ;;  %v17728_v42 = vcombine.low %v4037_v22, %v4041_v24  ;;  %v4089_v17 = vld [vmem:[%s27448_s6 + $0xab8] sm:$0xff] }
 0x346   : > { %7259 = vmatpush1.bf16.msra.mxu0 %v17670_v33  ;;  %v17729_v33 = vcombine.high %v4037_v22, %v4041_v24 }
 0x347   : > { %7423 = vmatpush1.bf16.msra.mxu1 %v17672_v52  ;;  %7260 = vmatprep.subr.bf16.mxu0 %v17679_v36  ;;  %v4044_v52 = vld [vmem:[%s27448_s6 + $0x950] sm:$0xff] }
 0x348   : > { %7424 = vmatprep.subr.bf16.mxu1 %v17681_v37  ;;  %v4048_v36 = vld [vmem:[%s27448_s6 + $0x970] sm:$0xff]  ;;  %v4045_v37 = vld [vmem:[%s27448_s6 + $0x958] sm:$0xff] }
 0x349   : > { %v17735_v61 = vcombine.high %v4044_v52, %v4048_v36  ;;  %v17734_v31 = vcombine.low %v4044_v52, %v4048_v36  ;;  %v17736_v47 = vcombine.low %v4045_v37, %v4049_v38  ;;  %v4097_v52 = vld [vmem:[%s27448_s6 + $0xaf8] sm:$0xff] }
 0x34a   : > { %7261 = vmatpush1.bf16.msra.mxu0 %v17678_v19  ;;  %v17737_v19 = vcombine.high %v4045_v37, %v4049_v38 }
 0x34b   : > { %7425 = vmatpush1.bf16.msra.mxu1 %v17680_v44  ;;  %7262 = vmatprep.subr.bf16.mxu0 %v17687_v27  ;;  %v4052_v44 = vld [vmem:[%s27448_s6 + $0x990] sm:$0xff] }
 0x34c   : > { %7426 = vmatprep.subr.bf16.mxu1 %v17689_v45  ;;  %v4056_v27 = vld [vmem:[%s27448_s6 + $0x9b0] sm:$0xff]  ;;  %v4053_v45 = vld [vmem:[%s27448_s6 + $0x998] sm:$0xff] }
 0x34d   : > { %v17743_v48 = vcombine.high %v4052_v44, %v4056_v27  ;;  %v17742_v58 = vcombine.low %v4052_v44, %v4056_v27  ;;  %v4105_v44 = vld [vmem:[%s27448_s6 + $0xb38] sm:$0xff] }
 0x34e   : > { %7263 = vmatpush1.bf16.msra.mxu0 %v17686_v49  ;;  %v17745_v49 = vcombine.high %v4053_v45, %v4057_v46 }
 0x34f   : > { %7427 = vmatpush1.bf16.msra.mxu1 %v17688_v51  ;;  %7273 = vmatprep.subr.bf16.mxu0 %v17695_v54  ;;  %v4060_v51 = vld [vmem:[%s27448_s6 + $0x9d0] sm:$0xff] }
 0x350   : > { %7437 = vmatprep.subr.bf16.mxu1 %v17697_v55  ;;  %v4064_v54 = vld [vmem:[%s27448_s6 + $0x9f0] sm:$0xff]  ;;  %v4061_v55 = vld [vmem:[%s27448_s6 + $0x9d8] sm:$0xff] }
 0x351   : > { %7265 = vmatmul.mubr.bf16.vlgmr.msra.gmra.mrb[12].mxu0 %v22418_v56  ;;  %v17751_v1 = vcombine.high %v4060_v51, %v4064_v54  ;;  %v17753_v20 = vcombine.high %v4061_v55, %v4065_v57  ;;  %v17752_v26 = vcombine.low %v4061_v55, %v4065_v57 }
 0x352   : > { %7429 = vmatmul.mubr.bf16.vlgmr.msra.gmra.mrb[12].mxu1 %v22418_v56  ;;  %7274 = vmatpush1.bf16.msra.mxu0 %v17694_v60  ;;  %v4029_v56 = vld [vmem:[%s27448_s6 + $0x8d8] sm:$0xff]  ;;  %v17744_v60 = vcombine.low %v4053_v45, %v4057_v46 }
 0x353   : > { %7305 = vmatprep.mubr.bf16.mxu0 %v22625_v0  ;;  %7438 = vmatpush1.bf16.msra.mxu1 %v17696_v2  ;;  %v17721_v16 = vcombine.high %v4029_v56, %v4033_v15  ;;  %v17720_v25 = vcombine.low %v4029_v56, %v4033_v15  ;;  %v4068_v2 = vld [vmem:[%s27448_s6 + $0xa10] sm:$0xff] }
 0x354   : > { %7469 = vmatprep.mubr.bf16.mxu1 %v22625_v0  ;;  %7275 = vmatprep.subr.bf16.mxu0 %v17703_v3  ;;  %v17710_v0 = vcombine.low %v4020_v4, %v4024_v6  ;;  %v4072_v3 = vld [vmem:[%s27448_s6 + $0xa30] sm:$0xff]  ;;  %v4069_v4 = vld [vmem:[%s27448_s6 + $0xa18] sm:$0xff] }
 0x355   : > { %7439 = vmatprep.subr.bf16.mxu1 %v17705_v7  ;;  %v4073_v6 = vld [vmem:[%s27448_s6 + $0xa38] sm:$0xff]  ;;  %v17750_v7 = vcombine.low %v4060_v51, %v4064_v54  ;;  %v17759_v8 = vcombine.high %v4068_v2, %v4072_v3  ;;  %v17758_v13 = vcombine.low %v4068_v2, %v4072_v3 }
 0x356   : > { %7276 = vmatpush1.bf16.msra.mxu0 %v17702_v23  ;;  %v17761_v23 = vcombine.high %v4069_v4, %v4073_v6  ;;  %v17760_v56 = vcombine.low %v4069_v4, %v4073_v6  ;;  %v4113_v51 = vld [vmem:[%s27448_s6 + $0xb78] sm:$0xff] }
 0x357   : > { %7440 = vmatpush1.bf16.msra.mxu1 %v17704_v9  ;;  %7277 = vmatprep.subr.bf16.mxu0 %v17711_v10  ;;  %v4076_v9 = vld [vmem:[%s27448_s6 + $0xa50] sm:$0xff]  ;;  %v4121_v2 = vld [vmem:[%s27448_s6 + $0xbb8] sm:$0xff] }
 0x358   : > { %7441 = vmatprep.subr.bf16.mxu1 %v17713_v11  ;;  %v4080_v10 = vld [vmem:[%s27448_s6 + $0xa70] sm:$0xff]  ;;  %v4077_v11 = vld [vmem:[%s27448_s6 + $0xa58] sm:$0xff] }
 0x359   : > { %v17767_v15 = vcombine.high %v4076_v9, %v4080_v10  ;;  %v17766_v21 = vcombine.low %v4076_v9, %v4080_v10  ;;  %v17768_v22 = vcombine.low %v4077_v11, %v4081_v14  ;;  %v4129_v9 = vld [vmem:[%s27448_s6 + $0xbf8] sm:$0xff] }
 0x35a   : > { %7278 = vmatpush1.bf16.msra.mxu0 %v17710_v0  ;;  %v17769_v0 = vcombine.high %v4077_v11, %v4081_v14 }
 0x35b   : > { %7442 = vmatpush1.bf16.msra.mxu1 %v17712_v34  ;;  %7279 = vmatprep.subr.bf16.mxu0 %v17719_v35  ;;  %v4084_v34 = vld [vmem:[%s27448_s6 + $0xa90] sm:$0xff] }
 0x35c   : > { %7443 = vmatprep.subr.bf16.mxu1 %v17721_v16  ;;  %v4088_v35 = vld [vmem:[%s27448_s6 + $0xab0] sm:$0xff]  ;;  %v4085_v16 = vld [vmem:[%s27448_s6 + $0xa98] sm:$0xff] }
 0x35d   : > { %v17775_v24 = vcombine.high %v4084_v34, %v4088_v35  ;;  %v17774_v36 = vcombine.low %v4084_v34, %v4088_v35  ;;  %v17776_v37 = vcombine.low %v4085_v16, %v4089_v17  ;;  %v4137_v34 = vld [vmem:[%s27448_s6 + $0xc38] sm:$0xff] }
 0x35e   : > { %7280 = vmatpush1.bf16.msra.mxu0 %v17718_v30  ;;  %v17777_v30 = vcombine.high %v4085_v16, %v4089_v17 }
 0x35f   : > { %7444 = vmatpush1.bf16.msra.mxu1 %v17720_v25  ;;  %7281 = vmatprep.subr.bf16.mxu0 %v17727_v29  ;;  %v4092_v25 = vld [vmem:[%s27448_s6 + $0xad0] sm:$0xff] }
 0x360   : > { %7445 = vmatprep.subr.bf16.mxu1 %v17729_v33  ;;  %v4096_v29 = vld [vmem:[%s27448_s6 + $0xaf0] sm:$0xff]  ;;  %v4093_v33 = vld [vmem:[%s27448_s6 + $0xad8] sm:$0xff] }
 0x361   : > { %v17783_v38 = vcombine.high %v4092_v25, %v4096_v29  ;;  %v17782_v27 = vcombine.low %v4092_v25, %v4096_v29  ;;  %v17784_v45 = vcombine.low %v4093_v33, %v4097_v52  ;;  %v4141_v25 = vld [vmem:[%s27448_s6 + $0xc58] sm:$0xff] }
 0x362   : > { %7282 = vmatpush1.bf16.msra.mxu0 %v17726_v40  ;;  %v17785_v40 = vcombine.high %v4093_v33, %v4097_v52  ;;  %v4145_v29 = vld [vmem:[%s27448_s6 + $0xc78] sm:$0xff] }
 0x363   : > { %7446 = vmatpush1.bf16.msra.mxu1 %v17728_v42  ;;  %7283 = vmatprep.subr.bf16.mxu0 %v17735_v61  ;;  %v4100_v42 = vld [vmem:[%s27448_s6 + $0xb10] sm:$0xff] }
 0x364   : > { %7447 = vmatprep.subr.bf16.mxu1 %v17737_v19  ;;  %v4104_v61 = vld [vmem:[%s27448_s6 + $0xb30] sm:$0xff]  ;;  %v4101_v19 = vld [vmem:[%s27448_s6 + $0xb18] sm:$0xff] }
 0x365   : > { %v17791_v46 = vcombine.high %v4100_v42, %v4104_v61  ;;  %v17790_v54 = vcombine.low %v4100_v42, %v4104_v61  ;;  %v17792_v55 = vcombine.low %v4101_v19, %v4105_v44  ;;  %v4153_v42 = vld [vmem:[%s27448_s6 + $0xcb8] sm:$0xff] }
 0x366   : > { %7284 = vmatpush1.bf16.msra.mxu0 %v17734_v31  ;;  %v17793_v31 = vcombine.high %v4101_v19, %v4105_v44  ;;  %v17832_v19 = vcombine.low %v4141_v25, %v4145_v29 }
 0x367   : > { %7448 = vmatpush1.bf16.msra.mxu1 %v17736_v47  ;;  %7285 = vmatprep.subr.bf16.mxu0 %v17743_v48  ;;  %v4108_v47 = vld [vmem:[%s27448_s6 + $0xb50] sm:$0xff] }
 0x368   : > { %7449 = vmatprep.subr.bf16.mxu1 %v17745_v49  ;;  %v4112_v48 = vld [vmem:[%s27448_s6 + $0xb70] sm:$0xff]  ;;  %v4109_v49 = vld [vmem:[%s27448_s6 + $0xb58] sm:$0xff] }
 0x369   : > { %v17799_v57 = vcombine.high %v4108_v47, %v4112_v48  ;;  %v17798_v3 = vcombine.low %v4108_v47, %v4112_v48  ;;  %v17800_v4 = vcombine.low %v4109_v49, %v4113_v51 }
 0x36a   : > { %7286 = vmatpush1.bf16.msra.mxu0 %v17742_v58  ;;  %v17801_v58 = vcombine.high %v4109_v49, %v4113_v51  ;;  %v4164_v51 = vld [vmem:[%s27448_s6 + $0xd10] sm:$0xff] }
 0x36b   : > { %7450 = vmatpush1.bf16.msra.mxu1 %v17744_v60  ;;  %7287 = vmatprep.subr.bf16.mxu0 %v17751_v1  ;;  %v4116_v60 = vld [vmem:[%s27448_s6 + $0xb90] sm:$0xff] }
 0x36c   : > { %7451 = vmatprep.subr.bf16.mxu1 %v17753_v20  ;;  %v4120_v1 = vld [vmem:[%s27448_s6 + $0xbb0] sm:$0xff]  ;;  %v4117_v20 = vld [vmem:[%s27448_s6 + $0xb98] sm:$0xff] }
 0x36d   : > { %v17807_v6 = vcombine.high %v4116_v60, %v4120_v1  ;;  %v17806_v10 = vcombine.low %v4116_v60, %v4120_v1  ;;  %v17808_v11 = vcombine.low %v4117_v20, %v4121_v2 }
 0x36e   : > { %7288 = vmatpush1.bf16.msra.mxu0 %v17750_v7  ;;  %v17809_v7 = vcombine.high %v4117_v20, %v4121_v2  ;;  %v4172_v2 = vld [vmem:[%s27448_s6 + $0xd50] sm:$0xff] }
 0x36f   : > { %7452 = vmatpush1.bf16.msra.mxu1 %v17752_v26  ;;  %7289 = vmatprep.subr.bf16.mxu0 %v17759_v8  ;;  %v4124_v26 = vld [vmem:[%s27448_s6 + $0xbd0] sm:$0xff] }
 0x370   : > { %7453 = vmatprep.subr.bf16.mxu1 %v17761_v23  ;;  %v4128_v8 = vld [vmem:[%s27448_s6 + $0xbf0] sm:$0xff]  ;;  %v4125_v23 = vld [vmem:[%s27448_s6 + $0xbd8] sm:$0xff] }
 0x371   : > { %v17815_v14 = vcombine.high %v4124_v26, %v4128_v8  ;;  %v17814_v35 = vcombine.low %v4124_v26, %v4128_v8  ;;  %v17816_v16 = vcombine.low %v4125_v23, %v4129_v9 }
 0x372   : > { %7290 = vmatpush1.bf16.msra.mxu0 %v17758_v13  ;;  %v17817_v13 = vcombine.high %v4125_v23, %v4129_v9  ;;  %v4180_v9 = vld [vmem:[%s27448_s6 + $0xd90] sm:$0xff] }
 0x373   : > { %7454 = vmatpush1.bf16.msra.mxu1 %v17760_v56  ;;  %7291 = vmatprep.subr.bf16.mxu0 %v17767_v15  ;;  %v4132_v56 = vld [vmem:[%s27448_s6 + $0xc10] sm:$0xff] }
 0x374   : > { %7455 = vmatprep.subr.bf16.mxu1 %v17769_v0  ;;  %v4136_v15 = vld [vmem:[%s27448_s6 + $0xc30] sm:$0xff]  ;;  %v4133_v0 = vld [vmem:[%s27448_s6 + $0xc18] sm:$0xff] }
 0x375   : > { %v17823_v17 = vcombine.high %v4132_v56, %v4136_v15  ;;  %v17824_v33 = vcombine.low %v4133_v0, %v4137_v34 }
 0x376   : > { %7292 = vmatpush1.bf16.msra.mxu0 %v17766_v21  ;;  %v17825_v21 = vcombine.high %v4133_v0, %v4137_v34 }
 0x377   : > { %7456 = vmatpush1.bf16.msra.mxu1 %v17768_v22  ;;  %7293 = vmatprep.subr.bf16.mxu0 %v17775_v24  ;;  %v4140_v22 = vld [vmem:[%s27448_s6 + $0xc50] sm:$0xff] }
 0x378   : > { %7457 = vmatprep.subr.bf16.mxu1 %v17777_v30  ;;  %v4144_v24 = vld [vmem:[%s27448_s6 + $0xc70] sm:$0xff]  ;;  %v17822_v30 = vcombine.low %v4132_v56, %v4136_v15 }
 0x379   : > { %v17831_v52 = vcombine.high %v4140_v22, %v4144_v24  ;;  %v17830_v61 = vcombine.low %v4140_v22, %v4144_v24  ;;  %v4189_v24 = vld [vmem:[%s27448_s6 + $0xdd8] sm:$0xff] }
 0x37a   : > { %7294 = vmatpush1.bf16.msra.mxu0 %v17774_v36  ;;  %v4148_v36 = vld [vmem:[%s27448_s6 + $0xc90] sm:$0xff] }
 0x37b   : > { %7458 = vmatpush1.bf16.msra.mxu1 %v17776_v37  ;;  %7295 = vmatprep.subr.bf16.mxu0 %v17783_v38  ;;  %v4152_v37 = vld [vmem:[%s27448_s6 + $0xcb0] sm:$0xff]  ;;  %v17833_v38 = vcombine.high %v4141_v25, %v4145_v29 }
 0x37c   : > { %7459 = vmatprep.subr.bf16.mxu1 %v17785_v40  ;;  %v4149_v40 = vld [vmem:[%s27448_s6 + $0xc98] sm:$0xff]  ;;  %v17839_v44 = vcombine.high %v4148_v36, %v4152_v37 }
 0x37d   : > { %v17840_v47 = vcombine.low %v4149_v40, %v4153_v42 }
 0x37e   : > { %7296 = vmatpush1.bf16.msra.mxu0 %v17782_v27  ;;  %v17841_v27 = vcombine.high %v4149_v40, %v4153_v42  ;;  %v4196_v42 = vld [vmem:[%s27448_s6 + $0xe10] sm:$0xff] }
 0x37f   : > { %7460 = vmatpush1.bf16.msra.mxu1 %v17784_v45  ;;  %7297 = vmatprep.subr.bf16.mxu0 %v17791_v46  ;;  %v4156_v45 = vld [vmem:[%s27448_s6 + $0xcd0] sm:$0xff] }
 0x380   : > { %7461 = vmatprep.subr.bf16.mxu1 %v17793_v31  ;;  %v4160_v46 = vld [vmem:[%s27448_s6 + $0xcf0] sm:$0xff]  ;;  %v4161_v31 = vld [vmem:[%s27448_s6 + $0xcf8] sm:$0xff] }
 0x381   : > { %v17847_v48 = vcombine.high %v4156_v45, %v4160_v46 }
 0x382   : > { %7298 = vmatpush1.bf16.msra.mxu0 %v17790_v54  ;;  %v4168_v54 = vld [vmem:[%s27448_s6 + $0xd30] sm:$0xff] }
 0x383   : > { %7462 = vmatpush1.bf16.msra.mxu1 %v17792_v55  ;;  %7299 = vmatprep.subr.bf16.mxu0 %v17799_v57  ;;  %v4165_v55 = vld [vmem:[%s27448_s6 + $0xd18] sm:$0xff]  ;;  %v17855_v1 = vcombine.high %v4164_v51, %v4168_v54 }
 0x384   : > { %7463 = vmatprep.subr.bf16.mxu1 %v17801_v58  ;;  %v4169_v57 = vld [vmem:[%s27448_s6 + $0xd38] sm:$0xff]  ;;  %v17846_v58 = vcombine.low %v4156_v45, %v4160_v46 }
 0x385   : > { %v17857_v20 = vcombine.high %v4165_v55, %v4169_v57  ;;  %v17856_v26 = vcombine.low %v4165_v55, %v4169_v57  ;;  %v4212_v57 = vld [vmem:[%s27448_s6 + $0xe90] sm:$0xff] }
 0x386   : > { %7300 = vmatpush1.bf16.msra.mxu0 %v17798_v3  ;;  %v4176_v3 = vld [vmem:[%s27448_s6 + $0xd70] sm:$0xff] }
 0x387   : > { %7464 = vmatpush1.bf16.msra.mxu1 %v17800_v4  ;;  %7301 = vmatprep.subr.bf16.mxu0 %v17807_v6  ;;  %v4173_v4 = vld [vmem:[%s27448_s6 + $0xd58] sm:$0xff]  ;;  %v17863_v8 = vcombine.high %v4172_v2, %v4176_v3 }
 0x388   : > { %7465 = vmatprep.subr.bf16.mxu1 %v17809_v7  ;;  %v4177_v6 = vld [vmem:[%s27448_s6 + $0xd78] sm:$0xff]  ;;  %v17854_v7 = vcombine.low %v4164_v51, %v4168_v54 }
 0x389   : > { %v17865_v23 = vcombine.high %v4173_v4, %v4177_v6  ;;  %v17864_v56 = vcombine.low %v4173_v4, %v4177_v6  ;;  %v4220_v6 = vld [vmem:[%s27448_s6 + $0xed0] sm:$0xff] }
 0x38a   : > { %7302 = vmatpush1.bf16.msra.mxu0 %v17806_v10  ;;  %v4184_v10 = vld [vmem:[%s27448_s6 + $0xdb0] sm:$0xff] }
 0x38b   : > { %7466 = vmatpush1.bf16.msra.mxu1 %v17808_v11  ;;  %7303 = vmatprep.subr.bf16.mxu0 %v17815_v14  ;;  %v4181_v11 = vld [vmem:[%s27448_s6 + $0xd98] sm:$0xff]  ;;  %v17871_v15 = vcombine.high %v4180_v9, %v4184_v10 }
 0x38c   : > { %7467 = vmatprep.subr.bf16.mxu1 %v17817_v13  ;;  %v4185_v14 = vld [vmem:[%s27448_s6 + $0xdb8] sm:$0xff]  ;;  %v17862_v13 = vcombine.low %v4172_v2, %v4176_v3 }
 0x38e   : > { %7304 = vmatpush1.bf16.msra.mxu0 %v17814_v35  ;;  %v17873_v35 = vcombine.high %v4181_v11, %v4185_v14 }
 0x38f   : > { %7468 = vmatpush1.bf16.msra.mxu1 %v17816_v16  ;;  %7314 = vmatprep.subr.bf16.mxu0 %v17823_v17  ;;  %v4188_v16 = vld [vmem:[%s27448_s6 + $0xdd0] sm:$0xff] }
 0x390   : > { %7478 = vmatprep.subr.bf16.mxu1 %v17825_v21  ;;  %v4192_v17 = vld [vmem:[%s27448_s6 + $0xdf0] sm:$0xff] }
 0x391   : > { %7306 = vmatmul.mubr.bf16.vlgmr.msra.gmra.mrb[12].mxu0 %v22627_v53 }
 0x392   : > { %7470 = vmatmul.mubr.bf16.vlgmr.msra.gmra.mrb[12].mxu1 %v22627_v53  ;;  %7315 = vmatpush1.bf16.msra.mxu0 %v17822_v30  ;;  %v4157_v53 = vld [vmem:[%s27448_s6 + $0xcd8] sm:$0xff] }
 0x393   : > { %7346 = vmatprep.mubr.bf16.mxu0 %v22643_v63  ;;  %7479 = vmatpush1.bf16.msra.mxu1 %v17824_v33  ;;  %v17849_v49 = vcombine.high %v4157_v53, %v4161_v31  ;;  %v17848_v60 = vcombine.low %v4157_v53, %v4161_v31  ;;  %v4193_v30 = vld [vmem:[%s27448_s6 + $0xdf8] sm:$0xff]  ;;  %v17870_v33 = vcombine.low %v4180_v9, %v4184_v10  ;;  %v4204_v31 = vld [vmem:[%s27448_s6 + $0xe50] sm:$0xff] }
 0x394   : > { %7510 = vmatprep.mubr.bf16.mxu1 %v22643_v63  ;;  %7316 = vmatprep.subr.bf16.mxu0 %v17831_v52  ;;  %v17838_v63 = vcombine.low %v4148_v36, %v4152_v37  ;;  %v17872_v37 = vcombine.low %v4181_v11, %v4185_v14  ;;  %v17881_v40 = vcombine.high %v4189_v24, %v4193_v30  ;;  %v4228_v14 = vld [vmem:[%s27448_s6 + $0xf10] sm:$0xff] }
 0x395   : > { %7480 = vmatprep.subr.bf16.mxu1 %v17833_v38  ;;  %v17879_v38 = vcombine.high %v4188_v16, %v4192_v17  ;;  %v17880_v45 = vcombine.low %v4189_v24, %v4193_v30  ;;  %v4236_v30 = vld [vmem:[%s27448_s6 + $0xf50] sm:$0xff] }
 0x396   : > { %7317 = vmatpush1.bf16.msra.mxu0 %v17830_v61  ;;  %v4200_v61 = vld [vmem:[%s27448_s6 + $0xe30] sm:$0xff] }
 0x397   : > { %7481 = vmatpush1.bf16.msra.mxu1 %v17832_v19  ;;  %7318 = vmatprep.subr.bf16.mxu0 %v17839_v44  ;;  %v4197_v19 = vld [vmem:[%s27448_s6 + $0xe18] sm:$0xff]  ;;  %v17887_v46 = vcombine.high %v4196_v42, %v4200_v61 }
 0x398   : > { %7482 = vmatprep.subr.bf16.mxu1 %v17841_v27  ;;  %v4201_v44 = vld [vmem:[%s27448_s6 + $0xe38] sm:$0xff]  ;;  %v17878_v27 = vcombine.low %v4188_v16, %v4192_v17 }
 0x399   : > { %v17889_v53 = vcombine.high %v4197_v19, %v4201_v44  ;;  %v17888_v51 = vcombine.low %v4197_v19, %v4201_v44  ;;  %v4248_v19 = vld [vmem:[%s27448_s6 + $0xfb0] sm:$0xff] }
 0x39a   : > { %7319 = vmatpush1.bf16.msra.mxu0 %v17838_v63  ;;  %v4208_v63 = vld [vmem:[%s27448_s6 + $0xe70] sm:$0xff] }
 0x39b   : > { %7483 = vmatpush1.bf16.msra.mxu1 %v17840_v47  ;;  %7320 = vmatprep.subr.bf16.mxu0 %v17847_v48  ;;  %v4205_v47 = vld [vmem:[%s27448_s6 + $0xe58] sm:$0xff]  ;;  %v17895_v54 = vcombine.high %v4204_v31, %v4208_v63 }
 0x39c   : > { %7484 = vmatprep.subr.bf16.mxu1 %v17849_v49  ;;  %v4209_v48 = vld [vmem:[%s27448_s6 + $0xe78] sm:$0xff]  ;;  %v17886_v49 = vcombine.low %v4196_v42, %v4200_v61  ;;  %v4244_v61 = vld [vmem:[%s27448_s6 + $0xf90] sm:$0xff] }
 0x39d   : > { %v17897_v55 = vcombine.high %v4205_v47, %v4209_v48  ;;  %v17896_v2 = vcombine.low %v4205_v47, %v4209_v48  ;;  %v4252_v47 = vld [vmem:[%s27448_s6 + $0xfd0] sm:$0xff] }
 0x39e   : > { %7321 = vmatpush1.bf16.msra.mxu0 %v17846_v58  ;;  %v4216_v58 = vld [vmem:[%s27448_s6 + $0xeb0] sm:$0xff] }
 0x39f   : > { %7485 = vmatpush1.bf16.msra.mxu1 %v17848_v60  ;;  %7322 = vmatprep.subr.bf16.mxu0 %v17855_v1  ;;  %v4213_v60 = vld [vmem:[%s27448_s6 + $0xe98] sm:$0xff]  ;;  %v17903_v3 = vcombine.high %v4212_v57, %v4216_v58  ;;  %v4256_v48 = vld [vmem:[%s27448_s6 + $0xff0] sm:$0xff] }
 0x3a0   : > { %7486 = vmatprep.subr.bf16.mxu1 %v17857_v20  ;;  %v4217_v1 = vld [vmem:[%s27448_s6 + $0xeb8] sm:$0xff]  ;;  %v17894_v20 = vcombine.low %v4204_v31, %v4208_v63  ;;  %v17935_v31 = vcombine.high %v4244_v61, %v4248_v19 }
 0x3a1   : > { %v17905_v4 = vcombine.high %v4213_v60, %v4217_v1  ;;  %v17904_v9 = vcombine.low %v4213_v60, %v4217_v1  ;;  %v7535_v1 = vld [vmem:[%s27450_s11] sm:$0xff] }
 0x3a2   : > { %7323 = vmatpush1.bf16.msra.mxu0 %v17854_v7  ;;  %v4224_v7 = vld [vmem:[%s27448_s6 + $0xef0] sm:$0xff] }
 0x3a3   : > { %7487 = vmatpush1.bf16.msra.mxu1 %v17856_v26  ;;  %7324 = vmatprep.subr.bf16.mxu0 %v17863_v8  ;;  %v4221_v26 = vld [vmem:[%s27448_s6 + $0xed8] sm:$0xff]  ;;  %v17911_v10 = vcombine.high %v4220_v6, %v4224_v7 }
 0x3a4   : > { %v23489_v0 = vpop.f32.mrb[8].mxu0  ;;  %v23491_v34 = vpop.f32.mrb[8].mxu1  ;;  %7488 = vmatprep.subr.bf16.mxu1 %v17865_v23  ;;  %v4225_v8 = vld [vmem:[%s27448_s6 + $0xef8] sm:$0xff]  ;;  %v17902_v23 = vcombine.low %v4212_v57, %v4216_v58  ;;  %v17943_v58 = vcombine.high %v4252_v47, %v4256_v48 }
 0x3a5   : > { %v23499_v21 = vpop.f32.mrb[9].mxu0  ;;  %v23501_v22 = vpop.f32.mrb[9].mxu1  ;;  %v17913_v11 = vcombine.high %v4221_v26, %v4225_v8  ;;  %v17912_v16 = vcombine.low %v4221_v26, %v4225_v8 }
 0x3a6   : > { %v7024_v25 = vpop.f32.mrb[10].mxu0  ;;  %v7188_v29 = vpop.f32.mrb[10].mxu1  ;;  %7325 = vmatpush1.bf16.msra.mxu0 %v17862_v13  ;;  %v4232_v13 = vld [vmem:[%s27448_s6 + $0xf30] sm:$0xff] }
 0x3a7   : > { %7489 = vmatpush1.bf16.msra.mxu1 %v17864_v56  ;;  %v7025_v52 = vpop.f32.mrb[11].mxu0  ;;  %v7189_v36 = vpop.f32.mrb[11].mxu1  ;;  %7326 = vmatprep.subr.bf16.mxu0 %v17871_v15  ;;  %v4229_v56 = vld [vmem:[%s27448_s6 + $0xf18] sm:$0xff]  ;;  %v17919_v17 = vcombine.high %v4228_v14, %v4232_v13  ;;  %v4240_v25 = vld [vmem:[%s27448_s6 + $0xf70] sm:$0xff] }
 0x3a8   : > { %7490 = vmatprep.subr.bf16.mxu1 %v17873_v35  ;;  %v4233_v15 = vld [vmem:[%s27448_s6 + $0xf38] sm:$0xff]  ;;  %v17910_v35 = vcombine.low %v4220_v6, %v4224_v7  ;;  %v17942_v6 = vcombine.low %v4252_v47, %v4256_v48 }
 0x3a9   : > { %v17921_v24 = vcombine.high %v4229_v56, %v4233_v15  ;;  %v4237_v29 = vld [vmem:[%s27448_s6 + $0xf58] sm:$0xff] }
 0x3aa   : > { %7327 = vmatpush1.bf16.msra.mxu0 %v17870_v33  ;;  %v4241_v33 = vld [vmem:[%s27448_s6 + $0xf78] sm:$0xff] }
 0x3ab   : > { %7491 = vmatpush1.bf16.msra.mxu1 %v17872_v37  ;;  %7328 = vmatprep.subr.bf16.mxu0 %v17879_v38  ;;  %v17432_v52 = vld [vmem:[%s27449_s4 + $0x1] ss:$8 sm:$0xf]  ;;  %v17918_v37 = vcombine.low %v4228_v14, %v4232_v13  ;;  %v17920_v38 = vcombine.low %v4229_v56, %v4233_v15  ;;  %v17929_v42 = vcombine.high %v4237_v29, %v4241_v33 }
 0x3ac   : > { %7492 = vmatprep.subr.bf16.mxu1 %v17881_v40  ;;  %v17433_v36 = vld [vmem:[%s27449_s4 + $0x1] ss:$8 sm:$0xf0]  ;;  %v17927_v40 = vcombine.high %v4236_v30, %v4240_v25 }
 0x3ad   : > { %v23593_v44 = vor.u32 %v17433_v36, %v17432_v52  ;;  %v7548_v14 = vld [vmem:[%s27450_s11 + $0x68] sm:$0xff]  ;;  %v7551_v15 = vld [vmem:[%s27450_s11 + $0x80] sm:$0xff] }
 0x3ae   : > { %7329 = vmatpush1.bf16.msra.mxu0 %v17878_v27  ;;  %v4245_v27 = vld [vmem:[%s27448_s6 + $0xf98] sm:$0xff]  ;;  %v7559_v36 = vld [vmem:[%s27450_s11 + $0xc0] sm:$0xff] }
 0x3af   : > { %7493 = vmatpush1.bf16.msra.mxu1 %v17880_v45  ;;  %7330 = vmatprep.subr.bf16.mxu0 %v17887_v46  ;;  %v4249_v45 = vld [vmem:[%s27448_s6 + $0xfb8] sm:$0xff]  ;;  %v17926_v46 = vcombine.low %v4236_v30, %v4240_v25  ;;  %v7556_v30 = vld [vmem:[%s27450_s11 + $0xa8] sm:$0xff] }
 0x3b0   : > { %7494 = vmatprep.subr.bf16.mxu1 %v17889_v53  ;;  %v17928_v53 = vcombine.low %v4237_v29, %v4241_v33  ;;  %v17937_v63 = vcombine.high %v4245_v27, %v4249_v45  ;;  %v17936_v57 = vcombine.low %v4245_v27, %v4249_v45  ;;  %v7567_v27 = vld [vmem:[%s27450_s11 + $0x100] sm:$0xff] }
 0x3b1   : > { %v7571_v45 = vld [vmem:[%s27450_s11 + $0x120] sm:$0xff] }
 0x3b2   : > { %7331 = vmatpush1.bf16.msra.mxu0 %v17886_v49  ;;  %v6830_v49 = vrot.slane %v23593_v44, %v20831_v50  ;;  %v17981_v47 = vcombine.high %v7567_v27, %v7571_v45 }
 0x3b3   : > { %7495 = vmatpush1.bf16.msra.mxu1 %v17888_v51  ;;  %7332 = vmatprep.subr.bf16.mxu0 %v17895_v54  ;;  %v4253_v51 = vld [vmem:[%s27448_s6 + $0xfd8] sm:$0xff] }
 0x3b4   : > { %7496 = vmatprep.subr.bf16.mxu1 %v17897_v55  ;;  %v4257_v54 = vld [vmem:[%s27448_s6 + $0xff8] sm:$0xff]  ;;  %v17934_v55 = vcombine.low %v4244_v61, %v4248_v19 }
 0x3b5   : > { %v17945_v60 = vcombine.high %v4253_v51, %v4257_v54  ;;  %v17944_v7 = vcombine.low %v4253_v51, %v4257_v54  ;;  %v7579_v51 = vld [vmem:[%s27450_s11 + $0x160] sm:$0xff]  ;;  %v7576_v54 = vld [vmem:[%s27450_s11 + $0x148] sm:$0xff] }
 0x3b6   : > { %7333 = vmatpush1.bf16.msra.mxu0 %v17894_v20  ;;  %v7539_v20 = vld [vmem:[%s27450_s11 + $0x20] sm:$0xff] }
 0x3b7   : > { %7497 = vmatpush1.bf16.msra.mxu1 %v17896_v2  ;;  %7334 = vmatprep.subr.bf16.mxu0 %v17903_v3  ;;  %v19360_v2 = vadd.f32 %v23499_v21, %v6830_v49  ;;  %v7536_v3 = vld [vmem:[%s27450_s11 + $0x8] sm:$0xff]  ;;  %v17949_v26 = vcombine.high %v7535_v1, %v7539_v20  ;;  %v7543_v21 = vld [vmem:[%s27450_s11 + $0x40] sm:$0xff] }
 0x3b8   : > { %7498 = vmatprep.subr.bf16.mxu1 %v17905_v4  ;;  %v7540_v4 = vld [vmem:[%s27450_s11 + $0x28] sm:$0xff]  ;;  %v7575_v49 = vld [vmem:[%s27450_s11 + $0x140] sm:$0xff] }
 0x3b9   : > { %v17951_v8 = vcombine.high %v7536_v3, %v7540_v4  ;;  %v17950_v13 = vcombine.low %v7536_v3, %v7540_v4  ;;  %v7584_v3 = vld [vmem:[%s27450_s11 + $0x188] sm:$0xff] }
 0x3ba   : > { %7335 = vmatpush1.bf16.msra.mxu0 %v17902_v23  ;;  %v7520_v23 = vmax.f32 %v19360_v2, 0.0  ;;  %v7587_v2 = vld [vmem:[%s27450_s11 + $0x1a0] sm:$0xff]  ;;  %v7588_v4 = vld [vmem:[%s27450_s11 + $0x1a8] sm:$0xff] }
 0x3bb   : > { %7499 = vmatpush1.bf16.msra.mxu1 %v17904_v9  ;;  %7336 = vmatprep.subr.bf16.mxu0 %v17911_v10  ;;  %v7547_v9 = vld [vmem:[%s27450_s11 + $0x60] sm:$0xff]  ;;  %v17948_v10 = vcombine.low %v7535_v1, %v7539_v20 }
 0x3bc   : > { %7500 = vmatprep.subr.bf16.mxu1 %v17913_v11  ;;  %v7544_v11 = vld [vmem:[%s27450_s11 + $0x48] sm:$0xff]  ;;  %v17957_v56 = vcombine.high %v7543_v21, %v7547_v9  ;;  %v17956_v25 = vcombine.low %v7543_v21, %v7547_v9  ;;  %v7583_v20 = vld [vmem:[%s27450_s11 + $0x180] sm:$0xff] }
 0x3bd   : > { %v17958_v29 = vcombine.low %v7544_v11, %v7548_v14  ;;  %v7595_v21 = vld [vmem:[%s27450_s11 + $0x1e0] sm:$0xff]  ;;  %v7592_v9 = vld [vmem:[%s27450_s11 + $0x1c8] sm:$0xff] }
 0x3be   : > { %7337 = vmatpush1.bf16.msra.mxu0 %v17910_v35  ;;  %v7555_v35 = vld [vmem:[%s27450_s11 + $0xa0] sm:$0xff] }
 0x3bf   : > { %7501 = vmatpush1.bf16.msra.mxu1 %v17912_v16  ;;  %7338 = vmatprep.subr.bf16.mxu0 %v17919_v17  ;;  %v23646_v16 = vpack.c.bf16 %v7520_v23, %v7520_v23  ;;  %v17959_v17 = vcombine.high %v7544_v11, %v7548_v14  ;;  %v17965_v33 = vcombine.high %v7551_v15, %v7555_v35  ;;  %v7591_v23 = vld [vmem:[%s27450_s11 + $0x1c0] sm:$0xff] }
 0x3c0   : > { %7502 = vmatprep.subr.bf16.mxu1 %v17921_v24  ;;  %v7552_v24 = vld [vmem:[%s27450_s11 + $0x88] sm:$0xff]  ;;  %v17996_v11 = vcombine.low %v7583_v20, %v7587_v2  ;;  %v17998_v14 = vcombine.low %v7584_v3, %v7588_v4 }
 0x3c1   : > { %v17967_v52 = vcombine.high %v7552_v24, %v7556_v30 }
 0x3c2   : > { %7339 = vmatpush1.bf16.msra.mxu0 %v17918_v37  ;;  %v7563_v37 = vld [vmem:[%s27450_s11 + $0xe0] sm:$0xff] }
 0x3c3   : > { %7503 = vmatpush1.bf16.msra.mxu1 %v17920_v38  ;;  %7340 = vmatprep.subr.bf16.mxu0 %v17927_v40  ;;  %v7564_v38 = vld [vmem:[%s27450_s11 + $0xe8] sm:$0xff]  ;;  %v17964_v40 = vcombine.low %v7551_v15, %v7555_v35  ;;  %v17973_v61 = vcombine.high %v7559_v36, %v7563_v37  ;;  %v7599_v15 = vld [vmem:[%s27450_s11 + $0x200] sm:$0xff] }
 0x3c4   : > { %7504 = vmatprep.subr.bf16.mxu1 %v17929_v42  ;;  %v17966_v42 = vcombine.low %v7552_v24, %v7556_v30  ;;  %v7603_v35 = vld [vmem:[%s27450_s11 + $0x220] sm:$0xff]  ;;  %v7604_v24 = vld [vmem:[%s27450_s11 + $0x228] sm:$0xff]  ;;  %v18004_v30 = vcombine.low %v7591_v23, %v7595_v21 }
 0x3c6   : > { %7341 = vmatpush1.bf16.msra.mxu0 %v17926_v46  ;;  %v7568_v46 = vld [vmem:[%s27450_s11 + $0x108] sm:$0xff] }
 0x3c7   : > { %7505 = vmatpush1.bf16.msra.mxu1 %v17928_v53  ;;  %7342 = vmatprep.subr.bf16.mxu0 %v17935_v31  ;;  %v7572_v53 = vld [vmem:[%s27450_s11 + $0x128] sm:$0xff]  ;;  %v17972_v31 = vcombine.low %v7559_v36, %v7563_v37  ;;  %v7611_v36 = vld [vmem:[%s27450_s11 + $0x260] sm:$0xff] }
 0x3c8   : > { %7506 = vmatprep.subr.bf16.mxu1 %v17937_v63  ;;  %v17983_v48 = vcombine.high %v7568_v46, %v7572_v53  ;;  %v7608_v37 = vld [vmem:[%s27450_s11 + $0x248] sm:$0xff] }
 0x3ca   : > { %7343 = vmatpush1.bf16.msra.mxu0 %v17934_v55  ;;  %v7580_v55 = vld [vmem:[%s27450_s11 + $0x168] sm:$0xff] }
 0x3cb   : > { %7507 = vmatpush1.bf16.msra.mxu1 %v17936_v57  ;;  %7344 = vmatprep.subr.bf16.mxu0 %v17943_v58  ;;  %v17980_v57 = vcombine.low %v7567_v27, %v7571_v45  ;;  %v17982_v58 = vcombine.low %v7568_v46, %v7572_v53  ;;  %v17991_v1 = vcombine.high %v7576_v54, %v7580_v55  ;;  %v7619_v27 = vld [vmem:[%s27450_s11 + $0x2a0] sm:$0xff]  ;;  %v7616_v45 = vld [vmem:[%s27450_s11 + $0x288] sm:$0xff] }
 0x3cc   : > { %7508 = vmatprep.subr.bf16.mxu1 %v17945_v60  ;;  %v17989_v60 = vcombine.high %v7575_v49, %v7579_v51  ;;  %v7620_v46 = vld [vmem:[%s27450_s11 + $0x2a8] sm:$0xff] }
 0x3ce   : > { %7345 = vmatpush1.bf16.msra.mxu0 %v17942_v6  ;;  %v17988_v6 = vcombine.low %v7575_v49, %v7579_v51  ;;  %v7627_v49 = vld [vmem:[%s27450_s11 + $0x2e0] sm:$0xff]  ;;  %v7624_v51 = vld [vmem:[%s27450_s11 + $0x2c8] sm:$0xff] }
 0x3cf   : > { %7509 = vmatpush1.bf16.msra.mxu1 %v17944_v7  ;;  %10652 = vmatprep.subr.bf16.mxu0 %v17949_v26  ;;  %v17990_v7 = vcombine.low %v7576_v54, %v7580_v55  ;;  %v17997_v26 = vcombine.high %v7583_v20, %v7587_v2  ;;  %v7628_v54 = vld [vmem:[%s27450_s11 + $0x2e8] sm:$0xff]  ;;  %v7635_v20 = vld [vmem:[%s27450_s11 + $0x320] sm:$0xff] }
 0x3d0   : > { %10816 = vmatprep.subr.bf16.mxu1 %v17951_v8  ;;  %v17999_v8 = vcombine.high %v7584_v3, %v7588_v4  ;;  %v7632_v2 = vld [vmem:[%s27450_s11 + $0x308] sm:$0xff] }
 0x3d1   : > { %7347 = vmatmul.mubr.bf16.vlgmr.msra.gmra.mrb[12].mxu0 %v22835_v43  ;;  %v7636_v3 = vld [vmem:[%s27450_s11 + $0x328] sm:$0xff] }
 0x3d2   : > { %7511 = vmatmul.mubr.bf16.vlgmr.msra.gmra.mrb[12].mxu1 %v22835_v43  ;;  %10653 = vmatpush1.bf16.msra.mxu0 %v17948_v10  ;;  %v7560_v43 = vld [vmem:[%s27450_s11 + $0xc8] sm:$0xff] }
 0x3d3   : > { %10684 = vmatprep.mubr.bf16.mxu0 %v23646_v16  ;;  %10817 = vmatpush1.bf16.msra.mxu1 %v17950_v13  ;;  %v17975_v19 = vcombine.high %v7560_v43, %v7564_v38  ;;  %v17974_v63 = vcombine.low %v7560_v43, %v7564_v38  ;;  %v7596_v10 = vld [vmem:[%s27450_s11 + $0x1e8] sm:$0xff]  ;;  %v18005_v13 = vcombine.high %v7591_v23, %v7595_v21  ;;  %v7643_v23 = vld [vmem:[%s27450_s11 + $0x360] sm:$0xff] }
 0x3d4   : > { %10848 = vmatprep.mubr.bf16.mxu1 %v23646_v16  ;;  %10654 = vmatprep.subr.bf16.mxu0 %v17957_v56  ;;  %v18007_v56 = vcombine.high %v7592_v9, %v7596_v10  ;;  %v7612_v43 = vld [vmem:[%s27450_s11 + $0x268] sm:$0xff]  ;;  %v18012_v38 = vcombine.low %v7599_v15, %v7603_v35 }
 0x3d5   : > { %10818 = vmatprep.subr.bf16.mxu1 %v17959_v17  ;;  %v7600_v17 = vld [vmem:[%s27450_s11 + $0x208] sm:$0xff] }
 0x3d6   : > { %10655 = vmatpush1.bf16.msra.mxu0 %v17956_v25  ;;  %v18006_v25 = vcombine.low %v7592_v9, %v7596_v10  ;;  %v7640_v21 = vld [vmem:[%s27450_s11 + $0x348] sm:$0xff] }
 0x3d7   : > { %10819 = vmatpush1.bf16.msra.mxu1 %v17958_v29  ;;  %10656 = vmatprep.subr.bf16.mxu0 %v17965_v33  ;;  %v18013_v29 = vcombine.high %v7599_v15, %v7603_v35  ;;  %v18015_v33 = vcombine.high %v7600_v17, %v7604_v24  ;;  %v7644_v9 = vld [vmem:[%s27450_s11 + $0x368] sm:$0xff]  ;;  %v7651_v15 = vld [vmem:[%s27450_s11 + $0x3a0] sm:$0xff] }
 0x3d8   : > { %10820 = vmatprep.subr.bf16.mxu1 %v17967_v52  ;;  %v7607_v52 = vld [vmem:[%s27450_s11 + $0x240] sm:$0xff]  ;;  %v7648_v35 = vld [vmem:[%s27450_s11 + $0x388] sm:$0xff] }
 0x3d9   : > { %v18020_v53 = vcombine.low %v7607_v52, %v7611_v36 }
 0x3da   : > { %10657 = vmatpush1.bf16.msra.mxu0 %v17964_v40  ;;  %v18014_v40 = vcombine.low %v7600_v17, %v7604_v24  ;;  %v7652_v17 = vld [vmem:[%s27450_s11 + $0x3a8] sm:$0xff] }
 0x3db   : > { %10821 = vmatpush1.bf16.msra.mxu1 %v17966_v42  ;;  %10658 = vmatprep.subr.bf16.mxu0 %v17973_v61  ;;  %v18021_v42 = vcombine.high %v7607_v52, %v7611_v36  ;;  %v18023_v61 = vcombine.high %v7608_v37, %v7612_v43  ;;  %v7655_v52 = vld [vmem:[%s27450_s11 + $0x3c0] sm:$0xff] }
 0x3dc   : > { %10822 = vmatprep.subr.bf16.mxu1 %v17975_v19  ;;  %v7615_v19 = vld [vmem:[%s27450_s11 + $0x280] sm:$0xff] }
 0x3dd   : > { %v18028_v55 = vcombine.low %v7615_v19, %v7619_v27  ;;  %v7659_v36 = vld [vmem:[%s27450_s11 + $0x3e0] sm:$0xff] }
 0x3de   : > { %10659 = vmatpush1.bf16.msra.mxu0 %v17972_v31  ;;  %v18022_v31 = vcombine.low %v7608_v37, %v7612_v43  ;;  %v6838_v37 = vrot.slane %v23593_v44, %v20966_v12  ;;  %v7656_v43 = vld [vmem:[%s27450_s11 + $0x3c8] sm:$0xff] }
 0x3df   : > { %10823 = vmatpush1.bf16.msra.mxu1 %v17974_v63  ;;  %10660 = vmatprep.subr.bf16.mxu0 %v17981_v47  ;;  %v18029_v63 = vcombine.high %v7615_v19, %v7619_v27  ;;  %v18031_v47 = vcombine.high %v7616_v45, %v7620_v46  ;;  %v18069_v19 = vcombine.high %v7655_v52, %v7659_v36 }
 0x3e0   : > { %10824 = vmatprep.subr.bf16.mxu1 %v17983_v48  ;;  %v7623_v48 = vld [vmem:[%s27450_s11 + $0x2c0] sm:$0xff] }
 0x3e1   : > { %v18036_v4 = vcombine.low %v7623_v48, %v7627_v49 }
 0x3e2   : > { %10661 = vmatpush1.bf16.msra.mxu0 %v17980_v57  ;;  %v18030_v57 = vcombine.low %v7616_v45, %v7620_v46  ;;  %v7663_v45 = vld [vmem:[%s27450_s11 + $0x400] sm:$0xff] }
 0x3e3   : > { %10825 = vmatpush1.bf16.msra.mxu1 %v17982_v58  ;;  %10662 = vmatprep.subr.bf16.mxu0 %v17989_v60  ;;  %v18037_v58 = vcombine.high %v7623_v48, %v7627_v49  ;;  %v18039_v60 = vcombine.high %v7624_v51, %v7628_v54  ;;  %v7667_v46 = vld [vmem:[%s27450_s11 + $0x420] sm:$0xff] }
 0x3e4   : > { %10826 = vmatprep.subr.bf16.mxu1 %v17991_v1  ;;  %v7631_v1 = vld [vmem:[%s27450_s11 + $0x300] sm:$0xff]  ;;  %v18077_v49 = vcombine.high %v7663_v45, %v7667_v46 }
 0x3e5   : > { %v18044_v10 = vcombine.low %v7631_v1, %v7635_v20 }
 0x3e6   : > { %10663 = vmatpush1.bf16.msra.mxu0 %v17988_v6  ;;  %v18038_v6 = vcombine.low %v7624_v51, %v7628_v54 }
 0x3e7   : > { %10827 = vmatpush1.bf16.msra.mxu1 %v17990_v7  ;;  %10664 = vmatprep.subr.bf16.mxu0 %v17997_v26  ;;  %v18045_v7 = vcombine.high %v7631_v1, %v7635_v20  ;;  %v18047_v26 = vcombine.high %v7632_v2, %v7636_v3 }
 0x3e8   : > { %10828 = vmatprep.subr.bf16.mxu1 %v17999_v8  ;;  %v7639_v8 = vld [vmem:[%s27450_s11 + $0x340] sm:$0xff] }
 0x3e9   : > { %v18052_v24 = vcombine.low %v7639_v8, %v7643_v23 }
 0x3ea   : > { %10665 = vmatpush1.bf16.msra.mxu0 %v17996_v11  ;;  %v18046_v11 = vcombine.low %v7632_v2, %v7636_v3  ;;  %v7679_v3 = vld [vmem:[%s27450_s11 + $0x480] sm:$0xff] }
 0x3eb   : > { %10829 = vmatpush1.bf16.msra.mxu1 %v17998_v14  ;;  %10666 = vmatprep.subr.bf16.mxu0 %v18005_v13  ;;  %v18053_v14 = vcombine.high %v7639_v8, %v7643_v23  ;;  %v18055_v13 = vcombine.high %v7640_v21, %v7644_v9  ;;  %v7684_v8 = vld [vmem:[%s27450_s11 + $0x4a8] sm:$0xff] }
 0x3ec   : > { %10830 = vmatprep.subr.bf16.mxu1 %v18007_v56  ;;  %v7647_v56 = vld [vmem:[%s27450_s11 + $0x380] sm:$0xff] }
 0x3ee   : > { %10667 = vmatpush1.bf16.msra.mxu0 %v18004_v30  ;;  %v6826_v30 = vrot.slane %v23593_v44, %v20957_v5 }
 0x3ef   : > { %10831 = vmatpush1.bf16.msra.mxu1 %v18006_v25  ;;  %10668 = vmatprep.subr.bf16.mxu0 %v18013_v29  ;;  %v18054_v25 = vcombine.low %v7640_v21, %v7644_v9  ;;  %v18061_v29 = vcombine.high %v7647_v56, %v7651_v15 }
 0x3f0   : > { %10832 = vmatprep.subr.bf16.mxu1 %v18015_v33  ;;  %v18063_v33 = vcombine.high %v7648_v35, %v7652_v17 }
 0x3f2   : > { %10669 = vmatpush1.bf16.msra.mxu0 %v18012_v38  ;;  %v7660_v38 = vld [vmem:[%s27450_s11 + $0x3e8] sm:$0xff] }
 0x3f3   : > { %10833 = vmatpush1.bf16.msra.mxu1 %v18014_v40  ;;  %10670 = vmatprep.subr.bf16.mxu0 %v18021_v42  ;;  %v18060_v40 = vcombine.low %v7647_v56, %v7651_v15  ;;  %v19359_v42 = vadd.f32 %v23489_v0, %v6826_v30  ;;  %v18071_v27 = vcombine.high %v7656_v43, %v7660_v38  ;;  %v7664_v0 = vld [vmem:[%s27450_s11 + $0x408] sm:$0xff]  ;;  %v7695_v30 = vld [vmem:[%s27450_s11 + $0x500] sm:$0xff] }
 0x3f4   : > { %10834 = vmatprep.subr.bf16.mxu1 %v18023_v61  ;;  %v18062_v61 = vcombine.low %v7648_v35, %v7652_v17  ;;  %v18070_v48 = vcombine.low %v7656_v43, %v7660_v38  ;;  %v7692_v56 = vld [vmem:[%s27450_s11 + $0x4e8] sm:$0xff]  ;;  %v7703_v38 = vld [vmem:[%s27450_s11 + $0x540] sm:$0xff] }
 0x3f6   : > { %10671 = vmatpush1.bf16.msra.mxu0 %v18020_v53  ;;  %v19362_v53 = vadd.f32 %v23501_v22, %v6838_v37  ;;  %v7671_v22 = vld [vmem:[%s27450_s11 + $0x440] sm:$0xff] }
 0x3f7   : > { %10835 = vmatpush1.bf16.msra.mxu1 %v18022_v31  ;;  %10672 = vmatprep.subr.bf16.mxu0 %v18029_v63  ;;  %v7668_v31 = vld [vmem:[%s27450_s11 + $0x428] sm:$0xff]  ;;  %v18068_v63 = vcombine.low %v7655_v52, %v7659_v36 }
 0x3f8   : > { %10836 = vmatprep.subr.bf16.mxu1 %v18031_v47  ;;  %v7519_v47 = vmax.f32 %v19359_v42, 0.0  ;;  %v18079_v51 = vcombine.high %v7664_v0, %v7668_v31  ;;  %v7522_v54 = vmax.f32 %v19362_v53, 0.0  ;;  %v18078_v20 = vcombine.low %v7664_v0, %v7668_v31  ;;  %v7704_v42 = vld [vmem:[%s27450_s11 + $0x548] sm:$0xff]  ;;  %v7711_v53 = vld [vmem:[%s27450_s11 + $0x580] sm:$0xff] }
 0x3f9   : > { %v7715_v0 = vld [vmem:[%s27450_s11 + $0x5a0] sm:$0xff]  ;;  %v7712_v31 = vld [vmem:[%s27450_s11 + $0x588] sm:$0xff] }
 0x3fa   : > { %10673 = vmatpush1.bf16.msra.mxu0 %v18028_v55  ;;  %v7675_v55 = vld [vmem:[%s27450_s11 + $0x460] sm:$0xff]  ;;  %v23844_v1 = vpack.c.bf16 %v7519_v47, %v7519_v47 }
 0x3fb   : > { %10837 = vmatpush1.bf16.msra.mxu1 %v18030_v57  ;;  %10674 = vmatprep.subr.bf16.mxu0 %v18037_v58  ;;  %v18076_v57 = vcombine.low %v7663_v45, %v7667_v46  ;;  %v7672_v58 = vld [vmem:[%s27450_s11 + $0x448] sm:$0xff]  ;;  %v18085_v2 = vcombine.high %v7671_v22, %v7675_v55  ;;  %v18084_v23 = vcombine.low %v7671_v22, %v7675_v55  ;;  %v7723_v22 = vld [vmem:[%s27450_s11 + $0x5e0] sm:$0xff] }
 0x3fc   : > { %10838 = vmatprep.subr.bf16.mxu1 %v18039_v60  ;;  %v7676_v60 = vld [vmem:[%s27450_s11 + $0x468] sm:$0xff] }
 0x3fd   : > { %v18086_v21 = vcombine.low %v7672_v58, %v7676_v60  ;;  %v7720_v55 = vld [vmem:[%s27450_s11 + $0x5c8] sm:$0xff] }
 0x3fe   : > { %10675 = vmatpush1.bf16.msra.mxu0 %v18036_v4  ;;  %v7683_v4 = vld [vmem:[%s27450_s11 + $0x4a0] sm:$0xff] }
 0x3ff   : > { %10839 = vmatpush1.bf16.msra.mxu1 %v18038_v6  ;;  %10676 = vmatprep.subr.bf16.mxu0 %v18045_v7  ;;  %v23852_v6 = vpack.c.bf16 %v7522_v54, %v7522_v54  ;;  %v18087_v7 = vcombine.high %v7672_v58, %v7676_v60  ;;  %v18093_v9 = vcombine.high %v7679_v3, %v7683_v4  ;;  %v7719_v54 = vld [vmem:[%s27450_s11 + $0x5c0] sm:$0xff] }
 0x400   : > { %10840 = vmatprep.subr.bf16.mxu1 %v18047_v26  ;;  %v7680_v26 = vld [vmem:[%s27450_s11 + $0x488] sm:$0xff]  ;;  %v18092_v15 = vcombine.low %v7679_v3, %v7683_v4  ;;  %v18124_v58 = vcombine.low %v7711_v53, %v7715_v0  ;;  %v7727_v3 = vld [vmem:[%s27450_s11 + $0x600] sm:$0xff] }
 0x401   : > { %v18094_v35 = vcombine.low %v7680_v26, %v7684_v8  ;;  %v7731_v4 = vld [vmem:[%s27450_s11 + $0x620] sm:$0xff] }
 0x402   : > { %10677 = vmatpush1.bf16.msra.mxu0 %v18044_v10  ;;  %v18095_v10 = vcombine.high %v7680_v26, %v7684_v8  ;;  %v7732_v26 = vld [vmem:[%s27450_s11 + $0x628] sm:$0xff]  ;;  %v18132_v8 = vcombine.low %v7719_v54, %v7723_v22 }
 0x403   : > { %10841 = vmatpush1.bf16.msra.mxu1 %v18046_v11  ;;  %10678 = vmatprep.subr.bf16.mxu0 %v18053_v14  ;;  %v7687_v11 = vld [vmem:[%s27450_s11 + $0x4c0] sm:$0xff] }
 0x404   : > { %10842 = vmatprep.subr.bf16.mxu1 %v18055_v13  ;;  %v7691_v14 = vld [vmem:[%s27450_s11 + $0x4e0] sm:$0xff]  ;;  %v7688_v13 = vld [vmem:[%s27450_s11 + $0x4c8] sm:$0xff] }
 0x405   : > { %v18101_v17 = vcombine.high %v7687_v11, %v7691_v14  ;;  %v18100_v52 = vcombine.low %v7687_v11, %v7691_v14  ;;  %v18102_v36 = vcombine.low %v7688_v13, %v7692_v56  ;;  %v7739_v11 = vld [vmem:[%s27450_s11 + $0x660] sm:$0xff]  ;;  %v7736_v14 = vld [vmem:[%s27450_s11 + $0x648] sm:$0xff] }
 0x406   : > { %10679 = vmatpush1.bf16.msra.mxu0 %v18052_v24  ;;  %v18103_v24 = vcombine.high %v7688_v13, %v7692_v56  ;;  %v7740_v13 = vld [vmem:[%s27450_s11 + $0x668] sm:$0xff]  ;;  %v18140_v56 = vcombine.low %v7727_v3, %v7731_v4 }
 0x407   : > { %10843 = vmatpush1.bf16.msra.mxu1 %v18054_v25  ;;  %10680 = vmatprep.subr.bf16.mxu0 %v18061_v29  ;;  %v7699_v25 = vld [vmem:[%s27450_s11 + $0x520] sm:$0xff]  ;;  %v7696_v29 = vld [vmem:[%s27450_s11 + $0x508] sm:$0xff] }
 0x408   : > { %10844 = vmatprep.subr.bf16.mxu1 %v18063_v33  ;;  %v7700_v33 = vld [vmem:[%s27450_s11 + $0x528] sm:$0xff]  ;;  %v18109_v37 = vcombine.high %v7695_v30, %v7699_v25 }
 0x409   : > { %v18111_v43 = vcombine.high %v7696_v29, %v7700_v33 }
 0x40a   : > { %10681 = vmatpush1.bf16.msra.mxu0 %v18060_v40  ;;  %v7707_v40 = vld [vmem:[%s27450_s11 + $0x560] sm:$0xff] }
 0x40b   : > { %10845 = vmatpush1.bf16.msra.mxu1 %v18062_v61  ;;  %10682 = vmatprep.subr.bf16.mxu0 %v18069_v19  ;;  %v7708_v61 = vld [vmem:[%s27450_s11 + $0x568] sm:$0xff]  ;;  %v18108_v19 = vcombine.low %v7695_v30, %v7699_v25  ;;  %v18117_v45 = vcombine.high %v7703_v38, %v7707_v40  ;;  %v18116_v47 = vcombine.low %v7703_v38, %v7707_v40  ;;  %v7747_v30 = vld [vmem:[%s27450_s11 + $0x6a0] sm:$0xff] }
 0x40c   : > { %10846 = vmatprep.subr.bf16.mxu1 %v18071_v27  ;;  %v18110_v27 = vcombine.low %v7696_v29, %v7700_v33  ;;  %v18119_v46 = vcombine.high %v7704_v42, %v7708_v61  ;;  %v7744_v25 = vld [vmem:[%s27450_s11 + $0x688] sm:$0xff]  ;;  %v7755_v38 = vld [vmem:[%s27450_s11 + $0x6e0] sm:$0xff] }
 0x40d   : > { %v7748_v29 = vld [vmem:[%s27450_s11 + $0x6a8] sm:$0xff] }
 0x40e   : > { %10683 = vmatpush1.bf16.msra.mxu0 %v18068_v63  ;;  %v7716_v63 = vld [vmem:[%s27450_s11 + $0x5a8] sm:$0xff] }
 0x40f   : > { %10847 = vmatpush1.bf16.msra.mxu1 %v18070_v48  ;;  %10693 = vmatprep.subr.bf16.mxu0 %v18077_v49  ;;  %v18118_v48 = vcombine.low %v7704_v42, %v7708_v61  ;;  %v18125_v49 = vcombine.high %v7711_v53, %v7715_v0  ;;  %v18126_v60 = vcombine.low %v7712_v31, %v7716_v63  ;;  %v7752_v40 = vld [vmem:[%s27450_s11 + $0x6c8] sm:$0xff]  ;;  %v7763_v53 = vld [vmem:[%s27450_s11 + $0x720] sm:$0xff] }
 0x410   : > { %10857 = vmatprep.subr.bf16.mxu1 %v18079_v51  ;;  %v18127_v51 = vcombine.high %v7712_v31, %v7716_v63  ;;  %v7756_v42 = vld [vmem:[%s27450_s11 + $0x6e8] sm:$0xff] }
 0x411   : > { %10685 = vmatmul.mubr.bf16.vlgmr.msra.gmra.mrb[16].mxu0 %v23844_v1  ;;  %v7760_v0 = vld [vmem:[%s27450_s11 + $0x708] sm:$0xff] }
 0x412   : > { %10849 = vmatmul.mubr.bf16.vlgmr.msra.gmra.mrb[16].mxu1 %v23844_v1  ;;  %10694 = vmatpush1.bf16.msra.mxu0 %v18076_v57  ;;  %v7724_v57 = vld [vmem:[%s27450_s11 + $0x5e8] sm:$0xff] }
 0x413   : > { %10725 = vmatprep.mubr.bf16.mxu0 %v23852_v6  ;;  %10858 = vmatpush1.bf16.msra.mxu1 %v18078_v20  ;;  %v18133_v20 = vcombine.high %v7719_v54, %v7723_v22  ;;  %v7764_v31 = vld [vmem:[%s27450_s11 + $0x728] sm:$0xff]  ;;  %v7771_v54 = vld [vmem:[%s27450_s11 + $0x760] sm:$0xff] }
 0x414   : > { %10889 = vmatprep.mubr.bf16.mxu1 %v23852_v6  ;;  %10695 = vmatprep.subr.bf16.mxu0 %v18085_v2  ;;  %v18135_v2 = vcombine.high %v7720_v55, %v7724_v57  ;;  %v7768_v22 = vld [vmem:[%s27450_s11 + $0x748] sm:$0xff] }
 0x415   : > { %10859 = vmatprep.subr.bf16.mxu1 %v18087_v7  ;;  %v7728_v7 = vld [vmem:[%s27450_s11 + $0x608] sm:$0xff] }
 0x416   : > { %10696 = vmatpush1.bf16.msra.mxu0 %v18084_v23  ;;  %v18134_v23 = vcombine.low %v7720_v55, %v7724_v57  ;;  %v7772_v55 = vld [vmem:[%s27450_s11 + $0x768] sm:$0xff] }
 0x417   : > { %10860 = vmatpush1.bf16.msra.mxu1 %v18086_v21  ;;  %10697 = vmatprep.subr.bf16.mxu0 %v18093_v9  ;;  %v18141_v21 = vcombine.high %v7727_v3, %v7731_v4  ;;  %v18143_v9 = vcombine.high %v7728_v7, %v7732_v26  ;;  %v7779_v3 = vld [vmem:[%s27450_s11 + $0x7a0] sm:$0xff]  ;;  %v7776_v4 = vld [vmem:[%s27450_s11 + $0x788] sm:$0xff] }
 0x418   : > { %10861 = vmatprep.subr.bf16.mxu1 %v18095_v10  ;;  %v7735_v10 = vld [vmem:[%s27450_s11 + $0x640] sm:$0xff] }
 0x419   : > { %v18148_v33 = vcombine.low %v7735_v10, %v7739_v11 }
 0x41a   : > { %10698 = vmatpush1.bf16.msra.mxu0 %v18092_v15  ;;  %v18142_v15 = vcombine.low %v7728_v7, %v7732_v26  ;;  %v7780_v7 = vld [vmem:[%s27450_s11 + $0x7a8] sm:$0xff] }
 0x41b   : > { %10862 = vmatpush1.bf16.msra.mxu1 %v18094_v35  ;;  %10699 = vmatprep.subr.bf16.mxu0 %v18101_v17  ;;  %v18149_v35 = vcombine.high %v7735_v10, %v7739_v11  ;;  %v18151_v17 = vcombine.high %v7736_v14, %v7740_v13  ;;  %v7783_v10 = vld [vmem:[%s27450_s11 + $0x7c0] sm:$0xff] }
 0x41c   : > { %10863 = vmatprep.subr.bf16.mxu1 %v18103_v24  ;;  %v7743_v24 = vld [vmem:[%s27450_s11 + $0x680] sm:$0xff] }
 0x41d   : > { %v18156_v61 = vcombine.low %v7743_v24, %v7747_v30  ;;  %v7787_v11 = vld [vmem:[%s27450_s11 + $0x7e0] sm:$0xff] }
 0x41e   : > { %10700 = vmatpush1.bf16.msra.mxu0 %v18100_v52  ;;  %v18150_v52 = vcombine.low %v7736_v14, %v7740_v13  ;;  %v7784_v14 = vld [vmem:[%s27450_s11 + $0x7c8] sm:$0xff] }
 0x41f   : > { %10864 = vmatpush1.bf16.msra.mxu1 %v18102_v36  ;;  %10701 = vmatprep.subr.bf16.mxu0 %v18109_v37  ;;  %v18157_v36 = vcombine.high %v7743_v24, %v7747_v30  ;;  %v18159_v37 = vcombine.high %v7744_v25, %v7748_v29  ;;  %v7788_v13 = vld [vmem:[%s27450_s11 + $0x7e8] sm:$0xff]  ;;  %v7791_v30 = vld [vmem:[%s27450_s11 + $0x800] sm:$0xff] }
 0x420   : > { %10865 = vmatprep.subr.bf16.mxu1 %v18111_v43  ;;  %v7751_v43 = vld [vmem:[%s27450_s11 + $0x6c0] sm:$0xff]  ;;  %v18199_v24 = vcombine.high %v7784_v14, %v7788_v13 }
 0x421   : > { %v18164_v63 = vcombine.low %v7751_v43, %v7755_v38 }
 0x422   : > { %10702 = vmatpush1.bf16.msra.mxu0 %v18108_v19  ;;  %v18158_v19 = vcombine.low %v7744_v25, %v7748_v29  ;;  %v7795_v25 = vld [vmem:[%s27450_s11 + $0x820] sm:$0xff]  ;;  %v7792_v29 = vld [vmem:[%s27450_s11 + $0x808] sm:$0xff] }
 0x423   : > { %10866 = vmatpush1.bf16.msra.mxu1 %v18110_v27  ;;  %10703 = vmatprep.subr.bf16.mxu0 %v18117_v45  ;;  %v18165_v27 = vcombine.high %v7751_v43, %v7755_v38  ;;  %v18167_v45 = vcombine.high %v7752_v40, %v7756_v42  ;;  %v7799_v38 = vld [vmem:[%s27450_s11 + $0x840] sm:$0xff] }
 0x424   : > { %10867 = vmatprep.subr.bf16.mxu1 %v18119_v46  ;;  %v7759_v46 = vld [vmem:[%s27450_s11 + $0x700] sm:$0xff] }
 0x425   : > { %v18172_v57 = vcombine.low %v7759_v46, %v7763_v53 }
 0x426   : > { %10704 = vmatpush1.bf16.msra.mxu0 %v18116_v47  ;;  %v18166_v47 = vcombine.low %v7752_v40, %v7756_v42  ;;  %v7803_v40 = vld [vmem:[%s27450_s11 + $0x860] sm:$0xff]  ;;  %v7800_v42 = vld [vmem:[%s27450_s11 + $0x848] sm:$0xff] }
 0x427   : > { %10868 = vmatpush1.bf16.msra.mxu1 %v18118_v48  ;;  %10705 = vmatprep.subr.bf16.mxu0 %v18125_v49  ;;  %v18173_v48 = vcombine.high %v7759_v46, %v7763_v53  ;;  %v18175_v49 = vcombine.high %v7760_v0, %v7764_v31  ;;  %v18213_v46 = vcombine.high %v7799_v38, %v7803_v40 }
 0x428   : > { %10869 = vmatprep.subr.bf16.mxu1 %v18127_v51  ;;  %v7767_v51 = vld [vmem:[%s27450_s11 + $0x740] sm:$0xff] }
 0x429   : > { %v18180_v26 = vcombine.low %v7767_v51, %v7771_v54 }
 0x42a   : > { %10706 = vmatpush1.bf16.msra.mxu0 %v18124_v58  ;;  %v18174_v58 = vcombine.low %v7760_v0, %v7764_v31  ;;  %v7807_v0 = vld [vmem:[%s27450_s11 + $0x880] sm:$0xff] }
 0x42b   : > { %10870 = vmatpush1.bf16.msra.mxu1 %v18126_v60  ;;  %10707 = vmatprep.subr.bf16.mxu0 %v18133_v20  ;;  %v18181_v60 = vcombine.high %v7767_v51, %v7771_v54  ;;  %v18183_v20 = vcombine.high %v7768_v22, %v7772_v55  ;;  %v7811_v31 = vld [vmem:[%s27450_s11 + $0x8a0] sm:$0xff] }
 0x42c   : > { %10871 = vmatprep.subr.bf16.mxu1 %v18135_v2  ;;  %v7775_v2 = vld [vmem:[%s27450_s11 + $0x780] sm:$0xff]  ;;  %v18221_v51 = vcombine.high %v7807_v0, %v7811_v31 }
 0x42e   : > { %10708 = vmatpush1.bf16.msra.mxu0 %v18132_v8  ;;  %v6834_v8 = vrot.slane %v23593_v44, %v21167_v28 }
 0x42f   : > { %10872 = vmatpush1.bf16.msra.mxu1 %v18134_v23  ;;  %10709 = vmatprep.subr.bf16.mxu0 %v18141_v21  ;;  %v18182_v23 = vcombine.low %v7768_v22, %v7772_v55  ;;  %v18189_v21 = vcombine.high %v7775_v2, %v7779_v3  ;;  %v7815_v22 = vld [vmem:[%s27450_s11 + $0x8c0] sm:$0xff] }
 0x430   : > { %10873 = vmatprep.subr.bf16.mxu1 %v18143_v9  ;;  %v18191_v9 = vcombine.high %v7776_v4, %v7780_v7  ;;  %v7819_v55 = vld [vmem:[%s27450_s11 + $0x8e0] sm:$0xff] }
 0x432   : > { %10710 = vmatpush1.bf16.msra.mxu0 %v18140_v56  ;;  %v18188_v56 = vcombine.low %v7775_v2, %v7779_v3  ;;  %v18229_v2 = vcombine.high %v7815_v22, %v7819_v55 }
 0x433   : > { %10874 = vmatpush1.bf16.msra.mxu1 %v18142_v15  ;;  %10711 = vmatprep.subr.bf16.mxu0 %v18149_v35  ;;  %v19361_v15 = vadd.f32 %v23491_v34, %v6834_v8  ;;  %v18190_v35 = vcombine.low %v7776_v4, %v7780_v7  ;;  %v7796_v34 = vld [vmem:[%s27450_s11 + $0x828] sm:$0xff]  ;;  %v7823_v4 = vld [vmem:[%s27450_s11 + $0x900] sm:$0xff] }
 0x434   : > { %10875 = vmatprep.subr.bf16.mxu1 %v18151_v17  ;;  %v18197_v17 = vcombine.high %v7783_v10, %v7787_v11  ;;  %v18207_v43 = vcombine.high %v7792_v29, %v7796_v34  ;;  %v7827_v7 = vld [vmem:[%s27450_s11 + $0x920] sm:$0xff]  ;;  %v7828_v8 = vld [vmem:[%s27450_s11 + $0x928] sm:$0xff] }
 0x436   : > { %10712 = vmatpush1.bf16.msra.mxu0 %v18148_v33  ;;  %v18196_v33 = vcombine.low %v7783_v10, %v7787_v11  ;;  %v7831_v11 = vld [vmem:[%s27450_s11 + $0x940] sm:$0xff] }
 0x437   : > { %10876 = vmatpush1.bf16.msra.mxu1 %v18150_v52  ;;  %10713 = vmatprep.subr.bf16.mxu0 %v18157_v36  ;;  %v7521_v52 = vmax.f32 %v19361_v15, 0.0  ;;  %v18198_v36 = vcombine.low %v7784_v14, %v7788_v13  ;;  %v7835_v14 = vld [vmem:[%s27450_s11 + $0x960] sm:$0xff]  ;;  %v7832_v13 = vld [vmem:[%s27450_s11 + $0x948] sm:$0xff]  ;;  %v18236_v15 = vcombine.low %v7823_v4, %v7827_v7 }
 0x438   : > { %10877 = vmatprep.subr.bf16.mxu1 %v18159_v37  ;;  %v18205_v37 = vcombine.high %v7791_v30, %v7795_v25 }
 0x43a   : > { %10714 = vmatpush1.bf16.msra.mxu0 %v18156_v61  ;;  %v7804_v61 = vld [vmem:[%s27450_s11 + $0x868] sm:$0xff] }
 0x43b   : > { %10878 = vmatpush1.bf16.msra.mxu1 %v18158_v19  ;;  %10715 = vmatprep.subr.bf16.mxu0 %v18165_v27  ;;  %v18204_v19 = vcombine.low %v7791_v30, %v7795_v25  ;;  %v24047_v27 = vpack.c.bf16 %v7521_v52, %v7521_v52  ;;  %v18215_v53 = vcombine.high %v7800_v42, %v7804_v61  ;;  %v7839_v30 = vld [vmem:[%s27450_s11 + $0x980] sm:$0xff] }
 0x43c   : > { %10879 = vmatprep.subr.bf16.mxu1 %v18167_v45  ;;  %v18206_v45 = vcombine.low %v7792_v29, %v7796_v34  ;;  %v7843_v25 = vld [vmem:[%s27450_s11 + $0x9a0] sm:$0xff]  ;;  %v7840_v29 = vld [vmem:[%s27450_s11 + $0x988] sm:$0xff] }
 0x43d   : > { %v7844_v34 = vld [vmem:[%s27450_s11 + $0x9a8] sm:$0xff] }
 0x43e   : > { %10716 = vmatpush1.bf16.msra.mxu0 %v18164_v63  ;;  %v7808_v63 = vld [vmem:[%s27450_s11 + $0x888] sm:$0xff] }
 0x43f   : > { %10880 = vmatpush1.bf16.msra.mxu1 %v18166_v47  ;;  %10717 = vmatprep.subr.bf16.mxu0 %v18173_v48  ;;  %v7812_v47 = vld [vmem:[%s27450_s11 + $0x8a8] sm:$0xff]  ;;  %v18212_v48 = vcombine.low %v7799_v38, %v7803_v40  ;;  %v7851_v38 = vld [vmem:[%s27450_s11 + $0x9e0] sm:$0xff] }
 0x440   : > { %10881 = vmatprep.subr.bf16.mxu1 %v18175_v49  ;;  %v18214_v49 = vcombine.low %v7800_v42, %v7804_v61  ;;  %v18223_v54 = vcombine.high %v7808_v63, %v7812_v47  ;;  %v7848_v40 = vld [vmem:[%s27450_s11 + $0x9c8] sm:$0xff]  ;;  %v18252_v61 = vcombine.low %v7839_v30, %v7843_v25 }
 0x441   : > { %v7852_v42 = vld [vmem:[%s27450_s11 + $0x9e8] sm:$0xff] }
 0x442   : > { %10718 = vmatpush1.bf16.msra.mxu0 %v18172_v57  ;;  %v7816_v57 = vld [vmem:[%s27450_s11 + $0x8c8] sm:$0xff] }
 0x443   : > { %10882 = vmatpush1.bf16.msra.mxu1 %v18174_v58  ;;  %10719 = vmatprep.subr.bf16.mxu0 %v18181_v60  ;;  %v7820_v58 = vld [vmem:[%s27450_s11 + $0x8e8] sm:$0xff]  ;;  %v18220_v60 = vcombine.low %v7807_v0, %v7811_v31  ;;  %v7859_v0 = vld [vmem:[%s27450_s11 + $0xa20] sm:$0xff] }
 0x444   : > { %10883 = vmatprep.subr.bf16.mxu1 %v18183_v20  ;;  %v18222_v20 = vcombine.low %v7808_v63, %v7812_v47  ;;  %v18231_v3 = vcombine.high %v7816_v57, %v7820_v58  ;;  %v7856_v31 = vld [vmem:[%s27450_s11 + $0xa08] sm:$0xff] }
 0x445   : > { %v7860_v63 = vld [vmem:[%s27450_s11 + $0xa28] sm:$0xff] }
 0x446   : > { %10720 = vmatpush1.bf16.msra.mxu0 %v18180_v26  ;;  %v7824_v26 = vld [vmem:[%s27450_s11 + $0x908] sm:$0xff] }
 0x447   : > { %10884 = vmatpush1.bf16.msra.mxu1 %v18182_v23  ;;  %10721 = vmatprep.subr.bf16.mxu0 %v18189_v21  ;;  %v18228_v23 = vcombine.low %v7815_v22, %v7819_v55  ;;  %v18230_v21 = vcombine.low %v7816_v57, %v7820_v58  ;;  %v18239_v10 = vcombine.high %v7824_v26, %v7828_v8  ;;  %v7867_v22 = vld [vmem:[%s27450_s11 + $0xa60] sm:$0xff]  ;;  %v7864_v55 = vld [vmem:[%s27450_s11 + $0xa48] sm:$0xff] }
 0x448   : > { %10885 = vmatprep.subr.bf16.mxu1 %v18191_v9  ;;  %v18237_v9 = vcombine.high %v7823_v4, %v7827_v7  ;;  %v7868_v57 = vld [vmem:[%s27450_s11 + $0xa68] sm:$0xff]  ;;  %v7875_v4 = vld [vmem:[%s27450_s11 + $0xaa0] sm:$0xff] }
 0x449   : > { %v7872_v7 = vld [vmem:[%s27450_s11 + $0xa88] sm:$0xff] }
 0x44a   : > { %10722 = vmatpush1.bf16.msra.mxu0 %v18188_v56  ;;  %v7836_v56 = vld [vmem:[%s27450_s11 + $0x968] sm:$0xff] }
 0x44b   : > { %10886 = vmatpush1.bf16.msra.mxu1 %v18190_v35  ;;  %10723 = vmatprep.subr.bf16.mxu0 %v18197_v17  ;;  %v18238_v35 = vcombine.low %v7824_v26, %v7828_v8  ;;  %v18245_v17 = vcombine.high %v7831_v11, %v7835_v14  ;;  %v18246_v52 = vcombine.low %v7832_v13, %v7836_v56  ;;  %v7876_v26 = vld [vmem:[%s27450_s11 + $0xaa8] sm:$0xff] }
 0x44c   : > { %10887 = vmatprep.subr.bf16.mxu1 %v18199_v24  ;;  %v18247_v24 = vcombine.high %v7832_v13, %v7836_v56  ;;  %v7884_v13 = vld [vmem:[%s27450_s11 + $0xae8] sm:$0xff] }
 0x44e   : > { %10724 = vmatpush1.bf16.msra.mxu0 %v18196_v33  ;;  %v18244_v33 = vcombine.low %v7831_v11, %v7835_v14  ;;  %v7883_v11 = vld [vmem:[%s27450_s11 + $0xae0] sm:$0xff]  ;;  %v7880_v14 = vld [vmem:[%s27450_s11 + $0xac8] sm:$0xff] }
 0x44f   : > { %10888 = vmatpush1.bf16.msra.mxu1 %v18198_v36  ;;  %10734 = vmatprep.subr.bf16.mxu0 %v18205_v37  ;;  %v18253_v36 = vcombine.high %v7839_v30, %v7843_v25  ;;  %v18255_v37 = vcombine.high %v7840_v29, %v7844_v34  ;;  %v7891_v30 = vld [vmem:[%s27450_s11 + $0xb20] sm:$0xff]  ;;  %v7888_v25 = vld [vmem:[%s27450_s11 + $0xb08] sm:$0xff] }
 0x450   : > { %10898 = vmatprep.subr.bf16.mxu1 %v18207_v43  ;;  %v7847_v43 = vld [vmem:[%s27450_s11 + $0x9c0] sm:$0xff] }
 0x451   : > { %10726 = vmatmul.mubr.bf16.vlgmr.msra.gmra.mrb[16].mxu0 %v24047_v27  ;;  %v18260_v47 = vcombine.low %v7847_v43, %v7851_v38 }
 0x452   : > { %10890 = vmatmul.mubr.bf16.vlgmr.msra.gmra.mrb[16].mxu1 %v24047_v27  ;;  %10735 = vmatpush1.bf16.msra.mxu0 %v18204_v19  ;;  %v18254_v19 = vcombine.low %v7840_v29, %v7844_v34  ;;  %v7892_v29 = vld [vmem:[%s27450_s11 + $0xb28] sm:$0xff] }
 0x453   : > { %10899 = vmatpush1.bf16.msra.mxu1 %v18206_v45  ;;  %10736 = vmatprep.subr.bf16.mxu0 %v18213_v46  ;;  %v18261_v45 = vcombine.high %v7847_v43, %v7851_v38  ;;  %v18263_v46 = vcombine.high %v7848_v40, %v7852_v42  ;;  %v7899_v43 = vld [vmem:[%s27450_s11 + $0xb60] sm:$0xff]  ;;  %v7896_v38 = vld [vmem:[%s27450_s11 + $0xb48] sm:$0xff] }
 0x454   : > { %10900 = vmatprep.subr.bf16.mxu1 %v18215_v53  ;;  %v7855_v53 = vld [vmem:[%s27450_s11 + $0xa00] sm:$0xff] }
 0x455   : > { %v18268_v58 = vcombine.low %v7855_v53, %v7859_v0 }
 0x456   : > { %10737 = vmatpush1.bf16.msra.mxu0 %v18212_v48  ;;  %v18262_v48 = vcombine.low %v7848_v40, %v7852_v42  ;;  %v7900_v40 = vld [vmem:[%s27450_s11 + $0xb68] sm:$0xff] }
 0x457   : > { %10901 = vmatpush1.bf16.msra.mxu1 %v18214_v49  ;;  %10738 = vmatprep.subr.bf16.mxu0 %v18221_v51  ;;  %v18269_v49 = vcombine.high %v7855_v53, %v7859_v0  ;;  %v18271_v51 = vcombine.high %v7856_v31, %v7860_v63  ;;  %v7907_v53 = vld [vmem:[%s27450_s11 + $0xba0] sm:$0xff]  ;;  %v7904_v0 = vld [vmem:[%s27450_s11 + $0xb88] sm:$0xff] }
 0x458   : > { %10902 = vmatprep.subr.bf16.mxu1 %v18223_v54  ;;  %v7863_v54 = vld [vmem:[%s27450_s11 + $0xa40] sm:$0xff] }
 0x459   : > { %v18276_v8 = vcombine.low %v7863_v54, %v7867_v22 }
 0x45a   : > { %10739 = vmatpush1.bf16.msra.mxu0 %v18220_v60  ;;  %v18270_v60 = vcombine.low %v7856_v31, %v7860_v63  ;;  %v7908_v31 = vld [vmem:[%s27450_s11 + $0xba8] sm:$0xff] }
 0x45b   : > { %10903 = vmatpush1.bf16.msra.mxu1 %v18222_v20  ;;  %10740 = vmatprep.subr.bf16.mxu0 %v18229_v2  ;;  %v18277_v20 = vcombine.high %v7863_v54, %v7867_v22  ;;  %v18279_v2 = vcombine.high %v7864_v55, %v7868_v57  ;;  %v7915_v54 = vld [vmem:[%s27450_s11 + $0xbe0] sm:$0xff]  ;;  %v7912_v22 = vld [vmem:[%s27450_s11 + $0xbc8] sm:$0xff] }
 0x45c   : > { %10904 = vmatprep.subr.bf16.mxu1 %v18231_v3  ;;  %v7871_v3 = vld [vmem:[%s27450_s11 + $0xa80] sm:$0xff] }
 0x45d   : > { %v18284_v56 = vcombine.low %v7871_v3, %v7875_v4 }
 0x45e   : > { %10741 = vmatpush1.bf16.msra.mxu0 %v18228_v23  ;;  %v18278_v23 = vcombine.low %v7864_v55, %v7868_v57  ;;  %v7916_v55 = vld [vmem:[%s27450_s11 + $0xbe8] sm:$0xff] }
 0x45f   : > { %10905 = vmatpush1.bf16.msra.mxu1 %v18230_v21  ;;  %10742 = vmatprep.subr.bf16.mxu0 %v18237_v9  ;;  %v18285_v21 = vcombine.high %v7871_v3, %v7875_v4  ;;  %v18287_v9 = vcombine.high %v7872_v7, %v7876_v26  ;;  %v7923_v3 = vld [vmem:[%s27450_s11 + $0xc20] sm:$0xff]  ;;  %v7920_v4 = vld [vmem:[%s27450_s11 + $0xc08] sm:$0xff] }
 0x460   : > { %10906 = vmatprep.subr.bf16.mxu1 %v18239_v10  ;;  %v7879_v10 = vld [vmem:[%s27450_s11 + $0xac0] sm:$0xff] }
 0x461   : > { %v18292_v34 = vcombine.low %v7879_v10, %v7883_v11 }
 0x462   : > { %10743 = vmatpush1.bf16.msra.mxu0 %v18236_v15  ;;  %v18286_v15 = vcombine.low %v7872_v7, %v7876_v26  ;;  %v7924_v7 = vld [vmem:[%s27450_s11 + $0xc28] sm:$0xff] }
 0x463   : > { %10907 = vmatpush1.bf16.msra.mxu1 %v18238_v35  ;;  %10744 = vmatprep.subr.bf16.mxu0 %v18245_v17  ;;  %v18293_v35 = vcombine.high %v7879_v10, %v7883_v11  ;;  %v18295_v17 = vcombine.high %v7880_v14, %v7884_v13  ;;  %v6846_v10 = vrot.slane %v23593_v44, %v21182_v39 }
 0x464   : > { %10908 = vmatprep.subr.bf16.mxu1 %v18247_v24  ;;  %v7887_v24 = vld [vmem:[%s27450_s11 + $0xb00] sm:$0xff]  ;;  %v6854_v11 = vrot.slane %v23593_v44, %v22603_v18 }
 0x465   : > { %v18300_v42 = vcombine.low %v7887_v24, %v7891_v30 }
 0x466   : > { %10745 = vmatpush1.bf16.msra.mxu0 %v18244_v33  ;;  %v18294_v33 = vcombine.low %v7880_v14, %v7884_v13 }
 0x467   : > { %10909 = vmatpush1.bf16.msra.mxu1 %v18246_v52  ;;  %10746 = vmatprep.subr.bf16.mxu0 %v18253_v36  ;;  %v18301_v52 = vcombine.high %v7887_v24, %v7891_v30  ;;  %v18303_v36 = vcombine.high %v7888_v25, %v7892_v29 }
 0x468   : > { %10910 = vmatprep.subr.bf16.mxu1 %v18255_v37  ;;  %v7895_v37 = vld [vmem:[%s27450_s11 + $0xb40] sm:$0xff] }
 0x469   : > { %v18308_v63 = vcombine.low %v7895_v37, %v7899_v43 }
 0x46a   : > { %10747 = vmatpush1.bf16.msra.mxu0 %v18252_v61  ;;  %v18302_v61 = vcombine.low %v7888_v25, %v7892_v29 }
 0x46b   : > { %10911 = vmatpush1.bf16.msra.mxu1 %v18254_v19  ;;  %10748 = vmatprep.subr.bf16.mxu0 %v18261_v45  ;;  %v18309_v19 = vcombine.high %v7895_v37, %v7899_v43  ;;  %v18311_v45 = vcombine.high %v7896_v38, %v7900_v40  ;;  %v7931_v43 = vld [vmem:[%s27450_s11 + $0xc60] sm:$0xff] }
 0x46c   : > { %10912 = vmatprep.subr.bf16.mxu1 %v18263_v46  ;;  %v7903_v46 = vld [vmem:[%s27450_s11 + $0xb80] sm:$0xff] }
 0x46d   : > { %v18316_v57 = vcombine.low %v7903_v46, %v7907_v53 }
 0x46e   : > { %10749 = vmatpush1.bf16.msra.mxu0 %v18260_v47  ;;  %v18310_v47 = vcombine.low %v7896_v38, %v7900_v40  ;;  %v7928_v38 = vld [vmem:[%s27450_s11 + $0xc48] sm:$0xff] }
 0x46f   : > { %10913 = vmatpush1.bf16.msra.mxu1 %v18262_v48  ;;  %10750 = vmatprep.subr.bf16.mxu0 %v18269_v49  ;;  %v18317_v48 = vcombine.high %v7903_v46, %v7907_v53  ;;  %v18319_v49 = vcombine.high %v7904_v0, %v7908_v31  ;;  %v7932_v40 = vld [vmem:[%s27450_s11 + $0xc68] sm:$0xff]  ;;  %v7935_v46 = vld [vmem:[%s27450_s11 + $0xc80] sm:$0xff] }
 0x470   : > { %10914 = vmatprep.subr.bf16.mxu1 %v18271_v51  ;;  %v7911_v51 = vld [vmem:[%s27450_s11 + $0xbc0] sm:$0xff] }
 0x471   : > { %v18324_v26 = vcombine.low %v7911_v51, %v7915_v54 }
 0x472   : > { %10751 = vmatpush1.bf16.msra.mxu0 %v18268_v58  ;;  %v18318_v58 = vcombine.low %v7904_v0, %v7908_v31  ;;  %v18343_v0 = vcombine.high %v7928_v38, %v7932_v40  ;;  %v7939_v31 = vld [vmem:[%s27450_s11 + $0xca0] sm:$0xff] }
 0x473   : > { %10915 = vmatpush1.bf16.msra.mxu1 %v18270_v60  ;;  %10752 = vmatprep.subr.bf16.mxu0 %v18277_v20  ;;  %v18325_v60 = vcombine.high %v7911_v51, %v7915_v54  ;;  %v18327_v20 = vcombine.high %v7912_v22, %v7916_v55  ;;  %v18342_v51 = vcombine.low %v7928_v38, %v7932_v40  ;;  %v7975_v40 = vld [vmem:[%s27450_s11 + $0xdc0] sm:$0xff] }
 0x474   : > { %10916 = vmatprep.subr.bf16.mxu1 %v18279_v2  ;;  %v7919_v2 = vld [vmem:[%s27450_s11 + $0xc00] sm:$0xff]  ;;  %v18349_v54 = vcombine.high %v7935_v46, %v7939_v31 }
 0x476   : > { %10753 = vmatpush1.bf16.msra.mxu0 %v18276_v8  ;;  %v18326_v8 = vcombine.low %v7912_v22, %v7916_v55  ;;  %v7943_v55 = vld [vmem:[%s27450_s11 + $0xcc0] sm:$0xff] }
 0x477   : > { %10917 = vmatpush1.bf16.msra.mxu1 %v18278_v23  ;;  %10754 = vmatprep.subr.bf16.mxu0 %v18285_v21  ;;  %v18333_v23 = vcombine.high %v7919_v2, %v7923_v3  ;;  %v18335_v21 = vcombine.high %v7920_v4, %v7924_v7 }
 0x478   : > { %10918 = vmatprep.subr.bf16.mxu1 %v18287_v9  ;;  %v6842_v9 = vrot.slane %v23593_v44, %v21377_v62 }
 0x47a   : > { %10755 = vmatpush1.bf16.msra.mxu0 %v18284_v56 }
 0x47b   : > { %10919 = vmatpush1.bf16.msra.mxu1 %v18286_v15  ;;  %10756 = vmatprep.subr.bf16.mxu0 %v18293_v35 }
 0x47c   : > { %10920 = vmatprep.subr.bf16.mxu1 %v18295_v17 }
 0x47e   : > { %10757 = vmatpush1.bf16.msra.mxu0 %v18292_v34 }
 0x47f   : > { %10921 = vmatpush1.bf16.msra.mxu1 %v18294_v33  ;;  %10758 = vmatprep.subr.bf16.mxu0 %v18301_v52 }
 0x480   : > { %10922 = vmatprep.subr.bf16.mxu1 %v18303_v36  ;;  %v7927_v36 = vld [vmem:[%s27450_s11 + $0xc40] sm:$0xff] }
 0x481   : > { %v18341_v53 = vcombine.high %v7927_v36, %v7931_v43 }
 0x482   : > { %10759 = vmatpush1.bf16.msra.mxu0 %v18300_v42 }
 0x483   : > { %10923 = vmatpush1.bf16.msra.mxu1 %v18302_v61  ;;  %10760 = vmatprep.subr.bf16.mxu0 %v18309_v19  ;;  %v18332_v61 = vcombine.low %v7919_v2, %v7923_v3  ;;  %v18334_v19 = vcombine.low %v7920_v4, %v7924_v7  ;;  %v7951_v7 = vld [vmem:[%s27450_s11 + $0xd00] sm:$0xff] }
 0x484   : > { %10924 = vmatprep.subr.bf16.mxu1 %v18311_v45 }
 0x486   : > { %10761 = vmatpush1.bf16.msra.mxu0 %v18308_v63  ;;  %v7936_v63 = vld [vmem:[%s27450_s11 + $0xc88] sm:$0xff] }
 0x487   : > { %10925 = vmatpush1.bf16.msra.mxu1 %v18310_v47  ;;  %10762 = vmatprep.subr.bf16.mxu0 %v18317_v48  ;;  %v7940_v47 = vld [vmem:[%s27450_s11 + $0xca8] sm:$0xff] }
 0x488   : > { %10926 = vmatprep.subr.bf16.mxu1 %v18319_v49  ;;  %v18340_v49 = vcombine.low %v7927_v36, %v7931_v43  ;;  %v18351_v22 = vcombine.high %v7936_v63, %v7940_v47  ;;  %v18350_v2 = vcombine.low %v7936_v63, %v7940_v47  ;;  %v7983_v47 = vld [vmem:[%s27450_s11 + $0xe00] sm:$0xff] }
 0x48a   : > { %10763 = vmatpush1.bf16.msra.mxu0 %v18316_v57  ;;  %v7947_v57 = vld [vmem:[%s27450_s11 + $0xce0] sm:$0xff] }
 0x48b   : > { %10927 = vmatpush1.bf16.msra.mxu1 %v18318_v58  ;;  %10764 = vmatprep.subr.bf16.mxu0 %v18325_v60  ;;  %v7944_v58 = vld [vmem:[%s27450_s11 + $0xcc8] sm:$0xff]  ;;  %v18357_v3 = vcombine.high %v7943_v55, %v7947_v57 }
 0x48c   : > { %10928 = vmatprep.subr.bf16.mxu1 %v18327_v20  ;;  %v7948_v60 = vld [vmem:[%s27450_s11 + $0xce8] sm:$0xff]  ;;  %v18348_v20 = vcombine.low %v7935_v46, %v7939_v31 }
 0x48d   : > { %v18359_v4 = vcombine.high %v7944_v58, %v7948_v60  ;;  %v7980_v46 = vld [vmem:[%s27450_s11 + $0xde8] sm:$0xff] }
 0x48e   : > { %10765 = vmatpush1.bf16.msra.mxu0 %v18324_v26  ;;  %v7955_v26 = vld [vmem:[%s27450_s11 + $0xd20] sm:$0xff] }
 0x48f   : > { %10929 = vmatpush1.bf16.msra.mxu1 %v18326_v8  ;;  %10775 = vmatprep.subr.bf16.mxu0 %v18333_v23  ;;  %v7952_v8 = vld [vmem:[%s27450_s11 + $0xd08] sm:$0xff] }
 0x490   : > { %10939 = vmatprep.subr.bf16.mxu1 %v18335_v21  ;;  %v7956_v23 = vld [vmem:[%s27450_s11 + $0xd28] sm:$0xff]  ;;  %v18356_v21 = vcombine.low %v7943_v55, %v7947_v57 }
 0x4a4   : > { %v7348_v14 = vpop.f32.mrb[12].mxu0 }
 0x4a5   : > { %v19363_v13 = vadd.f32 %v7348_v14, %v6842_v9  ;;  %v24237_v56 = vpop.f32.mrb[12].mxu1  ;;  %v7350_v15 = vpop.f32.mrb[13].mxu0  ;;  %v18358_v9 = vcombine.low %v7944_v58, %v7948_v60  ;;  %v7959_v14 = vld [vmem:[%s27450_s11 + $0xd40] sm:$0xff] }
 0x4a6   : > { %v19364_v35 = vadd.f32 %v7350_v15, %v6846_v10  ;;  %v7514_v17 = vpop.f32.mrb[13].mxu1  ;;  %v7352_v24 = vpop.f32.mrb[14].mxu0  ;;  %v18365_v10 = vcombine.high %v7951_v7, %v7955_v26  ;;  %v7960_v15 = vld [vmem:[%s27450_s11 + $0xd48] sm:$0xff]  ;;  %v7991_v60 = vld [vmem:[%s27450_s11 + $0xe40] sm:$0xff] }
 0x4a7   : > { %v7523_v30 = vmax.f32 %v19363_v13, 0.0  ;;  %v19366_v25 = vadd.f32 %v7514_v17, %v6854_v11  ;;  %v7516_v29 = vpop.f32.mrb[14].mxu1  ;;  %v7353_v34 = vpop.f32.mrb[15].mxu0  ;;  %v18367_v11 = vcombine.high %v7952_v8, %v7956_v23  ;;  %v7963_v13 = vld [vmem:[%s27450_s11 + $0xd60] sm:$0xff]  ;;  %v18364_v17 = vcombine.low %v7951_v7, %v7955_v26 }
 0x4a8   : > { %v7524_v33 = vmax.f32 %v19364_v35, 0.0  ;;  %v7517_v52 = vpop.f32.mrb[15].mxu1  ;;  %v7964_v35 = vld [vmem:[%s27450_s11 + $0xd68] sm:$0xff]  ;;  %v18366_v24 = vcombine.low %v7952_v8, %v7956_v23  ;;  %v7967_v29 = vld [vmem:[%s27450_s11 + $0xd80] sm:$0xff]  ;;  %v18372_v36 = vcombine.low %v7959_v14, %v7963_v13 }
 0x4a9   : > { %v7526_v37 = vmax.f32 %v19366_v25, 0.0  ;;  %v24253_v45 = vpack.c.bf16 %v7523_v30, %v7523_v30  ;;  %v18373_v30 = vcombine.high %v7959_v14, %v7963_v13  ;;  %v18375_v25 = vcombine.high %v7960_v15, %v7964_v35  ;;  %v7971_v34 = vld [vmem:[%s27450_s11 + $0xda0] sm:$0xff]  ;;  %v7972_v52 = vld [vmem:[%s27450_s11 + $0xda8] sm:$0xff] }
 0x4aa   : > { %v24251_v42 = vpack.c.bf16 %v7524_v33, %v7524_v33  ;;  %v7968_v33 = vld [vmem:[%s27450_s11 + $0xd88] sm:$0xff]  ;;  %v18381_v43 = vcombine.high %v7967_v29, %v7971_v34  ;;  %v7999_v23 = vld [vmem:[%s27450_s11 + $0xe80] sm:$0xff] }
 0x4ab   : > { %v24269_v48 = vpack.c.bf16 %v7526_v37, %v7526_v37  ;;  %v18374_v37 = vcombine.low %v7960_v15, %v7964_v35  ;;  %v18383_v38 = vcombine.high %v7968_v33, %v7972_v52  ;;  %v8007_v35 = vld [vmem:[%s27450_s11 + $0xec0] sm:$0xff] }
 0x4ac   : > { %10766 = vmatprep.mubr.bf16.mxu0 %v24251_v42  ;;  %10930 = vmatprep.mubr.bf16.mxu1 %v24251_v42 }
 0x4ad   : > { %10767 = vmatmul.mubr.bf16.vlgmr.msra.gmra.mrb[16].mxu0 %v24253_v45  ;;  %10931 = vmatmul.mubr.bf16.vlgmr.msra.gmra.mrb[16].mxu1 %v24253_v45 }
 0x4ae   : > { %10776 = vmatpush1.bf16.msra.mxu0 %v18332_v61  ;;  %10940 = vmatpush1.bf16.msra.mxu1 %v18334_v19  ;;  %v7979_v61 = vld [vmem:[%s27450_s11 + $0xde0] sm:$0xff]  ;;  %v7976_v19 = vld [vmem:[%s27450_s11 + $0xdc8] sm:$0xff] }
 0x4af   : > { %10807 = vmatprep.mubr.bf16.mxu0 %v24269_v48  ;;  %10971 = vmatprep.mubr.bf16.mxu1 %v24269_v48  ;;  %v18389_v31 = vcombine.high %v7975_v40, %v7979_v61  ;;  %v18391_v63 = vcombine.high %v7976_v19, %v7980_v46  ;;  %v18390_v55 = vcombine.low %v7976_v19, %v7980_v46  ;;  %v8023_v46 = vld [vmem:[%s27450_s11 + $0xf40] sm:$0xff] }
 0x4b0   : > { %10777 = vmatprep.subr.bf16.mxu0 %v18341_v53  ;;  %10941 = vmatprep.subr.bf16.mxu1 %v18343_v0  ;;  %v18380_v53 = vcombine.low %v7967_v29, %v7971_v34  ;;  %v18382_v0 = vcombine.low %v7968_v33, %v7972_v52  ;;  %v8015_v52 = vld [vmem:[%s27450_s11 + $0xf00] sm:$0xff] }
 0x4b2   : > { %10778 = vmatpush1.bf16.msra.mxu0 %v18340_v49  ;;  %10942 = vmatpush1.bf16.msra.mxu1 %v18342_v51  ;;  %v7987_v49 = vld [vmem:[%s27450_s11 + $0xe20] sm:$0xff]  ;;  %v7984_v51 = vld [vmem:[%s27450_s11 + $0xe08] sm:$0xff] }
 0x4b3   : > { %10779 = vmatprep.subr.bf16.mxu0 %v18349_v54  ;;  %10943 = vmatprep.subr.bf16.mxu1 %v18351_v22  ;;  %v7988_v54 = vld [vmem:[%s27450_s11 + $0xe28] sm:$0xff]  ;;  %v18388_v22 = vcombine.low %v7975_v40, %v7979_v61  ;;  %v18397_v57 = vcombine.high %v7983_v47, %v7987_v49 }
 0x4b4   : > { %v18399_v58 = vcombine.high %v7984_v51, %v7988_v54  ;;  %v18398_v7 = vcombine.low %v7984_v51, %v7988_v54  ;;  %v8031_v54 = vld [vmem:[%s27450_s11 + $0xf80] sm:$0xff] }
 0x4b6   : > { %10780 = vmatpush1.bf16.msra.mxu0 %v18348_v20  ;;  %10944 = vmatpush1.bf16.msra.mxu1 %v18350_v2  ;;  %v7995_v20 = vld [vmem:[%s27450_s11 + $0xe60] sm:$0xff]  ;;  %v7992_v2 = vld [vmem:[%s27450_s11 + $0xe48] sm:$0xff] }
 0x4b7   : > { %10781 = vmatprep.subr.bf16.mxu0 %v18357_v3  ;;  %10945 = vmatprep.subr.bf16.mxu1 %v18359_v4  ;;  %v7996_v3 = vld [vmem:[%s27450_s11 + $0xe68] sm:$0xff]  ;;  %v18396_v4 = vcombine.low %v7983_v47, %v7987_v49  ;;  %v18405_v26 = vcombine.high %v7991_v60, %v7995_v20 }
 0x4b8   : > { %v18407_v8 = vcombine.high %v7992_v2, %v7996_v3  ;;  %v18406_v14 = vcombine.low %v7992_v2, %v7996_v3 }
 0x4ba   : > { %10782 = vmatpush1.bf16.msra.mxu0 %v18356_v21  ;;  %10946 = vmatpush1.bf16.msra.mxu1 %v18358_v9  ;;  %v8003_v21 = vld [vmem:[%s27450_s11 + $0xea0] sm:$0xff]  ;;  %v8000_v9 = vld [vmem:[%s27450_s11 + $0xe88] sm:$0xff] }
 0x4bb   : > { %10783 = vmatprep.subr.bf16.mxu0 %v18365_v10  ;;  %10947 = vmatprep.subr.bf16.mxu1 %v18367_v11  ;;  %v8004_v10 = vld [vmem:[%s27450_s11 + $0xea8] sm:$0xff]  ;;  %v18404_v11 = vcombine.low %v7991_v60, %v7995_v20  ;;  %v18413_v13 = vcombine.high %v7999_v23, %v8003_v21  ;;  %v6850_v20 = vrot.slane %v23593_v44, %v22782_v59 }
 0x4bc   : > { %v18415_v15 = vcombine.high %v8000_v9, %v8004_v10  ;;  %v18414_v29 = vcombine.low %v8000_v9, %v8004_v10  ;;  %v8044_v44 = vld [vmem:[%s27450_s11 + $0xfe8] sm:$0xff] }
 0x4be   : > { %10784 = vmatpush1.bf16.msra.mxu0 %v18364_v17  ;;  %10948 = vmatpush1.bf16.msra.mxu1 %v18366_v24  ;;  %v8011_v17 = vld [vmem:[%s27450_s11 + $0xee0] sm:$0xff]  ;;  %v8008_v24 = vld [vmem:[%s27450_s11 + $0xec8] sm:$0xff] }
 0x4bf   : > { %10785 = vmatprep.subr.bf16.mxu0 %v18373_v30  ;;  %10949 = vmatprep.subr.bf16.mxu1 %v18375_v25  ;;  %v8012_v30 = vld [vmem:[%s27450_s11 + $0xee8] sm:$0xff]  ;;  %v18412_v25 = vcombine.low %v7999_v23, %v8003_v21  ;;  %v18421_v34 = vcombine.high %v8007_v35, %v8011_v17  ;;  %v19365_v21 = vadd.f32 %v24237_v56, %v6850_v20  ;;  %v7542_v56 = vld [vmem:[%s27450_s11 + $0x38] sm:$0xff] }
 0x4c0   : > { %v18423_v33 = vcombine.high %v8008_v24, %v8012_v30  ;;  %v18422_v40 = vcombine.low %v8008_v24, %v8012_v30  ;;  %v7570_v20 = vld [vmem:[%s27450_s11 + $0x118] sm:$0xff] }
 0x4c2   : > { %10786 = vmatpush1.bf16.msra.mxu0 %v18372_v36  ;;  %10950 = vmatpush1.bf16.msra.mxu1 %v18374_v37  ;;  %v8019_v36 = vld [vmem:[%s27450_s11 + $0xf20] sm:$0xff]  ;;  %v8016_v37 = vld [vmem:[%s27450_s11 + $0xf08] sm:$0xff] }
 0x4c3   : > { %10787 = vmatprep.subr.bf16.mxu0 %v18381_v43  ;;  %10951 = vmatprep.subr.bf16.mxu1 %v18383_v38  ;;  %v8020_v43 = vld [vmem:[%s27450_s11 + $0xf28] sm:$0xff]  ;;  %v18420_v38 = vcombine.low %v8007_v35, %v8011_v17  ;;  %v18429_v61 = vcombine.high %v8015_v52, %v8019_v36  ;;  %v7525_v17 = vmax.f32 %v19365_v21, 0.0  ;;  %v7582_v21 = vld [vmem:[%s27450_s11 + $0x178] sm:$0xff] }
 0x4c4   : > { %v18431_v19 = vcombine.high %v8016_v37, %v8020_v43  ;;  %v18430_v47 = vcombine.low %v8016_v37, %v8020_v43 }
 0x4c6   : > { %10788 = vmatpush1.bf16.msra.mxu0 %v18380_v53  ;;  %10952 = vmatpush1.bf16.msra.mxu1 %v18382_v0  ;;  %v8027_v53 = vld [vmem:[%s27450_s11 + $0xf60] sm:$0xff]  ;;  %v8024_v0 = vld [vmem:[%s27450_s11 + $0xf48] sm:$0xff] }
 0x4c7   : > { %10789 = vmatprep.subr.bf16.mxu0 %v18389_v31  ;;  %10953 = vmatprep.subr.bf16.mxu1 %v18391_v63  ;;  %v8028_v31 = vld [vmem:[%s27450_s11 + $0xf68] sm:$0xff]  ;;  %v18428_v63 = vcombine.low %v8015_v52, %v8019_v36  ;;  %v18437_v49 = vcombine.high %v8023_v46, %v8027_v53  ;;  %v24458_v36 = vpack.c.bf16 %v7525_v17, %v7525_v17 }
 0x4c8   : > { %v18439_v51 = vcombine.high %v8024_v0, %v8028_v31  ;;  %v18438_v60 = vcombine.low %v8024_v0, %v8028_v31 }
 0x4ca   : > { %10790 = vmatpush1.bf16.msra.mxu0 %v18388_v22  ;;  %10954 = vmatpush1.bf16.msra.mxu1 %v18390_v55  ;;  %v8035_v22 = vld [vmem:[%s27450_s11 + $0xfa0] sm:$0xff]  ;;  %v8032_v55 = vld [vmem:[%s27450_s11 + $0xf88] sm:$0xff] }
 0x4cb   : > { %10791 = vmatprep.subr.bf16.mxu0 %v18397_v57  ;;  %10955 = vmatprep.subr.bf16.mxu1 %v18399_v58  ;;  %v8036_v57 = vld [vmem:[%s27450_s11 + $0xfa8] sm:$0xff]  ;;  %v18436_v58 = vcombine.low %v8023_v46, %v8027_v53  ;;  %v18445_v2 = vcombine.high %v8031_v54, %v8035_v22  ;;  %v7558_v46 = vld [vmem:[%s27450_s11 + $0xb8] sm:$0xff] }
 0x4cc   : > { %v18447_v3 = vcombine.high %v8032_v55, %v8036_v57  ;;  %v18446_v23 = vcombine.low %v8032_v55, %v8036_v57 }
 0x4ce   : > { %10792 = vmatpush1.bf16.msra.mxu0 %v18396_v4  ;;  %10956 = vmatpush1.bf16.msra.mxu1 %v18398_v7  ;;  %v8039_v4 = vld [vmem:[%s27450_s11 + $0xfc0] sm:$0xff] }
 0x4cf   : > { %10793 = vmatprep.subr.bf16.mxu0 %v18405_v26  ;;  %10957 = vmatprep.subr.bf16.mxu1 %v18407_v8  ;;  %v8043_v7 = vld [vmem:[%s27450_s11 + $0xfe0] sm:$0xff]  ;;  %v8040_v26 = vld [vmem:[%s27450_s11 + $0xfc8] sm:$0xff]  ;;  %v18444_v8 = vcombine.low %v8031_v54, %v8035_v22 }
 0x4d0   : > { %v18453_v9 = vcombine.high %v8039_v4, %v8043_v7  ;;  %v18455_v10 = vcombine.high %v8040_v26, %v8044_v44  ;;  %v18454_v35 = vcombine.low %v8040_v26, %v8044_v44  ;;  %v7577_v44 = vld [vmem:[%s27450_s11 + $0x150] sm:$0xff] }
 0x4d2   : > { %10794 = vmatpush1.bf16.msra.mxu0 %v18404_v11  ;;  %10958 = vmatpush1.bf16.msra.mxu1 %v18406_v14  ;;  %v7537_v11 = vld [vmem:[%s27450_s11 + $0x10] sm:$0xff] }
 0x4d3   : > { %10795 = vmatprep.subr.bf16.mxu0 %v18413_v13  ;;  %10959 = vmatprep.subr.bf16.mxu1 %v18415_v15  ;;  %v7541_v14 = vld [vmem:[%s27450_s11 + $0x30] sm:$0xff]  ;;  %v7538_v13 = vld [vmem:[%s27450_s11 + $0x18] sm:$0xff]  ;;  %v18452_v15 = vcombine.low %v8039_v4, %v8043_v7 }
 0x4d4   : > { %v17953_v24 = vcombine.high %v7537_v11, %v7541_v14  ;;  %v17955_v30 = vcombine.high %v7538_v13, %v7542_v56  ;;  %v17952_v52 = vcombine.low %v7537_v11, %v7541_v14  ;;  %v17954_v37 = vcombine.low %v7538_v13, %v7542_v56  ;;  %v7585_v13 = vld [vmem:[%s27450_s11 + $0x190] sm:$0xff] }
 0x4d5   : > { %v7589_v56 = vld [vmem:[%s27450_s11 + $0x1b0] sm:$0xff] }
 0x4d6   : > { %10796 = vmatpush1.bf16.msra.mxu0 %v18412_v25  ;;  %10960 = vmatpush1.bf16.msra.mxu1 %v18414_v29  ;;  %v7545_v25 = vld [vmem:[%s27450_s11 + $0x50] sm:$0xff] }
 0x4d7   : > { %10797 = vmatprep.subr.bf16.mxu0 %v18421_v34  ;;  %10961 = vmatprep.subr.bf16.mxu1 %v18423_v33  ;;  %v7549_v29 = vld [vmem:[%s27450_s11 + $0x70] sm:$0xff]  ;;  %v7546_v34 = vld [vmem:[%s27450_s11 + $0x58] sm:$0xff] }
 0x4d8   : > { %v7550_v33 = vld [vmem:[%s27450_s11 + $0x78] sm:$0xff]  ;;  %v17961_v43 = vcombine.high %v7545_v25, %v7549_v29  ;;  %v17960_v53 = vcombine.low %v7545_v25, %v7549_v29  ;;  %v7593_v29 = vld [vmem:[%s27450_s11 + $0x1d0] sm:$0xff] }
 0x4d9   : > { %v17962_v0 = vcombine.low %v7546_v34, %v7550_v33 }
 0x4da   : > { %10798 = vmatpush1.bf16.msra.mxu0 %v18420_v38  ;;  %10962 = vmatpush1.bf16.msra.mxu1 %v18422_v40  ;;  %v17963_v38 = vcombine.high %v7546_v34, %v7550_v33  ;;  %v7553_v40 = vld [vmem:[%s27450_s11 + $0x90] sm:$0xff]  ;;  %v7594_v33 = vld [vmem:[%s27450_s11 + $0x1d8] sm:$0xff] }
 0x4db   : > { %10799 = vmatprep.subr.bf16.mxu0 %v18429_v61  ;;  %10963 = vmatprep.subr.bf16.mxu1 %v18431_v19  ;;  %v7557_v61 = vld [vmem:[%s27450_s11 + $0xb0] sm:$0xff]  ;;  %v7554_v19 = vld [vmem:[%s27450_s11 + $0x98] sm:$0xff] }
 0x4dc   : > { %v17969_v31 = vcombine.high %v7553_v40, %v7557_v61  ;;  %v17968_v54 = vcombine.low %v7553_v40, %v7557_v61  ;;  %v17970_v22 = vcombine.low %v7554_v19, %v7558_v46  ;;  %v7597_v34 = vld [vmem:[%s27450_s11 + $0x1f0] sm:$0xff] }
 0x4dd   : > { %v7601_v61 = vld [vmem:[%s27450_s11 + $0x210] sm:$0xff] }
 0x4de   : > { %10800 = vmatpush1.bf16.msra.mxu0 %v18428_v63  ;;  %10964 = vmatpush1.bf16.msra.mxu1 %v18430_v47  ;;  %v17971_v63 = vcombine.high %v7554_v19, %v7558_v46  ;;  %v7561_v47 = vld [vmem:[%s27450_s11 + $0xd0] sm:$0xff]  ;;  %v7602_v46 = vld [vmem:[%s27450_s11 + $0x218] sm:$0xff] }
 0x4df   : > { %10801 = vmatprep.subr.bf16.mxu0 %v18437_v49  ;;  %10965 = vmatprep.subr.bf16.mxu1 %v18439_v51  ;;  %v7565_v49 = vld [vmem:[%s27450_s11 + $0xf0] sm:$0xff]  ;;  %v7562_v51 = vld [vmem:[%s27450_s11 + $0xd8] sm:$0xff] }
 0x4e0   : > { %v17977_v55 = vcombine.high %v7561_v47, %v7565_v49  ;;  %v7605_v19 = vld [vmem:[%s27450_s11 + $0x230] sm:$0xff] }
 0x4e2   : > { %10802 = vmatpush1.bf16.msra.mxu0 %v18436_v58  ;;  %10966 = vmatpush1.bf16.msra.mxu1 %v18438_v60  ;;  %v7569_v58 = vld [vmem:[%s27450_s11 + $0x110] sm:$0xff] }
 0x4e3   : > { %10803 = vmatprep.subr.bf16.mxu0 %v18445_v2  ;;  %10967 = vmatprep.subr.bf16.mxu1 %v18447_v3  ;;  %v7573_v60 = vld [vmem:[%s27450_s11 + $0x130] sm:$0xff]  ;;  %v7574_v2 = vld [vmem:[%s27450_s11 + $0x138] sm:$0xff]  ;;  %v17976_v3 = vcombine.low %v7561_v47, %v7565_v49 }
 0x4e4   : > { %v17985_v7 = vcombine.high %v7569_v58, %v7573_v60  ;;  %v17987_v26 = vcombine.high %v7570_v20, %v7574_v2  ;;  %v7609_v49 = vld [vmem:[%s27450_s11 + $0x250] sm:$0xff] }
 0x4e6   : > { %10804 = vmatpush1.bf16.msra.mxu0 %v18444_v8  ;;  %10968 = vmatpush1.bf16.msra.mxu1 %v18446_v23  ;;  %v7581_v8 = vld [vmem:[%s27450_s11 + $0x170] sm:$0xff]  ;;  %v7578_v23 = vld [vmem:[%s27450_s11 + $0x158] sm:$0xff] }
 0x4e7   : > { %10805 = vmatprep.subr.bf16.mxu0 %v18453_v9  ;;  %10969 = vmatprep.subr.bf16.mxu1 %v18455_v10  ;;  %v17984_v9 = vcombine.low %v7569_v58, %v7573_v60  ;;  %v17986_v10 = vcombine.low %v7570_v20, %v7574_v2  ;;  %v17993_v11 = vcombine.high %v7577_v44, %v7581_v8  ;;  %v7617_v60 = vld [vmem:[%s27450_s11 + $0x290] sm:$0xff]  ;;  %v7618_v2 = vld [vmem:[%s27450_s11 + $0x298] sm:$0xff] }
 0x4e8   : > { %v17995_v14 = vcombine.high %v7578_v23, %v7582_v21  ;;  %v17992_v17 = vcombine.low %v7577_v44, %v7581_v8  ;;  %v7621_v20 = vld [vmem:[%s27450_s11 + $0x2b0] sm:$0xff] }
 0x4e9   : > { %v7625_v8 = vld [vmem:[%s27450_s11 + $0x2d0] sm:$0xff] }
 0x4ea   : > { %10806 = vmatpush1.bf16.msra.mxu0 %v18452_v15  ;;  %10970 = vmatpush1.bf16.msra.mxu1 %v18454_v35  ;;  %v7586_v15 = vld [vmem:[%s27450_s11 + $0x198] sm:$0xff] }
 0x4eb   : > { %10980 = vmatprep.subr.bf16.mxu0 %v17953_v24  ;;  %11144 = vmatprep.subr.bf16.mxu1 %v17955_v30  ;;  %v7590_v35 = vld [vmem:[%s27450_s11 + $0x1b8] sm:$0xff]  ;;  %v17994_v24 = vcombine.low %v7578_v23, %v7582_v21  ;;  %v18001_v30 = vcombine.high %v7585_v13, %v7589_v56  ;;  %v7629_v23 = vld [vmem:[%s27450_s11 + $0x2f0] sm:$0xff] }
 0x4ec   : > { %v18003_v25 = vcombine.high %v7586_v15, %v7590_v35  ;;  %v7626_v21 = vld [vmem:[%s27450_s11 + $0x2d8] sm:$0xff] }
 0x4ed   : > { %10808 = vmatmul.mubr.bf16.vlgmr.msra.gmra.mrb[16].mxu0 %v24458_v36  ;;  %10972 = vmatmul.mubr.bf16.vlgmr.msra.gmra.mrb[16].mxu1 %v24458_v36 }
 0x4ee   : > { %10981 = vmatpush1.bf16.msra.mxu0 %v17952_v52  ;;  %11012 = vmatprep.mubr.bf16.mxu0 %v23646_v16  ;;  %v7598_v52 = vld [vmem:[%s27450_s11 + $0x1f8] sm:$0xff] }
 0x4ef   : > { %11145 = vmatpush1.bf16.msra.mxu1 %v17954_v37  ;;  %11176 = vmatprep.mubr.bf16.mxu1 %v23646_v16  ;;  %v7566_v16 = vld [vmem:[%s27450_s11 + $0xf8] sm:$0xff]  ;;  %v18000_v37 = vcombine.low %v7585_v13, %v7589_v56  ;;  %v18011_v40 = vcombine.high %v7594_v33, %v7598_v52  ;;  %v7633_v56 = vld [vmem:[%s27450_s11 + $0x310] sm:$0xff] }
 0x4f0   : > { %10982 = vmatprep.subr.bf16.mxu0 %v17961_v43  ;;  %11146 = vmatprep.subr.bf16.mxu1 %v17963_v38  ;;  %v17979_v57 = vcombine.high %v7562_v51, %v7566_v16  ;;  %v17978_v4 = vcombine.low %v7562_v51, %v7566_v16  ;;  %v18002_v43 = vcombine.low %v7586_v15, %v7590_v35  ;;  %v7613_v51 = vld [vmem:[%s27450_s11 + $0x270] sm:$0xff]  ;;  %v7610_v16 = vld [vmem:[%s27450_s11 + $0x258] sm:$0xff] }
 0x4f1   : > { %v18009_v38 = vcombine.high %v7593_v29, %v7597_v34  ;;  %v7637_v15 = vld [vmem:[%s27450_s11 + $0x330] sm:$0xff]  ;;  %v7634_v35 = vld [vmem:[%s27450_s11 + $0x318] sm:$0xff] }
 0x4f2   : > { %10983 = vmatpush1.bf16.msra.mxu0 %v17960_v53  ;;  %v7606_v53 = vld [vmem:[%s27450_s11 + $0x238] sm:$0xff] }
 0x4f3   : > { %11147 = vmatpush1.bf16.msra.mxu1 %v17962_v0  ;;  %10984 = vmatprep.subr.bf16.mxu0 %v17969_v31  ;;  %v18008_v0 = vcombine.low %v7593_v29, %v7597_v34  ;;  %v18010_v31 = vcombine.low %v7594_v33, %v7598_v52  ;;  %v18019_v47 = vcombine.high %v7602_v46, %v7606_v53  ;;  %v7641_v34 = vld [vmem:[%s27450_s11 + $0x350] sm:$0xff]  ;;  %v7642_v52 = vld [vmem:[%s27450_s11 + $0x358] sm:$0xff] }
 0x4f4   : > { %11148 = vmatprep.subr.bf16.mxu1 %v17971_v63  ;;  %v18017_v63 = vcombine.high %v7601_v61, %v7605_v19  ;;  %v7645_v33 = vld [vmem:[%s27450_s11 + $0x370] sm:$0xff] }
 0x4f6   : > { %10985 = vmatpush1.bf16.msra.mxu0 %v17968_v54  ;;  %v7614_v54 = vld [vmem:[%s27450_s11 + $0x278] sm:$0xff] }
 0x4f7   : > { %11149 = vmatpush1.bf16.msra.mxu1 %v17970_v22  ;;  %10986 = vmatprep.subr.bf16.mxu0 %v17977_v55  ;;  %v18016_v22 = vcombine.low %v7601_v61, %v7605_v19  ;;  %v18018_v55 = vcombine.low %v7602_v46, %v7606_v53  ;;  %v18027_v58 = vcombine.high %v7610_v16, %v7614_v54  ;;  %v7649_v19 = vld [vmem:[%s27450_s11 + $0x390] sm:$0xff]  ;;  %v7650_v53 = vld [vmem:[%s27450_s11 + $0x398] sm:$0xff] }
 0x4f8   : > { %11150 = vmatprep.subr.bf16.mxu1 %v17979_v57  ;;  %v18025_v57 = vcombine.high %v7609_v49, %v7613_v51  ;;  %v7653_v46 = vld [vmem:[%s27450_s11 + $0x3b0] sm:$0xff] }
 0x4fa   : > { %10987 = vmatpush1.bf16.msra.mxu0 %v17976_v3  ;;  %v7622_v3 = vld [vmem:[%s27450_s11 + $0x2b8] sm:$0xff] }
 0x4fb   : > { %11151 = vmatpush1.bf16.msra.mxu1 %v17978_v4  ;;  %10988 = vmatprep.subr.bf16.mxu0 %v17985_v7  ;;  %v18024_v4 = vcombine.low %v7609_v49, %v7613_v51  ;;  %v18026_v7 = vcombine.low %v7610_v16, %v7614_v54  ;;  %v18035_v44 = vcombine.high %v7618_v2, %v7622_v3  ;;  %v7657_v51 = vld [vmem:[%s27450_s11 + $0x3d0] sm:$0xff]  ;;  %v7658_v54 = vld [vmem:[%s27450_s11 + $0x3d8] sm:$0xff] }
 0x4fc   : > { %11152 = vmatprep.subr.bf16.mxu1 %v17987_v26  ;;  %v18033_v26 = vcombine.high %v7617_v60, %v7621_v20  ;;  %v7661_v16 = vld [vmem:[%s27450_s11 + $0x3f0] sm:$0xff] }
 0x4fe   : > { %10989 = vmatpush1.bf16.msra.mxu0 %v17984_v9  ;;  %v7630_v9 = vld [vmem:[%s27450_s11 + $0x2f8] sm:$0xff] }
 0x4ff   : > { %11153 = vmatpush1.bf16.msra.mxu1 %v17986_v10  ;;  %10990 = vmatprep.subr.bf16.mxu0 %v17993_v11  ;;  %v18032_v10 = vcombine.low %v7617_v60, %v7621_v20  ;;  %v18034_v11 = vcombine.low %v7618_v2, %v7622_v3  ;;  %v18043_v13 = vcombine.high %v7626_v21, %v7630_v9  ;;  %v7665_v20 = vld [vmem:[%s27450_s11 + $0x410] sm:$0xff]  ;;  %v7666_v3 = vld [vmem:[%s27450_s11 + $0x418] sm:$0xff] }
 0x500   : > { %11154 = vmatprep.subr.bf16.mxu1 %v17995_v14  ;;  %v18041_v14 = vcombine.high %v7625_v8, %v7629_v23  ;;  %v7669_v2 = vld [vmem:[%s27450_s11 + $0x430] sm:$0xff] }
 0x502   : > { %10991 = vmatpush1.bf16.msra.mxu0 %v17992_v17  ;;  %v7638_v17 = vld [vmem:[%s27450_s11 + $0x338] sm:$0xff] }
 0x503   : > { %11155 = vmatpush1.bf16.msra.mxu1 %v17994_v24  ;;  %10992 = vmatprep.subr.bf16.mxu0 %v18001_v30  ;;  %v18040_v24 = vcombine.low %v7625_v8, %v7629_v23  ;;  %v18042_v30 = vcombine.low %v7626_v21, %v7630_v9  ;;  %v18051_v29 = vcombine.high %v7634_v35, %v7638_v17  ;;  %v7673_v23 = vld [vmem:[%s27450_s11 + $0x450] sm:$0xff] }
 0x504   : > { %11156 = vmatprep.subr.bf16.mxu1 %v18003_v25  ;;  %v18049_v25 = vcombine.high %v7633_v56, %v7637_v15  ;;  %v7677_v21 = vld [vmem:[%s27450_s11 + $0x470] sm:$0xff]  ;;  %v18080_v9 = vcombine.low %v7665_v20, %v7669_v2 }
 0x506   : > { %10993 = vmatpush1.bf16.msra.mxu0 %v18000_v37  ;;  %v7646_v37 = vld [vmem:[%s27450_s11 + $0x378] sm:$0xff] }
 0x507   : > { %11157 = vmatpush1.bf16.msra.mxu1 %v18002_v43  ;;  %10994 = vmatprep.subr.bf16.mxu0 %v18009_v38  ;;  %v18048_v43 = vcombine.low %v7633_v56, %v7637_v15  ;;  %v18050_v38 = vcombine.low %v7634_v35, %v7638_v17  ;;  %v18059_v61 = vcombine.high %v7642_v52, %v7646_v37  ;;  %v7681_v56 = vld [vmem:[%s27450_s11 + $0x490] sm:$0xff]  ;;  %v7682_v17 = vld [vmem:[%s27450_s11 + $0x498] sm:$0xff] }
 0x508   : > { %11158 = vmatprep.subr.bf16.mxu1 %v18011_v40  ;;  %v18057_v40 = vcombine.high %v7641_v34, %v7645_v33  ;;  %v7685_v15 = vld [vmem:[%s27450_s11 + $0x4b0] sm:$0xff] }
 0x50a   : > { %10995 = vmatpush1.bf16.msra.mxu0 %v18008_v0  ;;  %v7654_v0 = vld [vmem:[%s27450_s11 + $0x3b8] sm:$0xff] }
 0x50b   : > { %11159 = vmatpush1.bf16.msra.mxu1 %v18010_v31  ;;  %10996 = vmatprep.subr.bf16.mxu0 %v18017_v63  ;;  %v18056_v31 = vcombine.low %v7641_v34, %v7645_v33  ;;  %v18058_v63 = vcombine.low %v7642_v52, %v7646_v37  ;;  %v18067_v49 = vcombine.high %v7650_v53, %v7654_v0  ;;  %v7689_v33 = vld [vmem:[%s27450_s11 + $0x4d0] sm:$0xff]  ;;  %v7694_v37 = vld [vmem:[%s27450_s11 + $0x4f8] sm:$0xff] }
 0x50c   : > { %11160 = vmatprep.subr.bf16.mxu1 %v18019_v47  ;;  %v18065_v47 = vcombine.high %v7649_v19, %v7653_v46  ;;  %v7693_v52 = vld [vmem:[%s27450_s11 + $0x4f0] sm:$0xff] }
 0x50e   : > { %10997 = vmatpush1.bf16.msra.mxu0 %v18016_v22  ;;  %v7662_v22 = vld [vmem:[%s27450_s11 + $0x3f8] sm:$0xff] }
 0x50f   : > { %11161 = vmatpush1.bf16.msra.mxu1 %v18018_v55  ;;  %10998 = vmatprep.subr.bf16.mxu0 %v18025_v57  ;;  %v18064_v55 = vcombine.low %v7649_v19, %v7653_v46  ;;  %v18066_v57 = vcombine.low %v7650_v53, %v7654_v0  ;;  %v18075_v60 = vcombine.high %v7658_v54, %v7662_v22  ;;  %v7701_v19 = vld [vmem:[%s27450_s11 + $0x530] sm:$0xff]  ;;  %v7698_v46 = vld [vmem:[%s27450_s11 + $0x518] sm:$0xff] }
 0x510   : > { %11162 = vmatprep.subr.bf16.mxu1 %v18027_v58  ;;  %v18073_v58 = vcombine.high %v7657_v51, %v7661_v16  ;;  %v7702_v53 = vld [vmem:[%s27450_s11 + $0x538] sm:$0xff]  ;;  %v18104_v0 = vcombine.low %v7689_v33, %v7693_v52 }
 0x512   : > { %10999 = vmatpush1.bf16.msra.mxu0 %v18024_v4  ;;  %v7670_v4 = vld [vmem:[%s27450_s11 + $0x438] sm:$0xff] }
 0x513   : > { %11163 = vmatpush1.bf16.msra.mxu1 %v18026_v7  ;;  %11000 = vmatprep.subr.bf16.mxu0 %v18033_v26  ;;  %v18072_v7 = vcombine.low %v7657_v51, %v7661_v16  ;;  %v18074_v26 = vcombine.low %v7658_v54, %v7662_v22  ;;  %v18083_v8 = vcombine.high %v7666_v3, %v7670_v4  ;;  %v7709_v51 = vld [vmem:[%s27450_s11 + $0x570] sm:$0xff]  ;;  %v7706_v16 = vld [vmem:[%s27450_s11 + $0x558] sm:$0xff] }
 0x514   : > { %11164 = vmatprep.subr.bf16.mxu1 %v18035_v44  ;;  %v18081_v44 = vcombine.high %v7665_v20, %v7669_v2  ;;  %v7710_v54 = vld [vmem:[%s27450_s11 + $0x578] sm:$0xff]  ;;  %v7717_v20 = vld [vmem:[%s27450_s11 + $0x5b0] sm:$0xff] }
 0x515   : > { %v7714_v2 = vld [vmem:[%s27450_s11 + $0x598] sm:$0xff] }
 0x516   : > { %11001 = vmatpush1.bf16.msra.mxu0 %v18032_v10  ;;  %v7674_v10 = vld [vmem:[%s27450_s11 + $0x458] sm:$0xff] }
 0x517   : > { %11165 = vmatpush1.bf16.msra.mxu1 %v18034_v11  ;;  %11002 = vmatprep.subr.bf16.mxu0 %v18041_v14  ;;  %v7678_v11 = vld [vmem:[%s27450_s11 + $0x478] sm:$0xff]  ;;  %v18082_v14 = vcombine.low %v7666_v3, %v7670_v4 }
 0x518   : > { %11166 = vmatprep.subr.bf16.mxu1 %v18043_v13  ;;  %v18089_v13 = vcombine.high %v7673_v23, %v7677_v21  ;;  %v18091_v35 = vcombine.high %v7674_v10, %v7678_v11  ;;  %v7718_v3 = vld [vmem:[%s27450_s11 + $0x5b8] sm:$0xff] }
 0x51a   : > { %11003 = vmatpush1.bf16.msra.mxu0 %v18040_v24  ;;  %v7686_v24 = vld [vmem:[%s27450_s11 + $0x4b8] sm:$0xff] }
 0x51b   : > { %11167 = vmatpush1.bf16.msra.mxu1 %v18042_v30  ;;  %11004 = vmatprep.subr.bf16.mxu0 %v18049_v25  ;;  %v18088_v30 = vcombine.low %v7673_v23, %v7677_v21  ;;  %v18090_v25 = vcombine.low %v7674_v10, %v7678_v11  ;;  %v18099_v34 = vcombine.high %v7682_v17, %v7686_v24  ;;  %v7725_v23 = vld [vmem:[%s27450_s11 + $0x5f0] sm:$0xff]  ;;  %v7722_v21 = vld [vmem:[%s27450_s11 + $0x5d8] sm:$0xff] }
 0x51c   : > { %11168 = vmatprep.subr.bf16.mxu1 %v18051_v29  ;;  %v18097_v29 = vcombine.high %v7681_v56, %v7685_v15  ;;  %v18130_v11 = vcombine.low %v7714_v2, %v7718_v3 }
 0x51e   : > { %11005 = vmatpush1.bf16.msra.mxu0 %v18048_v43  ;;  %v18098_v43 = vcombine.low %v7682_v17, %v7686_v24  ;;  %v7734_v17 = vld [vmem:[%s27450_s11 + $0x638] sm:$0xff] }
 0x51f   : > { %11169 = vmatpush1.bf16.msra.mxu1 %v18050_v38  ;;  %11006 = vmatprep.subr.bf16.mxu0 %v18057_v40  ;;  %v18105_v38 = vcombine.high %v7689_v33, %v7693_v52  ;;  %v7741_v33 = vld [vmem:[%s27450_s11 + $0x670] sm:$0xff]  ;;  %v7738_v52 = vld [vmem:[%s27450_s11 + $0x658] sm:$0xff] }
 0x520   : > { %11170 = vmatprep.subr.bf16.mxu1 %v18059_v61  ;;  %v7697_v61 = vld [vmem:[%s27450_s11 + $0x510] sm:$0xff] }
 0x521   : > { %v18112_v22 = vcombine.low %v7697_v61, %v7701_v19 }
 0x522   : > { %11007 = vmatpush1.bf16.msra.mxu0 %v18056_v31 }
 0x523   : > { %11171 = vmatpush1.bf16.msra.mxu1 %v18058_v63  ;;  %11008 = vmatprep.subr.bf16.mxu0 %v18065_v47  ;;  %v18113_v63 = vcombine.high %v7697_v61, %v7701_v19  ;;  %v18115_v47 = vcombine.high %v7698_v46, %v7702_v53  ;;  %v7749_v61 = vld [vmem:[%s27450_s11 + $0x6b0] sm:$0xff]  ;;  %v7746_v19 = vld [vmem:[%s27450_s11 + $0x698] sm:$0xff] }
 0x524   : > { %11172 = vmatprep.subr.bf16.mxu1 %v18067_v49  ;;  %v7705_v49 = vld [vmem:[%s27450_s11 + $0x550] sm:$0xff] }
 0x525   : > { %v18120_v4 = vcombine.low %v7705_v49, %v7709_v51 }
 0x526   : > { %11009 = vmatpush1.bf16.msra.mxu0 %v18064_v55  ;;  %v18114_v55 = vcombine.low %v7698_v46, %v7702_v53  ;;  %v7750_v46 = vld [vmem:[%s27450_s11 + $0x6b8] sm:$0xff] }
 0x527   : > { %11173 = vmatpush1.bf16.msra.mxu1 %v18066_v57  ;;  %11010 = vmatprep.subr.bf16.mxu0 %v18073_v58  ;;  %v18121_v57 = vcombine.high %v7705_v49, %v7709_v51  ;;  %v18123_v58 = vcombine.high %v7706_v16, %v7710_v54  ;;  %v7757_v49 = vld [vmem:[%s27450_s11 + $0x6f0] sm:$0xff]  ;;  %v7754_v51 = vld [vmem:[%s27450_s11 + $0x6d8] sm:$0xff] }
 0x528   : > { %11174 = vmatprep.subr.bf16.mxu1 %v18075_v60  ;;  %v7713_v60 = vld [vmem:[%s27450_s11 + $0x590] sm:$0xff] }
 0x529   : > { %v18128_v10 = vcombine.low %v7713_v60, %v7717_v20 }
 0x52a   : > { %11011 = vmatpush1.bf16.msra.mxu0 %v18072_v7  ;;  %v18122_v7 = vcombine.low %v7706_v16, %v7710_v54  ;;  %v7758_v16 = vld [vmem:[%s27450_s11 + $0x6f8] sm:$0xff] }
 0x52b   : > { %11175 = vmatpush1.bf16.msra.mxu1 %v18074_v26  ;;  %11021 = vmatprep.subr.bf16.mxu0 %v18081_v44  ;;  %v18129_v26 = vcombine.high %v7713_v60, %v7717_v20  ;;  %v18131_v44 = vcombine.high %v7714_v2, %v7718_v3  ;;  %v7765_v60 = vld [vmem:[%s27450_s11 + $0x730] sm:$0xff]  ;;  %v7762_v20 = vld [vmem:[%s27450_s11 + $0x718] sm:$0xff] }
 0x52c   : > { %11185 = vmatprep.subr.bf16.mxu1 %v18083_v8  ;;  %v7721_v8 = vld [vmem:[%s27450_s11 + $0x5d0] sm:$0xff]  ;;  %v7766_v2 = vld [vmem:[%s27450_s11 + $0x738] sm:$0xff] }
 0x52d   : > { %11013 = vmatmul.mubr.bf16.vlgmr.msra.gmra.mrb[20].mxu0 %v23844_v1  ;;  %v18136_v24 = vcombine.low %v7721_v8, %v7725_v23 }
 0x52e   : > { %11177 = vmatmul.mubr.bf16.vlgmr.msra.gmra.mrb[20].mxu1 %v23844_v1  ;;  %11022 = vmatpush1.bf16.msra.mxu0 %v18080_v9  ;;  %v7690_v1 = vld [vmem:[%s27450_s11 + $0x4d8] sm:$0xff] }
 0x52f   : > { %11053 = vmatprep.mubr.bf16.mxu0 %v23852_v6  ;;  %11186 = vmatpush1.bf16.msra.mxu1 %v18082_v14  ;;  %v18107_v40 = vcombine.high %v7690_v1, %v7694_v37  ;;  %v18106_v31 = vcombine.low %v7690_v1, %v7694_v37  ;;  %v7726_v9 = vld [vmem:[%s27450_s11 + $0x5f8] sm:$0xff]  ;;  %v18137_v14 = vcombine.high %v7721_v8, %v7725_v23  ;;  %v7773_v8 = vld [vmem:[%s27450_s11 + $0x770] sm:$0xff] }
 0x530   : > { %11217 = vmatprep.mubr.bf16.mxu1 %v23852_v6  ;;  %11023 = vmatprep.subr.bf16.mxu0 %v18089_v13  ;;  %v18096_v6 = vcombine.low %v7681_v56, %v7685_v15  ;;  %v18139_v13 = vcombine.high %v7722_v21, %v7726_v9  ;;  %v7729_v56 = vld [vmem:[%s27450_s11 + $0x610] sm:$0xff]  ;;  %v7742_v1 = vld [vmem:[%s27450_s11 + $0x678] sm:$0xff] }
 0x531   : > { %11187 = vmatprep.subr.bf16.mxu1 %v18091_v35  ;;  %v7733_v15 = vld [vmem:[%s27450_s11 + $0x630] sm:$0xff]  ;;  %v7730_v35 = vld [vmem:[%s27450_s11 + $0x618] sm:$0xff] }
 0x532   : > { %11024 = vmatpush1.bf16.msra.mxu0 %v18088_v30  ;;  %v18138_v30 = vcombine.low %v7722_v21, %v7726_v9  ;;  %v18144_v37 = vcombine.low %v7729_v56, %v7733_v15  ;;  %v7770_v23 = vld [vmem:[%s27450_s11 + $0x758] sm:$0xff] }
 0x533   : > { %11188 = vmatpush1.bf16.msra.mxu1 %v18090_v25  ;;  %11025 = vmatprep.subr.bf16.mxu0 %v18097_v29  ;;  %v18145_v25 = vcombine.high %v7729_v56, %v7733_v15  ;;  %v18147_v29 = vcombine.high %v7730_v35, %v7734_v17  ;;  %v7774_v21 = vld [vmem:[%s27450_s11 + $0x778] sm:$0xff]  ;;  %v7781_v56 = vld [vmem:[%s27450_s11 + $0x7b0] sm:$0xff] }
 0x534   : > { %11189 = vmatprep.subr.bf16.mxu1 %v18099_v34  ;;  %v7737_v34 = vld [vmem:[%s27450_s11 + $0x650] sm:$0xff]  ;;  %v7778_v15 = vld [vmem:[%s27450_s11 + $0x798] sm:$0xff] }
 0x535   : > { %v18152_v53 = vcombine.low %v7737_v34, %v7741_v33 }
 0x536   : > { %11026 = vmatpush1.bf16.msra.mxu0 %v18096_v6  ;;  %v18146_v6 = vcombine.low %v7730_v35, %v7734_v17  ;;  %v7782_v35 = vld [vmem:[%s27450_s11 + $0x7b8] sm:$0xff] }
 0x537   : > { %11190 = vmatpush1.bf16.msra.mxu1 %v18098_v43  ;;  %11027 = vmatprep.subr.bf16.mxu0 %v18105_v38  ;;  %v18153_v43 = vcombine.high %v7737_v34, %v7741_v33  ;;  %v18155_v38 = vcombine.high %v7738_v52, %v7742_v1  ;;  %v7789_v34 = vld [vmem:[%s27450_s11 + $0x7f0] sm:$0xff]  ;;  %v7786_v33 = vld [vmem:[%s27450_s11 + $0x7d8] sm:$0xff] }
 0x538   : > { %11191 = vmatprep.subr.bf16.mxu1 %v18107_v40  ;;  %v7745_v40 = vld [vmem:[%s27450_s11 + $0x690] sm:$0xff] }
 0x539   : > { %v18160_v54 = vcombine.low %v7745_v40, %v7749_v61 }
 0x53a   : > { %11028 = vmatpush1.bf16.msra.mxu0 %v18104_v0  ;;  %v18154_v0 = vcombine.low %v7738_v52, %v7742_v1  ;;  %v7790_v52 = vld [vmem:[%s27450_s11 + $0x7f8] sm:$0xff] }
 0x53b   : > { %11192 = vmatpush1.bf16.msra.mxu1 %v18106_v31  ;;  %11029 = vmatprep.subr.bf16.mxu0 %v18113_v63  ;;  %v18161_v31 = vcombine.high %v7745_v40, %v7749_v61  ;;  %v18163_v63 = vcombine.high %v7746_v19, %v7750_v46  ;;  %v7797_v40 = vld [vmem:[%s27450_s11 + $0x830] sm:$0xff]  ;;  %v7794_v61 = vld [vmem:[%s27450_s11 + $0x818] sm:$0xff] }
 0x53c   : > { %11193 = vmatprep.subr.bf16.mxu1 %v18115_v47  ;;  %v7753_v47 = vld [vmem:[%s27450_s11 + $0x6d0] sm:$0xff] }
 0x53d   : > { %v18168_v3 = vcombine.low %v7753_v47, %v7757_v49 }
 0x53e   : > { %11030 = vmatpush1.bf16.msra.mxu0 %v18112_v22  ;;  %v18162_v22 = vcombine.low %v7746_v19, %v7750_v46  ;;  %v7798_v19 = vld [vmem:[%s27450_s11 + $0x838] sm:$0xff] }
 0x53f   : > { %11194 = vmatpush1.bf16.msra.mxu1 %v18114_v55  ;;  %11031 = vmatprep.subr.bf16.mxu0 %v18121_v57  ;;  %v18169_v55 = vcombine.high %v7753_v47, %v7757_v49  ;;  %v18171_v57 = vcombine.high %v7754_v51, %v7758_v16  ;;  %v7805_v47 = vld [vmem:[%s27450_s11 + $0x870] sm:$0xff] }
 0x540   : > { %11195 = vmatprep.subr.bf16.mxu1 %v18123_v58  ;;  %v7761_v58 = vld [vmem:[%s27450_s11 + $0x710] sm:$0xff] }
 0x541   : > { %v18176_v9 = vcombine.low %v7761_v58, %v7765_v60 }
 0x542   : > { %11032 = vmatpush1.bf16.msra.mxu0 %v18120_v4  ;;  %v18170_v4 = vcombine.low %v7754_v51, %v7758_v16  ;;  %v7802_v51 = vld [vmem:[%s27450_s11 + $0x858] sm:$0xff] }
 0x543   : > { %11196 = vmatpush1.bf16.msra.mxu1 %v18122_v7  ;;  %11033 = vmatprep.subr.bf16.mxu0 %v18129_v26  ;;  %v18177_v7 = vcombine.high %v7761_v58, %v7765_v60  ;;  %v18179_v26 = vcombine.high %v7762_v20, %v7766_v2  ;;  %v7806_v16 = vld [vmem:[%s27450_s11 + $0x878] sm:$0xff] }
 0x544   : > { %11197 = vmatprep.subr.bf16.mxu1 %v18131_v44  ;;  %v7769_v44 = vld [vmem:[%s27450_s11 + $0x750] sm:$0xff]  ;;  %v18219_v58 = vcombine.high %v7802_v51, %v7806_v16  ;;  %v7810_v60 = vld [vmem:[%s27450_s11 + $0x898] sm:$0xff] }
 0x545   : > { %v18184_v17 = vcombine.low %v7769_v44, %v7773_v8 }
 0x546   : > { %11034 = vmatpush1.bf16.msra.mxu0 %v18128_v10  ;;  %v18178_v10 = vcombine.low %v7762_v20, %v7766_v2  ;;  %v7814_v20 = vld [vmem:[%s27450_s11 + $0x8b8] sm:$0xff] }
 0x547   : > { %11198 = vmatpush1.bf16.msra.mxu1 %v18130_v11  ;;  %11035 = vmatprep.subr.bf16.mxu0 %v18137_v14  ;;  %v18185_v11 = vcombine.high %v7769_v44, %v7773_v8  ;;  %v18187_v14 = vcombine.high %v7770_v23, %v7774_v21  ;;  %v7821_v44 = vld [vmem:[%s27450_s11 + $0x8f0] sm:$0xff]  ;;  %v7822_v8 = vld [vmem:[%s27450_s11 + $0x8f8] sm:$0xff] }
 0x548   : > { %11199 = vmatprep.subr.bf16.mxu1 %v18139_v13  ;;  %v7777_v13 = vld [vmem:[%s27450_s11 + $0x790] sm:$0xff] }
 0x549   : > { %v18192_v1 = vcombine.low %v7777_v13, %v7781_v56 }
 0x54a   : > { %11036 = vmatpush1.bf16.msra.mxu0 %v18136_v24  ;;  %v18186_v24 = vcombine.low %v7770_v23, %v7774_v21  ;;  %v18226_v23 = vcombine.low %v7810_v60, %v7814_v20 }
 0x54b   : > { %11200 = vmatpush1.bf16.msra.mxu1 %v18138_v30  ;;  %11037 = vmatprep.subr.bf16.mxu0 %v18145_v25  ;;  %v18193_v30 = vcombine.high %v7777_v13, %v7781_v56  ;;  %v18195_v25 = vcombine.high %v7778_v15, %v7782_v35  ;;  %v7830_v13 = vld [vmem:[%s27450_s11 + $0x938] sm:$0xff] }
 0x54c   : > { %11201 = vmatprep.subr.bf16.mxu1 %v18147_v29  ;;  %v7785_v29 = vld [vmem:[%s27450_s11 + $0x7d0] sm:$0xff] }
 0x54d   : > { %v18200_v46 = vcombine.low %v7785_v29, %v7789_v34 }
 0x54e   : > { %11038 = vmatpush1.bf16.msra.mxu0 %v18144_v37  ;;  %v18194_v37 = vcombine.low %v7778_v15, %v7782_v35 }
 0x54f   : > { %11202 = vmatpush1.bf16.msra.mxu1 %v18146_v6  ;;  %11039 = vmatprep.subr.bf16.mxu0 %v18153_v43  ;;  %v18201_v6 = vcombine.high %v7785_v29, %v7789_v34  ;;  %v18203_v43 = vcombine.high %v7786_v33, %v7790_v52  ;;  %v7838_v29 = vld [vmem:[%s27450_s11 + $0x978] sm:$0xff] }
 0x550   : > { %11203 = vmatprep.subr.bf16.mxu1 %v18155_v38  ;;  %v7793_v38 = vld [vmem:[%s27450_s11 + $0x810] sm:$0xff] }
 0x551   : > { %v18208_v49 = vcombine.low %v7793_v38, %v7797_v40 }
 0x552   : > { %11040 = vmatpush1.bf16.msra.mxu0 %v18152_v53  ;;  %v18202_v53 = vcombine.low %v7786_v33, %v7790_v52 }
 0x553   : > { %11204 = vmatpush1.bf16.msra.mxu1 %v18154_v0  ;;  %11041 = vmatprep.subr.bf16.mxu0 %v18161_v31  ;;  %v18209_v0 = vcombine.high %v7793_v38, %v7797_v40  ;;  %v18211_v31 = vcombine.high %v7794_v61, %v7798_v19  ;;  %v7846_v38 = vld [vmem:[%s27450_s11 + $0x9b8] sm:$0xff] }
 0x554   : > { %11205 = vmatprep.subr.bf16.mxu1 %v18163_v63  ;;  %v7801_v63 = vld [vmem:[%s27450_s11 + $0x850] sm:$0xff] }
 0x555   : > { %v18216_v2 = vcombine.low %v7801_v63, %v7805_v47 }
 0x556   : > { %11042 = vmatpush1.bf16.msra.mxu0 %v18160_v54  ;;  %v18210_v54 = vcombine.low %v7794_v61, %v7798_v19 }
 0x557   : > { %11206 = vmatpush1.bf16.msra.mxu1 %v18162_v22  ;;  %11043 = vmatprep.subr.bf16.mxu0 %v18169_v55  ;;  %v18217_v22 = vcombine.high %v7801_v63, %v7805_v47  ;;  %v7809_v55 = vld [vmem:[%s27450_s11 + $0x890] sm:$0xff]  ;;  %v7854_v63 = vld [vmem:[%s27450_s11 + $0x9f8] sm:$0xff] }
 0x558   : > { %11207 = vmatprep.subr.bf16.mxu1 %v18171_v57  ;;  %v7813_v57 = vld [vmem:[%s27450_s11 + $0x8b0] sm:$0xff] }
 0x55a   : > { %11044 = vmatpush1.bf16.msra.mxu0 %v18168_v3  ;;  %v18218_v3 = vcombine.low %v7802_v51, %v7806_v16 }
 0x55b   : > { %11208 = vmatpush1.bf16.msra.mxu1 %v18170_v4  ;;  %11045 = vmatprep.subr.bf16.mxu0 %v18177_v7  ;;  %v18225_v4 = vcombine.high %v7809_v55, %v7813_v57  ;;  %v18227_v7 = vcombine.high %v7810_v60, %v7814_v20 }
 0x55c   : > { %11209 = vmatprep.subr.bf16.mxu1 %v18179_v26  ;;  %v7817_v26 = vld [vmem:[%s27450_s11 + $0x8d0] sm:$0xff] }
 0x55d   : > { %v18233_v21 = vcombine.high %v7817_v26, %v7821_v44  ;;  %v18232_v56 = vcombine.low %v7817_v26, %v7821_v44  ;;  %v7870_v26 = vld [vmem:[%s27450_s11 + $0xa78] sm:$0xff] }
 0x55e   : > { %11046 = vmatpush1.bf16.msra.mxu0 %v18176_v9 }
 0x55f   : > { %11210 = vmatpush1.bf16.msra.mxu1 %v18178_v10  ;;  %11047 = vmatprep.subr.bf16.mxu0 %v18185_v11  ;;  %v7825_v10 = vld [vmem:[%s27450_s11 + $0x910] sm:$0xff] }
 0x560   : > { %11211 = vmatprep.subr.bf16.mxu1 %v18187_v14  ;;  %v7829_v11 = vld [vmem:[%s27450_s11 + $0x930] sm:$0xff]  ;;  %v7826_v14 = vld [vmem:[%s27450_s11 + $0x918] sm:$0xff] }
 0x561   : > { %v18241_v35 = vcombine.high %v7825_v10, %v7829_v11  ;;  %v18240_v34 = vcombine.low %v7825_v10, %v7829_v11  ;;  %v18242_v33 = vcombine.low %v7826_v14, %v7830_v13  ;;  %v7878_v10 = vld [vmem:[%s27450_s11 + $0xab8] sm:$0xff] }
 0x562   : > { %11048 = vmatpush1.bf16.msra.mxu0 %v18184_v17  ;;  %v18243_v17 = vcombine.high %v7826_v14, %v7830_v13 }
 0x563   : > { %11212 = vmatpush1.bf16.msra.mxu1 %v18186_v24  ;;  %11049 = vmatprep.subr.bf16.mxu0 %v18193_v30  ;;  %v7833_v24 = vld [vmem:[%s27450_s11 + $0x950] sm:$0xff] }
 0x564   : > { %11213 = vmatprep.subr.bf16.mxu1 %v18195_v25  ;;  %v7837_v30 = vld [vmem:[%s27450_s11 + $0x970] sm:$0xff]  ;;  %v7834_v25 = vld [vmem:[%s27450_s11 + $0x958] sm:$0xff] }
 0x565   : > { %v18249_v52 = vcombine.high %v7833_v24, %v7837_v30  ;;  %v18248_v40 = vcombine.low %v7833_v24, %v7837_v30  ;;  %v18250_v61 = vcombine.low %v7834_v25, %v7838_v29  ;;  %v7886_v24 = vld [vmem:[%s27450_s11 + $0xaf8] sm:$0xff] }
 0x566   : > { %11050 = vmatpush1.bf16.msra.mxu0 %v18192_v1  ;;  %v18251_v1 = vcombine.high %v7834_v25, %v7838_v29 }
 0x567   : > { %11214 = vmatpush1.bf16.msra.mxu1 %v18194_v37  ;;  %11051 = vmatprep.subr.bf16.mxu0 %v18201_v6  ;;  %v7841_v37 = vld [vmem:[%s27450_s11 + $0x990] sm:$0xff] }
 0x568   : > { %11215 = vmatprep.subr.bf16.mxu1 %v18203_v43  ;;  %v7845_v6 = vld [vmem:[%s27450_s11 + $0x9b0] sm:$0xff]  ;;  %v7842_v43 = vld [vmem:[%s27450_s11 + $0x998] sm:$0xff] }
 0x569   : > { %v18257_v19 = vcombine.high %v7841_v37, %v7845_v6  ;;  %v18256_v47 = vcombine.low %v7841_v37, %v7845_v6  ;;  %v7894_v37 = vld [vmem:[%s27450_s11 + $0xb38] sm:$0xff] }
 0x56a   : > { %11052 = vmatpush1.bf16.msra.mxu0 %v18200_v46  ;;  %v18259_v46 = vcombine.high %v7842_v43, %v7846_v38 }
 0x56b   : > { %11216 = vmatpush1.bf16.msra.mxu1 %v18202_v53  ;;  %11062 = vmatprep.subr.bf16.mxu0 %v18209_v0  ;;  %v7849_v53 = vld [vmem:[%s27450_s11 + $0x9d0] sm:$0xff] }
 0x56c   : > { %11226 = vmatprep.subr.bf16.mxu1 %v18211_v31  ;;  %v7853_v0 = vld [vmem:[%s27450_s11 + $0x9f0] sm:$0xff]  ;;  %v7850_v31 = vld [vmem:[%s27450_s11 + $0x9d8] sm:$0xff] }
 0x56d   : > { %11054 = vmatmul.mubr.bf16.vlgmr.msra.gmra.mrb[20].mxu0 %v24047_v27  ;;  %v18265_v51 = vcombine.high %v7849_v53, %v7853_v0  ;;  %v18267_v16 = vcombine.high %v7850_v31, %v7854_v63  ;;  %v18266_v60 = vcombine.low %v7850_v31, %v7854_v63 }
 0x56e   : > { %11218 = vmatmul.mubr.bf16.vlgmr.msra.gmra.mrb[20].mxu1 %v24047_v27  ;;  %11063 = vmatpush1.bf16.msra.mxu0 %v18208_v49  ;;  %v7818_v27 = vld [vmem:[%s27450_s11 + $0x8d8] sm:$0xff]  ;;  %v18258_v49 = vcombine.low %v7842_v43, %v7846_v38 }
 0x56f   : > { %11094 = vmatprep.mubr.bf16.mxu0 %v24251_v42  ;;  %11227 = vmatpush1.bf16.msra.mxu1 %v18210_v54  ;;  %v18235_v9 = vcombine.high %v7818_v27, %v7822_v8  ;;  %v18234_v15 = vcombine.low %v7818_v27, %v7822_v8  ;;  %v7857_v54 = vld [vmem:[%s27450_s11 + $0xa10] sm:$0xff] }
 0x570   : > { %11258 = vmatprep.mubr.bf16.mxu1 %v24251_v42  ;;  %11064 = vmatprep.subr.bf16.mxu0 %v18217_v22  ;;  %v18224_v42 = vcombine.low %v7809_v55, %v7813_v57  ;;  %v7861_v22 = vld [vmem:[%s27450_s11 + $0xa30] sm:$0xff]  ;;  %v7858_v55 = vld [vmem:[%s27450_s11 + $0xa18] sm:$0xff] }
 0x571   : > { %11228 = vmatprep.subr.bf16.mxu1 %v18219_v58  ;;  %v7862_v57 = vld [vmem:[%s27450_s11 + $0xa38] sm:$0xff]  ;;  %v18264_v58 = vcombine.low %v7849_v53, %v7853_v0  ;;  %v18273_v20 = vcombine.high %v7857_v54, %v7861_v22  ;;  %v18272_v44 = vcombine.low %v7857_v54, %v7861_v22 }
 0x572   : > { %11065 = vmatpush1.bf16.msra.mxu0 %v18216_v2  ;;  %v18275_v2 = vcombine.high %v7858_v55, %v7862_v57  ;;  %v18274_v27 = vcombine.low %v7858_v55, %v7862_v57  ;;  %v7902_v53 = vld [vmem:[%s27450_s11 + $0xb78] sm:$0xff] }
 0x573   : > { %11229 = vmatpush1.bf16.msra.mxu1 %v18218_v3  ;;  %11066 = vmatprep.subr.bf16.mxu0 %v18225_v4  ;;  %v7865_v3 = vld [vmem:[%s27450_s11 + $0xa50] sm:$0xff]  ;;  %v7910_v54 = vld [vmem:[%s27450_s11 + $0xbb8] sm:$0xff] }
 0x574   : > { %11230 = vmatprep.subr.bf16.mxu1 %v18227_v7  ;;  %v7869_v4 = vld [vmem:[%s27450_s11 + $0xa70] sm:$0xff]  ;;  %v7866_v7 = vld [vmem:[%s27450_s11 + $0xa58] sm:$0xff] }
 0x575   : > { %v18281_v8 = vcombine.high %v7865_v3, %v7869_v4  ;;  %v18280_v11 = vcombine.low %v7865_v3, %v7869_v4  ;;  %v18282_v14 = vcombine.low %v7866_v7, %v7870_v26  ;;  %v7918_v3 = vld [vmem:[%s27450_s11 + $0xbf8] sm:$0xff] }
 0x576   : > { %11067 = vmatpush1.bf16.msra.mxu0 %v18224_v42  ;;  %v18283_v42 = vcombine.high %v7866_v7, %v7870_v26 }
 0x577   : > { %11231 = vmatpush1.bf16.msra.mxu1 %v18226_v23  ;;  %11068 = vmatprep.subr.bf16.mxu0 %v18233_v21  ;;  %v7873_v23 = vld [vmem:[%s27450_s11 + $0xa90] sm:$0xff] }
 0x578   : > { %11232 = vmatprep.subr.bf16.mxu1 %v18235_v9  ;;  %v7877_v21 = vld [vmem:[%s27450_s11 + $0xab0] sm:$0xff]  ;;  %v7874_v9 = vld [vmem:[%s27450_s11 + $0xa98] sm:$0xff] }
 0x579   : > { %v18289_v13 = vcombine.high %v7873_v23, %v7877_v21  ;;  %v18288_v30 = vcombine.low %v7873_v23, %v7877_v21  ;;  %v18290_v25 = vcombine.low %v7874_v9, %v7878_v10  ;;  %v7926_v23 = vld [vmem:[%s27450_s11 + $0xc38] sm:$0xff] }
 0x57a   : > { %11069 = vmatpush1.bf16.msra.mxu0 %v18232_v56  ;;  %v18291_v56 = vcombine.high %v7874_v9, %v7878_v10 }
 0x57b   : > { %11233 = vmatpush1.bf16.msra.mxu1 %v18234_v15  ;;  %11070 = vmatprep.subr.bf16.mxu0 %v18241_v35  ;;  %v7881_v15 = vld [vmem:[%s27450_s11 + $0xad0] sm:$0xff] }
 0x57c   : > { %11234 = vmatprep.subr.bf16.mxu1 %v18243_v17  ;;  %v7885_v35 = vld [vmem:[%s27450_s11 + $0xaf0] sm:$0xff]  ;;  %v7882_v17 = vld [vmem:[%s27450_s11 + $0xad8] sm:$0xff] }
 0x57d   : > { %v18297_v29 = vcombine.high %v7881_v15, %v7885_v35  ;;  %v18296_v6 = vcombine.low %v7881_v15, %v7885_v35  ;;  %v18298_v43 = vcombine.low %v7882_v17, %v7886_v24  ;;  %v7930_v15 = vld [vmem:[%s27450_s11 + $0xc58] sm:$0xff] }
 0x57e   : > { %11071 = vmatpush1.bf16.msra.mxu0 %v18240_v34  ;;  %v18299_v34 = vcombine.high %v7882_v17, %v7886_v24  ;;  %v7934_v35 = vld [vmem:[%s27450_s11 + $0xc78] sm:$0xff] }
 0x57f   : > { %11235 = vmatpush1.bf16.msra.mxu1 %v18242_v33  ;;  %11072 = vmatprep.subr.bf16.mxu0 %v18249_v52  ;;  %v7889_v33 = vld [vmem:[%s27450_s11 + $0xb10] sm:$0xff] }
 0x580   : > { %11236 = vmatprep.subr.bf16.mxu1 %v18251_v1  ;;  %v7893_v52 = vld [vmem:[%s27450_s11 + $0xb30] sm:$0xff]  ;;  %v7890_v1 = vld [vmem:[%s27450_s11 + $0xb18] sm:$0xff] }
 0x581   : > { %v18305_v38 = vcombine.high %v7889_v33, %v7893_v52  ;;  %v18304_v0 = vcombine.low %v7889_v33, %v7893_v52  ;;  %v18306_v31 = vcombine.low %v7890_v1, %v7894_v37  ;;  %v7942_v33 = vld [vmem:[%s27450_s11 + $0xcb8] sm:$0xff] }
 0x582   : > { %11073 = vmatpush1.bf16.msra.mxu0 %v18248_v40  ;;  %v18307_v40 = vcombine.high %v7890_v1, %v7894_v37  ;;  %v18346_v1 = vcombine.low %v7930_v15, %v7934_v35 }
 0x583   : > { %11237 = vmatpush1.bf16.msra.mxu1 %v18250_v61  ;;  %11074 = vmatprep.subr.bf16.mxu0 %v18257_v19  ;;  %v7897_v61 = vld [vmem:[%s27450_s11 + $0xb50] sm:$0xff] }
 0x584   : > { %11238 = vmatprep.subr.bf16.mxu1 %v18259_v46  ;;  %v7901_v19 = vld [vmem:[%s27450_s11 + $0xb70] sm:$0xff]  ;;  %v7898_v46 = vld [vmem:[%s27450_s11 + $0xb58] sm:$0xff] }
 0x585   : > { %v18313_v63 = vcombine.high %v7897_v61, %v7901_v19  ;;  %v18312_v22 = vcombine.low %v7897_v61, %v7901_v19  ;;  %v18314_v55 = vcombine.low %v7898_v46, %v7902_v53 }
 0x586   : > { %11075 = vmatpush1.bf16.msra.mxu0 %v18256_v47  ;;  %v18315_v47 = vcombine.high %v7898_v46, %v7902_v53  ;;  %v7953_v53 = vld [vmem:[%s27450_s11 + $0xd10] sm:$0xff] }
 0x587   : > { %11239 = vmatpush1.bf16.msra.mxu1 %v18258_v49  ;;  %11076 = vmatprep.subr.bf16.mxu0 %v18265_v51  ;;  %v7905_v49 = vld [vmem:[%s27450_s11 + $0xb90] sm:$0xff] }
 0x588   : > { %11240 = vmatprep.subr.bf16.mxu1 %v18267_v16  ;;  %v7909_v51 = vld [vmem:[%s27450_s11 + $0xbb0] sm:$0xff]  ;;  %v7906_v16 = vld [vmem:[%s27450_s11 + $0xb98] sm:$0xff] }
 0x589   : > { %v18321_v57 = vcombine.high %v7905_v49, %v7909_v51  ;;  %v18320_v4 = vcombine.low %v7905_v49, %v7909_v51  ;;  %v18322_v7 = vcombine.low %v7906_v16, %v7910_v54 }
 0x58a   : > { %11077 = vmatpush1.bf16.msra.mxu0 %v18264_v58  ;;  %v18323_v58 = vcombine.high %v7906_v16, %v7910_v54  ;;  %v7961_v54 = vld [vmem:[%s27450_s11 + $0xd50] sm:$0xff] }
 0x58b   : > { %11241 = vmatpush1.bf16.msra.mxu1 %v18266_v60  ;;  %11078 = vmatprep.subr.bf16.mxu0 %v18273_v20  ;;  %v7913_v60 = vld [vmem:[%s27450_s11 + $0xbd0] sm:$0xff] }
 0x58c   : > { %11242 = vmatprep.subr.bf16.mxu1 %v18275_v2  ;;  %v7917_v20 = vld [vmem:[%s27450_s11 + $0xbf0] sm:$0xff]  ;;  %v7914_v2 = vld [vmem:[%s27450_s11 + $0xbd8] sm:$0xff] }
 0x58d   : > { %v18329_v26 = vcombine.high %v7913_v60, %v7917_v20  ;;  %v18328_v21 = vcombine.low %v7913_v60, %v7917_v20  ;;  %v18330_v9 = vcombine.low %v7914_v2, %v7918_v3 }
 0x58e   : > { %11079 = vmatpush1.bf16.msra.mxu0 %v18272_v44  ;;  %v18331_v44 = vcombine.high %v7914_v2, %v7918_v3  ;;  %v7969_v3 = vld [vmem:[%s27450_s11 + $0xd90] sm:$0xff] }
 0x58f   : > { %11243 = vmatpush1.bf16.msra.mxu1 %v18274_v27  ;;  %11080 = vmatprep.subr.bf16.mxu0 %v18281_v8  ;;  %v7921_v27 = vld [vmem:[%s27450_s11 + $0xc10] sm:$0xff] }
 0x590   : > { %11244 = vmatprep.subr.bf16.mxu1 %v18283_v42  ;;  %v7925_v8 = vld [vmem:[%s27450_s11 + $0xc30] sm:$0xff]  ;;  %v7922_v42 = vld [vmem:[%s27450_s11 + $0xc18] sm:$0xff] }
 0x591   : > { %v18337_v10 = vcombine.high %v7921_v27, %v7925_v8  ;;  %v18338_v17 = vcombine.low %v7922_v42, %v7926_v23 }
 0x592   : > { %11081 = vmatpush1.bf16.msra.mxu0 %v18280_v11  ;;  %v18339_v11 = vcombine.high %v7922_v42, %v7926_v23 }
 0x593   : > { %11245 = vmatpush1.bf16.msra.mxu1 %v18282_v14  ;;  %11082 = vmatprep.subr.bf16.mxu0 %v18289_v13  ;;  %v7929_v14 = vld [vmem:[%s27450_s11 + $0xc50] sm:$0xff] }
 0x594   : > { %11246 = vmatprep.subr.bf16.mxu1 %v18291_v56  ;;  %v7933_v13 = vld [vmem:[%s27450_s11 + $0xc70] sm:$0xff]  ;;  %v18336_v56 = vcombine.low %v7921_v27, %v7925_v8 }
 0x595   : > { %v18345_v24 = vcombine.high %v7929_v14, %v7933_v13  ;;  %v18344_v52 = vcombine.low %v7929_v14, %v7933_v13  ;;  %v7978_v13 = vld [vmem:[%s27450_s11 + $0xdd8] sm:$0xff] }
 0x596   : > { %11083 = vmatpush1.bf16.msra.mxu0 %v18288_v30  ;;  %v7937_v30 = vld [vmem:[%s27450_s11 + $0xc90] sm:$0xff] }
 0x597   : > { %11247 = vmatpush1.bf16.msra.mxu1 %v18290_v25  ;;  %11084 = vmatprep.subr.bf16.mxu0 %v18297_v29  ;;  %v7941_v25 = vld [vmem:[%s27450_s11 + $0xcb0] sm:$0xff]  ;;  %v18347_v29 = vcombine.high %v7930_v15, %v7934_v35 }
 0x598   : > { %11248 = vmatprep.subr.bf16.mxu1 %v18299_v34  ;;  %v7938_v34 = vld [vmem:[%s27450_s11 + $0xc98] sm:$0xff]  ;;  %v18353_v37 = vcombine.high %v7937_v30, %v7941_v25 }
 0x599   : > { %v18354_v61 = vcombine.low %v7938_v34, %v7942_v33 }
 0x59a   : > { %11085 = vmatpush1.bf16.msra.mxu0 %v18296_v6  ;;  %v18355_v6 = vcombine.high %v7938_v34, %v7942_v33  ;;  %v7985_v33 = vld [vmem:[%s27450_s11 + $0xe10] sm:$0xff] }
 0x59b   : > { %11249 = vmatpush1.bf16.msra.mxu1 %v18298_v43  ;;  %11086 = vmatprep.subr.bf16.mxu0 %v18305_v38  ;;  %v7945_v43 = vld [vmem:[%s27450_s11 + $0xcd0] sm:$0xff] }
 0x59c   : > { %11250 = vmatprep.subr.bf16.mxu1 %v18307_v40  ;;  %v7949_v38 = vld [vmem:[%s27450_s11 + $0xcf0] sm:$0xff]  ;;  %v7950_v40 = vld [vmem:[%s27450_s11 + $0xcf8] sm:$0xff] }
 0x59d   : > { %v18361_v19 = vcombine.high %v7945_v43, %v7949_v38 }
 0x59e   : > { %11087 = vmatpush1.bf16.msra.mxu0 %v18304_v0  ;;  %v7957_v0 = vld [vmem:[%s27450_s11 + $0xd30] sm:$0xff] }
 0x59f   : > { %11251 = vmatpush1.bf16.msra.mxu1 %v18306_v31  ;;  %11088 = vmatprep.subr.bf16.mxu0 %v18313_v63  ;;  %v7954_v31 = vld [vmem:[%s27450_s11 + $0xd18] sm:$0xff]  ;;  %v18369_v51 = vcombine.high %v7953_v53, %v7957_v0 }
 0x5a0   : > { %11252 = vmatprep.subr.bf16.mxu1 %v18315_v47  ;;  %v7958_v63 = vld [vmem:[%s27450_s11 + $0xd38] sm:$0xff]  ;;  %v18360_v47 = vcombine.low %v7945_v43, %v7949_v38 }
 0x5a1   : > { %v18371_v16 = vcombine.high %v7954_v31, %v7958_v63  ;;  %v18370_v60 = vcombine.low %v7954_v31, %v7958_v63  ;;  %v8001_v63 = vld [vmem:[%s27450_s11 + $0xe90] sm:$0xff] }
 0x5a2   : > { %11089 = vmatpush1.bf16.msra.mxu0 %v18312_v22  ;;  %v7965_v22 = vld [vmem:[%s27450_s11 + $0xd70] sm:$0xff] }
 0x5a3   : > { %11253 = vmatpush1.bf16.msra.mxu1 %v18314_v55  ;;  %11090 = vmatprep.subr.bf16.mxu0 %v18321_v57  ;;  %v7962_v55 = vld [vmem:[%s27450_s11 + $0xd58] sm:$0xff]  ;;  %v18377_v20 = vcombine.high %v7961_v54, %v7965_v22 }
 0x5a4   : > { %11254 = vmatprep.subr.bf16.mxu1 %v18323_v58  ;;  %v7966_v57 = vld [vmem:[%s27450_s11 + $0xd78] sm:$0xff]  ;;  %v18368_v58 = vcombine.low %v7953_v53, %v7957_v0 }
 0x5a5   : > { %v18379_v2 = vcombine.high %v7962_v55, %v7966_v57  ;;  %v18378_v27 = vcombine.low %v7962_v55, %v7966_v57  ;;  %v8009_v57 = vld [vmem:[%s27450_s11 + $0xed0] sm:$0xff] }
 0x5a6   : > { %11091 = vmatpush1.bf16.msra.mxu0 %v18320_v4  ;;  %v7973_v4 = vld [vmem:[%s27450_s11 + $0xdb0] sm:$0xff] }
 0x5a7   : > { %11255 = vmatpush1.bf16.msra.mxu1 %v18322_v7  ;;  %11092 = vmatprep.subr.bf16.mxu0 %v18329_v26  ;;  %v7970_v7 = vld [vmem:[%s27450_s11 + $0xd98] sm:$0xff]  ;;  %v18385_v8 = vcombine.high %v7969_v3, %v7973_v4 }
 0x5a8   : > { %11256 = vmatprep.subr.bf16.mxu1 %v18331_v44  ;;  %v7974_v26 = vld [vmem:[%s27450_s11 + $0xdb8] sm:$0xff]  ;;  %v18376_v44 = vcombine.low %v7961_v54, %v7965_v22 }
 0x5aa   : > { %11093 = vmatpush1.bf16.msra.mxu0 %v18328_v21  ;;  %v18387_v21 = vcombine.high %v7970_v7, %v7974_v26 }
 0x5ab   : > { %11257 = vmatpush1.bf16.msra.mxu1 %v18330_v9  ;;  %11103 = vmatprep.subr.bf16.mxu0 %v18337_v10  ;;  %v7977_v9 = vld [vmem:[%s27450_s11 + $0xdd0] sm:$0xff] }
 0x5ac   : > { %11267 = vmatprep.subr.bf16.mxu1 %v18339_v11  ;;  %v7981_v10 = vld [vmem:[%s27450_s11 + $0xdf0] sm:$0xff] }
 0x5ad   : > { %11095 = vmatmul.mubr.bf16.vlgmr.msra.gmra.mrb[20].mxu0 %v24253_v45 }
 0x5ae   : > { %11259 = vmatmul.mubr.bf16.vlgmr.msra.gmra.mrb[20].mxu1 %v24253_v45  ;;  %11104 = vmatpush1.bf16.msra.mxu0 %v18336_v56  ;;  %v7946_v45 = vld [vmem:[%s27450_s11 + $0xcd8] sm:$0xff] }
 0x5af   : > { %11135 = vmatprep.mubr.bf16.mxu0 %v24269_v48  ;;  %11268 = vmatpush1.bf16.msra.mxu1 %v18338_v17  ;;  %v18363_v46 = vcombine.high %v7946_v45, %v7950_v40  ;;  %v18362_v49 = vcombine.low %v7946_v45, %v7950_v40  ;;  %v7982_v56 = vld [vmem:[%s27450_s11 + $0xdf8] sm:$0xff]  ;;  %v18384_v17 = vcombine.low %v7969_v3, %v7973_v4  ;;  %v7993_v40 = vld [vmem:[%s27450_s11 + $0xe50] sm:$0xff] }
 0x5b0   : > { %11299 = vmatprep.mubr.bf16.mxu1 %v24269_v48  ;;  %11105 = vmatprep.subr.bf16.mxu0 %v18345_v24  ;;  %v18352_v48 = vcombine.low %v7937_v30, %v7941_v25  ;;  %v18386_v25 = vcombine.low %v7970_v7, %v7974_v26  ;;  %v18395_v34 = vcombine.high %v7978_v13, %v7982_v56  ;;  %v8017_v26 = vld [vmem:[%s27450_s11 + $0xf10] sm:$0xff] }
 0x5b1   : > { %11269 = vmatprep.subr.bf16.mxu1 %v18347_v29  ;;  %v18393_v29 = vcombine.high %v7977_v9, %v7981_v10  ;;  %v18394_v43 = vcombine.low %v7978_v13, %v7982_v56  ;;  %v8025_v56 = vld [vmem:[%s27450_s11 + $0xf50] sm:$0xff] }
 0x5b2   : > { %11106 = vmatpush1.bf16.msra.mxu0 %v18344_v52  ;;  %v7989_v52 = vld [vmem:[%s27450_s11 + $0xe30] sm:$0xff] }
 0x5b3   : > { %11270 = vmatpush1.bf16.msra.mxu1 %v18346_v1  ;;  %11107 = vmatprep.subr.bf16.mxu0 %v18353_v37  ;;  %v7986_v1 = vld [vmem:[%s27450_s11 + $0xe18] sm:$0xff]  ;;  %v18401_v38 = vcombine.high %v7985_v33, %v7989_v52 }
 0x5b4   : > { %11271 = vmatprep.subr.bf16.mxu1 %v18355_v6  ;;  %v7990_v37 = vld [vmem:[%s27450_s11 + $0xe38] sm:$0xff]  ;;  %v18392_v6 = vcombine.low %v7977_v9, %v7981_v10 }
 0x5b5   : > { %v18403_v45 = vcombine.high %v7986_v1, %v7990_v37  ;;  %v18402_v53 = vcombine.low %v7986_v1, %v7990_v37  ;;  %v8037_v1 = vld [vmem:[%s27450_s11 + $0xfb0] sm:$0xff] }
 0x5b6   : > { %11108 = vmatpush1.bf16.msra.mxu0 %v18352_v48  ;;  %v7997_v48 = vld [vmem:[%s27450_s11 + $0xe70] sm:$0xff] }
 0x5b7   : > { %11272 = vmatpush1.bf16.msra.mxu1 %v18354_v61  ;;  %11109 = vmatprep.subr.bf16.mxu0 %v18361_v19  ;;  %v7994_v61 = vld [vmem:[%s27450_s11 + $0xe58] sm:$0xff]  ;;  %v18409_v0 = vcombine.high %v7993_v40, %v7997_v48 }
 0x5b8   : > { %11273 = vmatprep.subr.bf16.mxu1 %v18363_v46  ;;  %v7998_v19 = vld [vmem:[%s27450_s11 + $0xe78] sm:$0xff]  ;;  %v18400_v46 = vcombine.low %v7985_v33, %v7989_v52  ;;  %v8033_v52 = vld [vmem:[%s27450_s11 + $0xf90] sm:$0xff] }
 0x5b9   : > { %v18411_v31 = vcombine.high %v7994_v61, %v7998_v19  ;;  %v18410_v54 = vcombine.low %v7994_v61, %v7998_v19  ;;  %v8041_v61 = vld [vmem:[%s27450_s11 + $0xfd0] sm:$0xff] }
 0x5ba   : > { %11110 = vmatpush1.bf16.msra.mxu0 %v18360_v47  ;;  %v8005_v47 = vld [vmem:[%s27450_s11 + $0xeb0] sm:$0xff] }
 0x5bb   : > { %11274 = vmatpush1.bf16.msra.mxu1 %v18362_v49  ;;  %11111 = vmatprep.subr.bf16.mxu0 %v18369_v51  ;;  %v8002_v49 = vld [vmem:[%s27450_s11 + $0xe98] sm:$0xff]  ;;  %v18417_v22 = vcombine.high %v8001_v63, %v8005_v47  ;;  %v8045_v19 = vld [vmem:[%s27450_s11 + $0xff0] sm:$0xff] }
 0x5bc   : > { %11275 = vmatprep.subr.bf16.mxu1 %v18371_v16  ;;  %v8006_v51 = vld [vmem:[%s27450_s11 + $0xeb8] sm:$0xff]  ;;  %v18408_v16 = vcombine.low %v7993_v40, %v7997_v48  ;;  %v18449_v40 = vcombine.high %v8033_v52, %v8037_v1 }
 0x5bd   : > { %v18419_v55 = vcombine.high %v8002_v49, %v8006_v51  ;;  %v18418_v3 = vcombine.low %v8002_v49, %v8006_v51 }
 0x5be   : > { %11112 = vmatpush1.bf16.msra.mxu0 %v18368_v58  ;;  %v8013_v58 = vld [vmem:[%s27450_s11 + $0xef0] sm:$0xff] }
 0x5bf   : > { %11276 = vmatpush1.bf16.msra.mxu1 %v18370_v60  ;;  %11113 = vmatprep.subr.bf16.mxu0 %v18377_v20  ;;  %v8010_v60 = vld [vmem:[%s27450_s11 + $0xed8] sm:$0xff]  ;;  %v18425_v4 = vcombine.high %v8009_v57, %v8013_v58 }
 0x5c0   : > { %v25112_v42 = vpop.f32.mrb[16].mxu0  ;;  %v25114_v23 = vpop.f32.mrb[16].mxu1  ;;  %11277 = vmatprep.subr.bf16.mxu1 %v18379_v2  ;;  %v8014_v20 = vld [vmem:[%s27450_s11 + $0xef8] sm:$0xff]  ;;  %v18416_v2 = vcombine.low %v8001_v63, %v8005_v47  ;;  %v18457_v47 = vcombine.high %v8041_v61, %v8045_v19 }
 0x5c1   : > { %v25122_v11 = vpop.f32.mrb[17].mxu0  ;;  %v25124_v14 = vpop.f32.mrb[17].mxu1  ;;  %v18427_v7 = vcombine.high %v8010_v60, %v8014_v20  ;;  %v18426_v9 = vcombine.low %v8010_v60, %v8014_v20  ;;  %v19607_v60 = vld [vmem:[%s27451_s28 + $0x24] ss:$16 sps:$4 sm:$0xff]  }
 0x5c2   : > { %v10813_v15 = vpop.f32.mrb[18].mxu0  ;;  %v10977_v35 = vpop.f32.mrb[18].mxu1  ;;  %11114 = vmatpush1.bf16.msra.mxu0 %v18376_v44  ;;  %v8021_v44 = vld [vmem:[%s27450_s11 + $0xf30] sm:$0xff] }
 0x5c3   : > { %11278 = vmatpush1.bf16.msra.mxu1 %v18378_v27  ;;  %v10814_v24 = vpop.f32.mrb[19].mxu0  ;;  %v10978_v30 = vpop.f32.mrb[19].mxu1  ;;  %11115 = vmatprep.subr.bf16.mxu0 %v18385_v8  ;;  %v8018_v27 = vld [vmem:[%s27450_s11 + $0xf18] sm:$0xff]  ;;  %v18433_v10 = vcombine.high %v8017_v26, %v8021_v44  ;;  %v8029_v15 = vld [vmem:[%s27450_s11 + $0xf70] sm:$0xff] }
 0x5c4   : > { %11279 = vmatprep.subr.bf16.mxu1 %v18387_v21  ;;  %v8022_v8 = vld [vmem:[%s27450_s11 + $0xf38] sm:$0xff]  ;;  %v18424_v21 = vcombine.low %v8009_v57, %v8013_v58 }
 0x5c5   : > { %v18435_v13 = vcombine.high %v8018_v27, %v8022_v8  ;;  %v8026_v35 = vld [vmem:[%s27450_s11 + $0xf58] sm:$0xff] }
 0x5c6   : > { %11116 = vmatpush1.bf16.msra.mxu0 %v18384_v17  ;;  %v8030_v17 = vld [vmem:[%s27450_s11 + $0xf78] sm:$0xff] }
 0x5c7   : > { %11280 = vmatpush1.bf16.msra.mxu1 %v18386_v25  ;;  %11117 = vmatprep.subr.bf16.mxu0 %v18393_v29  ;;  %v17946_v24 = vld [vmem:[%s27449_s4 + $0x2] ss:$8 sm:$0xf]  ;;  %v18432_v25 = vcombine.low %v8017_v26, %v8021_v44  ;;  %v18434_v29 = vcombine.low %v8018_v27, %v8022_v8  ;;  %v18443_v33 = vcombine.high %v8026_v35, %v8030_v17  ;;  %v19619_v27 = vld [vmem:[%s27451_s28 + $0x64] ss:$16 sps:$4 sm:$0xff]  }
 0x5c8   : > { %11281 = vmatprep.subr.bf16.mxu1 %v18395_v34  ;;  %v17947_v30 = vld [vmem:[%s27449_s4 + $0x2] ss:$8 sm:$0xf0]  ;;  %v18441_v34 = vcombine.high %v8025_v56, %v8029_v15  ;;  %v19622_v8 = vld [vmem:[%s27451_s28 + $0x6c] ss:$16 sps:$4 sm:$0xff]  }
 0x5c9   : > { %v25216_v37 = vor.u32 %v17947_v30, %v17946_v24  ;;  %v19602_v58 = vld [vmem:[%s27451_s28 + $0x8] ss:$16 sps:$4 sm:$0xff]   ;;  %v19611_v26 = vld [vmem:[%s27451_s28 + $0x40] ss:$16 sps:$4 sm:$0xff]  }
 0x5ca   : > { %11118 = vmatpush1.bf16.msra.mxu0 %v18392_v6  ;;  %v8034_v6 = vld [vmem:[%s27450_s11 + $0xf98] sm:$0xff]  ;;  %v19629_v24 = vld [vmem:[%s27451_s28 + $0xa0] ss:$16 sps:$4 sm:$0xff]  }
 0x5cb   : > { %11282 = vmatpush1.bf16.msra.mxu1 %v18394_v43  ;;  %11119 = vmatprep.subr.bf16.mxu0 %v18401_v38  ;;  %v8038_v43 = vld [vmem:[%s27450_s11 + $0xfb8] sm:$0xff]  ;;  %v18440_v38 = vcombine.low %v8025_v56, %v8029_v15  ;;  %v19623_v56 = vld [vmem:[%s27451_s28 + $0x80] ss:$16 sps:$4 sm:$0xff]  }
 0x5cc   : > { %11283 = vmatprep.subr.bf16.mxu1 %v18403_v45  ;;  %v18442_v45 = vcombine.low %v8026_v35, %v8030_v17  ;;  %v18451_v48 = vcombine.high %v8034_v6, %v8038_v43  ;;  %v18450_v63 = vcombine.low %v8034_v6, %v8038_v43  ;;  %v19614_v44 = vld [vmem:[%s27451_s28 + $0x48] ss:$16 sps:$4 sm:$0xff]   ;;  %v19631_v35 = vld [vmem:[%s27451_s28 + $0xa4] ss:$16 sps:$4 sm:$0xff]   ;;  %v19634_v17 = vld [vmem:[%s27451_s28 + $0xac] ss:$16 sps:$4 sm:$0xff]  }
 0x5cd   : > { %v19626_v15 = vld [vmem:[%s27451_s28 + $0x88] ss:$16 sps:$4 sm:$0xff]   ;;  %v19641_v6 = vld [vmem:[%s27451_s28 + $0xe0] ss:$16 sps:$4 sm:$0xff]  }
 0x5ce   : > { %11120 = vmatpush1.bf16.msra.mxu0 %v18400_v46  ;;  %v10619_v46 = vrot.slane %v25216_v37, %v20831_v50  ;;  %v19632_v30 = vld [vmem:[%s27451_s28 + $0xa8] ss:$16 sps:$4 sm:$0xff]  }
 0x5cf   : > { %11284 = vmatpush1.bf16.msra.mxu1 %v18402_v53  ;;  %11121 = vmatprep.subr.bf16.mxu0 %v18409_v0  ;;  %v8042_v53 = vld [vmem:[%s27450_s11 + $0xfd8] sm:$0xff] }
 0x5d0   : > { %11285 = vmatprep.subr.bf16.mxu1 %v18411_v31  ;;  %v8046_v0 = vld [vmem:[%s27450_s11 + $0xff8] sm:$0xff]  ;;  %v18448_v31 = vcombine.low %v8033_v52, %v8037_v1  ;;  %v19368_v51 = vadd.f32 %v25122_v11, %v10619_v46  ;;  %v19599_v11 = vld [vmem:[%s27451_s28] ss:$16 sps:$4 sm:$0xff]   ;;  %v19643_v52 = vld [vmem:[%s27451_s28 + $0xe4] ss:$16 sps:$4 sm:$0xff]   ;;  %s27454_s11 = sld [smem:[#allocation20_spill]] }
 0x5d1   : > { %v18459_v49 = vcombine.high %v8042_v53, %v8046_v0  ;;  %v19646_v1 = vld [vmem:[%s27451_s28 + $0xec] ss:$16 sps:$4 sm:$0xff]   ;;  %v19644_v43 = vld [vmem:[%s27451_s28 + $0xe8] ss:$16 sps:$4 sm:$0xff]   ;;  %v19653_v46 = vld [vmem:[%s27451_s28 + $0x120] ss:$16 sps:$4 sm:$0xff]  }
 0x5d2   : > { %11122 = vmatpush1.bf16.msra.mxu0 %v18408_v16  ;;  %v18456_v16 = vcombine.low %v8041_v61, %v8045_v19  ;;  %v11309_v57 = vmax.f32 %v19368_v51, 0.0  ;;  %v19655_v61 = vld [vmem:[%s27451_s28 + $0x124] ss:$16 sps:$4 sm:$0xff]   ;;  %v19658_v19 = vld [vmem:[%s27451_s28 + $0x12c] ss:$16 sps:$4 sm:$0xff]  }
 0x5d3   : > { %11286 = vmatpush1.bf16.msra.mxu1 %v18410_v54  ;;  %11123 = vmatprep.subr.bf16.mxu0 %v18417_v22  ;;  %v18458_v54 = vcombine.low %v8042_v53, %v8046_v0  ;;  %v19601_v22 = vld [vmem:[%s27451_s28 + $0x4] ss:$16 sps:$4 sm:$0xff]   ;;  %v19656_v53 = vld [vmem:[%s27451_s28 + $0x128] ss:$16 sps:$4 sm:$0xff]   ;;  %v19670_v51 = vld [vmem:[%s27451_s28 + $0x16c] ss:$16 sps:$4 sm:$0xff]  }
 0x5d4   : > { %11287 = vmatprep.subr.bf16.mxu1 %v18419_v55  ;;  %v19604_v55 = vld [vmem:[%s27451_s28 + $0xc] ss:$16 sps:$4 sm:$0xff]   ;;  %v11317_v20 = vpack.c.bf16 %v11309_v57, %v11309_v57  ;;  %v19661_v0 = vld [vmem:[%s27451_s28 + $0x144] ss:$16 sps:$4 sm:$0xff]   ;;  %v19671_v57 = vld [vmem:[%s27451_s28 + $0x180] ss:$16 sps:$4 sm:$0xff]  }
 0x5d6   : > { %11124 = vmatpush1.bf16.msra.mxu0 %v18416_v2  ;;  %v19610_v2 = vld [vmem:[%s27451_s28 + $0x2c] ss:$16 sps:$4 sm:$0xff]  }
 0x5d7   : > { %11288 = vmatpush1.bf16.msra.mxu1 %v18418_v3  ;;  %11125 = vmatprep.subr.bf16.mxu0 %v18425_v4  ;;  %v19605_v3 = vld [vmem:[%s27451_s28 + $0x20] ss:$16 sps:$4 sm:$0xff]   ;;  %v19608_v4 = vld [vmem:[%s27451_s28 + $0x28] ss:$16 sps:$4 sm:$0xff]  }
 0x5d8   : > { %11289 = vmatprep.subr.bf16.mxu1 %v18427_v7  ;;  %v19613_v7 = vld [vmem:[%s27451_s28 + $0x44] ss:$16 sps:$4 sm:$0xff]  }
 0x5da   : > { %11126 = vmatpush1.bf16.msra.mxu0 %v18424_v21  ;;  %v19617_v21 = vld [vmem:[%s27451_s28 + $0x60] ss:$16 sps:$4 sm:$0xff]  }
 0x5db   : > { %11290 = vmatpush1.bf16.msra.mxu1 %v18426_v9  ;;  %11127 = vmatprep.subr.bf16.mxu0 %v18433_v10  ;;  %v19620_v9 = vld [vmem:[%s27451_s28 + $0x68] ss:$16 sps:$4 sm:$0xff]   ;;  %v19625_v10 = vld [vmem:[%s27451_s28 + $0x84] ss:$16 sps:$4 sm:$0xff]  }
 0x5dc   : > { %11291 = vmatprep.subr.bf16.mxu1 %v18435_v13  ;;  %v19628_v13 = vld [vmem:[%s27451_s28 + $0x8c] ss:$16 sps:$4 sm:$0xff]  }
 0x5de   : > { %11128 = vmatpush1.bf16.msra.mxu0 %v18432_v25  ;;  %v19637_v25 = vld [vmem:[%s27451_s28 + $0xc4] ss:$16 sps:$4 sm:$0xff]  }
 0x5df   : > { %11292 = vmatpush1.bf16.msra.mxu1 %v18434_v29  ;;  %11129 = vmatprep.subr.bf16.mxu0 %v18441_v34  ;;  %v19640_v29 = vld [vmem:[%s27451_s28 + $0xcc] ss:$16 sps:$4 sm:$0xff]   ;;  %v19635_v34 = vld [vmem:[%s27451_s28 + $0xc0] ss:$16 sps:$4 sm:$0xff]  }
 0x5e0   : > { %11293 = vmatprep.subr.bf16.mxu1 %v18443_v33  ;;  %v19638_v33 = vld [vmem:[%s27451_s28 + $0xc8] ss:$16 sps:$4 sm:$0xff]  }
 0x5e2   : > { %11130 = vmatpush1.bf16.msra.mxu0 %v18440_v38  ;;  %v19649_v38 = vld [vmem:[%s27451_s28 + $0x104] ss:$16 sps:$4 sm:$0xff]  }
 0x5e3   : > { %11294 = vmatpush1.bf16.msra.mxu1 %v18442_v45  ;;  %11131 = vmatprep.subr.bf16.mxu0 %v18449_v40  ;;  %v19652_v45 = vld [vmem:[%s27451_s28 + $0x10c] ss:$16 sps:$4 sm:$0xff]   ;;  %v19647_v40 = vld [vmem:[%s27451_s28 + $0x100] ss:$16 sps:$4 sm:$0xff]  }
 0x5e4   : > { %11295 = vmatprep.subr.bf16.mxu1 %v18451_v48  ;;  %v19650_v48 = vld [vmem:[%s27451_s28 + $0x108] ss:$16 sps:$4 sm:$0xff]  }
 0x5e6   : > { %11132 = vmatpush1.bf16.msra.mxu0 %v18448_v31  ;;  %v19664_v31 = vld [vmem:[%s27451_s28 + $0x14c] ss:$16 sps:$4 sm:$0xff]  }
 0x5e7   : > { %11296 = vmatpush1.bf16.msra.mxu1 %v18450_v63  ;;  %11133 = vmatprep.subr.bf16.mxu0 %v18457_v47  ;;  %v19659_v63 = vld [vmem:[%s27451_s28 + $0x140] ss:$16 sps:$4 sm:$0xff]   ;;  %v19662_v47 = vld [vmem:[%s27451_s28 + $0x148] ss:$16 sps:$4 sm:$0xff]  }
 0x5e8   : > { %11297 = vmatprep.subr.bf16.mxu1 %v18459_v49  ;;  %v19667_v49 = vld [vmem:[%s27451_s28 + $0x164] ss:$16 sps:$4 sm:$0xff]  }
 0x5ea   : > { %11134 = vmatpush1.bf16.msra.mxu0 %v18456_v16  ;;  %v19665_v16 = vld [vmem:[%s27451_s28 + $0x160] ss:$16 sps:$4 sm:$0xff]  }
 0x5eb   : > { %11298 = vmatpush1.bf16.msra.mxu1 %v18458_v54  ;;  %12883 = vmatprep.subr.bf16.mxu0 %v19601_v22  ;;  %v19668_v54 = vld [vmem:[%s27451_s28 + $0x168] ss:$16 sps:$4 sm:$0xff]   ;;  %v19673_v22 = vld [vmem:[%s27451_s28 + $0x184] ss:$16 sps:$4 sm:$0xff]  }
 0x5ec   : > { %13047 = vmatprep.subr.bf16.mxu1 %v19604_v55  ;;  %v19676_v55 = vld [vmem:[%s27451_s28 + $0x18c] ss:$16 sps:$4 sm:$0xff]  }
 0x5ed   : > { %11136 = vmatmul.mubr.bf16.vlgmr.msra.gmra.mrb[20].mxu0 %v24458_v36 }
 0x5ee   : > { %11300 = vmatmul.mubr.bf16.vlgmr.msra.gmra.mrb[20].mxu1 %v24458_v36  ;;  %12884 = vmatpush1.bf16.msra.mxu0 %v19599_v11  ;;  %v19616_v36 = vld [vmem:[%s27451_s28 + $0x4c] ss:$16 sps:$4 sm:$0xff]   ;;  %v19674_v11 = vld [vmem:[%s27451_s28 + $0x188] ss:$16 sps:$4 sm:$0xff]  }
 0x5ef   : > { %12915 = vmatprep.mubr.bf16.mxu0 %v11317_v20  ;;  %13048 = vmatpush1.bf16.msra.mxu1 %v19602_v58  ;;  %v19679_v58 = vld [vmem:[%s27451_s28 + $0x1a4] ss:$16 sps:$4 sm:$0xff]  }
 0x5f0   : > { %13079 = vmatprep.mubr.bf16.mxu1 %v11317_v20  ;;  %12885 = vmatprep.subr.bf16.mxu0 %v19607_v60  ;;  %v19682_v60 = vld [vmem:[%s27451_s28 + $0x1ac] ss:$16 sps:$4 sm:$0xff]   ;;  %v19677_v20 = vld [vmem:[%s27451_s28 + $0x1a0] ss:$16 sps:$4 sm:$0xff]  }
 0x5f1   : > { %13049 = vmatprep.subr.bf16.mxu1 %v19610_v2  ;;  %v10615_v2 = vrot.slane %v25216_v37, %v20957_v5 }
 0x5f2   : > { %12886 = vmatpush1.bf16.msra.mxu0 %v19605_v3  ;;  %v19680_v3 = vld [vmem:[%s27451_s28 + $0x1a8] ss:$16 sps:$4 sm:$0xff]  }
 0x5f3   : > { %13050 = vmatpush1.bf16.msra.mxu1 %v19608_v4  ;;  %12887 = vmatprep.subr.bf16.mxu0 %v19613_v7  ;;  %v19685_v4 = vld [vmem:[%s27451_s28 + $0x1c4] ss:$16 sps:$4 sm:$0xff]   ;;  %v19688_v7 = vld [vmem:[%s27451_s28 + $0x1cc] ss:$16 sps:$4 sm:$0xff]  }
 0x5f4   : > { %13051 = vmatprep.subr.bf16.mxu1 %v19616_v36  ;;  %v10627_v36 = vrot.slane %v25216_v37, %v20966_v12 }
 0x5f6   : > { %12888 = vmatpush1.bf16.msra.mxu0 %v19611_v26  ;;  %v19683_v26 = vld [vmem:[%s27451_s28 + $0x1c0] ss:$16 sps:$4 sm:$0xff]  }
 0x5f7   : > { %13052 = vmatpush1.bf16.msra.mxu1 %v19614_v44  ;;  %12889 = vmatprep.subr.bf16.mxu0 %v19619_v27  ;;  %v19367_v44 = vadd.f32 %v25112_v42, %v10615_v2  ;;  %v19686_v27 = vld [vmem:[%s27451_s28 + $0x1c8] ss:$16 sps:$4 sm:$0xff]   ;;  %v19689_v42 = vld [vmem:[%s27451_s28 + $0x1e0] ss:$16 sps:$4 sm:$0xff]  }
 0x5f8   : > { %13053 = vmatprep.subr.bf16.mxu1 %v19622_v8  ;;  %v19691_v8 = vld [vmem:[%s27451_s28 + $0x1e4] ss:$16 sps:$4 sm:$0xff]   ;;  %v19746_v2 = vld [vmem:[%s27451_s28 + $0x308] ss:$16 sps:$4 sm:$0xff]  }
 0x5fa   : > { %12890 = vmatpush1.bf16.msra.mxu0 %v19617_v21  ;;  %v19694_v21 = vld [vmem:[%s27451_s28 + $0x1ec] ss:$16 sps:$4 sm:$0xff]  }
 0x5fb   : > { %13054 = vmatpush1.bf16.msra.mxu1 %v19620_v9  ;;  %12891 = vmatprep.subr.bf16.mxu0 %v19625_v10  ;;  %v19370_v9 = vadd.f32 %v25124_v14, %v10627_v36  ;;  %v11308_v10 = vmax.f32 %v19367_v44, 0.0  ;;  %v19700_v14 = vld [vmem:[%s27451_s28 + $0x20c] ss:$16 sps:$4 sm:$0xff]   ;;  %v19752_v36 = vld [vmem:[%s27451_s28 + $0x328] ss:$16 sps:$4 sm:$0xff]  }
 0x5fc   : > { %13055 = vmatprep.subr.bf16.mxu1 %v19628_v13  ;;  %v19692_v13 = vld [vmem:[%s27451_s28 + $0x1e8] ss:$16 sps:$4 sm:$0xff]   ;;  %v19760_v44 = vld [vmem:[%s27451_s28 + $0x34c] ss:$16 sps:$4 sm:$0xff]  }
 0x5fe   : > { %12892 = vmatpush1.bf16.msra.mxu0 %v19623_v56  ;;  %v19697_v56 = vld [vmem:[%s27451_s28 + $0x204] ss:$16 sps:$4 sm:$0xff]  }
 0x5ff   : > { %13056 = vmatpush1.bf16.msra.mxu1 %v19626_v15  ;;  %12893 = vmatprep.subr.bf16.mxu0 %v19631_v35  ;;  %v11311_v15 = vmax.f32 %v19370_v9, 0.0  ;;  %v19695_v35 = vld [vmem:[%s27451_s28 + $0x200] ss:$16 sps:$4 sm:$0xff]   ;;  %v19766_v9 = vld [vmem:[%s27451_s28 + $0x36c] ss:$16 sps:$4 sm:$0xff]  }
 0x600   : > { %13057 = vmatprep.subr.bf16.mxu1 %v19634_v17  ;;  %v11316_v17 = vpack.c.bf16 %v11308_v10, %v11308_v10  ;;  %v19764_v10 = vld [vmem:[%s27451_s28 + $0x368] ss:$16 sps:$4 sm:$0xff]  }
 0x602   : > { %12894 = vmatpush1.bf16.msra.mxu0 %v19629_v24  ;;  %v19698_v24 = vld [vmem:[%s27451_s28 + $0x208] ss:$16 sps:$4 sm:$0xff]  }
 0x603   : > { %13058 = vmatpush1.bf16.msra.mxu1 %v19632_v30  ;;  %12895 = vmatprep.subr.bf16.mxu0 %v19637_v25  ;;  %v19703_v30 = vld [vmem:[%s27451_s28 + $0x224] ss:$16 sps:$4 sm:$0xff]   ;;  %v11319_v25 = vpack.c.bf16 %v11311_v15, %v11311_v15  ;;  %v19770_v15 = vld [vmem:[%s27451_s28 + $0x388] ss:$16 sps:$4 sm:$0xff]  }
 0x604   : > { %13059 = vmatprep.subr.bf16.mxu1 %v19640_v29  ;;  %v19706_v29 = vld [vmem:[%s27451_s28 + $0x22c] ss:$16 sps:$4 sm:$0xff]  }
 0x606   : > { %12896 = vmatpush1.bf16.msra.mxu0 %v19635_v34  ;;  %v19701_v34 = vld [vmem:[%s27451_s28 + $0x220] ss:$16 sps:$4 sm:$0xff]  }
 0x607   : > { %13060 = vmatpush1.bf16.msra.mxu1 %v19638_v33  ;;  %12897 = vmatprep.subr.bf16.mxu0 %v19643_v52  ;;  %v19704_v33 = vld [vmem:[%s27451_s28 + $0x228] ss:$16 sps:$4 sm:$0xff]   ;;  %v19709_v52 = vld [vmem:[%s27451_s28 + $0x244] ss:$16 sps:$4 sm:$0xff]  }
 0x608   : > { %13061 = vmatprep.subr.bf16.mxu1 %v19646_v1  ;;  %v19712_v1 = vld [vmem:[%s27451_s28 + $0x24c] ss:$16 sps:$4 sm:$0xff]  }
 0x60a   : > { %12898 = vmatpush1.bf16.msra.mxu0 %v19641_v6  ;;  %v19707_v6 = vld [vmem:[%s27451_s28 + $0x240] ss:$16 sps:$4 sm:$0xff]  }
 0x60b   : > { %13062 = vmatpush1.bf16.msra.mxu1 %v19644_v43  ;;  %12899 = vmatprep.subr.bf16.mxu0 %v19649_v38  ;;  %v19710_v43 = vld [vmem:[%s27451_s28 + $0x248] ss:$16 sps:$4 sm:$0xff]   ;;  %v19715_v38 = vld [vmem:[%s27451_s28 + $0x264] ss:$16 sps:$4 sm:$0xff]  }
 0x60c   : > { %13063 = vmatprep.subr.bf16.mxu1 %v19652_v45  ;;  %v19718_v45 = vld [vmem:[%s27451_s28 + $0x26c] ss:$16 sps:$4 sm:$0xff]  }
 0x60e   : > { %12900 = vmatpush1.bf16.msra.mxu0 %v19647_v40  ;;  %v19713_v40 = vld [vmem:[%s27451_s28 + $0x260] ss:$16 sps:$4 sm:$0xff]  }
 0x60f   : > { %13064 = vmatpush1.bf16.msra.mxu1 %v19650_v48  ;;  %12901 = vmatprep.subr.bf16.mxu0 %v19655_v61  ;;  %v19716_v48 = vld [vmem:[%s27451_s28 + $0x268] ss:$16 sps:$4 sm:$0xff]   ;;  %v19721_v61 = vld [vmem:[%s27451_s28 + $0x284] ss:$16 sps:$4 sm:$0xff]  }
 0x610   : > { %13065 = vmatprep.subr.bf16.mxu1 %v19658_v19  ;;  %v19724_v19 = vld [vmem:[%s27451_s28 + $0x28c] ss:$16 sps:$4 sm:$0xff]  }
 0x612   : > { %12902 = vmatpush1.bf16.msra.mxu0 %v19653_v46  ;;  %v19719_v46 = vld [vmem:[%s27451_s28 + $0x280] ss:$16 sps:$4 sm:$0xff]  }
 0x613   : > { %13066 = vmatpush1.bf16.msra.mxu1 %v19656_v53  ;;  %12903 = vmatprep.subr.bf16.mxu0 %v19661_v0  ;;  %v19722_v53 = vld [vmem:[%s27451_s28 + $0x288] ss:$16 sps:$4 sm:$0xff]   ;;  %v19727_v0 = vld [vmem:[%s27451_s28 + $0x2a4] ss:$16 sps:$4 sm:$0xff]  }
 0x614   : > { %13067 = vmatprep.subr.bf16.mxu1 %v19664_v31  ;;  %v19730_v31 = vld [vmem:[%s27451_s28 + $0x2ac] ss:$16 sps:$4 sm:$0xff]  }
 0x616   : > { %12904 = vmatpush1.bf16.msra.mxu0 %v19659_v63  ;;  %v19725_v63 = vld [vmem:[%s27451_s28 + $0x2a0] ss:$16 sps:$4 sm:$0xff]  }
 0x617   : > { %13068 = vmatpush1.bf16.msra.mxu1 %v19662_v47  ;;  %12905 = vmatprep.subr.bf16.mxu0 %v19667_v49  ;;  %v19728_v47 = vld [vmem:[%s27451_s28 + $0x2a8] ss:$16 sps:$4 sm:$0xff]   ;;  %v19733_v49 = vld [vmem:[%s27451_s28 + $0x2c4] ss:$16 sps:$4 sm:$0xff]  }
 0x618   : > { %13069 = vmatprep.subr.bf16.mxu1 %v19670_v51  ;;  %v19736_v51 = vld [vmem:[%s27451_s28 + $0x2cc] ss:$16 sps:$4 sm:$0xff]  }
 0x61a   : > { %12906 = vmatpush1.bf16.msra.mxu0 %v19665_v16  ;;  %v19731_v16 = vld [vmem:[%s27451_s28 + $0x2c0] ss:$16 sps:$4 sm:$0xff]  }
 0x61b   : > { %13070 = vmatpush1.bf16.msra.mxu1 %v19668_v54  ;;  %12907 = vmatprep.subr.bf16.mxu0 %v19673_v22  ;;  %v19734_v54 = vld [vmem:[%s27451_s28 + $0x2c8] ss:$16 sps:$4 sm:$0xff]   ;;  %v19739_v22 = vld [vmem:[%s27451_s28 + $0x2e4] ss:$16 sps:$4 sm:$0xff]  }
 0x61c   : > { %13071 = vmatprep.subr.bf16.mxu1 %v19676_v55  ;;  %v19742_v55 = vld [vmem:[%s27451_s28 + $0x2ec] ss:$16 sps:$4 sm:$0xff]  }
 0x61e   : > { %12908 = vmatpush1.bf16.msra.mxu0 %v19671_v57  ;;  %v19737_v57 = vld [vmem:[%s27451_s28 + $0x2e0] ss:$16 sps:$4 sm:$0xff]  }
 0x61f   : > { %13072 = vmatpush1.bf16.msra.mxu1 %v19674_v11  ;;  %12909 = vmatprep.subr.bf16.mxu0 %v19679_v58  ;;  %v19740_v11 = vld [vmem:[%s27451_s28 + $0x2e8] ss:$16 sps:$4 sm:$0xff]   ;;  %v19745_v58 = vld [vmem:[%s27451_s28 + $0x304] ss:$16 sps:$4 sm:$0xff]  }
 0x620   : > { %13073 = vmatprep.subr.bf16.mxu1 %v19682_v60  ;;  %v19748_v60 = vld [vmem:[%s27451_s28 + $0x30c] ss:$16 sps:$4 sm:$0xff]  }
 0x622   : > { %12910 = vmatpush1.bf16.msra.mxu0 %v19677_v20  ;;  %v19743_v20 = vld [vmem:[%s27451_s28 + $0x300] ss:$16 sps:$4 sm:$0xff]  }
 0x623   : > { %13074 = vmatpush1.bf16.msra.mxu1 %v19680_v3  ;;  %12911 = vmatprep.subr.bf16.mxu0 %v19685_v4  ;;  %v19751_v3 = vld [vmem:[%s27451_s28 + $0x324] ss:$16 sps:$4 sm:$0xff]   ;;  %v19754_v4 = vld [vmem:[%s27451_s28 + $0x32c] ss:$16 sps:$4 sm:$0xff]  }
 0x624   : > { %13075 = vmatprep.subr.bf16.mxu1 %v19688_v7  ;;  %v19749_v7 = vld [vmem:[%s27451_s28 + $0x320] ss:$16 sps:$4 sm:$0xff]  }
 0x626   : > { %12912 = vmatpush1.bf16.msra.mxu0 %v19683_v26  ;;  %v19757_v26 = vld [vmem:[%s27451_s28 + $0x344] ss:$16 sps:$4 sm:$0xff]  }
 0x627   : > { %13076 = vmatpush1.bf16.msra.mxu1 %v19686_v27  ;;  %12913 = vmatprep.subr.bf16.mxu0 %v19691_v8  ;;  %v19755_v27 = vld [vmem:[%s27451_s28 + $0x340] ss:$16 sps:$4 sm:$0xff]   ;;  %v19758_v8 = vld [vmem:[%s27451_s28 + $0x348] ss:$16 sps:$4 sm:$0xff]  }
 0x628   : > { %13077 = vmatprep.subr.bf16.mxu1 %v19694_v21  ;;  %v19763_v21 = vld [vmem:[%s27451_s28 + $0x364] ss:$16 sps:$4 sm:$0xff]  }
 0x62a   : > { %12914 = vmatpush1.bf16.msra.mxu0 %v19689_v42  ;;  %v19761_v42 = vld [vmem:[%s27451_s28 + $0x360] ss:$16 sps:$4 sm:$0xff]  }
 0x62b   : > { %13078 = vmatpush1.bf16.msra.mxu1 %v19692_v13  ;;  %12924 = vmatprep.subr.bf16.mxu0 %v19697_v56  ;;  %v19769_v13 = vld [vmem:[%s27451_s28 + $0x384] ss:$16 sps:$4 sm:$0xff]   ;;  %v19772_v56 = vld [vmem:[%s27451_s28 + $0x38c] ss:$16 sps:$4 sm:$0xff]  }
 0x62c   : > { %13088 = vmatprep.subr.bf16.mxu1 %v19700_v14  ;;  %v19767_v14 = vld [vmem:[%s27451_s28 + $0x380] ss:$16 sps:$4 sm:$0xff]  }
 0x62d   : > { %12916 = vmatmul.mubr.bf16.vlgmr.msra.gmra.mrb[24].mxu0 %v11316_v17 }
 0x62e   : > { %13080 = vmatmul.mubr.bf16.vlgmr.msra.gmra.mrb[24].mxu1 %v11316_v17  ;;  %12925 = vmatpush1.bf16.msra.mxu0 %v19695_v35  ;;  %v19775_v35 = vld [vmem:[%s27451_s28 + $0x3a4] ss:$16 sps:$4 sm:$0xff]   ;;  %v19778_v17 = vld [vmem:[%s27451_s28 + $0x3ac] ss:$16 sps:$4 sm:$0xff]  }
 0x62f   : > { %12956 = vmatprep.mubr.bf16.mxu0 %v11319_v25  ;;  %13089 = vmatpush1.bf16.msra.mxu1 %v19698_v24  ;;  %v19773_v24 = vld [vmem:[%s27451_s28 + $0x3a0] ss:$16 sps:$4 sm:$0xff]  }
 0x630   : > { %13120 = vmatprep.mubr.bf16.mxu1 %v11319_v25  ;;  %12926 = vmatprep.subr.bf16.mxu0 %v19703_v30  ;;  %v10623_v30 = vrot.slane %v25216_v37, %v21167_v28  ;;  %v19776_v25 = vld [vmem:[%s27451_s28 + $0x3a8] ss:$16 sps:$4 sm:$0xff]  }
 0x631   : > { %13090 = vmatprep.subr.bf16.mxu1 %v19706_v29  ;;  %v19781_v29 = vld [vmem:[%s27451_s28 + $0x3c4] ss:$16 sps:$4 sm:$0xff]  }
 0x632   : > { %12927 = vmatpush1.bf16.msra.mxu0 %v19701_v34  ;;  %v19784_v34 = vld [vmem:[%s27451_s28 + $0x3cc] ss:$16 sps:$4 sm:$0xff]  }
 0x633   : > { %13091 = vmatpush1.bf16.msra.mxu1 %v19704_v33  ;;  %12928 = vmatprep.subr.bf16.mxu0 %v19709_v52  ;;  %v19779_v33 = vld [vmem:[%s27451_s28 + $0x3c0] ss:$16 sps:$4 sm:$0xff]   ;;  %v19369_v52 = vadd.f32 %v25114_v23, %v10623_v30  ;;  %v19853_v30 = vld [vmem:[%s27451_s28 + $0x544] ss:$16 sps:$4 sm:$0xff]  }
 0x634   : > { %13092 = vmatprep.subr.bf16.mxu1 %v19712_v1  ;;  %v19782_v1 = vld [vmem:[%s27451_s28 + $0x3c8] ss:$16 sps:$4 sm:$0xff]   ;;  %v19785_v23 = vld [vmem:[%s27451_s28 + $0x3e0] ss:$16 sps:$4 sm:$0xff]  }
 0x636   : > { %12929 = vmatpush1.bf16.msra.mxu0 %v19707_v6  ;;  %v19787_v6 = vld [vmem:[%s27451_s28 + $0x3e4] ss:$16 sps:$4 sm:$0xff]  }
 0x637   : > { %13093 = vmatpush1.bf16.msra.mxu1 %v19710_v43  ;;  %12930 = vmatprep.subr.bf16.mxu0 %v19715_v38  ;;  %v19790_v43 = vld [vmem:[%s27451_s28 + $0x3ec] ss:$16 sps:$4 sm:$0xff]   ;;  %v11310_v38 = vmax.f32 %v19369_v52, 0.0 }
 0x638   : > { %13094 = vmatprep.subr.bf16.mxu1 %v19718_v45  ;;  %v19788_v45 = vld [vmem:[%s27451_s28 + $0x3e8] ss:$16 sps:$4 sm:$0xff]   ;;  %v19862_v52 = vld [vmem:[%s27451_s28 + $0x56c] ss:$16 sps:$4 sm:$0xff]  }
 0x63a   : > { %12931 = vmatpush1.bf16.msra.mxu0 %v19713_v40  ;;  %v19793_v40 = vld [vmem:[%s27451_s28 + $0x404] ss:$16 sps:$4 sm:$0xff]  }
 0x63b   : > { %13095 = vmatpush1.bf16.msra.mxu1 %v19716_v48  ;;  %12932 = vmatprep.subr.bf16.mxu0 %v19721_v61  ;;  %v19796_v48 = vld [vmem:[%s27451_s28 + $0x40c] ss:$16 sps:$4 sm:$0xff]   ;;  %v19791_v61 = vld [vmem:[%s27451_s28 + $0x400] ss:$16 sps:$4 sm:$0xff]  }
 0x63c   : > { %13096 = vmatprep.subr.bf16.mxu1 %v19724_v19  ;;  %v11318_v19 = vpack.c.bf16 %v11310_v38, %v11310_v38  ;;  %v19863_v38 = vld [vmem:[%s27451_s28 + $0x580] ss:$16 sps:$4 sm:$0xff]  }
 0x63e   : > { %12933 = vmatpush1.bf16.msra.mxu0 %v19719_v46  ;;  %v19794_v46 = vld [vmem:[%s27451_s28 + $0x408] ss:$16 sps:$4 sm:$0xff]  }
 0x63f   : > { %13097 = vmatpush1.bf16.msra.mxu1 %v19722_v53  ;;  %12934 = vmatprep.subr.bf16.mxu0 %v19727_v0  ;;  %v19799_v53 = vld [vmem:[%s27451_s28 + $0x424] ss:$16 sps:$4 sm:$0xff]   ;;  %v19802_v0 = vld [vmem:[%s27451_s28 + $0x42c] ss:$16 sps:$4 sm:$0xff]  }
 0x640   : > { %13098 = vmatprep.subr.bf16.mxu1 %v19730_v31  ;;  %v19797_v31 = vld [vmem:[%s27451_s28 + $0x420] ss:$16 sps:$4 sm:$0xff]  }
 0x642   : > { %12935 = vmatpush1.bf16.msra.mxu0 %v19725_v63  ;;  %v19800_v63 = vld [vmem:[%s27451_s28 + $0x428] ss:$16 sps:$4 sm:$0xff]  }
 0x643   : > { %13099 = vmatpush1.bf16.msra.mxu1 %v19728_v47  ;;  %12936 = vmatprep.subr.bf16.mxu0 %v19733_v49  ;;  %v19805_v47 = vld [vmem:[%s27451_s28 + $0x444] ss:$16 sps:$4 sm:$0xff]   ;;  %v19808_v49 = vld [vmem:[%s27451_s28 + $0x44c] ss:$16 sps:$4 sm:$0xff]  }
 0x644   : > { %13100 = vmatprep.subr.bf16.mxu1 %v19736_v51  ;;  %v19803_v51 = vld [vmem:[%s27451_s28 + $0x440] ss:$16 sps:$4 sm:$0xff]  }
 0x646   : > { %12937 = vmatpush1.bf16.msra.mxu0 %v19731_v16  ;;  %v19806_v16 = vld [vmem:[%s27451_s28 + $0x448] ss:$16 sps:$4 sm:$0xff]  }
 0x647   : > { %13101 = vmatpush1.bf16.msra.mxu1 %v19734_v54  ;;  %12938 = vmatprep.subr.bf16.mxu0 %v19739_v22  ;;  %v19811_v54 = vld [vmem:[%s27451_s28 + $0x464] ss:$16 sps:$4 sm:$0xff]   ;;  %v19814_v22 = vld [vmem:[%s27451_s28 + $0x46c] ss:$16 sps:$4 sm:$0xff]  }
 0x648   : > { %13102 = vmatprep.subr.bf16.mxu1 %v19742_v55  ;;  %v19809_v55 = vld [vmem:[%s27451_s28 + $0x460] ss:$16 sps:$4 sm:$0xff]  }
 0x64a   : > { %12939 = vmatpush1.bf16.msra.mxu0 %v19737_v57  ;;  %v19812_v57 = vld [vmem:[%s27451_s28 + $0x468] ss:$16 sps:$4 sm:$0xff]  }
 0x64b   : > { %13103 = vmatpush1.bf16.msra.mxu1 %v19740_v11  ;;  %12940 = vmatprep.subr.bf16.mxu0 %v19745_v58  ;;  %v19817_v11 = vld [vmem:[%s27451_s28 + $0x484] ss:$16 sps:$4 sm:$0xff]   ;;  %v19820_v58 = vld [vmem:[%s27451_s28 + $0x48c] ss:$16 sps:$4 sm:$0xff]  }
 0x64c   : > { %13104 = vmatprep.subr.bf16.mxu1 %v19748_v60  ;;  %v19815_v60 = vld [vmem:[%s27451_s28 + $0x480] ss:$16 sps:$4 sm:$0xff]  }
 0x64e   : > { %12941 = vmatpush1.bf16.msra.mxu0 %v19743_v20  ;;  %v19818_v20 = vld [vmem:[%s27451_s28 + $0x488] ss:$16 sps:$4 sm:$0xff]  }
 0x64f   : > { %13105 = vmatpush1.bf16.msra.mxu1 %v19746_v2  ;;  %12942 = vmatprep.subr.bf16.mxu0 %v19751_v3  ;;  %v19823_v2 = vld [vmem:[%s27451_s28 + $0x4a4] ss:$16 sps:$4 sm:$0xff]   ;;  %v19826_v3 = vld [vmem:[%s27451_s28 + $0x4ac] ss:$16 sps:$4 sm:$0xff]  }
 0x650   : > { %13106 = vmatprep.subr.bf16.mxu1 %v19754_v4  ;;  %v19821_v4 = vld [vmem:[%s27451_s28 + $0x4a0] ss:$16 sps:$4 sm:$0xff]  }
 0x652   : > { %12943 = vmatpush1.bf16.msra.mxu0 %v19749_v7  ;;  %v19824_v7 = vld [vmem:[%s27451_s28 + $0x4a8] ss:$16 sps:$4 sm:$0xff]  }
 0x653   : > { %13107 = vmatpush1.bf16.msra.mxu1 %v19752_v36  ;;  %12944 = vmatprep.subr.bf16.mxu0 %v19757_v26  ;;  %v19829_v36 = vld [vmem:[%s27451_s28 + $0x4c4] ss:$16 sps:$4 sm:$0xff]   ;;  %v19832_v26 = vld [vmem:[%s27451_s28 + $0x4cc] ss:$16 sps:$4 sm:$0xff]  }
 0x654   : > { %13108 = vmatprep.subr.bf16.mxu1 %v19760_v44  ;;  %v19827_v44 = vld [vmem:[%s27451_s28 + $0x4c0] ss:$16 sps:$4 sm:$0xff]  }
 0x656   : > { %12945 = vmatpush1.bf16.msra.mxu0 %v19755_v27  ;;  %v19830_v27 = vld [vmem:[%s27451_s28 + $0x4c8] ss:$16 sps:$4 sm:$0xff]  }
 0x657   : > { %13109 = vmatpush1.bf16.msra.mxu1 %v19758_v8  ;;  %12946 = vmatprep.subr.bf16.mxu0 %v19763_v21  ;;  %v19835_v8 = vld [vmem:[%s27451_s28 + $0x4e4] ss:$16 sps:$4 sm:$0xff]   ;;  %v19838_v21 = vld [vmem:[%s27451_s28 + $0x4ec] ss:$16 sps:$4 sm:$0xff]  }
 0x658   : > { %13110 = vmatprep.subr.bf16.mxu1 %v19766_v9  ;;  %v19833_v9 = vld [vmem:[%s27451_s28 + $0x4e0] ss:$16 sps:$4 sm:$0xff]  }
 0x65a   : > { %12947 = vmatpush1.bf16.msra.mxu0 %v19761_v42  ;;  %v19836_v42 = vld [vmem:[%s27451_s28 + $0x4e8] ss:$16 sps:$4 sm:$0xff]  }
 0x65b   : > { %13111 = vmatpush1.bf16.msra.mxu1 %v19764_v10  ;;  %12948 = vmatprep.subr.bf16.mxu0 %v19769_v13  ;;  %v19841_v10 = vld [vmem:[%s27451_s28 + $0x504] ss:$16 sps:$4 sm:$0xff]   ;;  %v19844_v13 = vld [vmem:[%s27451_s28 + $0x50c] ss:$16 sps:$4 sm:$0xff]  }
 0x65c   : > { %13112 = vmatprep.subr.bf16.mxu1 %v19772_v56  ;;  %v19839_v56 = vld [vmem:[%s27451_s28 + $0x500] ss:$16 sps:$4 sm:$0xff]  }
 0x65e   : > { %12949 = vmatpush1.bf16.msra.mxu0 %v19767_v14  ;;  %v19842_v14 = vld [vmem:[%s27451_s28 + $0x508] ss:$16 sps:$4 sm:$0xff]  }
 0x65f   : > { %13113 = vmatpush1.bf16.msra.mxu1 %v19770_v15  ;;  %12950 = vmatprep.subr.bf16.mxu0 %v19775_v35  ;;  %v19847_v15 = vld [vmem:[%s27451_s28 + $0x524] ss:$16 sps:$4 sm:$0xff]   ;;  %v19850_v35 = vld [vmem:[%s27451_s28 + $0x52c] ss:$16 sps:$4 sm:$0xff]  }
 0x660   : > { %13114 = vmatprep.subr.bf16.mxu1 %v19778_v17  ;;  %v19845_v17 = vld [vmem:[%s27451_s28 + $0x520] ss:$16 sps:$4 sm:$0xff]  }
 0x662   : > { %12951 = vmatpush1.bf16.msra.mxu0 %v19773_v24  ;;  %v19848_v24 = vld [vmem:[%s27451_s28 + $0x528] ss:$16 sps:$4 sm:$0xff]  }
 0x663   : > { %13115 = vmatpush1.bf16.msra.mxu1 %v19776_v25  ;;  %12952 = vmatprep.subr.bf16.mxu0 %v19781_v29  ;;  %v19856_v25 = vld [vmem:[%s27451_s28 + $0x54c] ss:$16 sps:$4 sm:$0xff]   ;;  %v19851_v29 = vld [vmem:[%s27451_s28 + $0x540] ss:$16 sps:$4 sm:$0xff]  }
 0x664   : > { %13116 = vmatprep.subr.bf16.mxu1 %v19784_v34  ;;  %v19854_v34 = vld [vmem:[%s27451_s28 + $0x548] ss:$16 sps:$4 sm:$0xff]  }
 0x666   : > { %12953 = vmatpush1.bf16.msra.mxu0 %v19779_v33  ;;  %v19859_v33 = vld [vmem:[%s27451_s28 + $0x564] ss:$16 sps:$4 sm:$0xff]  }
 0x667   : > { %13117 = vmatpush1.bf16.msra.mxu1 %v19782_v1  ;;  %12954 = vmatprep.subr.bf16.mxu0 %v19787_v6  ;;  %v19857_v1 = vld [vmem:[%s27451_s28 + $0x560] ss:$16 sps:$4 sm:$0xff]   ;;  %v19860_v6 = vld [vmem:[%s27451_s28 + $0x568] ss:$16 sps:$4 sm:$0xff]  }
 0x668   : > { %13118 = vmatprep.subr.bf16.mxu1 %v19790_v43  ;;  %v19865_v43 = vld [vmem:[%s27451_s28 + $0x584] ss:$16 sps:$4 sm:$0xff]  }
 0x66a   : > { %12955 = vmatpush1.bf16.msra.mxu0 %v19785_v23  ;;  %v19868_v23 = vld [vmem:[%s27451_s28 + $0x58c] ss:$16 sps:$4 sm:$0xff]  }
 0x66b   : > { %13119 = vmatpush1.bf16.msra.mxu1 %v19788_v45  ;;  %12965 = vmatprep.subr.bf16.mxu0 %v19793_v40  ;;  %v19866_v45 = vld [vmem:[%s27451_s28 + $0x588] ss:$16 sps:$4 sm:$0xff]   ;;  %v19871_v40 = vld [vmem:[%s27451_s28 + $0x5a4] ss:$16 sps:$4 sm:$0xff]  }
 0x66c   : > { %13129 = vmatprep.subr.bf16.mxu1 %v19796_v48  ;;  %v19874_v48 = vld [vmem:[%s27451_s28 + $0x5ac] ss:$16 sps:$4 sm:$0xff]  }
 0x66d   : > { %12957 = vmatmul.mubr.bf16.vlgmr.msra.gmra.mrb[24].mxu0 %v11318_v19 }
 0x66e   : > { %13121 = vmatmul.mubr.bf16.vlgmr.msra.gmra.mrb[24].mxu1 %v11318_v19  ;;  %12966 = vmatpush1.bf16.msra.mxu0 %v19791_v61  ;;  %v19869_v61 = vld [vmem:[%s27451_s28 + $0x5a0] ss:$16 sps:$4 sm:$0xff]   ;;  %v19872_v19 = vld [vmem:[%s27451_s28 + $0x5a8] ss:$16 sps:$4 sm:$0xff]  }
 0x66f   : > { %13130 = vmatpush1.bf16.msra.mxu1 %v19794_v46  ;;  %12967 = vmatprep.subr.bf16.mxu0 %v19799_v53  ;;  %v19877_v46 = vld [vmem:[%s27451_s28 + $0x5c4] ss:$16 sps:$4 sm:$0xff]   ;;  %v19880_v53 = vld [vmem:[%s27451_s28 + $0x5cc] ss:$16 sps:$4 sm:$0xff]  }
 0x670   : > { %13131 = vmatprep.subr.bf16.mxu1 %v19802_v0  ;;  %v19875_v0 = vld [vmem:[%s27451_s28 + $0x5c0] ss:$16 sps:$4 sm:$0xff]  }
 0x672   : > { %12968 = vmatpush1.bf16.msra.mxu0 %v19797_v31  ;;  %v19878_v31 = vld [vmem:[%s27451_s28 + $0x5c8] ss:$16 sps:$4 sm:$0xff]  }
 0x673   : > { %13132 = vmatpush1.bf16.msra.mxu1 %v19800_v63  ;;  %12969 = vmatprep.subr.bf16.mxu0 %v19805_v47  ;;  %v19883_v63 = vld [vmem:[%s27451_s28 + $0x5e4] ss:$16 sps:$4 sm:$0xff]   ;;  %v19886_v47 = vld [vmem:[%s27451_s28 + $0x5ec] ss:$16 sps:$4 sm:$0xff]  }
 0x674   : > { %13133 = vmatprep.subr.bf16.mxu1 %v19808_v49  ;;  %v19881_v49 = vld [vmem:[%s27451_s28 + $0x5e0] ss:$16 sps:$4 sm:$0xff]  }
 0x676   : > { %12970 = vmatpush1.bf16.msra.mxu0 %v19803_v51  ;;  %v19884_v51 = vld [vmem:[%s27451_s28 + $0x5e8] ss:$16 sps:$4 sm:$0xff]  }
 0x677   : > { %13134 = vmatpush1.bf16.msra.mxu1 %v19806_v16  ;;  %12971 = vmatprep.subr.bf16.mxu0 %v19811_v54  ;;  %v19889_v16 = vld [vmem:[%s27451_s28 + $0x604] ss:$16 sps:$4 sm:$0xff]   ;;  %v19892_v54 = vld [vmem:[%s27451_s28 + $0x60c] ss:$16 sps:$4 sm:$0xff]  }
 0x678   : > { %13135 = vmatprep.subr.bf16.mxu1 %v19814_v22  ;;  %v10631_v22 = vrot.slane %v25216_v37, %v21377_v62 }
 0x67a   : > { %12972 = vmatpush1.bf16.msra.mxu0 %v19809_v55  ;;  %v10635_v55 = vrot.slane %v25216_v37, %v21182_v39 }
 0x67b   : > { %13136 = vmatpush1.bf16.msra.mxu1 %v19812_v57  ;;  %12973 = vmatprep.subr.bf16.mxu0 %v19817_v11  ;;  %v10643_v57 = vrot.slane %v25216_v37, %v22603_v18  ;;  %v19887_v18 = vld [vmem:[%s27451_s28 + $0x600] ss:$16 sps:$4 sm:$0xff]  }
 0x67c   : > { %13137 = vmatprep.subr.bf16.mxu1 %v19820_v58 }
 0x67e   : > { %12974 = vmatpush1.bf16.msra.mxu0 %v19815_v60 }
 0x67f   : > { %13138 = vmatpush1.bf16.msra.mxu1 %v19818_v20  ;;  %12975 = vmatprep.subr.bf16.mxu0 %v19823_v2 }
 0x680   : > { %13139 = vmatprep.subr.bf16.mxu1 %v19826_v3 }
 0x682   : > { %12976 = vmatpush1.bf16.msra.mxu0 %v19821_v4 }
 0x683   : > { %13140 = vmatpush1.bf16.msra.mxu1 %v19824_v7  ;;  %12977 = vmatprep.subr.bf16.mxu0 %v19829_v36 }
 0x684   : > { %13141 = vmatprep.subr.bf16.mxu1 %v19832_v26 }
 0x686   : > { %12978 = vmatpush1.bf16.msra.mxu0 %v19827_v44 }
 0x687   : > { %13142 = vmatpush1.bf16.msra.mxu1 %v19830_v27  ;;  %12979 = vmatprep.subr.bf16.mxu0 %v19835_v8 }
 0x688   : > { %13143 = vmatprep.subr.bf16.mxu1 %v19838_v21 }
 0x68a   : > { %12980 = vmatpush1.bf16.msra.mxu0 %v19833_v9 }
 0x68b   : > { %13144 = vmatpush1.bf16.msra.mxu1 %v19836_v42  ;;  %12981 = vmatprep.subr.bf16.mxu0 %v19841_v10  ;;  %v19890_v42 = vld [vmem:[%s27451_s28 + $0x608] ss:$16 sps:$4 sm:$0xff]  }
 0x68c   : > { %13145 = vmatprep.subr.bf16.mxu1 %v19844_v13  ;;  %v19895_v13 = vld [vmem:[%s27451_s28 + $0x624] ss:$16 sps:$4 sm:$0xff]  }
 0x68e   : > { %12982 = vmatpush1.bf16.msra.mxu0 %v19839_v56  ;;  %v19898_v56 = vld [vmem:[%s27451_s28 + $0x62c] ss:$16 sps:$4 sm:$0xff]  }
 0x68f   : > { %13146 = vmatpush1.bf16.msra.mxu1 %v19842_v14  ;;  %12983 = vmatprep.subr.bf16.mxu0 %v19847_v15  ;;  %v19893_v15 = vld [vmem:[%s27451_s28 + $0x620] ss:$16 sps:$4 sm:$0xff]  }
 0x690   : > { %13147 = vmatprep.subr.bf16.mxu1 %v19850_v35  ;;  %v19896_v35 = vld [vmem:[%s27451_s28 + $0x628] ss:$16 sps:$4 sm:$0xff]  }
 0x692   : > { %12984 = vmatpush1.bf16.msra.mxu0 %v19845_v17  ;;  %v19901_v17 = vld [vmem:[%s27451_s28 + $0x644] ss:$16 sps:$4 sm:$0xff]  }
 0x693   : > { %13148 = vmatpush1.bf16.msra.mxu1 %v19848_v24  ;;  %12985 = vmatprep.subr.bf16.mxu0 %v19853_v30  ;;  %v19904_v24 = vld [vmem:[%s27451_s28 + $0x64c] ss:$16 sps:$4 sm:$0xff]   ;;  %v19899_v30 = vld [vmem:[%s27451_s28 + $0x640] ss:$16 sps:$4 sm:$0xff]  }
 0x694   : > { %13149 = vmatprep.subr.bf16.mxu1 %v19856_v25  ;;  %v19902_v25 = vld [vmem:[%s27451_s28 + $0x648] ss:$16 sps:$4 sm:$0xff]  }
 0x696   : > { %12986 = vmatpush1.bf16.msra.mxu0 %v19851_v29  ;;  %v19907_v29 = vld [vmem:[%s27451_s28 + $0x664] ss:$16 sps:$4 sm:$0xff]  }
 0x697   : > { %13150 = vmatpush1.bf16.msra.mxu1 %v19854_v34  ;;  %12987 = vmatprep.subr.bf16.mxu0 %v19859_v33  ;;  %v19910_v34 = vld [vmem:[%s27451_s28 + $0x66c] ss:$16 sps:$4 sm:$0xff]   ;;  %v19905_v33 = vld [vmem:[%s27451_s28 + $0x660] ss:$16 sps:$4 sm:$0xff]  }
 0x698   : > { %13151 = vmatprep.subr.bf16.mxu1 %v19862_v52  ;;  %v19908_v52 = vld [vmem:[%s27451_s28 + $0x668] ss:$16 sps:$4 sm:$0xff]  }
 0x69a   : > { %12988 = vmatpush1.bf16.msra.mxu0 %v19857_v1  ;;  %v19913_v1 = vld [vmem:[%s27451_s28 + $0x684] ss:$16 sps:$4 sm:$0xff]  }
 0x69b   : > { %13152 = vmatpush1.bf16.msra.mxu1 %v19860_v6  ;;  %12989 = vmatprep.subr.bf16.mxu0 %v19865_v43  ;;  %v19916_v6 = vld [vmem:[%s27451_s28 + $0x68c] ss:$16 sps:$4 sm:$0xff]   ;;  %v19911_v43 = vld [vmem:[%s27451_s28 + $0x680] ss:$16 sps:$4 sm:$0xff]  }
 0x69c   : > { %13153 = vmatprep.subr.bf16.mxu1 %v19868_v23  ;;  %v19914_v23 = vld [vmem:[%s27451_s28 + $0x688] ss:$16 sps:$4 sm:$0xff]  }
 0x69e   : > { %12990 = vmatpush1.bf16.msra.mxu0 %v19863_v38  ;;  %v19919_v38 = vld [vmem:[%s27451_s28 + $0x6a4] ss:$16 sps:$4 sm:$0xff]  }
 0x69f   : > { %13154 = vmatpush1.bf16.msra.mxu1 %v19866_v45  ;;  %12991 = vmatprep.subr.bf16.mxu0 %v19871_v40  ;;  %v19922_v45 = vld [vmem:[%s27451_s28 + $0x6ac] ss:$16 sps:$4 sm:$0xff]   ;;  %v19917_v40 = vld [vmem:[%s27451_s28 + $0x6a0] ss:$16 sps:$4 sm:$0xff]  }
 0x6a0   : > { %13155 = vmatprep.subr.bf16.mxu1 %v19874_v48  ;;  %v19920_v48 = vld [vmem:[%s27451_s28 + $0x6a8] ss:$16 sps:$4 sm:$0xff]  }
 0x6a2   : > { %12992 = vmatpush1.bf16.msra.mxu0 %v19869_v61  ;;  %v19925_v61 = vld [vmem:[%s27451_s28 + $0x6c4] ss:$16 sps:$4 sm:$0xff]  }
 0x6a3   : > { %13156 = vmatpush1.bf16.msra.mxu1 %v19872_v19  ;;  %12993 = vmatprep.subr.bf16.mxu0 %v19877_v46  ;;  %v19928_v19 = vld [vmem:[%s27451_s28 + $0x6cc] ss:$16 sps:$4 sm:$0xff]   ;;  %v19923_v46 = vld [vmem:[%s27451_s28 + $0x6c0] ss:$16 sps:$4 sm:$0xff]  }
 0x6a4   : > { %13157 = vmatprep.subr.bf16.mxu1 %v19880_v53  ;;  %v19926_v53 = vld [vmem:[%s27451_s28 + $0x6c8] ss:$16 sps:$4 sm:$0xff]  }
 0x6a6   : > { %12994 = vmatpush1.bf16.msra.mxu0 %v19875_v0  ;;  %v19931_v0 = vld [vmem:[%s27451_s28 + $0x6e4] ss:$16 sps:$4 sm:$0xff]  }
 0x6a7   : > { %13158 = vmatpush1.bf16.msra.mxu1 %v19878_v31  ;;  %12995 = vmatprep.subr.bf16.mxu0 %v19883_v63  ;;  %v19934_v31 = vld [vmem:[%s27451_s28 + $0x6ec] ss:$16 sps:$4 sm:$0xff]   ;;  %v19929_v63 = vld [vmem:[%s27451_s28 + $0x6e0] ss:$16 sps:$4 sm:$0xff]  }
 0x6a8   : > { %13159 = vmatprep.subr.bf16.mxu1 %v19886_v47  ;;  %v19932_v47 = vld [vmem:[%s27451_s28 + $0x6e8] ss:$16 sps:$4 sm:$0xff]  }
 0x6aa   : > { %12996 = vmatpush1.bf16.msra.mxu0 %v19881_v49  ;;  %v19937_v49 = vld [vmem:[%s27451_s28 + $0x704] ss:$16 sps:$4 sm:$0xff]  }
 0x6ab   : > { %13160 = vmatpush1.bf16.msra.mxu1 %v19884_v51  ;;  %13006 = vmatprep.subr.bf16.mxu0 %v19889_v16  ;;  %v19940_v51 = vld [vmem:[%s27451_s28 + $0x70c] ss:$16 sps:$4 sm:$0xff]   ;;  %v19935_v16 = vld [vmem:[%s27451_s28 + $0x700] ss:$16 sps:$4 sm:$0xff]  }
 0x6ac   : > { %13170 = vmatprep.subr.bf16.mxu1 %v19892_v54  ;;  %v19938_v54 = vld [vmem:[%s27451_s28 + $0x708] ss:$16 sps:$4 sm:$0xff]  }
 0x6c0   : > { %v11137_v11 = vpop.f32.mrb[20].mxu0 }
 0x6c1   : > { %v19371_v58 = vadd.f32 %v11137_v11, %v10631_v22  ;;  %v25838_v60 = vpop.f32.mrb[20].mxu1  ;;  %v11139_v20 = vpop.f32.mrb[21].mxu0  ;;  %v19943_v22 = vld [vmem:[%s27451_s28 + $0x724] ss:$16 sps:$4 sm:$0xff]   ;;  %v19944_v11 = vld [vmem:[%s27451_s28 + $0x728] ss:$16 sps:$4 sm:$0xff]  }
 0x6c2   : > { %v19372_v2 = vadd.f32 %v11139_v20, %v10635_v55  ;;  %v11303_v3 = vpop.f32.mrb[21].mxu1  ;;  %v11141_v4 = vpop.f32.mrb[22].mxu0  ;;  %v19946_v55 = vld [vmem:[%s27451_s28 + $0x72c] ss:$16 sps:$4 sm:$0xff]  }
 0x6c3   : > { %v11312_v7 = vmax.f32 %v19371_v58, 0.0  ;;  %v19374_v36 = vadd.f32 %v11303_v3, %v10643_v57  ;;  %v11305_v26 = vpop.f32.mrb[22].mxu1  ;;  %v11142_v44 = vpop.f32.mrb[23].mxu0  ;;  %v19941_v57 = vld [vmem:[%s27451_s28 + $0x720] ss:$16 sps:$4 sm:$0xff]  }
 0x6c4   : > { %v11313_v27 = vmax.f32 %v19372_v2, 0.0  ;;  %v11306_v8 = vpop.f32.mrb[23].mxu1  ;;  %v19949_v58 = vld [vmem:[%s27451_s28 + $0x744] ss:$16 sps:$4 sm:$0xff]   ;;  %v19952_v20 = vld [vmem:[%s27451_s28 + $0x74c] ss:$16 sps:$4 sm:$0xff]  }
 0x6c5   : > { %v11315_v21 = vmax.f32 %v19374_v36, 0.0  ;;  %v11320_v10 = vpack.c.bf16 %v11312_v7, %v11312_v7  ;;  %v19947_v2 = vld [vmem:[%s27451_s28 + $0x740] ss:$16 sps:$4 sm:$0xff]   ;;  %v19950_v3 = vld [vmem:[%s27451_s28 + $0x748] ss:$16 sps:$4 sm:$0xff]  }
 0x6c6   : > { %v11321_v9 = vpack.c.bf16 %v11313_v27, %v11313_v27  ;;  %v19955_v4 = vld [vmem:[%s27451_s28 + $0x764] ss:$16 sps:$4 sm:$0xff]   ;;  %v19958_v7 = vld [vmem:[%s27451_s28 + $0x76c] ss:$16 sps:$4 sm:$0xff]   ;;  %v19953_v36 = vld [vmem:[%s27451_s28 + $0x760] ss:$16 sps:$4 sm:$0xff]  }
 0x6c7   : > { %v11323_v14 = vpack.c.bf16 %v11315_v21, %v11315_v21  ;;  %v19956_v26 = vld [vmem:[%s27451_s28 + $0x768] ss:$16 sps:$4 sm:$0xff]   ;;  %v19961_v44 = vld [vmem:[%s27451_s28 + $0x784] ss:$16 sps:$4 sm:$0xff]   ;;  %v19964_v27 = vld [vmem:[%s27451_s28 + $0x78c] ss:$16 sps:$4 sm:$0xff]  }
 0x6c8   : > { %12997 = vmatprep.mubr.bf16.mxu0 %v11321_v9  ;;  %13161 = vmatprep.mubr.bf16.mxu1 %v11321_v9  ;;  %v19959_v8 = vld [vmem:[%s27451_s28 + $0x780] ss:$16 sps:$4 sm:$0xff]   ;;  %v19962_v21 = vld [vmem:[%s27451_s28 + $0x788] ss:$16 sps:$4 sm:$0xff]   ;;  %v19967_v9 = vld [vmem:[%s27451_s28 + $0x7a4] ss:$16 sps:$4 sm:$0xff]  }
 0x6c9   : > { %12998 = vmatmul.mubr.bf16.vlgmr.msra.gmra.mrb[24].mxu0 %v11320_v10  ;;  %13162 = vmatmul.mubr.bf16.vlgmr.msra.gmra.mrb[24].mxu1 %v11320_v10  ;;  %v19968_v10 = vld [vmem:[%s27451_s28 + $0x7a8] ss:$16 sps:$4 sm:$0xff]  }
 0x6ca   : > { %13007 = vmatpush1.bf16.msra.mxu0 %v19887_v18  ;;  %13171 = vmatpush1.bf16.msra.mxu1 %v19890_v42  ;;  %v19970_v18 = vld [vmem:[%s27451_s28 + $0x7ac] ss:$16 sps:$4 sm:$0xff]   ;;  %v19965_v42 = vld [vmem:[%s27451_s28 + $0x7a0] ss:$16 sps:$4 sm:$0xff]  }
 0x6cb   : > { %13038 = vmatprep.mubr.bf16.mxu0 %v11323_v14  ;;  %13202 = vmatprep.mubr.bf16.mxu1 %v11323_v14  ;;  %v19976_v14 = vld [vmem:[%s27451_s28 + $0x7cc] ss:$16 sps:$4 sm:$0xff]  }
 0x6cc   : > { %13008 = vmatprep.subr.bf16.mxu0 %v19895_v13  ;;  %13172 = vmatprep.subr.bf16.mxu1 %v19898_v56  ;;  %v10639_v13 = vrot.slane %v25216_v37, %v22782_v59  ;;  %v19973_v56 = vld [vmem:[%s27451_s28 + $0x7c4] ss:$16 sps:$4 sm:$0xff]   ;;  %v19974_v59 = vld [vmem:[%s27451_s28 + $0x7c8] ss:$16 sps:$4 sm:$0xff]  }
 0x6ce   : > { %13009 = vmatpush1.bf16.msra.mxu0 %v19893_v15  ;;  %13173 = vmatpush1.bf16.msra.mxu1 %v19896_v35  ;;  %v19971_v15 = vld [vmem:[%s27451_s28 + $0x7c0] ss:$16 sps:$4 sm:$0xff]   ;;  %v19373_v37 = vadd.f32 %v25838_v60, %v10639_v13  ;;  %v19979_v35 = vld [vmem:[%s27451_s28 + $0x7e4] ss:$16 sps:$4 sm:$0xff]   ;;  %v19980_v60 = vld [vmem:[%s27451_s28 + $0x7e8] ss:$16 sps:$4 sm:$0xff]  }
 0x6cf   : > { %13010 = vmatprep.subr.bf16.mxu0 %v19901_v17  ;;  %13174 = vmatprep.subr.bf16.mxu1 %v19904_v24  ;;  %v19982_v17 = vld [vmem:[%s27451_s28 + $0x7ec] ss:$16 sps:$4 sm:$0xff]   ;;  %v19977_v24 = vld [vmem:[%s27451_s28 + $0x7e0] ss:$16 sps:$4 sm:$0xff]   ;;  %v20051_v13 = vld [vmem:[%s27452_s27 + $0x164] ss:$16 sps:$4 sm:$0xff]  }
 0x6d2   : > { %13011 = vmatpush1.bf16.msra.mxu0 %v19899_v30  ;;  %13175 = vmatpush1.bf16.msra.mxu1 %v19902_v25  ;;  %v11314_v30 = vmax.f32 %v19373_v37, 0.0  ;;  %v19985_v25 = vld [vmem:[%s27452_s27 + $0x4] ss:$16 sps:$4 sm:$0xff]   ;;  %v20060_v37 = vld [vmem:[%s27452_s27 + $0x18c] ss:$16 sps:$4 sm:$0xff]  }
 0x6d3   : > { %13012 = vmatprep.subr.bf16.mxu0 %v19907_v29  ;;  %13176 = vmatprep.subr.bf16.mxu1 %v19910_v34  ;;  %v19988_v29 = vld [vmem:[%s27452_s27 + $0xc] ss:$16 sps:$4 sm:$0xff]   ;;  %v19983_v34 = vld [vmem:[%s27452_s27] ss:$16 sps:$4 sm:$0xff]  }
 0x6d6   : > { %13013 = vmatpush1.bf16.msra.mxu0 %v19905_v33  ;;  %13177 = vmatpush1.bf16.msra.mxu1 %v19908_v52  ;;  %v19986_v33 = vld [vmem:[%s27452_s27 + $0x8] ss:$16 sps:$4 sm:$0xff]   ;;  %v11322_v52 = vpack.c.bf16 %v11314_v30, %v11314_v30  ;;  %v20061_v30 = vld [vmem:[%s27452_s27 + $0x1a0] ss:$16 sps:$4 sm:$0xff]  }
 0x6d7   : > { %13014 = vmatprep.subr.bf16.mxu0 %v19913_v1  ;;  %13178 = vmatprep.subr.bf16.mxu1 %v19916_v6  ;;  %v19991_v1 = vld [vmem:[%s27452_s27 + $0x24] ss:$16 sps:$4 sm:$0xff]   ;;  %v19994_v6 = vld [vmem:[%s27452_s27 + $0x2c] ss:$16 sps:$4 sm:$0xff]  }
 0x6da   : > { %13015 = vmatpush1.bf16.msra.mxu0 %v19911_v43  ;;  %13179 = vmatpush1.bf16.msra.mxu1 %v19914_v23  ;;  %v19989_v43 = vld [vmem:[%s27452_s27 + $0x20] ss:$16 sps:$4 sm:$0xff]   ;;  %v19992_v23 = vld [vmem:[%s27452_s27 + $0x28] ss:$16 sps:$4 sm:$0xff]  }
 0x6db   : > { %13016 = vmatprep.subr.bf16.mxu0 %v19919_v38  ;;  %13180 = vmatprep.subr.bf16.mxu1 %v19922_v45  ;;  %v19997_v38 = vld [vmem:[%s27452_s27 + $0x44] ss:$16 sps:$4 sm:$0xff]   ;;  %v20000_v45 = vld [vmem:[%s27452_s27 + $0x4c] ss:$16 sps:$4 sm:$0xff]  }
 0x6de   : > { %13017 = vmatpush1.bf16.msra.mxu0 %v19917_v40  ;;  %13181 = vmatpush1.bf16.msra.mxu1 %v19920_v48  ;;  %v19995_v40 = vld [vmem:[%s27452_s27 + $0x40] ss:$16 sps:$4 sm:$0xff]   ;;  %v19998_v48 = vld [vmem:[%s27452_s27 + $0x48] ss:$16 sps:$4 sm:$0xff]  }
 0x6df   : > { %13018 = vmatprep.subr.bf16.mxu0 %v19925_v61  ;;  %13182 = vmatprep.subr.bf16.mxu1 %v19928_v19  ;;  %v20003_v61 = vld [vmem:[%s27452_s27 + $0x64] ss:$16 sps:$4 sm:$0xff]   ;;  %v20006_v19 = vld [vmem:[%s27452_s27 + $0x6c] ss:$16 sps:$4 sm:$0xff]  }
 0x6e2   : > { %13019 = vmatpush1.bf16.msra.mxu0 %v19923_v46  ;;  %13183 = vmatpush1.bf16.msra.mxu1 %v19926_v53  ;;  %v20001_v46 = vld [vmem:[%s27452_s27 + $0x60] ss:$16 sps:$4 sm:$0xff]   ;;  %v20004_v53 = vld [vmem:[%s27452_s27 + $0x68] ss:$16 sps:$4 sm:$0xff]  }
 0x6e3   : > { %13020 = vmatprep.subr.bf16.mxu0 %v19931_v0  ;;  %13184 = vmatprep.subr.bf16.mxu1 %v19934_v31  ;;  %v20009_v0 = vld [vmem:[%s27452_s27 + $0x84] ss:$16 sps:$4 sm:$0xff]   ;;  %v20012_v31 = vld [vmem:[%s27452_s27 + $0x8c] ss:$16 sps:$4 sm:$0xff]  }
 0x6e6   : > { %13021 = vmatpush1.bf16.msra.mxu0 %v19929_v63  ;;  %13185 = vmatpush1.bf16.msra.mxu1 %v19932_v47  ;;  %v20007_v63 = vld [vmem:[%s27452_s27 + $0x80] ss:$16 sps:$4 sm:$0xff]   ;;  %v20010_v47 = vld [vmem:[%s27452_s27 + $0x88] ss:$16 sps:$4 sm:$0xff]  }
 0x6e7   : > { %13022 = vmatprep.subr.bf16.mxu0 %v19937_v49  ;;  %13186 = vmatprep.subr.bf16.mxu1 %v19940_v51  ;;  %v20015_v49 = vld [vmem:[%s27452_s27 + $0xa4] ss:$16 sps:$4 sm:$0xff]   ;;  %v20018_v51 = vld [vmem:[%s27452_s27 + $0xac] ss:$16 sps:$4 sm:$0xff]  }
 0x6ea   : > { %13023 = vmatpush1.bf16.msra.mxu0 %v19935_v16  ;;  %13187 = vmatpush1.bf16.msra.mxu1 %v19938_v54  ;;  %v20013_v16 = vld [vmem:[%s27452_s27 + $0xa0] ss:$16 sps:$4 sm:$0xff]   ;;  %v20016_v54 = vld [vmem:[%s27452_s27 + $0xa8] ss:$16 sps:$4 sm:$0xff]  }
 0x6eb   : > { %13024 = vmatprep.subr.bf16.mxu0 %v19943_v22  ;;  %13188 = vmatprep.subr.bf16.mxu1 %v19946_v55  ;;  %v20021_v22 = vld [vmem:[%s27452_s27 + $0xc4] ss:$16 sps:$4 sm:$0xff]   ;;  %v20024_v55 = vld [vmem:[%s27452_s27 + $0xcc] ss:$16 sps:$4 sm:$0xff]  }
 0x6ee   : > { %13025 = vmatpush1.bf16.msra.mxu0 %v19941_v57  ;;  %13189 = vmatpush1.bf16.msra.mxu1 %v19944_v11  ;;  %v20019_v57 = vld [vmem:[%s27452_s27 + $0xc0] ss:$16 sps:$4 sm:$0xff]   ;;  %v20022_v11 = vld [vmem:[%s27452_s27 + $0xc8] ss:$16 sps:$4 sm:$0xff]  }
 0x6ef   : > { %13026 = vmatprep.subr.bf16.mxu0 %v19949_v58  ;;  %13190 = vmatprep.subr.bf16.mxu1 %v19952_v20  ;;  %v20027_v58 = vld [vmem:[%s27452_s27 + $0xe4] ss:$16 sps:$4 sm:$0xff]   ;;  %v20030_v20 = vld [vmem:[%s27452_s27 + $0xec] ss:$16 sps:$4 sm:$0xff]  }
 0x6f2   : > { %13027 = vmatpush1.bf16.msra.mxu0 %v19947_v2  ;;  %13191 = vmatpush1.bf16.msra.mxu1 %v19950_v3  ;;  %v20025_v2 = vld [vmem:[%s27452_s27 + $0xe0] ss:$16 sps:$4 sm:$0xff]   ;;  %v20028_v3 = vld [vmem:[%s27452_s27 + $0xe8] ss:$16 sps:$4 sm:$0xff]  }
 0x6f3   : > { %13028 = vmatprep.subr.bf16.mxu0 %v19955_v4  ;;  %13192 = vmatprep.subr.bf16.mxu1 %v19958_v7  ;;  %v20033_v4 = vld [vmem:[%s27452_s27 + $0x104] ss:$16 sps:$4 sm:$0xff]   ;;  %v20036_v7 = vld [vmem:[%s27452_s27 + $0x10c] ss:$16 sps:$4 sm:$0xff]  }
 0x6f6   : > { %13029 = vmatpush1.bf16.msra.mxu0 %v19953_v36  ;;  %13193 = vmatpush1.bf16.msra.mxu1 %v19956_v26  ;;  %v20031_v36 = vld [vmem:[%s27452_s27 + $0x100] ss:$16 sps:$4 sm:$0xff]   ;;  %v20034_v26 = vld [vmem:[%s27452_s27 + $0x108] ss:$16 sps:$4 sm:$0xff]  }
 0x6f7   : > { %13030 = vmatprep.subr.bf16.mxu0 %v19961_v44  ;;  %13194 = vmatprep.subr.bf16.mxu1 %v19964_v27  ;;  %v20039_v44 = vld [vmem:[%s27452_s27 + $0x124] ss:$16 sps:$4 sm:$0xff]   ;;  %v20042_v27 = vld [vmem:[%s27452_s27 + $0x12c] ss:$16 sps:$4 sm:$0xff]  }
 0x6fa   : > { %13031 = vmatpush1.bf16.msra.mxu0 %v19959_v8  ;;  %13195 = vmatpush1.bf16.msra.mxu1 %v19962_v21  ;;  %v20037_v8 = vld [vmem:[%s27452_s27 + $0x120] ss:$16 sps:$4 sm:$0xff]   ;;  %v20040_v21 = vld [vmem:[%s27452_s27 + $0x128] ss:$16 sps:$4 sm:$0xff]  }
 0x6fb   : > { %13032 = vmatprep.subr.bf16.mxu0 %v19967_v9  ;;  %13196 = vmatprep.subr.bf16.mxu1 %v19970_v18  ;;  %v20045_v9 = vld [vmem:[%s27452_s27 + $0x144] ss:$16 sps:$4 sm:$0xff]   ;;  %v20048_v18 = vld [vmem:[%s27452_s27 + $0x14c] ss:$16 sps:$4 sm:$0xff]  }
 0x6fe   : > { %13033 = vmatpush1.bf16.msra.mxu0 %v19965_v42  ;;  %13197 = vmatpush1.bf16.msra.mxu1 %v19968_v10  ;;  %v20043_v42 = vld [vmem:[%s27452_s27 + $0x140] ss:$16 sps:$4 sm:$0xff]   ;;  %v20046_v10 = vld [vmem:[%s27452_s27 + $0x148] ss:$16 sps:$4 sm:$0xff]  }
 0x6ff   : > { %13034 = vmatprep.subr.bf16.mxu0 %v19973_v56  ;;  %13198 = vmatprep.subr.bf16.mxu1 %v19976_v14  ;;  %v20054_v56 = vld [vmem:[%s27452_s27 + $0x16c] ss:$16 sps:$4 sm:$0xff]   ;;  %v20049_v14 = vld [vmem:[%s27452_s27 + $0x160] ss:$16 sps:$4 sm:$0xff]  }
 0x702   : > { %13035 = vmatpush1.bf16.msra.mxu0 %v19971_v15  ;;  %13199 = vmatpush1.bf16.msra.mxu1 %v19974_v59  ;;  %v20052_v15 = vld [vmem:[%s27452_s27 + $0x168] ss:$16 sps:$4 sm:$0xff]   ;;  %v20057_v59 = vld [vmem:[%s27452_s27 + $0x184] ss:$16 sps:$4 sm:$0xff]  }
 0x703   : > { %13036 = vmatprep.subr.bf16.mxu0 %v19979_v35  ;;  %13200 = vmatprep.subr.bf16.mxu1 %v19982_v17  ;;  %v20055_v35 = vld [vmem:[%s27452_s27 + $0x180] ss:$16 sps:$4 sm:$0xff]   ;;  %v20058_v17 = vld [vmem:[%s27452_s27 + $0x188] ss:$16 sps:$4 sm:$0xff]  }
 0x706   : > { %13037 = vmatpush1.bf16.msra.mxu0 %v19977_v24  ;;  %13201 = vmatpush1.bf16.msra.mxu1 %v19980_v60  ;;  %v20063_v24 = vld [vmem:[%s27452_s27 + $0x1a4] ss:$16 sps:$4 sm:$0xff]   ;;  %v20066_v60 = vld [vmem:[%s27452_s27 + $0x1ac] ss:$16 sps:$4 sm:$0xff]  }
 0x707   : > { %14010 = vmatprep.subr.bf16.mxu0 %v19985_v25  ;;  %14092 = vmatprep.subr.bf16.mxu1 %v19988_v29  ;;  %v20064_v25 = vld [vmem:[%s27452_s27 + $0x1a8] ss:$16 sps:$4 sm:$0xff]   ;;  %v20069_v29 = vld [vmem:[%s27452_s27 + $0x1c4] ss:$16 sps:$4 sm:$0xff]  }
 0x709   : > { %13039 = vmatmul.mubr.bf16.vlgmr.msra.gmra.mrb[24].mxu0 %v11322_v52  ;;  %13203 = vmatmul.mubr.bf16.vlgmr.msra.gmra.mrb[24].mxu1 %v11322_v52  ;;  %v20070_v52 = vld [vmem:[%s27452_s27 + $0x1c8] ss:$16 sps:$4 sm:$0xff]  }
 0x70a   : > { %14011 = vmatpush1.bf16.msra.mxu0 %v19983_v34  ;;  %14093 = vmatpush1.bf16.msra.mxu1 %v19986_v33  ;;  %v20072_v34 = vld [vmem:[%s27452_s27 + $0x1cc] ss:$16 sps:$4 sm:$0xff]   ;;  %v20067_v33 = vld [vmem:[%s27452_s27 + $0x1c0] ss:$16 sps:$4 sm:$0xff]  }
 0x70b   : > { %14012 = vmatprep.subr.bf16.mxu0 %v19991_v1  ;;  %14094 = vmatprep.subr.bf16.mxu1 %v19994_v6  ;;  %v20075_v1 = vld [vmem:[%s27452_s27 + $0x1e4] ss:$16 sps:$4 sm:$0xff]   ;;  %v20078_v6 = vld [vmem:[%s27452_s27 + $0x1ec] ss:$16 sps:$4 sm:$0xff]  }
 0x70e   : > { %14013 = vmatpush1.bf16.msra.mxu0 %v19989_v43  ;;  %14095 = vmatpush1.bf16.msra.mxu1 %v19992_v23  ;;  %v20073_v43 = vld [vmem:[%s27452_s27 + $0x1e0] ss:$16 sps:$4 sm:$0xff]   ;;  %v20076_v23 = vld [vmem:[%s27452_s27 + $0x1e8] ss:$16 sps:$4 sm:$0xff]  }
 0x70f   : > { %14014 = vmatprep.subr.bf16.mxu0 %v19997_v38  ;;  %14096 = vmatprep.subr.bf16.mxu1 %v20000_v45  ;;  %v20081_v38 = vld [vmem:[%s27452_s27 + $0x204] ss:$16 sps:$4 sm:$0xff]   ;;  %v20084_v45 = vld [vmem:[%s27452_s27 + $0x20c] ss:$16 sps:$4 sm:$0xff]  }
 0x712   : > { %14015 = vmatpush1.bf16.msra.mxu0 %v19995_v40  ;;  %14097 = vmatpush1.bf16.msra.mxu1 %v19998_v48  ;;  %v26230_v40 = vld [vmem:[%s27449_s4 + $0x3] ss:$8 sm:$0xf] }
 0x713   : > { %14016 = vmatprep.subr.bf16.mxu0 %v20003_v61  ;;  %14098 = vmatprep.subr.bf16.mxu1 %v20006_v19  ;;  %v12866_v48 = vrot.slane %v26230_v40, %v20957_v5  ;;  %v12870_v61 = vrot.slane %v26230_v40, %v20831_v50  ;;  %v12878_v19 = vrot.slane %v26230_v40, %v20966_v12 }
 0x716   : > { %14017 = vmatpush1.bf16.msra.mxu0 %v20001_v46  ;;  %14099 = vmatpush1.bf16.msra.mxu1 %v20004_v53 }
 0x717   : > { %14018 = vmatprep.subr.bf16.mxu0 %v20009_v0  ;;  %14100 = vmatprep.subr.bf16.mxu1 %v20012_v31 }
 0x71a   : > { %14019 = vmatpush1.bf16.msra.mxu0 %v20007_v63  ;;  %14101 = vmatpush1.bf16.msra.mxu1 %v20010_v47 }
 0x71b   : > { %14020 = vmatprep.subr.bf16.mxu0 %v20015_v49  ;;  %14102 = vmatprep.subr.bf16.mxu1 %v20018_v51 }
 0x71e   : > { %14021 = vmatpush1.bf16.msra.mxu0 %v20013_v16  ;;  %14103 = vmatpush1.bf16.msra.mxu1 %v20016_v54 }
 0x71f   : > { %14022 = vmatprep.subr.bf16.mxu0 %v20021_v22  ;;  %14104 = vmatprep.subr.bf16.mxu1 %v20024_v55 }
 0x722   : > { %14023 = vmatpush1.bf16.msra.mxu0 %v20019_v57  ;;  %14105 = vmatpush1.bf16.msra.mxu1 %v20022_v11 }
 0x723   : > { %14024 = vmatprep.subr.bf16.mxu0 %v20027_v58  ;;  %14106 = vmatprep.subr.bf16.mxu1 %v20030_v20  ;;  %v20079_v20 = vld [vmem:[%s27452_s27 + $0x200] ss:$16 sps:$4 sm:$0xff]  }
 0x726   : > { %14025 = vmatpush1.bf16.msra.mxu0 %v20025_v2  ;;  %14107 = vmatpush1.bf16.msra.mxu1 %v20028_v3  ;;  %v20082_v2 = vld [vmem:[%s27452_s27 + $0x208] ss:$16 sps:$4 sm:$0xff]  }
 0x727   : > { %14026 = vmatprep.subr.bf16.mxu0 %v20033_v4  ;;  %14108 = vmatprep.subr.bf16.mxu1 %v20036_v7  ;;  %v20087_v4 = vld [vmem:[%s27452_s27 + $0x224] ss:$16 sps:$4 sm:$0xff]   ;;  %v20090_v7 = vld [vmem:[%s27452_s27 + $0x22c] ss:$16 sps:$4 sm:$0xff]  }
 0x72a   : > { %14027 = vmatpush1.bf16.msra.mxu0 %v20031_v36  ;;  %14109 = vmatpush1.bf16.msra.mxu1 %v20034_v26  ;;  %v20085_v26 = vld [vmem:[%s27452_s27 + $0x220] ss:$16 sps:$4 sm:$0xff]  }
 0x72b   : > { %14028 = vmatprep.subr.bf16.mxu0 %v20039_v44  ;;  %14110 = vmatprep.subr.bf16.mxu1 %v20042_v27  ;;  %v20088_v44 = vld [vmem:[%s27452_s27 + $0x228] ss:$16 sps:$4 sm:$0xff]   ;;  %v20093_v27 = vld [vmem:[%s27452_s27 + $0x244] ss:$16 sps:$4 sm:$0xff]  }
 0x72e   : > { %14029 = vmatpush1.bf16.msra.mxu0 %v20037_v8  ;;  %14111 = vmatpush1.bf16.msra.mxu1 %v20040_v21  ;;  %v20096_v8 = vld [vmem:[%s27452_s27 + $0x24c] ss:$16 sps:$4 sm:$0xff]   ;;  %v20091_v21 = vld [vmem:[%s27452_s27 + $0x240] ss:$16 sps:$4 sm:$0xff]  }
 0x72f   : > { %14030 = vmatprep.subr.bf16.mxu0 %v20045_v9  ;;  %14112 = vmatprep.subr.bf16.mxu1 %v20048_v18  ;;  %v20094_v9 = vld [vmem:[%s27452_s27 + $0x248] ss:$16 sps:$4 sm:$0xff]   ;;  %v20099_v18 = vld [vmem:[%s27452_s27 + $0x264] ss:$16 sps:$4 sm:$0xff]  }
 0x732   : > { %14031 = vmatpush1.bf16.msra.mxu0 %v20043_v42  ;;  %14113 = vmatpush1.bf16.msra.mxu1 %v20046_v10  ;;  %v20102_v42 = vld [vmem:[%s27452_s27 + $0x26c] ss:$16 sps:$4 sm:$0xff]   ;;  %v20097_v10 = vld [vmem:[%s27452_s27 + $0x260] ss:$16 sps:$4 sm:$0xff]  }
 0x733   : > { %14032 = vmatprep.subr.bf16.mxu0 %v20051_v13  ;;  %14114 = vmatprep.subr.bf16.mxu1 %v20054_v56  ;;  %v20100_v13 = vld [vmem:[%s27452_s27 + $0x268] ss:$16 sps:$4 sm:$0xff]   ;;  %v20105_v56 = vld [vmem:[%s27452_s27 + $0x284] ss:$16 sps:$4 sm:$0xff]  }
 0x736   : > { %14033 = vmatpush1.bf16.msra.mxu0 %v20049_v14  ;;  %14115 = vmatpush1.bf16.msra.mxu1 %v20052_v15  ;;  %v20108_v14 = vld [vmem:[%s27452_s27 + $0x28c] ss:$16 sps:$4 sm:$0xff]   ;;  %v20103_v15 = vld [vmem:[%s27452_s27 + $0x280] ss:$16 sps:$4 sm:$0xff]  }
 0x737   : > { %14034 = vmatprep.subr.bf16.mxu0 %v20057_v59  ;;  %14116 = vmatprep.subr.bf16.mxu1 %v20060_v37  ;;  %v20106_v59 = vld [vmem:[%s27452_s27 + $0x288] ss:$16 sps:$4 sm:$0xff]   ;;  %v20111_v37 = vld [vmem:[%s27452_s27 + $0x2a4] ss:$16 sps:$4 sm:$0xff]  }
 0x73a   : > { %14035 = vmatpush1.bf16.msra.mxu0 %v20055_v35  ;;  %14117 = vmatpush1.bf16.msra.mxu1 %v20058_v17  ;;  %v20114_v35 = vld [vmem:[%s27452_s27 + $0x2ac] ss:$16 sps:$4 sm:$0xff]   ;;  %v20109_v17 = vld [vmem:[%s27452_s27 + $0x2a0] ss:$16 sps:$4 sm:$0xff]  }
 0x73b   : > { %14036 = vmatprep.subr.bf16.mxu0 %v20063_v24  ;;  %14118 = vmatprep.subr.bf16.mxu1 %v20066_v60  ;;  %v20112_v24 = vld [vmem:[%s27452_s27 + $0x2a8] ss:$16 sps:$4 sm:$0xff]   ;;  %v20117_v60 = vld [vmem:[%s27452_s27 + $0x2c4] ss:$16 sps:$4 sm:$0xff]  }
 0x73e   : > { %14037 = vmatpush1.bf16.msra.mxu0 %v20061_v30  ;;  %14119 = vmatpush1.bf16.msra.mxu1 %v20064_v25  ;;  %v20120_v30 = vld [vmem:[%s27452_s27 + $0x2cc] ss:$16 sps:$4 sm:$0xff]   ;;  %v20115_v25 = vld [vmem:[%s27452_s27 + $0x2c0] ss:$16 sps:$4 sm:$0xff]  }
 0x73f   : > { %14038 = vmatprep.subr.bf16.mxu0 %v20069_v29  ;;  %14120 = vmatprep.subr.bf16.mxu1 %v20072_v34  ;;  %v20118_v29 = vld [vmem:[%s27452_s27 + $0x2c8] ss:$16 sps:$4 sm:$0xff]   ;;  %v20123_v34 = vld [vmem:[%s27452_s27 + $0x2e4] ss:$16 sps:$4 sm:$0xff]  }
 0x742   : > { %14039 = vmatpush1.bf16.msra.mxu0 %v20067_v33  ;;  %14121 = vmatpush1.bf16.msra.mxu1 %v20070_v52  ;;  %v20126_v33 = vld [vmem:[%s27452_s27 + $0x2ec] ss:$16 sps:$4 sm:$0xff]   ;;  %v20121_v52 = vld [vmem:[%s27452_s27 + $0x2e0] ss:$16 sps:$4 sm:$0xff]  }
 0x743   : > { %14040 = vmatprep.subr.bf16.mxu0 %v20075_v1  ;;  %14122 = vmatprep.subr.bf16.mxu1 %v20078_v6  ;;  %v20124_v1 = vld [vmem:[%s27452_s27 + $0x2e8] ss:$16 sps:$4 sm:$0xff]   ;;  %v20129_v6 = vld [vmem:[%s27452_s27 + $0x304] ss:$16 sps:$4 sm:$0xff]  }
 0x746   : > { %14041 = vmatpush1.bf16.msra.mxu0 %v20073_v43  ;;  %14123 = vmatpush1.bf16.msra.mxu1 %v20076_v23  ;;  %v20132_v43 = vld [vmem:[%s27452_s27 + $0x30c] ss:$16 sps:$4 sm:$0xff]   ;;  %v20127_v23 = vld [vmem:[%s27452_s27 + $0x300] ss:$16 sps:$4 sm:$0xff]  }
 0x747   : > { %14051 = vmatprep.subr.bf16.mxu0 %v20081_v38  ;;  %14133 = vmatprep.subr.bf16.mxu1 %v20084_v45  ;;  %v20130_v38 = vld [vmem:[%s27452_s27 + $0x308] ss:$16 sps:$4 sm:$0xff]   ;;  %v20135_v45 = vld [vmem:[%s27452_s27 + $0x324] ss:$16 sps:$4 sm:$0xff]  }
 0x7dc   : > { %v13040_v46 = vpop.f32.mrb[24].mxu0  ;;  %v26238_v53 = vpop.f32.mrb[24].mxu1 }
 0x7dd   : > { %v19375_v0 = vadd.f32 %v13040_v46, %v12866_v48  ;;  %v13042_v31 = vpop.f32.mrb[25].mxu0  ;;  %v13206_v63 = vpop.f32.mrb[25].mxu1  ;;  %v20138_v48 = vld [vmem:[%s27452_s27 + $0x32c] ss:$16 sps:$4 sm:$0xff]   ;;  %v20141_v46 = vld [vmem:[%s27452_s27 + $0x344] ss:$16 sps:$4 sm:$0xff]  }
 0x7de   : > { %v19376_v47 = vadd.f32 %v13042_v31, %v12870_v61  ;;  %v19378_v49 = vadd.f32 %v13206_v63, %v12878_v19  ;;  %v13044_v51 = vpop.f32.mrb[26].mxu0  ;;  %v13208_v16 = vpop.f32.mrb[26].mxu1  ;;  %v20133_v61 = vld [vmem:[%s27452_s27 + $0x320] ss:$16 sps:$4 sm:$0xff]   ;;  %v20136_v19 = vld [vmem:[%s27452_s27 + $0x328] ss:$16 sps:$4 sm:$0xff]  }
 0x7df   : > { %v13211_v54 = vmax.f32 %v19375_v0, 0.0  ;;  %v13045_v22 = vpop.f32.mrb[27].mxu0  ;;  %v13209_v55 = vpop.f32.mrb[27].mxu1  ;;  %v20144_v0 = vld [vmem:[%s27452_s27 + $0x34c] ss:$16 sps:$4 sm:$0xff]  }
 0x7e0   : > { %v13212_v57 = vmax.f32 %v19376_v47, 0.0  ;;  %v13214_v11 = vmax.f32 %v19378_v49, 0.0  ;;  %v20139_v31 = vld [vmem:[%s27452_s27 + $0x340] ss:$16 sps:$4 sm:$0xff]   ;;  %v20142_v63 = vld [vmem:[%s27452_s27 + $0x348] ss:$16 sps:$4 sm:$0xff]  }
 0x7e1   : > { %v13215_v3 = vpack.c.bf16 %v13211_v54, %v13211_v54  ;;  %v20147_v47 = vld [vmem:[%s27452_s27 + $0x364] ss:$16 sps:$4 sm:$0xff]   ;;  %v20150_v49 = vld [vmem:[%s27452_s27 + $0x36c] ss:$16 sps:$4 sm:$0xff]   ;;  %v20145_v51 = vld [vmem:[%s27452_s27 + $0x360] ss:$16 sps:$4 sm:$0xff]  }
 0x7e2   : > { %v13216_v58 = vpack.c.bf16 %v13212_v57, %v13212_v57  ;;  %v13218_v36 = vpack.c.bf16 %v13214_v11, %v13214_v11  ;;  %v20148_v16 = vld [vmem:[%s27452_s27 + $0x368] ss:$16 sps:$4 sm:$0xff]   ;;  %v20153_v54 = vld [vmem:[%s27452_s27 + $0x384] ss:$16 sps:$4 sm:$0xff]   ;;  %v20156_v22 = vld [vmem:[%s27452_s27 + $0x38c] ss:$16 sps:$4 sm:$0xff]  }
 0x7e3   : > { %v20151_v55 = vld [vmem:[%s27452_s27 + $0x380] ss:$16 sps:$4 sm:$0xff]   ;;  %v20154_v57 = vld [vmem:[%s27452_s27 + $0x388] ss:$16 sps:$4 sm:$0xff]   ;;  %v20159_v11 = vld [vmem:[%s27452_s27 + $0x3a4] ss:$16 sps:$4 sm:$0xff]  }
 0x7e4   : > { %14042 = vmatprep.mubr.bf16.mxu0 %v13216_v58  ;;  %14124 = vmatprep.mubr.bf16.mxu1 %v13216_v58  ;;  %v20162_v58 = vld [vmem:[%s27452_s27 + $0x3ac] ss:$16 sps:$4 sm:$0xff]  }
 0x7e5   : > { %14043 = vmatmul.mubr.bf16.vlgmr.msra.gmra.mrb[28].mxu0 %v13215_v3  ;;  %14125 = vmatmul.mubr.bf16.vlgmr.msra.gmra.mrb[28].mxu1 %v13215_v3  ;;  %v12874_v3 = vrot.slane %v26230_v40, %v21167_v28  ;;  %v20166_v40 = vld [vmem:[%s27452_s27 + $0x3c8] ss:$16 sps:$4 sm:$0xff]  }
 0x7e6   : > { %14052 = vmatpush1.bf16.msra.mxu0 %v20079_v20  ;;  %14134 = vmatpush1.bf16.msra.mxu1 %v20082_v2  ;;  %v20157_v20 = vld [vmem:[%s27452_s27 + $0x3a0] ss:$16 sps:$4 sm:$0xff]   ;;  %v20160_v2 = vld [vmem:[%s27452_s27 + $0x3a8] ss:$16 sps:$4 sm:$0xff]  }
 0x7e7   : > { %14083 = vmatprep.mubr.bf16.mxu0 %v13218_v36  ;;  %14165 = vmatprep.mubr.bf16.mxu1 %v13218_v36  ;;  %v20163_v36 = vld [vmem:[%s27452_s27 + $0x3c0] ss:$16 sps:$4 sm:$0xff]  }
 0x7e8   : > { %14053 = vmatprep.subr.bf16.mxu0 %v20087_v4  ;;  %14135 = vmatprep.subr.bf16.mxu1 %v20090_v7  ;;  %v20165_v4 = vld [vmem:[%s27452_s27 + $0x3c4] ss:$16 sps:$4 sm:$0xff]   ;;  %v20168_v7 = vld [vmem:[%s27452_s27 + $0x3cc] ss:$16 sps:$4 sm:$0xff]  }
 0x7ea   : > { %14054 = vmatpush1.bf16.msra.mxu0 %v20085_v26  ;;  %14136 = vmatpush1.bf16.msra.mxu1 %v20088_v44  ;;  %v19377_v26 = vadd.f32 %v26238_v53, %v12874_v3  ;;  %v20171_v44 = vld [vmem:[%s27452_s27 + $0x3e4] ss:$16 sps:$4 sm:$0xff]   ;;  %v20172_v53 = vld [vmem:[%s27452_s27 + $0x3e8] ss:$16 sps:$4 sm:$0xff]  }
 0x7eb   : > { %14055 = vmatprep.subr.bf16.mxu0 %v20093_v27  ;;  %14137 = vmatprep.subr.bf16.mxu1 %v20096_v8  ;;  %v20174_v27 = vld [vmem:[%s27452_s27 + $0x3ec] ss:$16 sps:$4 sm:$0xff]   ;;  %v20169_v8 = vld [vmem:[%s27452_s27 + $0x3e0] ss:$16 sps:$4 sm:$0xff]   ;;  %v20243_v3 = vld [vmem:[%s27453_s7 + $0x164] ss:$16 sps:$4 sm:$0xff]  }
 0x7ee   : > { %14056 = vmatpush1.bf16.msra.mxu0 %v20091_v21  ;;  %14138 = vmatpush1.bf16.msra.mxu1 %v20094_v9  ;;  %v13213_v21 = vmax.f32 %v19377_v26, 0.0  ;;  %v20177_v9 = vld [vmem:[%s27453_s7 + $0x4] ss:$16 sps:$4 sm:$0xff]   ;;  %v20252_v26 = vld [vmem:[%s27453_s7 + $0x18c] ss:$16 sps:$4 sm:$0xff]  }
 0x7ef   : > { %14057 = vmatprep.subr.bf16.mxu0 %v20099_v18  ;;  %14139 = vmatprep.subr.bf16.mxu1 %v20102_v42  ;;  %v20180_v18 = vld [vmem:[%s27453_s7 + $0xc] ss:$16 sps:$4 sm:$0xff]   ;;  %v20175_v42 = vld [vmem:[%s27453_s7] ss:$16 sps:$4 sm:$0xff]  }
 0x7f2   : > { %14058 = vmatpush1.bf16.msra.mxu0 %v20097_v10  ;;  %14140 = vmatpush1.bf16.msra.mxu1 %v20100_v13  ;;  %v20178_v10 = vld [vmem:[%s27453_s7 + $0x8] ss:$16 sps:$4 sm:$0xff]   ;;  %v13217_v13 = vpack.c.bf16 %v13213_v21, %v13213_v21  ;;  %v20253_v21 = vld [vmem:[%s27453_s7 + $0x1a0] ss:$16 sps:$4 sm:$0xff]  }
 0x7f3   : > { %14059 = vmatprep.subr.bf16.mxu0 %v20105_v56  ;;  %14141 = vmatprep.subr.bf16.mxu1 %v20108_v14  ;;  %v20183_v56 = vld [vmem:[%s27453_s7 + $0x24] ss:$16 sps:$4 sm:$0xff]   ;;  %v20186_v14 = vld [vmem:[%s27453_s7 + $0x2c] ss:$16 sps:$4 sm:$0xff]  }
 0x7f6   : > { %14060 = vmatpush1.bf16.msra.mxu0 %v20103_v15  ;;  %14142 = vmatpush1.bf16.msra.mxu1 %v20106_v59  ;;  %v20181_v15 = vld [vmem:[%s27453_s7 + $0x20] ss:$16 sps:$4 sm:$0xff]   ;;  %v20184_v59 = vld [vmem:[%s27453_s7 + $0x28] ss:$16 sps:$4 sm:$0xff]  }
 0x7f7   : > { %14061 = vmatprep.subr.bf16.mxu0 %v20111_v37  ;;  %14143 = vmatprep.subr.bf16.mxu1 %v20114_v35  ;;  %v20189_v37 = vld [vmem:[%s27453_s7 + $0x44] ss:$16 sps:$4 sm:$0xff]   ;;  %v20192_v35 = vld [vmem:[%s27453_s7 + $0x4c] ss:$16 sps:$4 sm:$0xff]  }
 0x7fa   : > { %14062 = vmatpush1.bf16.msra.mxu0 %v20109_v17  ;;  %14144 = vmatpush1.bf16.msra.mxu1 %v20112_v24  ;;  %v20187_v17 = vld [vmem:[%s27453_s7 + $0x40] ss:$16 sps:$4 sm:$0xff]   ;;  %v20190_v24 = vld [vmem:[%s27453_s7 + $0x48] ss:$16 sps:$4 sm:$0xff]  }
 0x7fb   : > { %14063 = vmatprep.subr.bf16.mxu0 %v20117_v60  ;;  %14145 = vmatprep.subr.bf16.mxu1 %v20120_v30  ;;  %v20195_v60 = vld [vmem:[%s27453_s7 + $0x64] ss:$16 sps:$4 sm:$0xff]   ;;  %v20198_v30 = vld [vmem:[%s27453_s7 + $0x6c] ss:$16 sps:$4 sm:$0xff]  }
 0x7fe   : > { %14064 = vmatpush1.bf16.msra.mxu0 %v20115_v25  ;;  %14146 = vmatpush1.bf16.msra.mxu1 %v20118_v29  ;;  %v20193_v25 = vld [vmem:[%s27453_s7 + $0x60] ss:$16 sps:$4 sm:$0xff]   ;;  %v20196_v29 = vld [vmem:[%s27453_s7 + $0x68] ss:$16 sps:$4 sm:$0xff]  }
 0x7ff   : > { %14065 = vmatprep.subr.bf16.mxu0 %v20123_v34  ;;  %14147 = vmatprep.subr.bf16.mxu1 %v20126_v33  ;;  %v20201_v34 = vld [vmem:[%s27453_s7 + $0x84] ss:$16 sps:$4 sm:$0xff]   ;;  %v20204_v33 = vld [vmem:[%s27453_s7 + $0x8c] ss:$16 sps:$4 sm:$0xff]  }
 0x802   : > { %14066 = vmatpush1.bf16.msra.mxu0 %v20121_v52  ;;  %14148 = vmatpush1.bf16.msra.mxu1 %v20124_v1  ;;  %v20199_v52 = vld [vmem:[%s27453_s7 + $0x80] ss:$16 sps:$4 sm:$0xff]   ;;  %v20202_v1 = vld [vmem:[%s27453_s7 + $0x88] ss:$16 sps:$4 sm:$0xff]  }
 0x803   : > { %14067 = vmatprep.subr.bf16.mxu0 %v20129_v6  ;;  %14149 = vmatprep.subr.bf16.mxu1 %v20132_v43  ;;  %v20207_v6 = vld [vmem:[%s27453_s7 + $0xa4] ss:$16 sps:$4 sm:$0xff]   ;;  %v20210_v43 = vld [vmem:[%s27453_s7 + $0xac] ss:$16 sps:$4 sm:$0xff]  }
 0x806   : > { %14068 = vmatpush1.bf16.msra.mxu0 %v20127_v23  ;;  %14150 = vmatpush1.bf16.msra.mxu1 %v20130_v38  ;;  %v20205_v23 = vld [vmem:[%s27453_s7 + $0xa0] ss:$16 sps:$4 sm:$0xff]   ;;  %v20208_v38 = vld [vmem:[%s27453_s7 + $0xa8] ss:$16 sps:$4 sm:$0xff]  }
 0x807   : > { %14069 = vmatprep.subr.bf16.mxu0 %v20135_v45  ;;  %14151 = vmatprep.subr.bf16.mxu1 %v20138_v48  ;;  %v20213_v45 = vld [vmem:[%s27453_s7 + $0xc4] ss:$16 sps:$4 sm:$0xff]   ;;  %v20216_v48 = vld [vmem:[%s27453_s7 + $0xcc] ss:$16 sps:$4 sm:$0xff]  }
 0x80a   : > { %14070 = vmatpush1.bf16.msra.mxu0 %v20133_v61  ;;  %14152 = vmatpush1.bf16.msra.mxu1 %v20136_v19  ;;  %v20211_v61 = vld [vmem:[%s27453_s7 + $0xc0] ss:$16 sps:$4 sm:$0xff]   ;;  %v20214_v19 = vld [vmem:[%s27453_s7 + $0xc8] ss:$16 sps:$4 sm:$0xff]  }
 0x80b   : > { %14071 = vmatprep.subr.bf16.mxu0 %v20141_v46  ;;  %14153 = vmatprep.subr.bf16.mxu1 %v20144_v0  ;;  %v20219_v46 = vld [vmem:[%s27453_s7 + $0xe4] ss:$16 sps:$4 sm:$0xff]   ;;  %v20222_v0 = vld [vmem:[%s27453_s7 + $0xec] ss:$16 sps:$4 sm:$0xff]  }
 0x80e   : > { %14072 = vmatpush1.bf16.msra.mxu0 %v20139_v31  ;;  %14154 = vmatpush1.bf16.msra.mxu1 %v20142_v63  ;;  %v20217_v31 = vld [vmem:[%s27453_s7 + $0xe0] ss:$16 sps:$4 sm:$0xff]   ;;  %v20220_v63 = vld [vmem:[%s27453_s7 + $0xe8] ss:$16 sps:$4 sm:$0xff]  }
 0x80f   : > { %14073 = vmatprep.subr.bf16.mxu0 %v20147_v47  ;;  %14155 = vmatprep.subr.bf16.mxu1 %v20150_v49  ;;  %v20225_v47 = vld [vmem:[%s27453_s7 + $0x104] ss:$16 sps:$4 sm:$0xff]   ;;  %v20228_v49 = vld [vmem:[%s27453_s7 + $0x10c] ss:$16 sps:$4 sm:$0xff]  }
 0x812   : > { %14074 = vmatpush1.bf16.msra.mxu0 %v20145_v51  ;;  %14156 = vmatpush1.bf16.msra.mxu1 %v20148_v16  ;;  %v20223_v51 = vld [vmem:[%s27453_s7 + $0x100] ss:$16 sps:$4 sm:$0xff]   ;;  %v20226_v16 = vld [vmem:[%s27453_s7 + $0x108] ss:$16 sps:$4 sm:$0xff]  }
 0x813   : > { %14075 = vmatprep.subr.bf16.mxu0 %v20153_v54  ;;  %14157 = vmatprep.subr.bf16.mxu1 %v20156_v22  ;;  %v20231_v54 = vld [vmem:[%s27453_s7 + $0x124] ss:$16 sps:$4 sm:$0xff]   ;;  %v20234_v22 = vld [vmem:[%s27453_s7 + $0x12c] ss:$16 sps:$4 sm:$0xff]  }
 0x816   : > { %14076 = vmatpush1.bf16.msra.mxu0 %v20151_v55  ;;  %14158 = vmatpush1.bf16.msra.mxu1 %v20154_v57  ;;  %v20229_v55 = vld [vmem:[%s27453_s7 + $0x120] ss:$16 sps:$4 sm:$0xff]   ;;  %v20232_v57 = vld [vmem:[%s27453_s7 + $0x128] ss:$16 sps:$4 sm:$0xff]  }
 0x817   : > { %14077 = vmatprep.subr.bf16.mxu0 %v20159_v11  ;;  %14159 = vmatprep.subr.bf16.mxu1 %v20162_v58  ;;  %v20237_v11 = vld [vmem:[%s27453_s7 + $0x144] ss:$16 sps:$4 sm:$0xff]   ;;  %v20240_v58 = vld [vmem:[%s27453_s7 + $0x14c] ss:$16 sps:$4 sm:$0xff]  }
 0x81a   : > { %14078 = vmatpush1.bf16.msra.mxu0 %v20157_v20  ;;  %14160 = vmatpush1.bf16.msra.mxu1 %v20160_v2  ;;  %v20235_v20 = vld [vmem:[%s27453_s7 + $0x140] ss:$16 sps:$4 sm:$0xff]   ;;  %v20238_v2 = vld [vmem:[%s27453_s7 + $0x148] ss:$16 sps:$4 sm:$0xff]  }
 0x81b   : > { %14079 = vmatprep.subr.bf16.mxu0 %v20165_v4  ;;  %14161 = vmatprep.subr.bf16.mxu1 %v20168_v7  ;;  %v20246_v4 = vld [vmem:[%s27453_s7 + $0x16c] ss:$16 sps:$4 sm:$0xff]   ;;  %v20241_v7 = vld [vmem:[%s27453_s7 + $0x160] ss:$16 sps:$4 sm:$0xff]  }
 0x81e   : > { %14080 = vmatpush1.bf16.msra.mxu0 %v20163_v36  ;;  %14162 = vmatpush1.bf16.msra.mxu1 %v20166_v40  ;;  %v20244_v36 = vld [vmem:[%s27453_s7 + $0x168] ss:$16 sps:$4 sm:$0xff]   ;;  %v20249_v40 = vld [vmem:[%s27453_s7 + $0x184] ss:$16 sps:$4 sm:$0xff]  }
 0x81f   : > { %14081 = vmatprep.subr.bf16.mxu0 %v20171_v44  ;;  %14163 = vmatprep.subr.bf16.mxu1 %v20174_v27  ;;  %v20247_v44 = vld [vmem:[%s27453_s7 + $0x180] ss:$16 sps:$4 sm:$0xff]   ;;  %v20250_v27 = vld [vmem:[%s27453_s7 + $0x188] ss:$16 sps:$4 sm:$0xff]  }
 0x822   : > { %14082 = vmatpush1.bf16.msra.mxu0 %v20169_v8  ;;  %14164 = vmatpush1.bf16.msra.mxu1 %v20172_v53  ;;  %v20255_v8 = vld [vmem:[%s27453_s7 + $0x1a4] ss:$16 sps:$4 sm:$0xff]   ;;  %v20258_v53 = vld [vmem:[%s27453_s7 + $0x1ac] ss:$16 sps:$4 sm:$0xff]  }
 0x823   : > { %14973 = vmatprep.subr.bf16.mxu0 %v20177_v9  ;;  %15055 = vmatprep.subr.bf16.mxu1 %v20180_v18  ;;  %v20256_v9 = vld [vmem:[%s27453_s7 + $0x1a8] ss:$16 sps:$4 sm:$0xff]   ;;  %v20261_v18 = vld [vmem:[%s27453_s7 + $0x1c4] ss:$16 sps:$4 sm:$0xff]  }
 0x825   : > { %14084 = vmatmul.mubr.bf16.vlgmr.msra.gmra.mrb[28].mxu0 %v13217_v13  ;;  %14166 = vmatmul.mubr.bf16.vlgmr.msra.gmra.mrb[28].mxu1 %v13217_v13  ;;  %v20262_v13 = vld [vmem:[%s27453_s7 + $0x1c8] ss:$16 sps:$4 sm:$0xff]  }
 0x826   : > { %14974 = vmatpush1.bf16.msra.mxu0 %v20175_v42  ;;  %15056 = vmatpush1.bf16.msra.mxu1 %v20178_v10  ;;  %v20264_v42 = vld [vmem:[%s27453_s7 + $0x1cc] ss:$16 sps:$4 sm:$0xff]   ;;  %v20259_v10 = vld [vmem:[%s27453_s7 + $0x1c0] ss:$16 sps:$4 sm:$0xff]  }
 0x827   : > { %14975 = vmatprep.subr.bf16.mxu0 %v20183_v56  ;;  %15057 = vmatprep.subr.bf16.mxu1 %v20186_v14  ;;  %v20267_v56 = vld [vmem:[%s27453_s7 + $0x1e4] ss:$16 sps:$4 sm:$0xff]   ;;  %v20270_v14 = vld [vmem:[%s27453_s7 + $0x1ec] ss:$16 sps:$4 sm:$0xff]  }
 0x82a   : > { %14976 = vmatpush1.bf16.msra.mxu0 %v20181_v15  ;;  %15058 = vmatpush1.bf16.msra.mxu1 %v20184_v59  ;;  %v20265_v15 = vld [vmem:[%s27453_s7 + $0x1e0] ss:$16 sps:$4 sm:$0xff]   ;;  %v20268_v59 = vld [vmem:[%s27453_s7 + $0x1e8] ss:$16 sps:$4 sm:$0xff]  }
 0x82b   : > { %14977 = vmatprep.subr.bf16.mxu0 %v20189_v37  ;;  %15059 = vmatprep.subr.bf16.mxu1 %v20192_v35  ;;  %v20273_v37 = vld [vmem:[%s27453_s7 + $0x204] ss:$16 sps:$4 sm:$0xff]   ;;  %v20276_v35 = vld [vmem:[%s27453_s7 + $0x20c] ss:$16 sps:$4 sm:$0xff]  }
 0x82e   : > { %14978 = vmatpush1.bf16.msra.mxu0 %v20187_v17  ;;  %15060 = vmatpush1.bf16.msra.mxu1 %v20190_v24  ;;  %v26630_v17 = vld [vmem:[%s27449_s4 + $0x4] ss:$8 sm:$0xf] }
 0x82f   : > { %14979 = vmatprep.subr.bf16.mxu0 %v20195_v60  ;;  %15061 = vmatprep.subr.bf16.mxu1 %v20198_v30  ;;  %v13993_v24 = vrot.slane %v26630_v17, %v20957_v5  ;;  %v13997_v60 = vrot.slane %v26630_v17, %v20831_v50  ;;  %v14005_v30 = vrot.slane %v26630_v17, %v20966_v12 }
 0x832   : > { %14980 = vmatpush1.bf16.msra.mxu0 %v20193_v25  ;;  %15062 = vmatpush1.bf16.msra.mxu1 %v20196_v29 }
 0x833   : > { %14981 = vmatprep.subr.bf16.mxu0 %v20201_v34  ;;  %15063 = vmatprep.subr.bf16.mxu1 %v20204_v33 }
 0x836   : > { %14982 = vmatpush1.bf16.msra.mxu0 %v20199_v52  ;;  %15064 = vmatpush1.bf16.msra.mxu1 %v20202_v1 }
 0x837   : > { %14983 = vmatprep.subr.bf16.mxu0 %v20207_v6  ;;  %15065 = vmatprep.subr.bf16.mxu1 %v20210_v43 }
 0x83a   : > { %14984 = vmatpush1.bf16.msra.mxu0 %v20205_v23  ;;  %15066 = vmatpush1.bf16.msra.mxu1 %v20208_v38 }
 0x83b   : > { %14985 = vmatprep.subr.bf16.mxu0 %v20213_v45  ;;  %15067 = vmatprep.subr.bf16.mxu1 %v20216_v48 }
 0x83e   : > { %14986 = vmatpush1.bf16.msra.mxu0 %v20211_v61  ;;  %15068 = vmatpush1.bf16.msra.mxu1 %v20214_v19 }
 0x83f   : > { %14987 = vmatprep.subr.bf16.mxu0 %v20219_v46  ;;  %15069 = vmatprep.subr.bf16.mxu1 %v20222_v0  ;;  %v20271_v0 = vld [vmem:[%s27453_s7 + $0x200] ss:$16 sps:$4 sm:$0xff]  }
 0x842   : > { %14988 = vmatpush1.bf16.msra.mxu0 %v20217_v31  ;;  %15070 = vmatpush1.bf16.msra.mxu1 %v20220_v63  ;;  %v20274_v31 = vld [vmem:[%s27453_s7 + $0x208] ss:$16 sps:$4 sm:$0xff]  }
 0x843   : > { %14989 = vmatprep.subr.bf16.mxu0 %v20225_v47  ;;  %15071 = vmatprep.subr.bf16.mxu1 %v20228_v49  ;;  %v20279_v47 = vld [vmem:[%s27453_s7 + $0x224] ss:$16 sps:$4 sm:$0xff]   ;;  %v20282_v49 = vld [vmem:[%s27453_s7 + $0x22c] ss:$16 sps:$4 sm:$0xff]  }
 0x846   : > { %14990 = vmatpush1.bf16.msra.mxu0 %v20223_v51  ;;  %15072 = vmatpush1.bf16.msra.mxu1 %v20226_v16  ;;  %v20277_v16 = vld [vmem:[%s27453_s7 + $0x220] ss:$16 sps:$4 sm:$0xff]  }
 0x847   : > { %14991 = vmatprep.subr.bf16.mxu0 %v20231_v54  ;;  %15073 = vmatprep.subr.bf16.mxu1 %v20234_v22  ;;  %v20280_v54 = vld [vmem:[%s27453_s7 + $0x228] ss:$16 sps:$4 sm:$0xff]   ;;  %v20285_v22 = vld [vmem:[%s27453_s7 + $0x244] ss:$16 sps:$4 sm:$0xff]  }
 0x84a   : > { %14992 = vmatpush1.bf16.msra.mxu0 %v20229_v55  ;;  %15074 = vmatpush1.bf16.msra.mxu1 %v20232_v57  ;;  %v20288_v55 = vld [vmem:[%s27453_s7 + $0x24c] ss:$16 sps:$4 sm:$0xff]   ;;  %v20283_v57 = vld [vmem:[%s27453_s7 + $0x240] ss:$16 sps:$4 sm:$0xff]  }
 0x84b   : > { %14993 = vmatprep.subr.bf16.mxu0 %v20237_v11  ;;  %15075 = vmatprep.subr.bf16.mxu1 %v20240_v58  ;;  %v20286_v11 = vld [vmem:[%s27453_s7 + $0x248] ss:$16 sps:$4 sm:$0xff]   ;;  %v20291_v58 = vld [vmem:[%s27453_s7 + $0x264] ss:$16 sps:$4 sm:$0xff]  }
 0x84e   : > { %14994 = vmatpush1.bf16.msra.mxu0 %v20235_v20  ;;  %15076 = vmatpush1.bf16.msra.mxu1 %v20238_v2  ;;  %v20294_v20 = vld [vmem:[%s27453_s7 + $0x26c] ss:$16 sps:$4 sm:$0xff]   ;;  %v20289_v2 = vld [vmem:[%s27453_s7 + $0x260] ss:$16 sps:$4 sm:$0xff]  }
 0x84f   : > { %14995 = vmatprep.subr.bf16.mxu0 %v20243_v3  ;;  %15077 = vmatprep.subr.bf16.mxu1 %v20246_v4  ;;  %v20292_v3 = vld [vmem:[%s27453_s7 + $0x268] ss:$16 sps:$4 sm:$0xff]   ;;  %v20297_v4 = vld [vmem:[%s27453_s7 + $0x284] ss:$16 sps:$4 sm:$0xff]  }
 0x852   : > { %14996 = vmatpush1.bf16.msra.mxu0 %v20241_v7  ;;  %15078 = vmatpush1.bf16.msra.mxu1 %v20244_v36  ;;  %v20300_v7 = vld [vmem:[%s27453_s7 + $0x28c] ss:$16 sps:$4 sm:$0xff]   ;;  %v20295_v36 = vld [vmem:[%s27453_s7 + $0x280] ss:$16 sps:$4 sm:$0xff]  }
 0x853   : > { %14997 = vmatprep.subr.bf16.mxu0 %v20249_v40  ;;  %15079 = vmatprep.subr.bf16.mxu1 %v20252_v26  ;;  %v20298_v40 = vld [vmem:[%s27453_s7 + $0x288] ss:$16 sps:$4 sm:$0xff]   ;;  %v20303_v26 = vld [vmem:[%s27453_s7 + $0x2a4] ss:$16 sps:$4 sm:$0xff]  }
 0x856   : > { %14998 = vmatpush1.bf16.msra.mxu0 %v20247_v44  ;;  %15080 = vmatpush1.bf16.msra.mxu1 %v20250_v27  ;;  %v20306_v44 = vld [vmem:[%s27453_s7 + $0x2ac] ss:$16 sps:$4 sm:$0xff]   ;;  %v20301_v27 = vld [vmem:[%s27453_s7 + $0x2a0] ss:$16 sps:$4 sm:$0xff]  }
 0x857   : > { %14999 = vmatprep.subr.bf16.mxu0 %v20255_v8  ;;  %15081 = vmatprep.subr.bf16.mxu1 %v20258_v53  ;;  %v20304_v8 = vld [vmem:[%s27453_s7 + $0x2a8] ss:$16 sps:$4 sm:$0xff]   ;;  %v20309_v53 = vld [vmem:[%s27453_s7 + $0x2c4] ss:$16 sps:$4 sm:$0xff]  }
 0x85a   : > { %15000 = vmatpush1.bf16.msra.mxu0 %v20253_v21  ;;  %15082 = vmatpush1.bf16.msra.mxu1 %v20256_v9  ;;  %v20312_v21 = vld [vmem:[%s27453_s7 + $0x2cc] ss:$16 sps:$4 sm:$0xff]   ;;  %v20307_v9 = vld [vmem:[%s27453_s7 + $0x2c0] ss:$16 sps:$4 sm:$0xff]  }
 0x85b   : > { %15001 = vmatprep.subr.bf16.mxu0 %v20261_v18  ;;  %15083 = vmatprep.subr.bf16.mxu1 %v20264_v42  ;;  %v20310_v18 = vld [vmem:[%s27453_s7 + $0x2c8] ss:$16 sps:$4 sm:$0xff]   ;;  %v20315_v42 = vld [vmem:[%s27453_s7 + $0x2e4] ss:$16 sps:$4 sm:$0xff]  }
 0x85e   : > { %15002 = vmatpush1.bf16.msra.mxu0 %v20259_v10  ;;  %15084 = vmatpush1.bf16.msra.mxu1 %v20262_v13  ;;  %v20318_v10 = vld [vmem:[%s27453_s7 + $0x2ec] ss:$16 sps:$4 sm:$0xff]   ;;  %v20313_v13 = vld [vmem:[%s27453_s7 + $0x2e0] ss:$16 sps:$4 sm:$0xff]  }
 0x85f   : > { %15003 = vmatprep.subr.bf16.mxu0 %v20267_v56  ;;  %15085 = vmatprep.subr.bf16.mxu1 %v20270_v14  ;;  %v20316_v56 = vld [vmem:[%s27453_s7 + $0x2e8] ss:$16 sps:$4 sm:$0xff]   ;;  %v20321_v14 = vld [vmem:[%s27453_s7 + $0x304] ss:$16 sps:$4 sm:$0xff]  }
 0x862   : > { %15004 = vmatpush1.bf16.msra.mxu0 %v20265_v15  ;;  %15086 = vmatpush1.bf16.msra.mxu1 %v20268_v59  ;;  %v20324_v15 = vld [vmem:[%s27453_s7 + $0x30c] ss:$16 sps:$4 sm:$0xff]   ;;  %v20319_v59 = vld [vmem:[%s27453_s7 + $0x300] ss:$16 sps:$4 sm:$0xff]  }
 0x863   : > { %15014 = vmatprep.subr.bf16.mxu0 %v20273_v37  ;;  %15096 = vmatprep.subr.bf16.mxu1 %v20276_v35  ;;  %v20322_v37 = vld [vmem:[%s27453_s7 + $0x308] ss:$16 sps:$4 sm:$0xff]   ;;  %v20327_v35 = vld [vmem:[%s27453_s7 + $0x324] ss:$16 sps:$4 sm:$0xff]  }
 0x8f8   : > { %v14085_v25 = vpop.f32.mrb[28].mxu0  ;;  %v26638_v29 = vpop.f32.mrb[28].mxu1 }
 0x8f9   : > { %v19379_v34 = vadd.f32 %v14085_v25, %v13993_v24  ;;  %v14087_v33 = vpop.f32.mrb[29].mxu0  ;;  %v14169_v52 = vpop.f32.mrb[29].mxu1  ;;  %v20330_v24 = vld [vmem:[%s27453_s7 + $0x32c] ss:$16 sps:$4 sm:$0xff]   ;;  %v20333_v25 = vld [vmem:[%s27453_s7 + $0x344] ss:$16 sps:$4 sm:$0xff]  }
 0x8fa   : > { %v19380_v1 = vadd.f32 %v14087_v33, %v13997_v60  ;;  %v19382_v6 = vadd.f32 %v14169_v52, %v14005_v30  ;;  %v14089_v43 = vpop.f32.mrb[30].mxu0  ;;  %v14171_v23 = vpop.f32.mrb[30].mxu1  ;;  %v20325_v60 = vld [vmem:[%s27453_s7 + $0x320] ss:$16 sps:$4 sm:$0xff]   ;;  %v20328_v30 = vld [vmem:[%s27453_s7 + $0x328] ss:$16 sps:$4 sm:$0xff]  }
 0x8fb   : > { %v14174_v38 = vmax.f32 %v19379_v34, 0.0  ;;  %v14090_v45 = vpop.f32.mrb[31].mxu0  ;;  %v14172_v48 = vpop.f32.mrb[31].mxu1  ;;  %v20336_v34 = vld [vmem:[%s27453_s7 + $0x34c] ss:$16 sps:$4 sm:$0xff]  }
 0x8fc   : > { %v14175_v61 = vmax.f32 %v19380_v1, 0.0  ;;  %v14177_v19 = vmax.f32 %v19382_v6, 0.0  ;;  %v20331_v33 = vld [vmem:[%s27453_s7 + $0x340] ss:$16 sps:$4 sm:$0xff]   ;;  %v20334_v52 = vld [vmem:[%s27453_s7 + $0x348] ss:$16 sps:$4 sm:$0xff]  }
 0x8fd   : > { %v14178_v63 = vpack.c.bf16 %v14174_v38, %v14174_v38  ;;  %v20339_v1 = vld [vmem:[%s27453_s7 + $0x364] ss:$16 sps:$4 sm:$0xff]   ;;  %v20342_v6 = vld [vmem:[%s27453_s7 + $0x36c] ss:$16 sps:$4 sm:$0xff]   ;;  %v20337_v43 = vld [vmem:[%s27453_s7 + $0x360] ss:$16 sps:$4 sm:$0xff]  }
 0x8fe   : > { %v14179_v46 = vpack.c.bf16 %v14175_v61, %v14175_v61  ;;  %v14181_v51 = vpack.c.bf16 %v14177_v19, %v14177_v19  ;;  %v20340_v23 = vld [vmem:[%s27453_s7 + $0x368] ss:$16 sps:$4 sm:$0xff]   ;;  %v20345_v38 = vld [vmem:[%s27453_s7 + $0x384] ss:$16 sps:$4 sm:$0xff]   ;;  %v20348_v45 = vld [vmem:[%s27453_s7 + $0x38c] ss:$16 sps:$4 sm:$0xff]  }
 0x8ff   : > { %v20343_v48 = vld [vmem:[%s27453_s7 + $0x380] ss:$16 sps:$4 sm:$0xff]   ;;  %v20346_v61 = vld [vmem:[%s27453_s7 + $0x388] ss:$16 sps:$4 sm:$0xff]   ;;  %v20351_v19 = vld [vmem:[%s27453_s7 + $0x3a4] ss:$16 sps:$4 sm:$0xff]  }
 0x900   : > { %15005 = vmatprep.mubr.bf16.mxu0 %v14179_v46  ;;  %15087 = vmatprep.mubr.bf16.mxu1 %v14179_v46  ;;  %v20354_v46 = vld [vmem:[%s27453_s7 + $0x3ac] ss:$16 sps:$4 sm:$0xff]  }
 0x901   : > { %15006 = vmatmul.mubr.bf16.vlgmr.msra.gmra.mrb[32].mxu0 %v14178_v63  ;;  %15088 = vmatmul.mubr.bf16.vlgmr.msra.gmra.mrb[32].mxu1 %v14178_v63  ;;  %v14001_v63 = vrot.slane %v26630_v17, %v21167_v28  ;;  %v20358_v17 = vld [vmem:[%s27453_s7 + $0x3c8] ss:$16 sps:$4 sm:$0xff]  }
 0x902   : > { %15015 = vmatpush1.bf16.msra.mxu0 %v20271_v0  ;;  %15097 = vmatpush1.bf16.msra.mxu1 %v20274_v31  ;;  %v20349_v0 = vld [vmem:[%s27453_s7 + $0x3a0] ss:$16 sps:$4 sm:$0xff]   ;;  %v20352_v31 = vld [vmem:[%s27453_s7 + $0x3a8] ss:$16 sps:$4 sm:$0xff]  }
 0x903   : > { %15046 = vmatprep.mubr.bf16.mxu0 %v14181_v51  ;;  %15128 = vmatprep.mubr.bf16.mxu1 %v14181_v51  ;;  %v20355_v51 = vld [vmem:[%s27453_s7 + $0x3c0] ss:$16 sps:$4 sm:$0xff]  }
 0x904   : > { %15016 = vmatprep.subr.bf16.mxu0 %v20279_v47  ;;  %15098 = vmatprep.subr.bf16.mxu1 %v20282_v49  ;;  %v20357_v47 = vld [vmem:[%s27453_s7 + $0x3c4] ss:$16 sps:$4 sm:$0xff]   ;;  %v20360_v49 = vld [vmem:[%s27453_s7 + $0x3cc] ss:$16 sps:$4 sm:$0xff]  }
 0x906   : > { %15017 = vmatpush1.bf16.msra.mxu0 %v20277_v16  ;;  %15099 = vmatpush1.bf16.msra.mxu1 %v20280_v54  ;;  %v19381_v16 = vadd.f32 %v26638_v29, %v14001_v63  ;;  %v20363_v54 = vld [vmem:[%s27453_s7 + $0x3e4] ss:$16 sps:$4 sm:$0xff]   ;;  %v20364_v29 = vld [vmem:[%s27453_s7 + $0x3e8] ss:$16 sps:$4 sm:$0xff]  }
 0x907   : > { %15018 = vmatprep.subr.bf16.mxu0 %v20285_v22  ;;  %15100 = vmatprep.subr.bf16.mxu1 %v20288_v55  ;;  %v20366_v22 = vld [vmem:[%s27453_s7 + $0x3ec] ss:$16 sps:$4 sm:$0xff]   ;;  %v20361_v55 = vld [vmem:[%s27453_s7 + $0x3e0] ss:$16 sps:$4 sm:$0xff]  }
 0x90a   : > { %15019 = vmatpush1.bf16.msra.mxu0 %v20283_v57  ;;  %15101 = vmatpush1.bf16.msra.mxu1 %v20286_v11  ;;  %v14176_v57 = vmax.f32 %v19381_v16, 0.0  ;;  %v20367_v11 = vld [vmem:[%s27454_s11 + $0x40] sm:$0xff]  }
 0x90b   : > { %15020 = vmatprep.subr.bf16.mxu0 %v20291_v58  ;;  %15102 = vmatprep.subr.bf16.mxu1 %v20294_v20  ;;  %v20368_v58 = vld [vmem:[%s27454_s11 + $0xc0] sm:$0xff]  }
 0x90c   : > { %v20369_v20 = vld [vmem:[%s27454_s11] sm:$0xff]  }
 0x90e   : > { %15021 = vmatpush1.bf16.msra.mxu0 %v20289_v2  ;;  %15103 = vmatpush1.bf16.msra.mxu1 %v20292_v3  ;;  %v20370_v2 = vld [vmem:[%s27454_s11 + $0x80] sm:$0xff]   ;;  %v14180_v3 = vpack.c.bf16 %v14176_v57, %v14176_v57 }
 0x90f   : > { %15022 = vmatprep.subr.bf16.mxu0 %v20297_v4  ;;  %15104 = vmatprep.subr.bf16.mxu1 %v20300_v7  ;;  %v20371_v4 = vld [vmem:[%s27454_s11 + $0x48] sm:$0xff]  }
 0x910   : > { %v20372_v7 = vld [vmem:[%s27454_s11 + $0xc8] sm:$0xff]  }
 0x912   : > { %15023 = vmatpush1.bf16.msra.mxu0 %v20295_v36  ;;  %15105 = vmatpush1.bf16.msra.mxu1 %v20298_v40  ;;  %v20373_v36 = vld [vmem:[%s27454_s11 + $0x8] sm:$0xff]  }
 0x913   : > { %15024 = vmatprep.subr.bf16.mxu0 %v20303_v26  ;;  %15106 = vmatprep.subr.bf16.mxu1 %v20306_v44  ;;  %v20374_v40 = vld [vmem:[%s27454_s11 + $0x88] sm:$0xff]   ;;  %v20375_v26 = vld [vmem:[%s27454_s11 + $0x50] sm:$0xff]  }
 0x914   : > { %v20376_v44 = vld [vmem:[%s27454_s11 + $0xd0] sm:$0xff]  }
 0x916   : > { %15025 = vmatpush1.bf16.msra.mxu0 %v20301_v27  ;;  %15107 = vmatpush1.bf16.msra.mxu1 %v20304_v8  ;;  %v20377_v27 = vld [vmem:[%s27454_s11 + $0x10] sm:$0xff]  }
 0x917   : > { %15026 = vmatprep.subr.bf16.mxu0 %v20309_v53  ;;  %15108 = vmatprep.subr.bf16.mxu1 %v20312_v21  ;;  %v20378_v8 = vld [vmem:[%s27454_s11 + $0x90] sm:$0xff]   ;;  %v20379_v53 = vld [vmem:[%s27454_s11 + $0x58] sm:$0xff]  }
 0x918   : > { %v20380_v21 = vld [vmem:[%s27454_s11 + $0xd8] sm:$0xff]  }
 0x91a   : > { %15027 = vmatpush1.bf16.msra.mxu0 %v20307_v9  ;;  %15109 = vmatpush1.bf16.msra.mxu1 %v20310_v18  ;;  %v20381_v9 = vld [vmem:[%s27454_s11 + $0x18] sm:$0xff]  }
 0x91b   : > { %15028 = vmatprep.subr.bf16.mxu0 %v20315_v42  ;;  %15110 = vmatprep.subr.bf16.mxu1 %v20318_v10  ;;  %v20382_v18 = vld [vmem:[%s27454_s11 + $0x98] sm:$0xff]   ;;  %v20383_v42 = vld [vmem:[%s27454_s11 + $0x60] sm:$0xff]  }
 0x91c   : > { %v20384_v10 = vld [vmem:[%s27454_s11 + $0xe0] sm:$0xff]  }
 0x91e   : > { %15029 = vmatpush1.bf16.msra.mxu0 %v20313_v13  ;;  %15111 = vmatpush1.bf16.msra.mxu1 %v20316_v56  ;;  %v20385_v13 = vld [vmem:[%s27454_s11 + $0x20] sm:$0xff]  }
 0x91f   : > { %15030 = vmatprep.subr.bf16.mxu0 %v20321_v14  ;;  %15112 = vmatprep.subr.bf16.mxu1 %v20324_v15  ;;  %v20386_v56 = vld [vmem:[%s27454_s11 + $0xa0] sm:$0xff]   ;;  %v20387_v14 = vld [vmem:[%s27454_s11 + $0x68] sm:$0xff]  }
 0x920   : > { %v20388_v15 = vld [vmem:[%s27454_s11 + $0xe8] sm:$0xff]  }
 0x922   : > { %15031 = vmatpush1.bf16.msra.mxu0 %v20319_v59  ;;  %15113 = vmatpush1.bf16.msra.mxu1 %v20322_v37  ;;  %v20389_v59 = vld [vmem:[%s27454_s11 + $0x28] sm:$0xff]  }
 0x923   : > { %15032 = vmatprep.subr.bf16.mxu0 %v20327_v35  ;;  %15114 = vmatprep.subr.bf16.mxu1 %v20330_v24  ;;  %v20390_v37 = vld [vmem:[%s27454_s11 + $0xa8] sm:$0xff]   ;;  %v20391_v35 = vld [vmem:[%s27454_s11 + $0x70] sm:$0xff]  }
 0x924   : > { %v20392_v24 = vld [vmem:[%s27454_s11 + $0xf0] sm:$0xff]  }
 0x926   : > { %15033 = vmatpush1.bf16.msra.mxu0 %v20325_v60  ;;  %15115 = vmatpush1.bf16.msra.mxu1 %v20328_v30  ;;  %v20393_v60 = vld [vmem:[%s27454_s11 + $0x30] sm:$0xff]  }
 0x927   : > { %15034 = vmatprep.subr.bf16.mxu0 %v20333_v25  ;;  %15116 = vmatprep.subr.bf16.mxu1 %v20336_v34  ;;  %v20394_v30 = vld [vmem:[%s27454_s11 + $0xb0] sm:$0xff]   ;;  %v20395_v25 = vld [vmem:[%s27454_s11 + $0x78] sm:$0xff]  }
 0x928   : > { %v20396_v34 = vld [vmem:[%s27454_s11 + $0xf8] sm:$0xff]  }
 0x92a   : > { %15035 = vmatpush1.bf16.msra.mxu0 %v20331_v33  ;;  %15117 = vmatpush1.bf16.msra.mxu1 %v20334_v52  ;;  %v20397_v33 = vld [vmem:[%s27454_s11 + $0x38] sm:$0xff]  }
 0x92b   : > { %15036 = vmatprep.subr.bf16.mxu0 %v20339_v1  ;;  %15118 = vmatprep.subr.bf16.mxu1 %v20342_v6  ;;  %v20398_v52 = vld [vmem:[%s27454_s11 + $0xb8] sm:$0xff]   ;;  %v20539_v1 = vmov 0.0   ;;  %s27182_s11 = scalar_lea.vmem [#allocation2], %s27416_s29 }
 0x92c   : > { %v18846_v6 = vld [vmem:[%s27449_s4 + $0x5] ss:$8 sm:$0xf] }
 0x92e   : > { %15037 = vmatpush1.bf16.msra.mxu0 %v20337_v43  ;;  %15119 = vmatpush1.bf16.msra.mxu1 %v20340_v23  ;;  %v14956_v43 = vrot.slane %v18846_v6, %v20957_v5  ;;  %v14964_v23 = vrot.slane %v18846_v6, %v21167_v28 }
 0x92f   : > { %15038 = vmatprep.subr.bf16.mxu0 %v20345_v38  ;;  %15120 = vmatprep.subr.bf16.mxu1 %v20348_v45  ;;  %v14960_v38 = vrot.slane %v18846_v6, %v20831_v50  ;;  %v14968_v45 = vrot.slane %v18846_v6, %v20966_v12  ;;  %v20414_v6 = vld [vmem:[%s27457_s10 + $0x38] sm:$0xff]  }
 0x932   : > { %15039 = vmatpush1.bf16.msra.mxu0 %v20343_v48  ;;  %15121 = vmatpush1.bf16.msra.mxu1 %v20346_v61 }
 0x933   : > { %15040 = vmatprep.subr.bf16.mxu0 %v20351_v19  ;;  %15122 = vmatprep.subr.bf16.mxu1 %v20354_v46 }
 0x936   : > { %15041 = vmatpush1.bf16.msra.mxu0 %v20349_v0  ;;  %15123 = vmatpush1.bf16.msra.mxu1 %v20352_v31 }
 0x937   : > { %15042 = vmatprep.subr.bf16.mxu0 %v20357_v47  ;;  %15124 = vmatprep.subr.bf16.mxu1 %v20360_v49 }
 0x93a   : > { %15043 = vmatpush1.bf16.msra.mxu0 %v20355_v51  ;;  %15125 = vmatpush1.bf16.msra.mxu1 %v20358_v17 }
 0x93b   : > { %15044 = vmatprep.subr.bf16.mxu0 %v20363_v54  ;;  %15126 = vmatprep.subr.bf16.mxu1 %v20366_v22 }
 0x93e   : > { %15045 = vmatpush1.bf16.msra.mxu0 %v20361_v55  ;;  %15127 = vmatpush1.bf16.msra.mxu1 %v20364_v29 }
 0x93f   : > { %19090 = vmatprep.subr.bf16.mxu0 %v20367_v11  ;;  %19112 = vmatprep.subr.bf16.mxu1 %v20368_v58  ;;  %v20399_v58 = vld [vmem:[%s27455_s0] sm:$0xff]  }
 0x941   : > { %15047 = vmatmul.mubr.bf16.vlgmr.msra.gmra.mrb[32].mxu0 %v14180_v3  ;;  %15129 = vmatmul.mubr.bf16.vlgmr.msra.gmra.mrb[32].mxu1 %v14180_v3  ;;  %v20400_v3 = vld [vmem:[%s27455_s0 + $0x8] sm:$0xff]  }
 0x942   : > { %19091 = vmatpush3.bf16.msra.mxu0 %v20369_v20  ;;  %19113 = vmatpush3.bf16.msra.mxu1 %v20370_v2 }
 0x943   : > { %19092 = vmatprep.subr.bf16.mxu0 %v20371_v4  ;;  %19114 = vmatprep.subr.bf16.mxu1 %v20372_v7  ;;  %v20401_v4 = vld [vmem:[%s27455_s0 + $0x10] sm:$0xff]   ;;  %v20402_v7 = vld [vmem:[%s27455_s0 + $0x18] sm:$0xff]  }
 0x946   : > { %19093 = vmatpush3.bf16.msra.mxu0 %v20373_v36  ;;  %19115 = vmatpush3.bf16.msra.mxu1 %v20374_v40  ;;  %v20403_v36 = vld [vmem:[%s27455_s0 + $0x20] sm:$0xff]   ;;  %v20404_v40 = vld [vmem:[%s27455_s0 + $0x28] sm:$0xff]  }
 0x947   : > { %19094 = vmatprep.subr.bf16.mxu0 %v20375_v26  ;;  %19116 = vmatprep.subr.bf16.mxu1 %v20376_v44  ;;  %v20405_v26 = vld [vmem:[%s27455_s0 + $0x30] sm:$0xff]   ;;  %v20406_v44 = vld [vmem:[%s27455_s0 + $0x38] sm:$0xff]   ;;  %s27459_s0 = smov %s27458_s8 }
 0x94a   : > { %19095 = vmatpush3.bf16.msra.mxu0 %v20377_v27  ;;  %19117 = vmatpush3.bf16.msra.mxu1 %v20378_v8  ;;  %v20407_v27 = vld [vmem:[%s27456_s30] sm:$0xff]   ;;  %v20408_v8 = vld [vmem:[%s27457_s10 + $0x8] sm:$0xff]  }
 0x94b   : > { %19096 = vmatprep.subr.bf16.mxu0 %v20379_v53  ;;  %19118 = vmatprep.subr.bf16.mxu1 %v20380_v21  ;;  %v20409_v53 = vld [vmem:[%s27457_s10 + $0x10] sm:$0xff]   ;;  %v20410_v21 = vld [vmem:[%s27457_s10 + $0x18] sm:$0xff]  }
 0x94e   : > { %19097 = vmatpush3.bf16.msra.mxu0 %v20381_v9  ;;  %19119 = vmatpush3.bf16.msra.mxu1 %v20382_v18  ;;  %v20411_v9 = vld [vmem:[%s27457_s10 + $0x20] sm:$0xff]   ;;  %v20412_v18 = vld [vmem:[%s27457_s10 + $0x28] sm:$0xff]  }
 0x94f   : > { %19098 = vmatprep.subr.bf16.mxu0 %v20383_v42  ;;  %19120 = vmatprep.subr.bf16.mxu1 %v20384_v10 }
 0x952   : > { %19099 = vmatpush3.bf16.msra.mxu0 %v20385_v13  ;;  %19121 = vmatpush3.bf16.msra.mxu1 %v20386_v56  ;;  %v15209_v13 = vld [vmem:[%s27449_s4 + $0x6] ss:$0 sm:$0xff] }
 0x953   : > { %19100 = vmatprep.subr.bf16.mxu0 %v20387_v14  ;;  %19122 = vmatprep.subr.bf16.mxu1 %v20388_v15 }
 0x956   : > { %19101 = vmatpush3.bf16.msra.mxu0 %v20389_v59  ;;  %19123 = vmatpush3.bf16.msra.mxu1 %v20390_v37 }
 0x957   : > { %19102 = vmatprep.subr.bf16.mxu0 %v20391_v35  ;;  %19124 = vmatprep.subr.bf16.mxu1 %v20392_v24 }
 0x95a   : > { %19103 = vmatpush3.bf16.msra.mxu0 %v20393_v60  ;;  %19125 = vmatpush3.bf16.msra.mxu1 %v20394_v30 }
 0x95b   : > { %19104 = vmatprep.subr.bf16.mxu0 %v20395_v25  ;;  %19126 = vmatprep.subr.bf16.mxu1 %v20396_v34 }
 0x95e   : > { %19105 = vmatpush3.bf16.msra.mxu0 %v20397_v33  ;;  %19127 = vmatpush3.bf16.msra.mxu1 %v20398_v52  ;;  %v20413_v52 = vld [vmem:[%s27457_s10 + $0x30] sm:$0xff]   ;;  %s16962_s10 = sshll.u32 %s27182_s11, 4  ;;  %s16963_s10 = int_to_ptr.vmem [resolvable:$true] %s16962_s10 }
 0x95f   : > { %19195 = vmatprep.subr.bf16.mxu0 %v20539_v1  ;;  %19215 = vmatprep.subr.bf16.mxu1 %v20539_v1  ;;  %p20482_p0 = scmp.lt.s32.totalorder %s16963_s10, %s20480_s9 }
 0xa14   : > { %v15048_v48 = vpop.f32.mrb[32].mxu0  ;;  %v15130_v61 = vpop.f32.mrb[32].mxu1 }
 0xa15   : > { %v19383_v19 = vadd.f32 %v15048_v48, %v14956_v43  ;;  %v19385_v46 = vadd.f32 %v15130_v61, %v14964_v23  ;;  %v15050_v0 = vpop.f32.mrb[33].mxu0  ;;  %v15132_v31 = vpop.f32.mrb[33].mxu1  ;;  %v20415_v43 = vld [vmem:[%s27458_s8] sm:$0xff]   ;;  %v20416_v23 = vld [vmem:[%s27459_s0 + $0x8] sm:$0xff]   ;;  %s27460_s8 = sld [smem:[#allocation24_spill]] }
 0xa16   : > { %v19384_v63 = vadd.f32 %v15050_v0, %v14960_v38  ;;  %v19386_v47 = vadd.f32 %v15132_v31, %v14968_v45  ;;  %v15052_v49 = vpop.f32.mrb[34].mxu0  ;;  %v15134_v51 = vpop.f32.mrb[34].mxu1  ;;  %v20417_v38 = vld [vmem:[%s27459_s0 + $0x10] sm:$0xff]   ;;  %v20418_v45 = vld [vmem:[%s27459_s0 + $0x18] sm:$0xff]   ;;  %v20419_v48 = vld [vmem:[%s27459_s0 + $0x20] sm:$0xff]  }
 0xa17   : > { %v15137_v17 = vmax.f32 %v19383_v19, 0.0  ;;  %v15139_v16 = vmax.f32 %v19385_v46, 0.0  ;;  %v15053_v54 = vpop.f32.mrb[35].mxu0  ;;  %v15135_v22 = vpop.f32.mrb[35].mxu1  ;;  %v20420_v61 = vld [vmem:[%s27459_s0 + $0x28] sm:$0xff]  }
 0xa18   : > { %v15138_v55 = vmax.f32 %v19384_v63, 0.0  ;;  %v15140_v29 = vmax.f32 %v19386_v47, 0.0  ;;  %v15500_v19 = vld [vmem:[%s27449_s4 + $0x7] ss:$0 sm:$0xff]  ;;  %v15607_v22 = vld [vmem:[%s27449_s4 + $0x40] ss:$0 sm:$0xff] }
 0xa19   : > { %v15141_v20 = vpack.c.bf16 %v15137_v17, %v15137_v17  ;;  %v15143_v2 = vpack.c.bf16 %v15139_v16, %v15139_v16  ;;  %v20421_v17 = vld [vmem:[%s27459_s0 + $0x30] sm:$0xff]   ;;  %v20422_v16 = vld [vmem:[%s27459_s0 + $0x38] sm:$0xff]   ;;  %s19087_s0 = sshll.u32 %s20710_s3, 4 }
 0xa1a   : > { %v15142_v57 = vpack.c.bf16 %v15138_v55, %v15138_v55  ;;  %v15144_v11 = vpack.c.bf16 %v15140_v29, %v15140_v29  ;;  %s27303_s6 = scalar_lea.hbm %s27464_s12, %s19087_s0 }
 0xa1b   : > { %s27461_s7 = smov %s27460_s8  ;;  %v20423_v54 = vld [vmem:[%s27460_s8] sm:$0xff]   ;;  %s20475_s8 = scalar_lea.vmem %s16963_s10, 16 }
 0xa1c   : > { %15434 = vmatprep.mubr.bf16.mxu0 %v15142_v57  ;;  %15474 = vmatprep.mubr.bf16.mxu1 %v15144_v11  ;;  %p20476_p11 = scmp.ne.s32.totalorder %s16963_s10, %s20475_s8 }
 0xa1d   : > { %15435 = vmatmul.mubr.bf16.vlgmr.msra.gmra.mrb[36].mxu0 %v15141_v20  ;;  %15475 = vmatmul.mubr.bf16.vlgmr.msra.gmra.mrb[36].mxu1 %v15143_v2 }
 0xa1e   : > { %19196 = vmatpush3.bf16.msra.mxu0 %v20399_v58  ;;  %19211 = vmatprep.mubr.msk.bf16.mxu0 %vm20540_vm0, %v20539_v1  ;;  %p20477_p12 = pnand %p20476_p11, %p20727_p5 }
 0xa1f   : > { %19197 = vmatprep.subr.bf16.mxu0 %v20539_v1  ;;  %19231 = vmatprep.mubr.msk.bf16.mxu1 %vm20540_vm0, %v20539_v1 }
 0xa20   : > { %19216 = vmatpush3.bf16.msra.mxu1 %v20407_v27  ;;  %p20478_p13 = pneg %p20477_p12 }
 0xa21   : > { %19217 = vmatprep.subr.bf16.mxu1 %v20539_v1 }
 0xa22   : > { %19198 = vmatpush3.bf16.msra.mxu0 %v20400_v3  ;;  %v20424_v3 = vld [vmem:[%s27461_s7 + $0x8] sm:$0xff]  }
 0xa23   : > { %19199 = vmatprep.subr.bf16.mxu0 %v20539_v1 }
 0xa24   : > { %19218 = vmatpush3.bf16.msra.mxu1 %v20408_v8  ;;  %v20425_v8 = vld [vmem:[%s27462_s13] sm:$0xff]  }
 0xa25   : > { %19219 = vmatprep.subr.bf16.mxu1 %v20539_v1 }
 0xa26   : > { %19200 = vmatpush3.bf16.msra.mxu0 %v20401_v4  ;;  %v15714_v4 = vld [vmem:[%s27449_s4 + $0x41] ss:$0 sm:$0xff] }
 0xa27   : > { %19201 = vmatprep.subr.bf16.mxu0 %v20539_v1 }
 0xa28   : > { %19220 = vmatpush3.bf16.msra.mxu1 %v20409_v53 }
 0xa29   : > { %19221 = vmatprep.subr.bf16.mxu1 %v20539_v1 }
 0xa2a   : > { %19202 = vmatpush3.bf16.msra.mxu0 %v20402_v7 }
 0xa2b   : > { %19203 = vmatprep.subr.bf16.mxu0 %v20539_v1 }
 0xa2c   : > { %19222 = vmatpush3.bf16.msra.mxu1 %v20410_v21  ;;  %v20426_v21 = vld [vmem:[%s27462_s13 + $0x8] sm:$0xff]   ;;  %s27465_s13 = sand.u32 1, %s20529_s5  }
 0xa2d   : > { %19223 = vmatprep.subr.bf16.mxu1 %v20539_v1  ;;  %s16946_s30 = scalar_lea.sflag [#allocation3], %s27465_s13 }
 0xa2e   : > { %19204 = vmatpush3.bf16.msra.mxu0 %v20403_v36 }
 0xa2f   : > { %19205 = vmatprep.subr.bf16.mxu0 %v20539_v1 }
 0xa30   : > { %19224 = vmatpush3.bf16.msra.mxu1 %v20411_v9  ;;  %v15809_v9 = vld [vmem:[%s27449_s4 + $0x42] ss:$0 sm:$0xff] }
 0xa31   : > { %19225 = vmatprep.subr.bf16.mxu1 %v20539_v1 }
 0xa32   : > { %19206 = vmatpush3.bf16.msra.mxu0 %v20404_v40 }
 0xa33   : > { %19207 = vmatprep.subr.bf16.mxu0 %v20539_v1 }
 0xa34   : > { %19226 = vmatpush3.bf16.msra.mxu1 %v20412_v18 }
 0xa35   : > { %19227 = vmatprep.subr.bf16.mxu1 %v20539_v1 }
 0xa36   : > { %19208 = vmatpush3.bf16.msra.mxu0 %v20405_v26 }
 0xa37   : > { %19209 = vmatprep.subr.bf16.mxu0 %v20539_v1 }
 0xa38   : > { %19228 = vmatpush3.bf16.msra.mxu1 %v20413_v52 }
 0xa39   : > { %19229 = vmatprep.subr.bf16.mxu1 %v20539_v1 }
 0xa3a   : > { %19210 = vmatpush3.bf16.msra.mxu0 %v20406_v44 }
 0xa3b   : > { %19235 = vmatprep.subr.bf16.mxu0 %v20539_v1 }
 0xa3c   : > { %19230 = vmatpush3.bf16.msra.mxu1 %v20414_v6 }
 0xa3d   : > { %19255 = vmatprep.subr.bf16.mxu1 %v20539_v1 }
 0xaf0   : > { %v19106_v42 = vpop.f32.mrb[36].mxu0  ;;  %v19128_v10 = vpop.f32.mrb[36].mxu1 }
 0xaf1   : > { %v19107_v56 = vpop.f32.mrb[37].mxu0  ;;  %v19129_v14 = vpop.f32.mrb[37].mxu1 }
 0xaf2   : > { %v19108_v15 = vadd.f32 %v19107_v56, %v19106_v42  ;;  %v19130_v59 = vadd.f32 %v19129_v14, %v19128_v10  ;;  %v19109_v37 = vpop.f32.mrb[38].mxu0  ;;  %v19131_v35 = vpop.f32.mrb[38].mxu1 }
 0xaf3   : > { %v19110_v24 = vpop.f32.mrb[39].mxu0  ;;  %v19132_v60 = vpop.f32.mrb[39].mxu1  ;;  %v20428_v37 = vld [vmem:[%s27463_s14 + $0x8] sm:$0xff]   ;;  %v15872_v35 = vld [vmem:[%s27449_s4 + $0x43] ss:$0 sm:$0xff] }
 0xaf4   : > { %v15437_v30 = vadd.f32 %v19108_v15, %v15209_v13  ;;  %v20427_v15 = vld [vmem:[%s27463_s14] sm:$0xff]   ;;  %s20481_s14 = scalar_lea.vmem %s20480_s9, 32 }
 0xaf5   : > { %p20483_p1 = scmp.lt.s32.totalorder %s20481_s14, %s20475_s8 }
 0xaf6   : > { %v15477_v25 = vadd.f32 %v19130_v59, %v15437_v30 }
 0xaf7   : > { %p20484_p2 = por %p20483_p1, %p20482_p0 }
 0xaf8   : > { %v15482_v34 = vmax.f32 %v15477_v25, 0.0 }
 0xaf9   : > { %p20485_p3 = pnand %p20484_p2, %p20478_p13 }
 0xafa   : > { %v15483_v33 = vpack.c.bf16 %v15482_v34, %v15482_v34  ;;  %v15992_v34 = vld [vmem:[%s27375_s15] sm:$0xf] }
 0xafc   : > { %19212 = vmatmul.mubr.bf16.vlgmr.msra.gmra.mrb[40].mxu0 %v15483_v33 }
 0xafd   : > { %19251 = vmatprep.mubr.msk.bf16.mxu0 %vm20540_vm0, %v20539_v1  ;;  %19236 = vmatpush3.bf16.msra.mxu0 %v20415_v43  ;;  %v16000_v43 = vsel %vm15998_vm2, %v15992_v34, 0  ;;  %v16294_v34 = vld [vmem:[%s27381_s21] sm:$0xf] }
 0xafe   : > { %19237 = vmatprep.subr.bf16.mxu0 %v20539_v1 }
 0xb01   : > { %19238 = vmatpush3.bf16.msra.mxu0 %v20416_v23  ;;  %v16044_v23 = vld [vmem:[%s27376_s16] sm:$0xf] }
 0xb02   : > { %19239 = vmatprep.subr.bf16.mxu0 %v20539_v1 }
 0xb05   : > { %19240 = vmatpush3.bf16.msra.mxu0 %v20417_v38  ;;  %v16050_v38 = vsel %vm15998_vm2, %v16044_v23, 0 }
 0xb06   : > { %19241 = vmatprep.subr.bf16.mxu0 %v20539_v1 }
 0xb09   : > { %19242 = vmatpush3.bf16.msra.mxu0 %v20418_v45  ;;  %v15934_v45 = vld [vmem:[%s27449_s4 + $0x44] ss:$0 sm:$0xff] }
 0xb0a   : > { %19243 = vmatprep.subr.bf16.mxu0 %v20539_v1 }
 0xb0d   : > { %19244 = vmatpush3.bf16.msra.mxu0 %v20419_v48 }
 0xb0e   : > { %19245 = vmatprep.subr.bf16.mxu0 %v20539_v1 }
 0xb11   : > { %19246 = vmatpush3.bf16.msra.mxu0 %v20420_v61 }
 0xb12   : > { %19247 = vmatprep.subr.bf16.mxu0 %v20539_v1 }
 0xb15   : > { %19248 = vmatpush3.bf16.msra.mxu0 %v20421_v17 }
 0xb16   : > { %19249 = vmatprep.subr.bf16.mxu0 %v20539_v1 }
 0xb19   : > { %19250 = vmatpush3.bf16.msra.mxu0 %v20422_v16 }
 0xb1a   : > { %19285 = vmatprep.subr.bf16.mxu0 %v20539_v1 }
 0xbcf   : > { %v15583_v46 = vpop.f32.mrb[40].mxu0 }
 0xbd0   : > { %v15584_v0 = vadd.f32 %v15583_v46, %v15500_v19  ;;  %v19213_v31 = vpop.f32.mrb[41].mxu0 }
 0xbd1   : > { %v15586_v63 = vpop.f32.mrb[42].mxu0 }
 0xbd2   : > { %v15589_v47 = vmax.f32 %v15584_v0, 0.0  ;;  %v19214_v49 = vpop.f32.mrb[43].mxu0 }
 0xbd4   : > { %v15590_v51 = vpack.c.bf16 %v15589_v47, %v15589_v47  ;;  %v16094_v47 = vld [vmem:[%s27377_s17] sm:$0xf] }
 0xbd5   : > { %v16100_v49 = vsel %vm15998_vm2, %v16094_v47, 0 }
 0xbd6   : > { %19232 = vmatmul.mubr.bf16.vlgmr.msra.gmra.mrb[40].mxu1 %v15590_v51  ;;  %v15993_v51 = vld [vmem:[%s27449_s4 + $0x45] ss:$0 sm:$0xff] }
 0xbd7   : > { %19259 = vmatprep.mubr.msk.bf16.mxu1 %vm20540_vm0, %v20539_v1  ;;  %19256 = vmatpush3.bf16.msra.mxu1 %v20423_v54 }
 0xbd8   : > { %19257 = vmatprep.subr.bf16.mxu1 %v20539_v1 }
 0xbdb   : > { %19258 = vmatpush3.bf16.msra.mxu1 %v20424_v3 }
 0xbdc   : > { %19263 = vmatprep.subr.bf16.mxu1 %v20539_v1 }
 0xca9   : > { %v15690_v55 = vpop.f32.mrb[40].mxu1 }
 0xcaa   : > { %v15691_v29 = vadd.f32 %v15690_v55, %v15607_v22  ;;  %v19233_v57 = vpop.f32.mrb[41].mxu1 }
 0xcab   : > { %v15693_v11 = vpop.f32.mrb[42].mxu1 }
 0xcac   : > { %v15696_v58 = vmax.f32 %v15691_v29, 0.0  ;;  %v19234_v20 = vpop.f32.mrb[43].mxu1  ;;  %v16144_v11 = vld [vmem:[%s27378_s18] sm:$0xf] }
 0xcad   : > { %v16045_v20 = vld [vmem:[%s27449_s4 + $0x46] ss:$0 sm:$0xff] }
 0xcae   : > { %v15697_v2 = vpack.c.bf16 %v15696_v58, %v15696_v58  ;;  %v16150_v58 = vsel %vm15998_vm2, %v16144_v11, 0 }
 0xcb0   : > { %19252 = vmatmul.mubr.bf16.vlgmr.msra.gmra.mrb[44].mxu0 %v15697_v2 }
 0xcb1   : > { %19287 = vmatprep.mubr.msk.bf16.mxu0 %vm20540_vm0, %v20539_v1  ;;  %19286 = vmatpush3.bf16.msra.mxu0 %v16050_v38 }
 0xcb2   : > { %19297 = vmatprep.subr.bf16.mxu0 %v20539_v1 }
 0xd83   : > { %v15797_v7 = vpop.f32.mrb[44].mxu0 }
 0xd84   : > { %v15798_v36 = vadd.f32 %v15797_v7, %v15714_v4  ;;  %v19253_v40 = vpop.f32.mrb[45].mxu0 }
 0xd85   : > { %v15800_v26 = vpop.f32.mrb[46].mxu0 }
 0xd86   : > { %v15803_v44 = vmax.f32 %v15798_v36, 0.0  ;;  %v19254_v27 = vpop.f32.mrb[47].mxu0 }
 0xd88   : > { %v15804_v53 = vpack.c.bf16 %v15803_v44, %v15803_v44  ;;  %v16194_v44 = vld [vmem:[%s27379_s19] sm:$0xf] }
 0xd89   : > { %v16200_v27 = vsel %vm15998_vm2, %v16194_v44, 0 }
 0xd8a   : > { %19260 = vmatmul.mubr.msk.bf16.vlgmr.msra.gmra.mrb[44].mxu1 %vm15822_vm1, %v15804_v53 }
 0xd8b   : > { %19264 = vmatpush3.bf16.msra.mxu1 %v20425_v8  ;;  %19267 = vmatprep.mubr.msk.bf16.mxu1 %vm20540_vm0, %v20539_v1  ;;  %v16095_v8 = vld [vmem:[%s27449_s4 + $0x47] ss:$0 sm:$0xff] }
 0xd8c   : > { %19265 = vmatprep.subr.bf16.mxu1 %v20539_v1 }
 0xd8f   : > { %19266 = vmatpush3.bf16.msra.mxu1 %v20426_v21 }
 0xd90   : > { %19271 = vmatprep.subr.bf16.mxu1 %v20539_v1 }
 0xe5d   : > { %v15860_v18 = vpop.f32.mrb[44].mxu1 }
 0xe5e   : > { %v15861_v42 = vadd.f32 %v15860_v18, %v15809_v9  ;;  %v19261_v10 = vpop.f32.mrb[45].mxu1 }
 0xe5f   : > { %v15863_v13 = vpop.f32.mrb[46].mxu1 }
 0xe60   : > { %v15866_v56 = vmax.f32 %v15861_v42, 0.0  ;;  %v19262_v14 = vpop.f32.mrb[47].mxu1 }
 0xe62   : > { %v15867_v59 = vpack.c.bf16 %v15866_v56, %v15866_v56  ;;  %v16244_v56 = vld [vmem:[%s27380_s20] sm:$0xf] }
 0xe63   : > { %v16250_v14 = vsel %vm15998_vm2, %v16244_v56, 0 }
 0xe64   : > { %19268 = vmatmul.mubr.msk.bf16.vlgmr.msra.gmra.mrb[48].mxu1 %vm15822_vm1, %v15867_v59 }
 0xe65   : > { %19272 = vmatpush3.bf16.msra.mxu1 %v20427_v15  ;;  %19275 = vmatprep.mubr.msk.bf16.mxu1 %vm20540_vm0, %v20539_v1  ;;  %v16145_v15 = vld [vmem:[%s27449_s4 + $0x80] ss:$0 sm:$0xff] }
 0xe66   : > { %19273 = vmatprep.subr.bf16.mxu1 %v20539_v1 }
 0xe69   : > { %19274 = vmatpush3.bf16.msra.mxu1 %v20428_v37 }
 0xe6a   : > { %19279 = vmatprep.subr.bf16.mxu1 %v20539_v1 }
 0xf37   : > { %v15922_v24 = vpop.f32.mrb[48].mxu1 }
 0xf38   : > { %v15923_v60 = vadd.f32 %v15922_v24, %v15872_v35  ;;  %v19269_v30 = vpop.f32.mrb[49].mxu1 }
 0xf39   : > { %v15925_v25 = vpop.f32.mrb[50].mxu1 }
 0xf3a   : > { %v15928_v33 = vmax.f32 %v15923_v60, 0.0  ;;  %v19270_v52 = vpop.f32.mrb[51].mxu1 }
 0xf3b   : > { %v16195_v52 = vld [vmem:[%s27449_s4 + $0x81] ss:$0 sm:$0xff] }
 0xf3c   : > { %v15929_v6 = vpack.c.bf16 %v15928_v33, %v15928_v33  ;;  %v16300_v33 = vsel %vm15998_vm2, %v16294_v34, 0  ;;  %v16457_v34 = vld [vmem:[%s27449_s4 + $0x86] ss:$0 sm:$0xff] }
 0xf3e   : > { %19276 = vmatmul.mubr.msk.bf16.vlgmr.msra.gmra.mrb[52].mxu1 %vm15822_vm1, %v15929_v6 }
 0xf3f   : > { %19280 = vmatpush3.bf16.msra.mxu1 %v16000_v43  ;;  %19281 = vmatprep.mubr.msk.bf16.mxu1 %vm20540_vm0, %v20539_v1 }
 0xf40   : > { %19291 = vmatprep.subr.bf16.mxu1 %v20539_v1 }
0x1011   : > { %v15984_v48 = vpop.f32.mrb[52].mxu1 }
0x1012   : > { %v15985_v61 = vadd.f32 %v15984_v48, %v15934_v45  ;;  %v19277_v19 = vpop.f32.mrb[53].mxu1 }
0x1013   : > { %v15987_v46 = vpop.f32.mrb[54].mxu1  ;;  %v16245_v19 = vld [vmem:[%s27449_s4 + $0x82] ss:$0 sm:$0xff] }
0x1014   : > { %v15990_v0 = vmax.f32 %v15985_v61, 0.0  ;;  %v19278_v31 = vpop.f32.mrb[55].mxu1 }
0x1016   : > { %v15991_v63 = vpack.c.bf16 %v15990_v0, %v15990_v0 }
0x1018   : > { %19282 = vmatmul.mubr.msk.bf16.vlgmr.msra.gmra.mrb[56].mxu1 %vm15994_vm3, %v15991_v63 }
0x1019   : > { %19293 = vmatprep.mubr.msk.bf16.mxu1 %vm20540_vm0, %v20539_v1  ;;  %19292 = vmatpush3.bf16.msra.mxu1 %v16100_v49 }
0x101a   : > { %19303 = vmatprep.subr.bf16.mxu1 %v20539_v1 }
0x10eb   : > { %v16036_v17 = vpop.f32.mrb[56].mxu1 }
0x10ec   : > { %v16037_v16 = vadd.f32 %v16036_v17, %v15993_v51  ;;  %v19283_v54 = vpop.f32.mrb[57].mxu1  ;;  %v20429_v17 = vld [vmem:[%s27382_s22] sm:$0xff]  }
0x10ed   : > { %v16039_v22 = vpop.f32.mrb[58].mxu1  ;;  %v16295_v54 = vld [vmem:[%s27449_s4 + $0x83] ss:$0 sm:$0xff] }
0x10ee   : > { %v16042_v55 = vmax.f32 %v16037_v16, 0.0  ;;  %v19284_v29 = vpop.f32.mrb[59].mxu1  ;;  %v20430_v16 = vld [vmem:[%s27383_s23] sm:$0xff]  }
0x10f0   : > { %v16043_v57 = vpack.c.bf16 %v16042_v55, %v16042_v55 }
0x10f2   : > { %19288 = vmatmul.mubr.msk.bf16.vlgmr.msra.gmra.mrb[48].mxu0 %vm15994_vm3, %v16043_v57 }
0x10f3   : > { %19299 = vmatprep.mubr.msk.bf16.mxu0 %vm20540_vm0, %v20539_v1  ;;  %19298 = vmatpush3.bf16.msra.mxu0 %v16150_v58 }
0x10f4   : > { %19309 = vmatprep.subr.bf16.mxu0 %v20539_v1 }
0x11c5   : > { %v16086_v2 = vpop.f32.mrb[48].mxu0 }
0x11c6   : > { %v16087_v3 = vadd.f32 %v16086_v2, %v16045_v20  ;;  %v19289_v4 = vpop.f32.mrb[49].mxu0  ;;  %v20431_v2 = vld [vmem:[%s27384_s24] sm:$0xff]  }
0x11c7   : > { %v16089_v7 = vpop.f32.mrb[50].mxu0 }
0x11c8   : > { %v16092_v36 = vmax.f32 %v16087_v3, 0.0  ;;  %v19290_v40 = vpop.f32.mrb[51].mxu0  ;;  %v16348_v3 = vld [vmem:[%s27449_s4 + $0x84] ss:$0 sm:$0xff] }
0x11ca   : > { %v16093_v26 = vpack.c.bf16 %v16092_v36, %v16092_v36 }
0x11cc   : > { %19294 = vmatmul.mubr.msk.bf16.vlgmr.msra.gmra.mrb[60].mxu1 %vm15994_vm3, %v16093_v26 }
0x11cd   : > { %19305 = vmatprep.mubr.msk.bf16.mxu1 %vm20540_vm0, %v20539_v1  ;;  %19304 = vmatpush3.bf16.msra.mxu1 %v16200_v27 }
0x11ce   : > { %19315 = vmatprep.subr.bf16.mxu1 %v20539_v1 }
0x129f   : > { %v16136_v53 = vpop.f32.mrb[60].mxu1 }
0x12a0   : > { %v16137_v21 = vadd.f32 %v16136_v53, %v16095_v8  ;;  %v19295_v9 = vpop.f32.mrb[61].mxu1  ;;  %v20432_v8 = vld [vmem:[%s27385_s25] sm:$0xff]   ;;  %v20433_v53 = vld [vmem:[%s27385_s25 + $0x8] sm:$0xff]  }
0x12a1   : > { %v16139_v18 = vpop.f32.mrb[62].mxu1 }
0x12a2   : > { %v16142_v42 = vmax.f32 %v16137_v21, 0.0  ;;  %v19296_v10 = vpop.f32.mrb[63].mxu1  ;;  %v16403_v21 = vld [vmem:[%s27449_s4 + $0x85] ss:$0 sm:$0xff] }
0x12a4   : > { %v16143_v13 = vpack.c.bf16 %v16142_v42, %v16142_v42 }
0x12a6   : > { %19300 = vmatmul.mubr.msk.bf16.vlgmr.msra.gmra.mrb[52].mxu0 %vm15994_vm3, %v16143_v13 }
0x12a7   : > { %19311 = vmatprep.mubr.msk.bf16.mxu0 %vm20540_vm0, %v20539_v1  ;;  %19310 = vmatpush3.bf16.msra.mxu0 %v16250_v14 }
0x12a8   : > { %19321 = vmatprep.subr.bf16.mxu0 %v20539_v1 }
0x1379   : > { %v16186_v59 = vpop.f32.mrb[52].mxu0 }
0x137a   : > { %v16187_v37 = vadd.f32 %v16186_v59, %v16145_v15  ;;  %v19301_v35 = vpop.f32.mrb[53].mxu0  ;;  %v20434_v15 = vld [vmem:[%s27385_s25 + $0x10] sm:$0xff]   ;;  %v20435_v59 = vld [vmem:[%s27385_s25 + $0x18] sm:$0xff]  }
0x137b   : > { %v16189_v24 = vpop.f32.mrb[54].mxu0  ;;  %v20438_v35 = vld [vmem:[%s27386_s26 + $0x4] ss:$24 sps:$4 sm:$0xff]  }
0x137c   : > { %v16192_v60 = vmax.f32 %v16187_v37, 0.0  ;;  %v19302_v30 = vpop.f32.mrb[55].mxu0  ;;  %v20436_v37 = vld [vmem:[%s27386_s26] ss:$24 sps:$4 sm:$0xff]   ;;  %v20441_v24 = vld [vmem:[%s27386_s26 + $0xc] ss:$24 sps:$4 sm:$0xff]  }
0x137d   : > { %v20450_v30 = vld [vmem:[%s27386_s26 + $0x64] ss:$24 sps:$4 sm:$0xff]  }
0x137e   : > { %v16193_v25 = vpack.c.bf16 %v16192_v60, %v16192_v60  ;;  %v20442_v60 = vld [vmem:[%s27386_s26 + $0x30] ss:$24 sps:$4 sm:$0xff]  }
0x1380   : > { %19306 = vmatmul.mubr.msk.bf16.vlgmr.msra.gmra.mrb[64].mxu1 %vm15994_vm3, %v16193_v25  ;;  %v20448_v25 = vld [vmem:[%s27386_s26 + $0x60] ss:$24 sps:$4 sm:$0xff]  }
0x1381   : > { %19317 = vmatprep.mubr.msk.bf16.mxu1 %vm20540_vm0, %v20539_v1  ;;  %19316 = vmatpush3.bf16.msra.mxu1 %v16300_v33 }
0x1382   : > { %19327 = vmatprep.subr.bf16.mxu1 %v20539_v1 }
0x1453   : > { %v16236_v6 = vpop.f32.mrb[64].mxu1 }
0x1454   : > { %v16237_v43 = vadd.f32 %v16236_v6, %v16195_v52  ;;  %v19307_v23 = vpop.f32.mrb[65].mxu1 }
0x1455   : > { %v16239_v38 = vpop.f32.mrb[66].mxu1 }
0x1456   : > { %v16242_v45 = vmax.f32 %v16237_v43, 0.0  ;;  %v19308_v48 = vpop.f32.mrb[67].mxu1 }
0x1458   : > { %v16243_v61 = vpack.c.bf16 %v16242_v45, %v16242_v45  ;;  %v20439_v45 = vld [vmem:[%s27386_s26 + $0x8] ss:$24 sps:$4 sm:$0xff]  }
0x145a   : > { %19312 = vmatmul.mubr.msk.bf16.vlgmr.msra.gmra.mrb[56].mxu0 %vm15994_vm3, %v16243_v61  ;;  %v20447_v61 = vld [vmem:[%s27386_s26 + $0x3c] ss:$24 sps:$4 sm:$0xff]  }
0x145b   : > { %19323 = vmatprep.mubr.msk.bf16.mxu0 %vm20540_vm0, %v20539_v1  ;;  %19322 = vmatpush3.bf16.msra.mxu0 %v20429_v17  ;;  %v20541_v17 = vmov 0  }
0x145c   : > { %19333 = vmatprep.subr.bf16.mxu0 %v20539_v1 }
0x152d   : > { %v16286_v46 = vpop.f32.mrb[56].mxu0 }
0x152e   : > { %v16287_v0 = vadd.f32 %v16286_v46, %v16245_v19  ;;  %v19313_v31 = vpop.f32.mrb[57].mxu0  ;;  %v20445_v19 = vld [vmem:[%s27386_s26 + $0x38] ss:$24 sps:$4 sm:$0xff]   ;;  %v20453_v46 = vld [vmem:[%s27386_s26 + $0x6c] ss:$24 sps:$4 sm:$0xff]  }
0x152f   : > { %v16289_v63 = vpop.f32.mrb[58].mxu0  ;;  %v20456_v31 = vld [vmem:[%s27386_s26 + $0x94] ss:$24 sps:$4 sm:$0xff]  }
0x1530   : > { %v16292_v47 = vmax.f32 %v16287_v0, 0.0  ;;  %v19314_v49 = vpop.f32.mrb[59].mxu0  ;;  %v20451_v0 = vld [vmem:[%s27386_s26 + $0x68] ss:$24 sps:$4 sm:$0xff]  }
0x1531   : > { %v20454_v63 = vld [vmem:[%s27386_s26 + $0x90] ss:$24 sps:$4 sm:$0xff]  }
0x1532   : > { %v16293_v51 = vpack.c.bf16 %v16292_v47, %v16292_v47  ;;  %v20459_v47 = vld [vmem:[%s27386_s26 + $0x9c] ss:$24 sps:$4 sm:$0xff]   ;;  %v20457_v49 = vld [vmem:[%s27386_s26 + $0x98] ss:$24 sps:$4 sm:$0xff]  }
0x1534   : > { %19318 = vmatmul.mubr.msk.bf16.vlgmr.msra.gmra.mrb[68].mxu1 %vm15994_vm3, %v16293_v51  ;;  %v20462_v51 = vld [vmem:[%s27386_s26 + $0x14] ss:$24 sps:$4 sm:$0xff]  }
0x1535   : > { %19329 = vmatprep.mubr.msk.bf16.mxu1 %vm20540_vm0, %v20539_v1  ;;  %19328 = vmatpush3.bf16.msra.mxu1 %v20430_v16  ;;  %v16517_v16 = vld [vmem:[%s27449_s4 + $0x87] ss:$0 sm:$0xff] }
0x1536   : > { %19339 = vmatprep.subr.bf16.mxu1 %v20539_v1 }
0x1607   : > { %v16336_v22 = vpop.f32.mrb[68].mxu1 }
0x1608   : > { %v16337_v55 = vadd.f32 %v16336_v22, %v16295_v54  ;;  %v19319_v29 = vpop.f32.mrb[69].mxu1 }
0x1609   : > { %v16339_v57 = vpop.f32.mrb[70].mxu1 }
0x160a   : > { %20472 = vtanh.f32 %v16337_v55  ;;  %v19320_v11 = vpop.f32.mrb[71].mxu1 }
0x1614   : > { %v20473_v58 = vpop.eup %20472 }
0x1615   : > { %v16345_v20 = vpack.c.bf16 %v20473_v58, %v20473_v58  ;;  %16344 = vst.msk [vmem:[%s27182_s11] sm:$0x1] %vm16343_vm4, %v20473_v58  ;;  %v20460_v58 = vld [vmem:[%s27386_s26 + $0x10] ss:$24 sps:$4 sm:$0xff]  }
0x1617   : > { %19324 = vmatmul.mubr.msk.bf16.vlgmr.msra.gmra.mrb[60].mxu0 %vm16355_vm5, %v16345_v20 }
0x1618   : > { %19335 = vmatprep.mubr.msk.bf16.mxu0 %vm20540_vm0, %v20539_v1  ;;  %19334 = vmatpush3.bf16.msra.mxu0 %v20431_v2  ;;  %v20465_v2 = vld [vmem:[%s27386_s26 + $0x44] ss:$24 sps:$4 sm:$0xff]  }
0x1619   : > { %16770 = vmatprep.subr.bf16.mxu0 %v20438_v35 }
0x16ea   : > { %v16393_v4 = vpop.f32.mrb[60].mxu0 }
0x16eb   : > { %v16394_v7 = vadd.f32 %v16393_v4, %v16348_v3  ;;  %v19325_v36 = vpop.f32.mrb[61].mxu0  ;;  %v20463_v3 = vld [vmem:[%s27386_s26 + $0x40] ss:$24 sps:$4 sm:$0xff]   ;;  %v20468_v4 = vld [vmem:[%s27386_s26 + $0x74] ss:$24 sps:$4 sm:$0xff]  }
0x16ec   : > { %v16396_v40 = vpop.f32.mrb[62].mxu0  ;;  %v20471_v36 = vld [vmem:[%s27386_s26 + $0xa4] ss:$24 sps:$4 sm:$0xff]  }
0x16ed   : > { %v16399_v26 = vmax.f32 %v16394_v7, 0.0  ;;  %v19326_v44 = vpop.f32.mrb[63].mxu0  ;;  %v20466_v7 = vld [vmem:[%s27386_s26 + $0x70] ss:$24 sps:$4 sm:$0xff]   ;;  %v20469_v40 = vld [vmem:[%s27386_s26 + $0xa0] ss:$24 sps:$4 sm:$0xff]  }
0x16ef   : > { %v16400_v27 = vpack.c.bf16 %v16399_v26, %v16399_v26 }
0x16f1   : > { %19330 = vmatmul.mubr.msk.bf16.vlgmr.msra.gmra.mrb[72].mxu1 %vm16355_vm5, %v16400_v27 }
0x16f2   : > { %19347 = vmatprep.mubr.msk.bf16.mxu1 %vm20540_vm0, %v20539_v1  ;;  %19340 = vmatpush3.bf16.msra.mxu1 %v20432_v8 }
0x16f3   : > { %19341 = vmatprep.subr.bf16.mxu1 %v20539_v1 }
0x16f6   : > { %19342 = vmatpush3.bf16.msra.mxu1 %v20433_v53 }
0x16f7   : > { %19343 = vmatprep.subr.bf16.mxu1 %v20539_v1 }
0x16fa   : > { %19344 = vmatpush3.bf16.msra.mxu1 %v20434_v15 }
0x16fb   : > { %19345 = vmatprep.subr.bf16.mxu1 %v20539_v1  ;;  %v20444_v1 = vld [vmem:[%s27386_s26 + $0x34] ss:$24 sps:$4 sm:$0xff]  }
0x16fe   : > { %19346 = vmatpush3.bf16.msra.mxu1 %v20435_v59 }
0x16ff   : > { %16811 = vmatprep.subr.bf16.mxu1 %v20441_v24 }
0x17c4   : > { %v16447_v9 = vpop.f32.mrb[72].mxu1 }
0x17c5   : > { %v16448_v18 = vadd.f32 %v16447_v9, %v16403_v21  ;;  %v19331_v42 = vpop.f32.mrb[73].mxu1 }
0x17c6   : > { %v16450_v10 = vpop.f32.mrb[74].mxu1 }
0x17c7   : > { %v16453_v13 = vmax.f32 %v16448_v18, 0.0  ;;  %v19332_v56 = vpop.f32.mrb[75].mxu1 }
0x17c9   : > { %v16454_v14 = vpack.c.bf16 %v16453_v13, %v16453_v13 }
0x17cb   : > { %19336 = vmatmul.mubr.msk.bf16.vlgmr.msra.gmra.mrb[64].mxu0 %vm16355_vm5, %v16454_v14 }
0x17cc   : > { %16771 = vmatpush1.bf16.msra.mxu0 %v20436_v37  ;;  %16802 = vmatprep.mubr.bf16.mxu0 %v20541_v17 }
0x17cd   : > { %16772 = vmatprep.subr.bf16.mxu0 %v20444_v1 }
0x17d0   : > { %16773 = vmatpush1.bf16.msra.mxu0 %v20442_v60 }
0x17d1   : > { %16774 = vmatprep.subr.bf16.mxu0 %v20450_v30 }
0x17d4   : > { %16775 = vmatpush1.bf16.msra.mxu0 %v20448_v25 }
0x17d5   : > { %16776 = vmatprep.subr.bf16.mxu0 %v20456_v31 }
0x17d8   : > { %16777 = vmatpush1.bf16.msra.mxu0 %v20454_v63 }
0x17d9   : > { %16852 = vmatprep.subr.bf16.mxu0 %v20462_v51 }
0x189e   : > { %v16501_v33 = vpop.f32.mrb[64].mxu0 }
0x189f   : > { %v16502_v52 = vadd.f32 %v16501_v33, %v16457_v34  ;;  %v19337_v6 = vpop.f32.mrb[65].mxu0 }
0x18a0   : > { %v16504_v43 = vpop.f32.mrb[66].mxu0 }
0x18a1   : > { %v16507_v23 = vmax.f32 %v16502_v52, 0.0  ;;  %v19338_v38 = vpop.f32.mrb[67].mxu0 }
0x18a3   : > { %v16508_v48 = vpack.c.bf16 %v16507_v23, %v16507_v23 }
0x18a5   : > { %19348 = vmatmul.mubr.msk.bf16.vlgmr.msra.gmra.mrb[76].mxu1 %vm16542_vm6, %v16508_v48 }
0x18a6   : > { %16812 = vmatpush1.bf16.msra.mxu1 %v20439_v45  ;;  %16843 = vmatprep.mubr.bf16.mxu1 %v20541_v17 }
0x18a7   : > { %16813 = vmatprep.subr.bf16.mxu1 %v20447_v61 }
0x18aa   : > { %16814 = vmatpush1.bf16.msra.mxu1 %v20445_v19 }
0x18ab   : > { %16815 = vmatprep.subr.bf16.mxu1 %v20453_v46 }
0x18ae   : > { %16816 = vmatpush1.bf16.msra.mxu1 %v20451_v0 }
0x18af   : > { %16817 = vmatprep.subr.bf16.mxu1 %v20459_v47 }
0x18b2   : > { %16818 = vmatpush1.bf16.msra.mxu1 %v20457_v49 }
0x1978   : > { %v16580_v54 = vpop.f32.mrb[76].mxu1 }
0x1979   : > { %v16581_v22 = vadd.f32 %v16580_v54, %v16517_v16  ;;  %v19349_v55 = vpop.f32.mrb[77].mxu1 }
0x197a   : > { %v16583_v29 = vpop.f32.mrb[78].mxu1 }
0x197b   : > { %v16586_v57 = vmax.f32 %v16581_v22, 0.0  ;;  %v19350_v11 = vpop.f32.mrb[79].mxu1 }
0x197d   : > { %v16587_v20 = vpack.c.bf16 %v16586_v57, %v16586_v57 }
0x197f   : > { %19084 = vmatmul.mubr.msk.bf16.vlgmr.msra.gmra.mrb[68].mxu0 %vm16542_vm6, %v16587_v20  ;;  %19085 = vmatmul.mubr.msk.bf16.vlgmr.msra.gmra.mrb[80].mxu1 %vm16542_vm6, %v16587_v20 }
0x1980   : > { %16853 = vmatpush1.bf16.msra.mxu0 %v20460_v58  ;;  %16884 = vmatprep.mubr.bf16.mxu0 %v20541_v17 }
0x1981   : > { %16854 = vmatprep.subr.bf16.mxu0 %v20465_v2 }
0x1984   : > { %16855 = vmatpush1.bf16.msra.mxu0 %v20463_v3 }
0x1985   : > { %16856 = vmatprep.subr.bf16.mxu0 %v20468_v4 }
0x1988   : > { %16857 = vmatpush1.bf16.msra.mxu0 %v20466_v7 }
0x1989   : > { %16858 = vmatprep.subr.bf16.mxu0 %v20471_v36 }
0x198c   : > { %16859 = vmatpush1.bf16.msra.mxu0 %v20469_v40 }
0x198f   : > { %19086 = vmatmul.mubr.msk.bf16.vlgmr.msra.gmra.mrb[72].mxu0 %vm16542_vm6, %v16587_v20 }
0x1990   : > { %20488 = shalt.err (!%p20485_p3)
}
0x1991   : > { %s20489_s13 = scalar_lea.hbm %s27303_s6, 16  ;;  %s20493_s0 = scalar_lea.hbm %s27464_s12, 32 }
0x1992   : > { %p20490_p4 = scmp.ne.s32.totalorder %s27303_s6, %s20489_s13  ;;  %p20494_p9 = scmp.lt.u32.totalorder %s27303_s6, %s27464_s12 }
0x1993   : > { %p20495_p10 = scmp.lt.u32.totalorder %s20493_s0, %s20489_s13  ;;  %p20497_p12 = scmp.lt.u32.totalorder %s20489_s13, %s27303_s6 }
0x1994   : > { %p20491_p7 = pnand %p20490_p4, %p20727_p5 }
0x1995   : > { %p20496_p11 = por %p20495_p10, %p20494_p9 }
0x1996   : > { %p20492_p8 = pneg %p20491_p7 }
0x1997   : > { %p20498_p13 = por %p20497_p12, %p20496_p11 }
0x1999   : > { %p20499_p0 = pnand %p20498_p13, %p20492_p8 }
0x199b   : > { %20502 = shalt.err (!%p20499_p0)
}
0x199c   : > { %19556 = dma.vmem_to_hbm [thread:$0]  (%p20727_p5), %s16963_s10, 16, %s27303_s6, %s16946_s30   ;;  %v19058_v26 = vld [vmem:[%s27449_s4 + $0xc0] ss:$8 sm:$0xf]  ;;  %v20543_v8 = vmov 1966171168  }
0x199d   : > { %v19059_v44 = vld [vmem:[%s27449_s4 + $0xc0] ss:$8 sm:$0x30]  ;;  %v16903_v53 = vunpack.c.l.s4 %v20543_v8  ;;  %s27466_s2 = sld [smem:[#allocation11_spill]]  ;;  %s27468_s13 = sld [smem:[#allocation28_spill]]  ;;  %vm16942_vm7 = vcmp.lt.s32.totalorder %v854_v32, 768 }
0x199e   : > { %v16615_v27 = vor.u32 %v19059_v44, %v19058_v26 }
0x199f   : > { %v16904_v42 = vunpack.c.0.s8 %v16903_v53 }
0x19a0   : > { %v16740_v21 = vrot.slane %v16615_v27, %v20957_v5  ;;  %v16748_v9 = vrot.slane %v16615_v27, %v21167_v28  ;;  %v16744_v18 = vrot.slane %v16615_v27, %v20831_v50  ;;  %v16752_v10 = vrot.slane %v16615_v27, %v20966_v12 }
0x19a1   : > { %v16907_v24 = vsub.s32 %v16904_v42, %v20809_v41  ;;  %v16756_v52 = vrot.slane %v16615_v27, %v21377_v62  ;;  %v16760_v6 = vrot.slane %v16615_v27, %v21182_v39 }
0x19a3   : > { %s27467_s10 = smul.u32 6, %s27466_s2 }
0x19a5   : > { %s850_s3 = scalar_lea.vmem %s27468_s13, %s27467_s10 }
0x1a52   : > { %v16804_v13 = vpop.f32.mrb[68].mxu0  ;;  %v16845_v56 = vpop.f32.mrb[80].mxu1 }
0x1a53   : > { %v16805_v14 = vadd.f32 %v16804_v13, %v16740_v21  ;;  %v16846_v15 = vadd.f32 %v16845_v56, %v16748_v9  ;;  %v16806_v59 = vpop.f32.mrb[69].mxu0  ;;  %v16847_v37 = vpop.f32.mrb[81].mxu1 }
0x1a54   : > { %v16807_v35 = vadd.f32 %v16806_v59, %v16744_v18  ;;  %v16848_v1 = vadd.f32 %v16847_v37, %v16752_v10  ;;  %v16808_v60 = vpop.f32.mrb[70].mxu0  ;;  %v16849_v30 = vpop.f32.mrb[82].mxu1 }
0x1a55   : > { %v16809_v5 = vpop.f32.mrb[71].mxu0  ;;  %v16850_v25 = vpop.f32.mrb[83].mxu1 }
0x1a56   : > { %v16899_v28 = vcombine.low %v16805_v14, %v16807_v35  ;;  %v16900_v34 = vcombine.low %v16846_v15, %v16848_v1 }
0x1a58   : > { %v16908_v50 = vrot.slane %v16899_v28, %v16907_v24  ;;  %v16915_v33 = vrot.slane %v16900_v34, %v16907_v24 }
0x1a5a   : > { %v16923_v12 = vcombine.low %v16908_v50, %v16915_v33 }
0x1a5c   : > { %v16930_v46 = vrot.slane %v16923_v12, %v16907_v24 }
0x1a62   : > { %v16886_v43 = vpop.f32.mrb[72].mxu0 }
0x1a63   : > { %v16887_v23 = vadd.f32 %v16886_v43, %v16756_v52  ;;  %v16888_v38 = vpop.f32.mrb[73].mxu0 }
0x1a64   : > { %v16889_v45 = vadd.f32 %v16888_v38, %v16760_v6  ;;  %v16890_v41 = vpop.f32.mrb[74].mxu0 }
0x1a65   : > { %v16891_v48 = vpop.f32.mrb[75].mxu0 }
0x1a66   : > { %v16901_v61 = vcombine.low %v16887_v23, %v16889_v45 }
0x1a68   : > { %v16922_v19 = vrot.slane %v16901_v61, %v16907_v24 }
0x1a6a   : > { %v16937_v0 = vrot.slane %v16922_v19, %v16907_v24 }
0x1a6c   : > { %v16938_v62 = vcombine.low %v16930_v46, %v16937_v0 }
0x1a6e   : > { %16944 = vst.msk [vmem:[%s850_s3] sm:$0x3f] %vm16942_vm7, %v16938_v62 }
0x1a6f PF: > { %s27469_s11 = sld [smem:[#allocation7_spill]]  ;;  %s27470_s0 = sld [smem:[#allocation5_spill]] }
0x1a75   : > { %p19562_p5 = scmp.ge.s32.totalorder %s27469_s11, 2  ;;  %s16977_s29 = sand.u32 1, %s27470_s0  }
0x1a76   : > { %s16978_s14 = scalar_lea.sflag [#allocation3], %s16977_s29 }
0x1a77   : > { %p19559_p1 = pnand %p19562_p5, %p20731_p6 }
0x1a79   : > { %20520 = dma.done.wait (!%p19559_p1), %s16978_s14, 16  }
0x1a7a   : > { %20522 = vsyncadd (!%p19559_p1), %s16978_s14, 4294967280  ;;  %s27472_s30 = sld [smem:[#allocation8_spill]]  ;;  %s27473_s1 = sld [smem:[#allocation6_spill]] }
0x1a7b   : > { %s27474_s9 = sld [smem:[#allocation9_spill]]  ;;  %s27475_s8 = smov %s20529_s5 }
0x1a80   : > { %p39_p2 = scmp.ge.s32.totalorder %s27472_s30, 4   ;;  %s27476_s5 = smov %s27473_s1 }
0x1a82   :  { %41 = sbr.rel (!%p39_p2) target bundleno = 21 (0x15), region = 181 }
0x1a89   :  { %16989 = vsyncpa [#allocation3], 1 }
0x1a8a   :  { %16991 = vsyncpa [#allocation3 + $0x1], 1 }

</bundles_post_ra>
